<compile_context>
chip_gen: v7x
topology: tpu7x:2x2x1
jax: 0.10.0
libtpu: 0.0.40
codegen_flags: <defaults>
</compile_context>

<pallas_src>
import jax
import jax.numpy as jnp
from jax.experimental import pallas as pl
from jax.experimental.pallas import tpu as pltpu

# ------------------------- toy configuration (scaled-down model) ----------------------
B = 2            # batch
T = 16           # valid time frames
T_PAD = 128      # time padded to one full lane width (multiple of 128)
FEAT_DIM = 128   # SSL feature dim      (768 in the real model)
CHANNELS = 64    # TDNN channels        (512)
C_LAST = 128     # channels[-1]         (1536)
EMB = 32         # embedding dim        (256)
ATT = 32         # attention channels   (128)
SE_DIM = 32      # SE bottleneck        (128)
SCALE = 8
NUMS = SCALE - 1
WIDTH = CHANNELS // SCALE
FEAT_NUM = 3     # number of SSL hidden-state layers
DILATIONS = (2, 3, 4)
EPS_BN = 1e-5
EPS_IN = 1e-5

assert CHANNELS % SCALE == 0 and T <= T_PAD - 4 and T_PAD % 128 == 0


# ------------------------------- small in-kernel helpers ------------------------------
def _lane_mask():
    """(1, T_PAD) float mask of the valid frames (time on the lane axis)."""
    t = jax.lax.broadcasted_iota(jnp.int32, (1, T_PAD), 1)
    return (t < T).astype(jnp.float32)


def _shift_t(x, s):
    """result[:, t] = x[:, t + s]; wrapped lanes land in the masked (invalid) region.

    Correctness invariant: every tensor fed into a roll (or a 1/T mean) must be exactly
    zero on the padded lanes -- upheld by the `* lmask` after every epilogue below.
    """
    if s == 0:
        return x
    return pltpu.roll(x, shift=(-s) % T_PAD, axis=1)


def _rep_spec(p):
    """BlockSpec mapping the full parameter array to every grid step (stays VMEM-resident)."""
    n = p.ndim
    return pl.BlockSpec(p.shape, lambda *_: (0,) * n)


# ------------------------------- the fused kernel --------------------------------------
def _ecapa_kernel(wsm_ref, hs_ref,
                  l1w_ref, l1e_ref,
                  bw1_ref, be1_ref, bwr_ref, ber_ref, bw2_ref, be2_ref,
                  sw1_ref, sb1_ref, sw2_ref, sb2_ref,
                  wc_ref, bc_ref,
                  wa1_ref, ba1_ref, wa2_ref, ba2_ref,
                  he_ref, whm_ref, whs_ref, hb_ref,
                  tf_ref, emb_ref):
    lmask = _lane_mask()
    bf16 = jnp.bfloat16

    # ---- front: softmax-weighted SSL layer mix + 1e-6 + InstanceNorm1d (channel-major) ----
    feat = wsm_ref[0] * hs_ref[0, 0]                              # (D, T_PAD)
    for f in range(1, FEAT_NUM):
        feat = feat + wsm_ref[f] * hs_ref[f, 0]
    x = feat + 1e-6
    mean = jnp.sum(x * lmask, axis=1, keepdims=True) * (1.0 / T)  # per-channel over valid frames
    cen = (x - mean) * lmask
    var = jnp.sum(cen * cen, axis=1, keepdims=True) * (1.0 / T)
    xn = cen * jax.lax.rsqrt(var + EPS_IN)                        # zero on padded frames

    # ---- layer1: conv1d(k=5, pad=2) as one bf16 im2col matmul (lane rolls + sublane concat)
    slab = jnp.concatenate(
        [_shift_t(xn, s).astype(bf16) for s in (-2, -1, 0, 1, 2)], axis=0)   # (5D, T_PAD) bf16
    y = jnp.dot(l1w_ref[...], slab, preferred_element_type=jnp.float32)      # (C, T_PAD) f32
    y = (jnp.maximum(y + l1e_ref[0], 0.0) * l1e_ref[1] + l1e_ref[2]) * lmask

    # ---- three fused SE_Res2Blocks: all intermediates stay in VMEM/vregs -------------------
    block_outs = []
    xb = y                                                        # (C, T_PAD), zero on pads
    for i, d in enumerate(DILATIONS):
        # Conv1dReluBn #1 (1x1)
        y1 = jnp.dot(bw1_ref[i], xb.astype(bf16), preferred_element_type=jnp.float32)
        y1 = (jnp.maximum(y1 + be1_ref[i, 0], 0.0) * be1_ref[i, 1] + be1_ref[i, 2]) * lmask

        # Res2Conv1dReluBn: serial chain over SCALE groups, K=3 dilated convs as im2col matmuls
        outs = []
        sp = None
        for g in range(NUMS):
            grp = y1[g * WIDTH:(g + 1) * WIDTH, :]
            sp = grp if g == 0 else sp + grp
            slab_g = jnp.concatenate(
                [_shift_t(sp, -d), sp, _shift_t(sp, d)], axis=0).astype(bf16)  # (3W, T_PAD)
            z = jnp.dot(bwr_ref[i, g], slab_g, preferred_element_type=jnp.float32)
            sp = (jnp.maximum(z + ber_ref[i, g, 0], 0.0) * ber_ref[i, g, 1]
                  + ber_ref[i, g, 2]) * lmask
            outs.append(sp)
        outs.append(y1[NUMS * WIDTH:, :])

        # Conv1dReluBn #2 (1x1): pre-split weight, accumulate per group (concat stays virtual)
        y2 = jnp.dot(bw2_ref[i, 0], outs[0].astype(bf16), preferred_element_type=jnp.float32)
        for g in range(1, SCALE):
            y2 = y2 + jnp.dot(bw2_ref[i, g], outs[g].astype(bf16),
                              preferred_element_type=jnp.float32)
        y2 = (jnp.maximum(y2 + be2_ref[i, 0], 0.0) * be2_ref[i, 1] + be2_ref[i, 2]) * lmask

        # SE_Connect (tiny column matmuls, kept in f32)
        s = jnp.sum(y2, axis=1, keepdims=True) * (1.0 / T)        # mean over valid frames
        h = jnp.maximum(jnp.dot(sw1_ref[i], s, preferred_element_type=jnp.float32)
                        + sb1_ref[i], 0.0)
        g = jax.nn.sigmoid(jnp.dot(sw2_ref[i], h, preferred_element_type=jnp.float32)
                           + sb2_ref[i])

        xb = y2 * g + xb                                          # residual (in_ch == out_ch)
        block_outs.append(xb)

    out2, out3, out4 = block_outs

    # ---- tail: 1x1 cat-conv over the virtual [out2|out3|out4] concat --------------------
    tf = (jnp.dot(wc_ref[0], out2.astype(bf16), preferred_element_type=jnp.float32)
          + jnp.dot(wc_ref[1], out3.astype(bf16), preferred_element_type=jnp.float32)
          + jnp.dot(wc_ref[2], out4.astype(bf16), preferred_element_type=jnp.float32)
          + bc_ref[...])                                          # (C_LAST, T_PAD) f32
    tf_ref[0] = tf[:, :T]                                         # write only valid frames

    # ---- AttentiveStatsPool over relu(tf), statistics in f32 ----------------------------
    xa = jnp.maximum(tf, 0.0) * lmask
    a = jnp.tanh(jnp.dot(wa1_ref[...], xa.astype(bf16),
                         preferred_element_type=jnp.float32) + ba1_ref[...])
    logits = jnp.dot(wa2_ref[...], a.astype(bf16),
                     preferred_element_type=jnp.float32) + ba2_ref[...]
    logits = logits * lmask - 1e30 * (1.0 - lmask)                # exclude padded frames
    m = jnp.max(logits, axis=1, keepdims=True)
    e = jnp.exp(logits - m)
    alpha = e / jnp.sum(e, axis=1, keepdims=True)                 # softmax over time (f32)
    mean_p = jnp.sum(alpha * xa, axis=1, keepdims=True)           # (C_LAST, 1)
    var_p = jnp.sum(alpha * xa * xa, axis=1, keepdims=True) - mean_p * mean_p
    std_p = jnp.sqrt(jnp.maximum(var_p, 1e-9))

    # ---- head: eval-BN (folded) + Linear; [mean|std] concat stays virtual ----------------
    nm = mean_p * he_ref[0] + he_ref[1]
    ns = std_p * he_ref[2] + he_ref[3]
    # lane-dense (1, EMB) embedding row via broadcast-multiply + sublane reduction (tiny).
    emb = (jnp.sum(nm * whm_ref[...], axis=0, keepdims=True)
           + jnp.sum(ns * whs_ref[...], axis=0, keepdims=True)
           + hb_ref[...])                                         # (1, EMB)
    emb_ref[0] = emb


def ecapa_fused(hs_cm, kp):
    params = (kp["l1_w"], kp["l1_e"],
              kp["bw1"], kp["be1"], kp["bwr"], kp["ber"], kp["bw2"], kp["be2"],
              kp["sw1"], kp["sb1"], kp["sw2"], kp["sb2"],
              kp["cat_w"], kp["cat_b"],
              kp["asp_w1"], kp["asp_b1"], kp["asp_w2"], kp["asp_b2"],
              kp["head_eps"], kp["head_wm"], kp["head_ws"], kp["head_b"])
    tf, emb = pl.pallas_call(
        _ecapa_kernel,
        out_shape=(jax.ShapeDtypeStruct((B, C_LAST, T), jnp.float32),
                   jax.ShapeDtypeStruct((B, 1, EMB), jnp.float32)),
        grid=(B,),
        in_specs=[pl.BlockSpec(memory_space=pltpu.MemorySpace.SMEM),            # softmax weights
                  pl.BlockSpec((FEAT_NUM, 1, FEAT_DIM, T_PAD), lambda b: (0, b, 0, 0))]
                 + [_rep_spec(p) for p in params],
        out_specs=(pl.BlockSpec((1, C_LAST, T), lambda b: (b, 0, 0)),
                   pl.BlockSpec((1, 1, EMB), lambda b: (b, 0, 0))),
        compiler_params=pltpu.CompilerParams(
            dimension_semantics=("parallel",),
            # toy working set is tiny; at production sizes re-derive per generation
            # (v5e 16 MiB default scoped, v7x 64 MiB physical) and add a T-chunk grid axis.
            vmem_limit_bytes=32 * 1024 * 1024),
    )(kp["wsm"], hs_cm, *params)
    return emb[:, 0, :], tf


# ------------------------------- parameter packing (torch layouts -> kernel layouts) ---
def _fold_bn(bn):
    s = bn["gamma"] * jax.lax.rsqrt(bn["rv"] + EPS_BN)
    return s, bn["beta"] - bn["rm"] * s


def _conv_epilogue(bias, bn):
    s, t = _fold_bn(bn)
    return jnp.stack([bias, s, t], axis=0)[..., None]          # (3, C, 1): bias, BN scale, shift


def _im2col_w(w):
    """torch Conv1d weight (out, in, K) -> (out, K*in), tap-major (matches the shift order)."""
    c_out, c_in, k = w.shape
    return jnp.transpose(w, (0, 2, 1)).reshape(c_out, k * c_in)


def _pack_block(bp):
    w2 = bp["conv2"]["w"][:, :, 0]                                                  # (C, C)
    w2_split = jnp.transpose(w2.reshape(CHANNELS, SCALE, WIDTH), (1, 0, 2))         # (S, C, W)
    return dict(
        w1=bp["conv1"]["w"][:, :, 0].astype(jnp.bfloat16),
        e1=_conv_epilogue(bp["conv1"]["b"], bp["bn1"]),
        wr=jnp.stack([_im2col_w(c["w"]) for c in bp["res2"]], axis=0).astype(jnp.bfloat16),
        er=jnp.stack([_conv_epilogue(c["b"], c["bn"]) for c in bp["res2"]], axis=0),
        w2=w2_split.astype(jnp.bfloat16),
        e2=_conv_epilogue(bp["conv2"]["b"], bp["bn2"]),
        se_w1=bp["se"]["w1"], se_b1=bp["se"]["b1"][:, None],
        se_w2=bp["se"]["w2"], se_b2=bp["se"]["b2"][:, None],
    )


def pack_params(p):
    """Fold eval-BN into scale/shift, im2col + bf16 conv weights, pre-split concat weights,
    and stack the three identically-shaped SE_Res2Block parameter sets along a leading axis."""
    blocks = [_pack_block(p["layer2"]), _pack_block(p["layer3"]), _pack_block(p["layer4"])]

    def stk(key):
        return jnp.stack([b[key] for b in blocks], axis=0)

    hs_s, hs_t = _fold_bn(p["head"]["bn"])                                         # (2*C_LAST,)
    head_eps = jnp.stack([hs_s[:C_LAST], hs_t[:C_LAST], hs_s[C_LAST:], hs_t[C_LAST:]],
                         axis=0)[..., None]
    wcat = p["conv"]["w"][:, :, 0]                                                 # (C_LAST, 3C)
    cat_w = jnp.transpose(wcat.reshape(C_LAST, 3, CHANNELS), (1, 0, 2)).astype(jnp.bfloat16)
    return dict(
        wsm=jax.nn.softmax(p["feature_weight"]),
        l1_w=_im2col_w(p["layer1"]["conv"]["w"]).astype(jnp.bfloat16),
        l1_e=_conv_epilogue(p["layer1"]["conv"]["b"], p["layer1"]["bn"]),
        bw1=stk("w1"), be1=stk("e1"), bwr=stk("wr"), ber=stk("er"),
        bw2=stk("w2"), be2=stk("e2"),
        sw1=stk("se_w1"), sb1=stk("se_b1"), sw2=stk("se_w2"), sb2=stk("se_b2"),
        cat_w=cat_w, cat_b=p["conv"]["b"][:, None],
        asp_w1=p["pool"]["w1"][:, :, 0].astype(jnp.bfloat16), asp_b1=p["pool"]["b1"][:, None],
        asp_w2=p["pool"]["w2"][:, :, 0].astype(jnp.bfloat16), asp_b2=p["pool"]["b2"][:, None],
        head_eps=head_eps,
        head_wm=jnp.transpose(p["head"]["linear_w"][:, :C_LAST]),   # (C_LAST, EMB)
        head_ws=jnp.transpose(p["head"]["linear_w"][:, C_LAST:]),   # (C_LAST, EMB)
        head_b=p["head"]["linear_b"][None, :],                      # (1, EMB)
    )


# ------------------------------- forward ------------------------------------------------
def ecapa_forward(hidden_states, params):
    kp = pack_params(params)
    # wrapper-side layout plumbing: (feat_num, B, T, D) -> channel-major (feat_num, B, D, T_PAD)
    # with zero time padding (padded frames stay zero and are masked inside the kernel).
    hs_cm = jnp.pad(jnp.transpose(hidden_states, (0, 1, 3, 2)),
                    ((0, 0), (0, 0), (0, 0), (0, T_PAD - T)))
    emb, time_feature = ecapa_fused(hs_cm, kp)
    return emb, time_feature


# ------------------------------- deterministic parameter init ---------------------------
def init_params(key):
    keys = iter(jax.random.split(key, 256))

    def nrm(shape, s=0.05):
        return (s * jax.random.normal(next(keys), shape)).astype(jnp.float32)

    def bnp(c):
        return dict(gamma=(1.0 + 0.1 * jax.random.normal(next(keys), (c,))).astype(jnp.float32),
                    beta=nrm((c,), 0.1),
                    rm=nrm((c,), 0.1),
                    rv=(1.0 + 0.1 * jax.random.uniform(next(keys), (c,))).astype(jnp.float32))

    def conv(c_out, c_in, k):
        return dict(w=nrm((c_out, c_in, k)), b=nrm((c_out,), 0.1))

    def block(c):
        wd = c // SCALE
        return dict(
            conv1=conv(c, c, 1), bn1=bnp(c),
            res2=[dict(w=nrm((wd, wd, 3)), b=nrm((wd,), 0.1), bn=bnp(wd)) for _ in range(NUMS)],
            conv2=conv(c, c, 1), bn2=bnp(c),
            se=dict(w1=nrm((SE_DIM, c)), b1=nrm((SE_DIM,), 0.1),
                    w2=nrm((c, SE_DIM)), b2=nrm((c,), 0.1)),
        )

    return dict(
        feature_weight=jnp.zeros((FEAT_NUM,), jnp.float32),
        layer1=dict(conv=conv(CHANNELS, FEAT_DIM, 5), bn=bnp(CHANNELS)),
        layer2=block(CHANNELS), layer3=block(CHANNELS), layer4=block(CHANNELS),
        conv=conv(C_LAST, 3 * CHANNELS, 1),
        pool=dict(w1=nrm((ATT, C_LAST, 1)), b1=nrm((ATT,), 0.1),
                  w2=nrm((C_LAST, ATT, 1)), b2=nrm((C_LAST,), 0.1)),
        head=dict(bn=bnp(2 * C_LAST),
                  linear_w=nrm((EMB, 2 * C_LAST)), linear_b=nrm((EMB,), 0.1)),
    )


# ------------------------------- main ----------------------------------------------------
if __name__ == "__main__":
    key = jax.random.PRNGKey(0)
    k_in, k_par = jax.random.split(key)
    hidden_states = jax.random.normal(k_in, (FEAT_NUM, B, T, FEAT_DIM), dtype=jnp.float32)
    params = init_params(k_par)

    fwd = jax.jit(ecapa_forward)
    emb, time_feature = fwd(hidden_states, params)
    jax.block_until_ready((emb, time_feature))

    assert emb.shape == (B, EMB), emb.shape
    assert time_feature.shape == (B, C_LAST, T), time_feature.shape
    assert bool(jnp.all(jnp.isfinite(emb))) and bool(jnp.all(jnp.isfinite(time_feature)))
    print("KERNEL_OK")
</pallas_src>

<mosaic_0001>
module attributes {stable_mosaic.version = 11 : i64} {
  func.func @_ecapa_kernel(%arg0: i32, %arg1: memref<3xf32, #tpu.memory_space<smem>>, %arg2: memref<3x1x128x128xf32, #tpu.memory_space<vmem>>, %arg3: memref<64x640xbf16, #tpu.memory_space<vmem>>, %arg4: memref<3x64x1xf32, #tpu.memory_space<vmem>>, %arg5: memref<3x64x64xbf16, #tpu.memory_space<vmem>>, %arg6: memref<3x3x64x1xf32, #tpu.memory_space<vmem>>, %arg7: memref<3x7x8x24xbf16, #tpu.memory_space<vmem>>, %arg8: memref<3x7x3x8x1xf32, #tpu.memory_space<vmem>>, %arg9: memref<3x8x64x8xbf16, #tpu.memory_space<vmem>>, %arg10: memref<3x3x64x1xf32, #tpu.memory_space<vmem>>, %arg11: memref<3x32x64xf32, #tpu.memory_space<vmem>>, %arg12: memref<3x32x1xf32, #tpu.memory_space<vmem>>, %arg13: memref<3x64x32xf32, #tpu.memory_space<vmem>>, %arg14: memref<3x64x1xf32, #tpu.memory_space<vmem>>, %arg15: memref<3x128x64xbf16, #tpu.memory_space<vmem>>, %arg16: memref<128x1xf32, #tpu.memory_space<vmem>>, %arg17: memref<32x128xbf16, #tpu.memory_space<vmem>>, %arg18: memref<32x1xf32, #tpu.memory_space<vmem>>, %arg19: memref<128x32xbf16, #tpu.memory_space<vmem>>, %arg20: memref<128x1xf32, #tpu.memory_space<vmem>>, %arg21: memref<4x128x1xf32, #tpu.memory_space<vmem>>, %arg22: memref<128x32xf32, #tpu.memory_space<vmem>>, %arg23: memref<128x32xf32, #tpu.memory_space<vmem>>, %arg24: memref<1x32xf32, #tpu.memory_space<vmem>>, %arg25: memref<1x128x16xf32, #tpu.memory_space<vmem>>, %arg26: memref<1x1x32xf32, #tpu.memory_space<vmem>>) attributes {dimension_semantics = [#tpu.dimension_semantics<parallel>], iteration_bounds = array<i64: 2>, scalar_prefetch = 0 : i64, scratch_operands = 0 : i64, tpu.core_type = #tpu.core_type<tc>, window_params = [{transform_indices = @transform_0, window_bounds = array<i64: 3>}, {transform_indices = @transform_1, window_bounds = array<i64: 3, 1, 128, 128>}, {pipeline_mode = #tpu.pipeline_mode<synchronous>, transform_indices = @transform_2, window_bounds = array<i64: 64, 640>}, {pipeline_mode = #tpu.pipeline_mode<synchronous>, transform_indices = @transform_3, window_bounds = array<i64: 3, 64, 1>}, {pipeline_mode = #tpu.pipeline_mode<synchronous>, transform_indices = @transform_4, window_bounds = array<i64: 3, 64, 64>}, {pipeline_mode = #tpu.pipeline_mode<synchronous>, transform_indices = @transform_5, window_bounds = array<i64: 3, 3, 64, 1>}, {pipeline_mode = #tpu.pipeline_mode<synchronous>, transform_indices = @transform_6, window_bounds = array<i64: 3, 7, 8, 24>}, {pipeline_mode = #tpu.pipeline_mode<synchronous>, transform_indices = @transform_7, window_bounds = array<i64: 3, 7, 3, 8, 1>}, {pipeline_mode = #tpu.pipeline_mode<synchronous>, transform_indices = @transform_8, window_bounds = array<i64: 3, 8, 64, 8>}, {pipeline_mode = #tpu.pipeline_mode<synchronous>, transform_indices = @transform_9, window_bounds = array<i64: 3, 3, 64, 1>}, {pipeline_mode = #tpu.pipeline_mode<synchronous>, transform_indices = @transform_10, window_bounds = array<i64: 3, 32, 64>}, {pipeline_mode = #tpu.pipeline_mode<synchronous>, transform_indices = @transform_11, window_bounds = array<i64: 3, 32, 1>}, {pipeline_mode = #tpu.pipeline_mode<synchronous>, transform_indices = @transform_12, window_bounds = array<i64: 3, 64, 32>}, {pipeline_mode = #tpu.pipeline_mode<synchronous>, transform_indices = @transform_13, window_bounds = array<i64: 3, 64, 1>}, {pipeline_mode = #tpu.pipeline_mode<synchronous>, transform_indices = @transform_14, window_bounds = array<i64: 3, 128, 64>}, {pipeline_mode = #tpu.pipeline_mode<synchronous>, transform_indices = @transform_15, window_bounds = array<i64: 128, 1>}, {pipeline_mode = #tpu.pipeline_mode<synchronous>, transform_indices = @transform_16, window_bounds = array<i64: 32, 128>}, {pipeline_mode = #tpu.pipeline_mode<synchronous>, transform_indices = @transform_17, window_bounds = array<i64: 32, 1>}, {pipeline_mode = #tpu.pipeline_mode<synchronous>, transform_indices = @transform_18, window_bounds = array<i64: 128, 32>}, {pipeline_mode = #tpu.pipeline_mode<synchronous>, transform_indices = @transform_19, window_bounds = array<i64: 128, 1>}, {pipeline_mode = #tpu.pipeline_mode<synchronous>, transform_indices = @transform_20, window_bounds = array<i64: 4, 128, 1>}, {pipeline_mode = #tpu.pipeline_mode<synchronous>, transform_indices = @transform_21, window_bounds = array<i64: 128, 32>}, {pipeline_mode = #tpu.pipeline_mode<synchronous>, transform_indices = @transform_22, window_bounds = array<i64: 128, 32>}, {pipeline_mode = #tpu.pipeline_mode<synchronous>, transform_indices = @transform_23, window_bounds = array<i64: 1, 32>}, {transform_indices = @transform_24, window_bounds = array<i64: 1, 128, 16>}, {transform_indices = @transform_25, window_bounds = array<i64: 1, 1, 32>}]} {
    %0 = tpu.iota {dimensions = array<i32: 1>} : vector<1x128xi32>
    %c16_i32 = arith.constant 16 : i32
    %1 = vector.broadcast %c16_i32 : i32 to vector<1x128xi32>
    %2 = arith.cmpi slt, %0, %1 : vector<1x128xi32>
    %3 = arith.extui %2 : vector<1x128xi1> to vector<1x128xi32>
    %4 = arith.sitofp %3 : vector<1x128xi32> to vector<1x128xf32>
    %c0 = arith.constant 0 : index
    %5 = memref.load %arg1[%c0] : memref<3xf32, #tpu.memory_space<smem>>
    %c0_0 = arith.constant 0 : index
    %c0_1 = arith.constant 0 : index
    %c0_2 = arith.constant 0 : index
    %c0_3 = arith.constant 0 : index
    %6 = vector.load %arg2[%c0_0, %c0_1, %c0_2, %c0_3] : memref<3x1x128x128xf32, #tpu.memory_space<vmem>>, vector<1x1x128x128xf32>
    %7 = vector.shape_cast %6 : vector<1x1x128x128xf32> to vector<128x128xf32>
    %8 = vector.broadcast %5 : f32 to vector<128x128xf32>
    %9 = arith.mulf %8, %7 : vector<128x128xf32>
    %c1 = arith.constant 1 : index
    %10 = memref.load %arg1[%c1] : memref<3xf32, #tpu.memory_space<smem>>
    %c1_4 = arith.constant 1 : index
    %c0_5 = arith.constant 0 : index
    %c0_6 = arith.constant 0 : index
    %c0_7 = arith.constant 0 : index
    %11 = vector.load %arg2[%c1_4, %c0_5, %c0_6, %c0_7] : memref<3x1x128x128xf32, #tpu.memory_space<vmem>>, vector<1x1x128x128xf32>
    %12 = vector.shape_cast %11 : vector<1x1x128x128xf32> to vector<128x128xf32>
    %13 = vector.broadcast %10 : f32 to vector<128x128xf32>
    %14 = arith.mulf %13, %12 : vector<128x128xf32>
    %15 = arith.addf %9, %14 : vector<128x128xf32>
    %c2 = arith.constant 2 : index
    %16 = memref.load %arg1[%c2] : memref<3xf32, #tpu.memory_space<smem>>
    %c2_8 = arith.constant 2 : index
    %c0_9 = arith.constant 0 : index
    %c0_10 = arith.constant 0 : index
    %c0_11 = arith.constant 0 : index
    %17 = vector.load %arg2[%c2_8, %c0_9, %c0_10, %c0_11] : memref<3x1x128x128xf32, #tpu.memory_space<vmem>>, vector<1x1x128x128xf32>
    %18 = vector.shape_cast %17 : vector<1x1x128x128xf32> to vector<128x128xf32>
    %19 = vector.broadcast %16 : f32 to vector<128x128xf32>
    %20 = arith.mulf %19, %18 : vector<128x128xf32>
    %21 = arith.addf %15, %20 : vector<128x128xf32>
    %cst = arith.constant 9.99999997E-7 : f32
    %22 = vector.broadcast %cst : f32 to vector<128x128xf32>
    %23 = arith.addf %21, %22 : vector<128x128xf32>
    %24 = vector.broadcast %4 : vector<1x128xf32> to vector<128x128xf32>
    %25 = arith.mulf %23, %24 : vector<128x128xf32>
    %cst_12 = arith.constant dense<0.000000e+00> : vector<128xf32>
    %26 = vector.multi_reduction <add>, %25, %cst_12 [1] : vector<128x128xf32> to vector<128xf32>
    %27 = vector.shape_cast %26 : vector<128xf32> to vector<128x1xf32>
    %cst_13 = arith.constant 6.250000e-02 : f32
    %28 = vector.broadcast %cst_13 : f32 to vector<128x1xf32>
    %29 = arith.mulf %27, %28 : vector<128x1xf32>
    %30 = vector.broadcast %29 : vector<128x1xf32> to vector<128x128xf32>
    %31 = arith.subf %23, %30 : vector<128x128xf32>
    %32 = vector.broadcast %4 : vector<1x128xf32> to vector<128x128xf32>
    %33 = arith.mulf %31, %32 : vector<128x128xf32>
    %34 = arith.mulf %33, %33 : vector<128x128xf32>
    %cst_14 = arith.constant dense<0.000000e+00> : vector<128xf32>
    %35 = vector.multi_reduction <add>, %34, %cst_14 [1] : vector<128x128xf32> to vector<128xf32>
    %36 = vector.shape_cast %35 : vector<128xf32> to vector<128x1xf32>
    %cst_15 = arith.constant 6.250000e-02 : f32
    %37 = vector.broadcast %cst_15 : f32 to vector<128x1xf32>
    %38 = arith.mulf %36, %37 : vector<128x1xf32>
    %cst_16 = arith.constant 9.99999974E-6 : f32
    %39 = vector.broadcast %cst_16 : f32 to vector<128x1xf32>
    %40 = arith.addf %38, %39 : vector<128x1xf32>
    %41 = math.rsqrt %40 : vector<128x1xf32>
    %42 = vector.broadcast %41 : vector<128x1xf32> to vector<128x128xf32>
    %43 = arith.mulf %33, %42 : vector<128x128xf32>
    %c2_i32 = arith.constant 2 : i32
    %44 = tpu.dynamic_rotate %43 by %c2_i32 dim 1 : vector<128x128xf32>, i32 -> vector<128x128xf32>
    %45 = arith.truncf %44 : vector<128x128xf32> to vector<128x128xbf16>
    %c1_i32 = arith.constant 1 : i32
    %46 = tpu.dynamic_rotate %43 by %c1_i32 dim 1 : vector<128x128xf32>, i32 -> vector<128x128xf32>
    %47 = arith.truncf %46 : vector<128x128xf32> to vector<128x128xbf16>
    %48 = arith.truncf %43 : vector<128x128xf32> to vector<128x128xbf16>
    %c127_i32 = arith.constant 127 : i32
    %49 = tpu.dynamic_rotate %43 by %c127_i32 dim 1 : vector<128x128xf32>, i32 -> vector<128x128xf32>
    %50 = arith.truncf %49 : vector<128x128xf32> to vector<128x128xbf16>
    %c126_i32 = arith.constant 126 : i32
    %51 = tpu.dynamic_rotate %43 by %c126_i32 dim 1 : vector<128x128xf32>, i32 -> vector<128x128xf32>
    %52 = arith.truncf %51 : vector<128x128xf32> to vector<128x128xbf16>
    %53 = tpu.concatenate %45, %47, %48, %50, %52 in 0 : vector<128x128xbf16>, vector<128x128xbf16>, vector<128x128xbf16>, vector<128x128xbf16>, vector<128x128xbf16> -> vector<640x128xbf16>
    %c0_17 = arith.constant 0 : index
    %c0_18 = arith.constant 0 : index
    %54 = vector.load %arg3[%c0_17, %c0_18] : memref<64x640xbf16, #tpu.memory_space<vmem>>, vector<64x640xbf16>
    %cst_19 = arith.constant dense<0.000000e+00> : vector<64x128xf32>
    %55 = tpu.matmul %54, %53, %cst_19 {dimension_numbers = #tpu.dot_dimension_numbers<[1], [0], [0], [1], [0, 0, 1, 1], [], []>} : vector<64x640xbf16>, vector<640x128xbf16>, vector<64x128xf32> -> vector<64x128xf32>
    %c0_20 = arith.constant 0 : index
    %c0_21 = arith.constant 0 : index
    %c0_22 = arith.constant 0 : index
    %56 = vector.load %arg4[%c0_20, %c0_21, %c0_22] : memref<3x64x1xf32, #tpu.memory_space<vmem>>, vector<1x64x1xf32>
    %57 = vector.shape_cast %56 : vector<1x64x1xf32> to vector<64x1xf32>
    %58 = vector.broadcast %57 : vector<64x1xf32> to vector<64x128xf32>
    %59 = arith.addf %55, %58 : vector<64x128xf32>
    %cst_23 = arith.constant 0.000000e+00 : f32
    %60 = vector.broadcast %cst_23 : f32 to vector<64x128xf32>
    %61 = arith.maximumf %59, %60 : vector<64x128xf32>
    %c1_24 = arith.constant 1 : index
    %c0_25 = arith.constant 0 : index
    %c0_26 = arith.constant 0 : index
    %62 = vector.load %arg4[%c1_24, %c0_25, %c0_26] : memref<3x64x1xf32, #tpu.memory_space<vmem>>, vector<1x64x1xf32>
    %63 = vector.shape_cast %62 : vector<1x64x1xf32> to vector<64x1xf32>
    %64 = vector.broadcast %63 : vector<64x1xf32> to vector<64x128xf32>
    %65 = arith.mulf %61, %64 : vector<64x128xf32>
    %c2_27 = arith.constant 2 : index
    %c0_28 = arith.constant 0 : index
    %c0_29 = arith.constant 0 : index
    %66 = vector.load %arg4[%c2_27, %c0_28, %c0_29] : memref<3x64x1xf32, #tpu.memory_space<vmem>>, vector<1x64x1xf32>
    %67 = vector.shape_cast %66 : vector<1x64x1xf32> to vector<64x1xf32>
    %68 = vector.broadcast %67 : vector<64x1xf32> to vector<64x128xf32>
    %69 = arith.addf %65, %68 : vector<64x128xf32>
    %70 = vector.broadcast %4 : vector<1x128xf32> to vector<64x128xf32>
    %71 = arith.mulf %69, %70 : vector<64x128xf32>
    %c0_30 = arith.constant 0 : index
    %c0_31 = arith.constant 0 : index
    %c0_32 = arith.constant 0 : index
    %72 = vector.load %arg5[%c0_30, %c0_31, %c0_32] : memref<3x64x64xbf16, #tpu.memory_space<vmem>>, vector<1x64x64xbf16>
    %73 = vector.shape_cast %72 : vector<1x64x64xbf16> to vector<64x64xbf16>
    %74 = arith.truncf %71 : vector<64x128xf32> to vector<64x128xbf16>
    %cst_33 = arith.constant dense<0.000000e+00> : vector<64x128xf32>
    %75 = tpu.matmul %73, %74, %cst_33 {dimension_numbers = #tpu.dot_dimension_numbers<[1], [0], [0], [1], [0, 0, 1, 1], [], []>} : vector<64x64xbf16>, vector<64x128xbf16>, vector<64x128xf32> -> vector<64x128xf32>
    %c0_34 = arith.constant 0 : index
    %c0_35 = arith.constant 0 : index
    %c0_36 = arith.constant 0 : index
    %c0_37 = arith.constant 0 : index
    %76 = vector.load %arg6[%c0_34, %c0_35, %c0_36, %c0_37] : memref<3x3x64x1xf32, #tpu.memory_space<vmem>>, vector<1x1x64x1xf32>
    %77 = vector.shape_cast %76 : vector<1x1x64x1xf32> to vector<64x1xf32>
    %78 = vector.broadcast %77 : vector<64x1xf32> to vector<64x128xf32>
    %79 = arith.addf %75, %78 : vector<64x128xf32>
    %cst_38 = arith.constant 0.000000e+00 : f32
    %80 = vector.broadcast %cst_38 : f32 to vector<64x128xf32>
    %81 = arith.maximumf %79, %80 : vector<64x128xf32>
    %c0_39 = arith.constant 0 : index
    %c1_40 = arith.constant 1 : index
    %c0_41 = arith.constant 0 : index
    %c0_42 = arith.constant 0 : index
    %82 = vector.load %arg6[%c0_39, %c1_40, %c0_41, %c0_42] : memref<3x3x64x1xf32, #tpu.memory_space<vmem>>, vector<1x1x64x1xf32>
    %83 = vector.shape_cast %82 : vector<1x1x64x1xf32> to vector<64x1xf32>
    %84 = vector.broadcast %83 : vector<64x1xf32> to vector<64x128xf32>
    %85 = arith.mulf %81, %84 : vector<64x128xf32>
    %c0_43 = arith.constant 0 : index
    %c2_44 = arith.constant 2 : index
    %c0_45 = arith.constant 0 : index
    %c0_46 = arith.constant 0 : index
    %86 = vector.load %arg6[%c0_43, %c2_44, %c0_45, %c0_46] : memref<3x3x64x1xf32, #tpu.memory_space<vmem>>, vector<1x1x64x1xf32>
    %87 = vector.shape_cast %86 : vector<1x1x64x1xf32> to vector<64x1xf32>
    %88 = vector.broadcast %87 : vector<64x1xf32> to vector<64x128xf32>
    %89 = arith.addf %85, %88 : vector<64x128xf32>
    %90 = vector.broadcast %4 : vector<1x128xf32> to vector<64x128xf32>
    %91 = arith.mulf %89, %90 : vector<64x128xf32>
    %92 = vector.extract_strided_slice %91 {offsets = [0, 0], sizes = [8, 128], strides = [1, 1]} : vector<64x128xf32> to vector<8x128xf32>
    %c2_i32_47 = arith.constant 2 : i32
    %93 = tpu.dynamic_rotate %92 by %c2_i32_47 dim 1 : vector<8x128xf32>, i32 -> vector<8x128xf32>
    %c126_i32_48 = arith.constant 126 : i32
    %94 = tpu.dynamic_rotate %92 by %c126_i32_48 dim 1 : vector<8x128xf32>, i32 -> vector<8x128xf32>
    %95 = tpu.concatenate %93, %92, %94 in 0 : vector<8x128xf32>, vector<8x128xf32>, vector<8x128xf32> -> vector<24x128xf32>
    %96 = arith.truncf %95 : vector<24x128xf32> to vector<24x128xbf16>
    %c0_49 = arith.constant 0 : index
    %c0_50 = arith.constant 0 : index
    %c0_51 = arith.constant 0 : index
    %c0_52 = arith.constant 0 : index
    %97 = vector.load %arg7[%c0_49, %c0_50, %c0_51, %c0_52] : memref<3x7x8x24xbf16, #tpu.memory_space<vmem>>, vector<1x1x8x24xbf16>
    %98 = vector.shape_cast %97 : vector<1x1x8x24xbf16> to vector<8x24xbf16>
    %cst_53 = arith.constant dense<0.000000e+00> : vector<8x128xf32>
    %99 = tpu.matmul %98, %96, %cst_53 {dimension_numbers = #tpu.dot_dimension_numbers<[1], [0], [0], [1], [0, 0, 1, 1], [], []>} : vector<8x24xbf16>, vector<24x128xbf16>, vector<8x128xf32> -> vector<8x128xf32>
    %c0_54 = arith.constant 0 : index
    %c0_55 = arith.constant 0 : index
    %c0_56 = arith.constant 0 : index
    %c0_57 = arith.constant 0 : index
    %c0_58 = arith.constant 0 : index
    %100 = vector.load %arg8[%c0_54, %c0_55, %c0_56, %c0_57, %c0_58] : memref<3x7x3x8x1xf32, #tpu.memory_space<vmem>>, vector<1x1x1x8x1xf32>
    %101 = vector.shape_cast %100 : vector<1x1x1x8x1xf32> to vector<8x1xf32>
    %102 = vector.broadcast %101 : vector<8x1xf32> to vector<8x128xf32>
    %103 = arith.addf %99, %102 : vector<8x128xf32>
    %cst_59 = arith.constant 0.000000e+00 : f32
    %104 = vector.broadcast %cst_59 : f32 to vector<8x128xf32>
    %105 = arith.maximumf %103, %104 : vector<8x128xf32>
    %c0_60 = arith.constant 0 : index
    %c0_61 = arith.constant 0 : index
    %c1_62 = arith.constant 1 : index
    %c0_63 = arith.constant 0 : index
    %c0_64 = arith.constant 0 : index
    %106 = vector.load %arg8[%c0_60, %c0_61, %c1_62, %c0_63, %c0_64] : memref<3x7x3x8x1xf32, #tpu.memory_space<vmem>>, vector<1x1x1x8x1xf32>
    %107 = vector.shape_cast %106 : vector<1x1x1x8x1xf32> to vector<8x1xf32>
    %108 = vector.broadcast %107 : vector<8x1xf32> to vector<8x128xf32>
    %109 = arith.mulf %105, %108 : vector<8x128xf32>
    %c0_65 = arith.constant 0 : index
    %c0_66 = arith.constant 0 : index
    %c2_67 = arith.constant 2 : index
    %c0_68 = arith.constant 0 : index
    %c0_69 = arith.constant 0 : index
    %110 = vector.load %arg8[%c0_65, %c0_66, %c2_67, %c0_68, %c0_69] : memref<3x7x3x8x1xf32, #tpu.memory_space<vmem>>, vector<1x1x1x8x1xf32>
    %111 = vector.shape_cast %110 : vector<1x1x1x8x1xf32> to vector<8x1xf32>
    %112 = vector.broadcast %111 : vector<8x1xf32> to vector<8x128xf32>
    %113 = arith.addf %109, %112 : vector<8x128xf32>
    %114 = vector.broadcast %4 : vector<1x128xf32> to vector<8x128xf32>
    %115 = arith.mulf %113, %114 : vector<8x128xf32>
    %116 = vector.extract_strided_slice %91 {offsets = [8, 0], sizes = [8, 128], strides = [1, 1]} : vector<64x128xf32> to vector<8x128xf32>
    %117 = arith.addf %115, %116 : vector<8x128xf32>
    %c2_i32_70 = arith.constant 2 : i32
    %118 = tpu.dynamic_rotate %117 by %c2_i32_70 dim 1 : vector<8x128xf32>, i32 -> vector<8x128xf32>
    %c126_i32_71 = arith.constant 126 : i32
    %119 = tpu.dynamic_rotate %117 by %c126_i32_71 dim 1 : vector<8x128xf32>, i32 -> vector<8x128xf32>
    %120 = tpu.concatenate %118, %117, %119 in 0 : vector<8x128xf32>, vector<8x128xf32>, vector<8x128xf32> -> vector<24x128xf32>
    %121 = arith.truncf %120 : vector<24x128xf32> to vector<24x128xbf16>
    %c0_72 = arith.constant 0 : index
    %c1_73 = arith.constant 1 : index
    %c0_74 = arith.constant 0 : index
    %c0_75 = arith.constant 0 : index
    %122 = vector.load %arg7[%c0_72, %c1_73, %c0_74, %c0_75] : memref<3x7x8x24xbf16, #tpu.memory_space<vmem>>, vector<1x1x8x24xbf16>
    %123 = vector.shape_cast %122 : vector<1x1x8x24xbf16> to vector<8x24xbf16>
    %cst_76 = arith.constant dense<0.000000e+00> : vector<8x128xf32>
    %124 = tpu.matmul %123, %121, %cst_76 {dimension_numbers = #tpu.dot_dimension_numbers<[1], [0], [0], [1], [0, 0, 1, 1], [], []>} : vector<8x24xbf16>, vector<24x128xbf16>, vector<8x128xf32> -> vector<8x128xf32>
    %c0_77 = arith.constant 0 : index
    %c1_78 = arith.constant 1 : index
    %c0_79 = arith.constant 0 : index
    %c0_80 = arith.constant 0 : index
    %c0_81 = arith.constant 0 : index
    %125 = vector.load %arg8[%c0_77, %c1_78, %c0_79, %c0_80, %c0_81] : memref<3x7x3x8x1xf32, #tpu.memory_space<vmem>>, vector<1x1x1x8x1xf32>
    %126 = vector.shape_cast %125 : vector<1x1x1x8x1xf32> to vector<8x1xf32>
    %127 = vector.broadcast %126 : vector<8x1xf32> to vector<8x128xf32>
    %128 = arith.addf %124, %127 : vector<8x128xf32>
    %cst_82 = arith.constant 0.000000e+00 : f32
    %129 = vector.broadcast %cst_82 : f32 to vector<8x128xf32>
    %130 = arith.maximumf %128, %129 : vector<8x128xf32>
    %c0_83 = arith.constant 0 : index
    %c1_84 = arith.constant 1 : index
    %c1_85 = arith.constant 1 : index
    %c0_86 = arith.constant 0 : index
    %c0_87 = arith.constant 0 : index
    %131 = vector.load %arg8[%c0_83, %c1_84, %c1_85, %c0_86, %c0_87] : memref<3x7x3x8x1xf32, #tpu.memory_space<vmem>>, vector<1x1x1x8x1xf32>
    %132 = vector.shape_cast %131 : vector<1x1x1x8x1xf32> to vector<8x1xf32>
    %133 = vector.broadcast %132 : vector<8x1xf32> to vector<8x128xf32>
    %134 = arith.mulf %130, %133 : vector<8x128xf32>
    %c0_88 = arith.constant 0 : index
    %c1_89 = arith.constant 1 : index
    %c2_90 = arith.constant 2 : index
    %c0_91 = arith.constant 0 : index
    %c0_92 = arith.constant 0 : index
    %135 = vector.load %arg8[%c0_88, %c1_89, %c2_90, %c0_91, %c0_92] : memref<3x7x3x8x1xf32, #tpu.memory_space<vmem>>, vector<1x1x1x8x1xf32>
    %136 = vector.shape_cast %135 : vector<1x1x1x8x1xf32> to vector<8x1xf32>
    %137 = vector.broadcast %136 : vector<8x1xf32> to vector<8x128xf32>
    %138 = arith.addf %134, %137 : vector<8x128xf32>
    %139 = vector.broadcast %4 : vector<1x128xf32> to vector<8x128xf32>
    %140 = arith.mulf %138, %139 : vector<8x128xf32>
    %141 = vector.extract_strided_slice %91 {offsets = [16, 0], sizes = [8, 128], strides = [1, 1]} : vector<64x128xf32> to vector<8x128xf32>
    %142 = arith.addf %140, %141 : vector<8x128xf32>
    %c2_i32_93 = arith.constant 2 : i32
    %143 = tpu.dynamic_rotate %142 by %c2_i32_93 dim 1 : vector<8x128xf32>, i32 -> vector<8x128xf32>
    %c126_i32_94 = arith.constant 126 : i32
    %144 = tpu.dynamic_rotate %142 by %c126_i32_94 dim 1 : vector<8x128xf32>, i32 -> vector<8x128xf32>
    %145 = tpu.concatenate %143, %142, %144 in 0 : vector<8x128xf32>, vector<8x128xf32>, vector<8x128xf32> -> vector<24x128xf32>
    %146 = arith.truncf %145 : vector<24x128xf32> to vector<24x128xbf16>
    %c0_95 = arith.constant 0 : index
    %c2_96 = arith.constant 2 : index
    %c0_97 = arith.constant 0 : index
    %c0_98 = arith.constant 0 : index
    %147 = vector.load %arg7[%c0_95, %c2_96, %c0_97, %c0_98] : memref<3x7x8x24xbf16, #tpu.memory_space<vmem>>, vector<1x1x8x24xbf16>
    %148 = vector.shape_cast %147 : vector<1x1x8x24xbf16> to vector<8x24xbf16>
    %cst_99 = arith.constant dense<0.000000e+00> : vector<8x128xf32>
    %149 = tpu.matmul %148, %146, %cst_99 {dimension_numbers = #tpu.dot_dimension_numbers<[1], [0], [0], [1], [0, 0, 1, 1], [], []>} : vector<8x24xbf16>, vector<24x128xbf16>, vector<8x128xf32> -> vector<8x128xf32>
    %c0_100 = arith.constant 0 : index
    %c2_101 = arith.constant 2 : index
    %c0_102 = arith.constant 0 : index
    %c0_103 = arith.constant 0 : index
    %c0_104 = arith.constant 0 : index
    %150 = vector.load %arg8[%c0_100, %c2_101, %c0_102, %c0_103, %c0_104] : memref<3x7x3x8x1xf32, #tpu.memory_space<vmem>>, vector<1x1x1x8x1xf32>
    %151 = vector.shape_cast %150 : vector<1x1x1x8x1xf32> to vector<8x1xf32>
    %152 = vector.broadcast %151 : vector<8x1xf32> to vector<8x128xf32>
    %153 = arith.addf %149, %152 : vector<8x128xf32>
    %cst_105 = arith.constant 0.000000e+00 : f32
    %154 = vector.broadcast %cst_105 : f32 to vector<8x128xf32>
    %155 = arith.maximumf %153, %154 : vector<8x128xf32>
    %c0_106 = arith.constant 0 : index
    %c2_107 = arith.constant 2 : index
    %c1_108 = arith.constant 1 : index
    %c0_109 = arith.constant 0 : index
    %c0_110 = arith.constant 0 : index
    %156 = vector.load %arg8[%c0_106, %c2_107, %c1_108, %c0_109, %c0_110] : memref<3x7x3x8x1xf32, #tpu.memory_space<vmem>>, vector<1x1x1x8x1xf32>
    %157 = vector.shape_cast %156 : vector<1x1x1x8x1xf32> to vector<8x1xf32>
    %158 = vector.broadcast %157 : vector<8x1xf32> to vector<8x128xf32>
    %159 = arith.mulf %155, %158 : vector<8x128xf32>
    %c0_111 = arith.constant 0 : index
    %c2_112 = arith.constant 2 : index
    %c2_113 = arith.constant 2 : index
    %c0_114 = arith.constant 0 : index
    %c0_115 = arith.constant 0 : index
    %160 = vector.load %arg8[%c0_111, %c2_112, %c2_113, %c0_114, %c0_115] : memref<3x7x3x8x1xf32, #tpu.memory_space<vmem>>, vector<1x1x1x8x1xf32>
    %161 = vector.shape_cast %160 : vector<1x1x1x8x1xf32> to vector<8x1xf32>
    %162 = vector.broadcast %161 : vector<8x1xf32> to vector<8x128xf32>
    %163 = arith.addf %159, %162 : vector<8x128xf32>
    %164 = vector.broadcast %4 : vector<1x128xf32> to vector<8x128xf32>
    %165 = arith.mulf %163, %164 : vector<8x128xf32>
    %166 = vector.extract_strided_slice %91 {offsets = [24, 0], sizes = [8, 128], strides = [1, 1]} : vector<64x128xf32> to vector<8x128xf32>
    %167 = arith.addf %165, %166 : vector<8x128xf32>
    %c2_i32_116 = arith.constant 2 : i32
    %168 = tpu.dynamic_rotate %167 by %c2_i32_116 dim 1 : vector<8x128xf32>, i32 -> vector<8x128xf32>
    %c126_i32_117 = arith.constant 126 : i32
    %169 = tpu.dynamic_rotate %167 by %c126_i32_117 dim 1 : vector<8x128xf32>, i32 -> vector<8x128xf32>
    %170 = tpu.concatenate %168, %167, %169 in 0 : vector<8x128xf32>, vector<8x128xf32>, vector<8x128xf32> -> vector<24x128xf32>
    %171 = arith.truncf %170 : vector<24x128xf32> to vector<24x128xbf16>
    %c0_118 = arith.constant 0 : index
    %c3 = arith.constant 3 : index
    %c0_119 = arith.constant 0 : index
    %c0_120 = arith.constant 0 : index
    %172 = vector.load %arg7[%c0_118, %c3, %c0_119, %c0_120] : memref<3x7x8x24xbf16, #tpu.memory_space<vmem>>, vector<1x1x8x24xbf16>
    %173 = vector.shape_cast %172 : vector<1x1x8x24xbf16> to vector<8x24xbf16>
    %cst_121 = arith.constant dense<0.000000e+00> : vector<8x128xf32>
    %174 = tpu.matmul %173, %171, %cst_121 {dimension_numbers = #tpu.dot_dimension_numbers<[1], [0], [0], [1], [0, 0, 1, 1], [], []>} : vector<8x24xbf16>, vector<24x128xbf16>, vector<8x128xf32> -> vector<8x128xf32>
    %c0_122 = arith.constant 0 : index
    %c3_123 = arith.constant 3 : index
    %c0_124 = arith.constant 0 : index
    %c0_125 = arith.constant 0 : index
    %c0_126 = arith.constant 0 : index
    %175 = vector.load %arg8[%c0_122, %c3_123, %c0_124, %c0_125, %c0_126] : memref<3x7x3x8x1xf32, #tpu.memory_space<vmem>>, vector<1x1x1x8x1xf32>
    %176 = vector.shape_cast %175 : vector<1x1x1x8x1xf32> to vector<8x1xf32>
    %177 = vector.broadcast %176 : vector<8x1xf32> to vector<8x128xf32>
    %178 = arith.addf %174, %177 : vector<8x128xf32>
    %cst_127 = arith.constant 0.000000e+00 : f32
    %179 = vector.broadcast %cst_127 : f32 to vector<8x128xf32>
    %180 = arith.maximumf %178, %179 : vector<8x128xf32>
    %c0_128 = arith.constant 0 : index
    %c3_129 = arith.constant 3 : index
    %c1_130 = arith.constant 1 : index
    %c0_131 = arith.constant 0 : index
    %c0_132 = arith.constant 0 : index
    %181 = vector.load %arg8[%c0_128, %c3_129, %c1_130, %c0_131, %c0_132] : memref<3x7x3x8x1xf32, #tpu.memory_space<vmem>>, vector<1x1x1x8x1xf32>
    %182 = vector.shape_cast %181 : vector<1x1x1x8x1xf32> to vector<8x1xf32>
    %183 = vector.broadcast %182 : vector<8x1xf32> to vector<8x128xf32>
    %184 = arith.mulf %180, %183 : vector<8x128xf32>
    %c0_133 = arith.constant 0 : index
    %c3_134 = arith.constant 3 : index
    %c2_135 = arith.constant 2 : index
    %c0_136 = arith.constant 0 : index
    %c0_137 = arith.constant 0 : index
    %185 = vector.load %arg8[%c0_133, %c3_134, %c2_135, %c0_136, %c0_137] : memref<3x7x3x8x1xf32, #tpu.memory_space<vmem>>, vector<1x1x1x8x1xf32>
    %186 = vector.shape_cast %185 : vector<1x1x1x8x1xf32> to vector<8x1xf32>
    %187 = vector.broadcast %186 : vector<8x1xf32> to vector<8x128xf32>
    %188 = arith.addf %184, %187 : vector<8x128xf32>
    %189 = vector.broadcast %4 : vector<1x128xf32> to vector<8x128xf32>
    %190 = arith.mulf %188, %189 : vector<8x128xf32>
    %191 = vector.extract_strided_slice %91 {offsets = [32, 0], sizes = [8, 128], strides = [1, 1]} : vector<64x128xf32> to vector<8x128xf32>
    %192 = arith.addf %190, %191 : vector<8x128xf32>
    %c2_i32_138 = arith.constant 2 : i32
    %193 = tpu.dynamic_rotate %192 by %c2_i32_138 dim 1 : vector<8x128xf32>, i32 -> vector<8x128xf32>
    %c126_i32_139 = arith.constant 126 : i32
    %194 = tpu.dynamic_rotate %192 by %c126_i32_139 dim 1 : vector<8x128xf32>, i32 -> vector<8x128xf32>
    %195 = tpu.concatenate %193, %192, %194 in 0 : vector<8x128xf32>, vector<8x128xf32>, vector<8x128xf32> -> vector<24x128xf32>
    %196 = arith.truncf %195 : vector<24x128xf32> to vector<24x128xbf16>
    %c0_140 = arith.constant 0 : index
    %c4 = arith.constant 4 : index
    %c0_141 = arith.constant 0 : index
    %c0_142 = arith.constant 0 : index
    %197 = vector.load %arg7[%c0_140, %c4, %c0_141, %c0_142] : memref<3x7x8x24xbf16, #tpu.memory_space<vmem>>, vector<1x1x8x24xbf16>
    %198 = vector.shape_cast %197 : vector<1x1x8x24xbf16> to vector<8x24xbf16>
    %cst_143 = arith.constant dense<0.000000e+00> : vector<8x128xf32>
    %199 = tpu.matmul %198, %196, %cst_143 {dimension_numbers = #tpu.dot_dimension_numbers<[1], [0], [0], [1], [0, 0, 1, 1], [], []>} : vector<8x24xbf16>, vector<24x128xbf16>, vector<8x128xf32> -> vector<8x128xf32>
    %c0_144 = arith.constant 0 : index
    %c4_145 = arith.constant 4 : index
    %c0_146 = arith.constant 0 : index
    %c0_147 = arith.constant 0 : index
    %c0_148 = arith.constant 0 : index
    %200 = vector.load %arg8[%c0_144, %c4_145, %c0_146, %c0_147, %c0_148] : memref<3x7x3x8x1xf32, #tpu.memory_space<vmem>>, vector<1x1x1x8x1xf32>
    %201 = vector.shape_cast %200 : vector<1x1x1x8x1xf32> to vector<8x1xf32>
    %202 = vector.broadcast %201 : vector<8x1xf32> to vector<8x128xf32>
    %203 = arith.addf %199, %202 : vector<8x128xf32>
    %cst_149 = arith.constant 0.000000e+00 : f32
    %204 = vector.broadcast %cst_149 : f32 to vector<8x128xf32>
    %205 = arith.maximumf %203, %204 : vector<8x128xf32>
    %c0_150 = arith.constant 0 : index
    %c4_151 = arith.constant 4 : index
    %c1_152 = arith.constant 1 : index
    %c0_153 = arith.constant 0 : index
    %c0_154 = arith.constant 0 : index
    %206 = vector.load %arg8[%c0_150, %c4_151, %c1_152, %c0_153, %c0_154] : memref<3x7x3x8x1xf32, #tpu.memory_space<vmem>>, vector<1x1x1x8x1xf32>
    %207 = vector.shape_cast %206 : vector<1x1x1x8x1xf32> to vector<8x1xf32>
    %208 = vector.broadcast %207 : vector<8x1xf32> to vector<8x128xf32>
    %209 = arith.mulf %205, %208 : vector<8x128xf32>
    %c0_155 = arith.constant 0 : index
    %c4_156 = arith.constant 4 : index
    %c2_157 = arith.constant 2 : index
    %c0_158 = arith.constant 0 : index
    %c0_159 = arith.constant 0 : index
    %210 = vector.load %arg8[%c0_155, %c4_156, %c2_157, %c0_158, %c0_159] : memref<3x7x3x8x1xf32, #tpu.memory_space<vmem>>, vector<1x1x1x8x1xf32>
    %211 = vector.shape_cast %210 : vector<1x1x1x8x1xf32> to vector<8x1xf32>
    %212 = vector.broadcast %211 : vector<8x1xf32> to vector<8x128xf32>
    %213 = arith.addf %209, %212 : vector<8x128xf32>
    %214 = vector.broadcast %4 : vector<1x128xf32> to vector<8x128xf32>
    %215 = arith.mulf %213, %214 : vector<8x128xf32>
    %216 = vector.extract_strided_slice %91 {offsets = [40, 0], sizes = [8, 128], strides = [1, 1]} : vector<64x128xf32> to vector<8x128xf32>
    %217 = arith.addf %215, %216 : vector<8x128xf32>
    %c2_i32_160 = arith.constant 2 : i32
    %218 = tpu.dynamic_rotate %217 by %c2_i32_160 dim 1 : vector<8x128xf32>, i32 -> vector<8x128xf32>
    %c126_i32_161 = arith.constant 126 : i32
    %219 = tpu.dynamic_rotate %217 by %c126_i32_161 dim 1 : vector<8x128xf32>, i32 -> vector<8x128xf32>
    %220 = tpu.concatenate %218, %217, %219 in 0 : vector<8x128xf32>, vector<8x128xf32>, vector<8x128xf32> -> vector<24x128xf32>
    %221 = arith.truncf %220 : vector<24x128xf32> to vector<24x128xbf16>
    %c0_162 = arith.constant 0 : index
    %c5 = arith.constant 5 : index
    %c0_163 = arith.constant 0 : index
    %c0_164 = arith.constant 0 : index
    %222 = vector.load %arg7[%c0_162, %c5, %c0_163, %c0_164] : memref<3x7x8x24xbf16, #tpu.memory_space<vmem>>, vector<1x1x8x24xbf16>
    %223 = vector.shape_cast %222 : vector<1x1x8x24xbf16> to vector<8x24xbf16>
    %cst_165 = arith.constant dense<0.000000e+00> : vector<8x128xf32>
    %224 = tpu.matmul %223, %221, %cst_165 {dimension_numbers = #tpu.dot_dimension_numbers<[1], [0], [0], [1], [0, 0, 1, 1], [], []>} : vector<8x24xbf16>, vector<24x128xbf16>, vector<8x128xf32> -> vector<8x128xf32>
    %c0_166 = arith.constant 0 : index
    %c5_167 = arith.constant 5 : index
    %c0_168 = arith.constant 0 : index
    %c0_169 = arith.constant 0 : index
    %c0_170 = arith.constant 0 : index
    %225 = vector.load %arg8[%c0_166, %c5_167, %c0_168, %c0_169, %c0_170] : memref<3x7x3x8x1xf32, #tpu.memory_space<vmem>>, vector<1x1x1x8x1xf32>
    %226 = vector.shape_cast %225 : vector<1x1x1x8x1xf32> to vector<8x1xf32>
    %227 = vector.broadcast %226 : vector<8x1xf32> to vector<8x128xf32>
    %228 = arith.addf %224, %227 : vector<8x128xf32>
    %cst_171 = arith.constant 0.000000e+00 : f32
    %229 = vector.broadcast %cst_171 : f32 to vector<8x128xf32>
    %230 = arith.maximumf %228, %229 : vector<8x128xf32>
    %c0_172 = arith.constant 0 : index
    %c5_173 = arith.constant 5 : index
    %c1_174 = arith.constant 1 : index
    %c0_175 = arith.constant 0 : index
    %c0_176 = arith.constant 0 : index
    %231 = vector.load %arg8[%c0_172, %c5_173, %c1_174, %c0_175, %c0_176] : memref<3x7x3x8x1xf32, #tpu.memory_space<vmem>>, vector<1x1x1x8x1xf32>
    %232 = vector.shape_cast %231 : vector<1x1x1x8x1xf32> to vector<8x1xf32>
    %233 = vector.broadcast %232 : vector<8x1xf32> to vector<8x128xf32>
    %234 = arith.mulf %230, %233 : vector<8x128xf32>
    %c0_177 = arith.constant 0 : index
    %c5_178 = arith.constant 5 : index
    %c2_179 = arith.constant 2 : index
    %c0_180 = arith.constant 0 : index
    %c0_181 = arith.constant 0 : index
    %235 = vector.load %arg8[%c0_177, %c5_178, %c2_179, %c0_180, %c0_181] : memref<3x7x3x8x1xf32, #tpu.memory_space<vmem>>, vector<1x1x1x8x1xf32>
    %236 = vector.shape_cast %235 : vector<1x1x1x8x1xf32> to vector<8x1xf32>
    %237 = vector.broadcast %236 : vector<8x1xf32> to vector<8x128xf32>
    %238 = arith.addf %234, %237 : vector<8x128xf32>
    %239 = vector.broadcast %4 : vector<1x128xf32> to vector<8x128xf32>
    %240 = arith.mulf %238, %239 : vector<8x128xf32>
    %241 = vector.extract_strided_slice %91 {offsets = [48, 0], sizes = [8, 128], strides = [1, 1]} : vector<64x128xf32> to vector<8x128xf32>
    %242 = arith.addf %240, %241 : vector<8x128xf32>
    %c2_i32_182 = arith.constant 2 : i32
    %243 = tpu.dynamic_rotate %242 by %c2_i32_182 dim 1 : vector<8x128xf32>, i32 -> vector<8x128xf32>
    %c126_i32_183 = arith.constant 126 : i32
    %244 = tpu.dynamic_rotate %242 by %c126_i32_183 dim 1 : vector<8x128xf32>, i32 -> vector<8x128xf32>
    %245 = tpu.concatenate %243, %242, %244 in 0 : vector<8x128xf32>, vector<8x128xf32>, vector<8x128xf32> -> vector<24x128xf32>
    %246 = arith.truncf %245 : vector<24x128xf32> to vector<24x128xbf16>
    %c0_184 = arith.constant 0 : index
    %c6 = arith.constant 6 : index
    %c0_185 = arith.constant 0 : index
    %c0_186 = arith.constant 0 : index
    %247 = vector.load %arg7[%c0_184, %c6, %c0_185, %c0_186] : memref<3x7x8x24xbf16, #tpu.memory_space<vmem>>, vector<1x1x8x24xbf16>
    %248 = vector.shape_cast %247 : vector<1x1x8x24xbf16> to vector<8x24xbf16>
    %cst_187 = arith.constant dense<0.000000e+00> : vector<8x128xf32>
    %249 = tpu.matmul %248, %246, %cst_187 {dimension_numbers = #tpu.dot_dimension_numbers<[1], [0], [0], [1], [0, 0, 1, 1], [], []>} : vector<8x24xbf16>, vector<24x128xbf16>, vector<8x128xf32> -> vector<8x128xf32>
    %c0_188 = arith.constant 0 : index
    %c6_189 = arith.constant 6 : index
    %c0_190 = arith.constant 0 : index
    %c0_191 = arith.constant 0 : index
    %c0_192 = arith.constant 0 : index
    %250 = vector.load %arg8[%c0_188, %c6_189, %c0_190, %c0_191, %c0_192] : memref<3x7x3x8x1xf32, #tpu.memory_space<vmem>>, vector<1x1x1x8x1xf32>
    %251 = vector.shape_cast %250 : vector<1x1x1x8x1xf32> to vector<8x1xf32>
    %252 = vector.broadcast %251 : vector<8x1xf32> to vector<8x128xf32>
    %253 = arith.addf %249, %252 : vector<8x128xf32>
    %cst_193 = arith.constant 0.000000e+00 : f32
    %254 = vector.broadcast %cst_193 : f32 to vector<8x128xf32>
    %255 = arith.maximumf %253, %254 : vector<8x128xf32>
    %c0_194 = arith.constant 0 : index
    %c6_195 = arith.constant 6 : index
    %c1_196 = arith.constant 1 : index
    %c0_197 = arith.constant 0 : index
    %c0_198 = arith.constant 0 : index
    %256 = vector.load %arg8[%c0_194, %c6_195, %c1_196, %c0_197, %c0_198] : memref<3x7x3x8x1xf32, #tpu.memory_space<vmem>>, vector<1x1x1x8x1xf32>
    %257 = vector.shape_cast %256 : vector<1x1x1x8x1xf32> to vector<8x1xf32>
    %258 = vector.broadcast %257 : vector<8x1xf32> to vector<8x128xf32>
    %259 = arith.mulf %255, %258 : vector<8x128xf32>
    %c0_199 = arith.constant 0 : index
    %c6_200 = arith.constant 6 : index
    %c2_201 = arith.constant 2 : index
    %c0_202 = arith.constant 0 : index
    %c0_203 = arith.constant 0 : index
    %260 = vector.load %arg8[%c0_199, %c6_200, %c2_201, %c0_202, %c0_203] : memref<3x7x3x8x1xf32, #tpu.memory_space<vmem>>, vector<1x1x1x8x1xf32>
    %261 = vector.shape_cast %260 : vector<1x1x1x8x1xf32> to vector<8x1xf32>
    %262 = vector.broadcast %261 : vector<8x1xf32> to vector<8x128xf32>
    %263 = arith.addf %259, %262 : vector<8x128xf32>
    %264 = vector.broadcast %4 : vector<1x128xf32> to vector<8x128xf32>
    %265 = arith.mulf %263, %264 : vector<8x128xf32>
    %266 = vector.extract_strided_slice %91 {offsets = [56, 0], sizes = [8, 128], strides = [1, 1]} : vector<64x128xf32> to vector<8x128xf32>
    %c0_204 = arith.constant 0 : index
    %c0_205 = arith.constant 0 : index
    %c0_206 = arith.constant 0 : index
    %c0_207 = arith.constant 0 : index
    %267 = vector.load %arg9[%c0_204, %c0_205, %c0_206, %c0_207] : memref<3x8x64x8xbf16, #tpu.memory_space<vmem>>, vector<1x1x64x8xbf16>
    %268 = vector.shape_cast %267 : vector<1x1x64x8xbf16> to vector<64x8xbf16>
    %269 = arith.truncf %115 : vector<8x128xf32> to vector<8x128xbf16>
    %cst_208 = arith.constant dense<0.000000e+00> : vector<64x128xf32>
    %270 = tpu.matmul %268, %269, %cst_208 {dimension_numbers = #tpu.dot_dimension_numbers<[1], [0], [0], [1], [0, 0, 1, 1], [], []>} : vector<64x8xbf16>, vector<8x128xbf16>, vector<64x128xf32> -> vector<64x128xf32>
    %c0_209 = arith.constant 0 : index
    %c1_210 = arith.constant 1 : index
    %c0_211 = arith.constant 0 : index
    %c0_212 = arith.constant 0 : index
    %271 = vector.load %arg9[%c0_209, %c1_210, %c0_211, %c0_212] : memref<3x8x64x8xbf16, #tpu.memory_space<vmem>>, vector<1x1x64x8xbf16>
    %272 = vector.shape_cast %271 : vector<1x1x64x8xbf16> to vector<64x8xbf16>
    %273 = arith.truncf %140 : vector<8x128xf32> to vector<8x128xbf16>
    %cst_213 = arith.constant dense<0.000000e+00> : vector<64x128xf32>
    %274 = tpu.matmul %272, %273, %cst_213 {dimension_numbers = #tpu.dot_dimension_numbers<[1], [0], [0], [1], [0, 0, 1, 1], [], []>} : vector<64x8xbf16>, vector<8x128xbf16>, vector<64x128xf32> -> vector<64x128xf32>
    %275 = arith.addf %270, %274 : vector<64x128xf32>
    %c0_214 = arith.constant 0 : index
    %c2_215 = arith.constant 2 : index
    %c0_216 = arith.constant 0 : index
    %c0_217 = arith.constant 0 : index
    %276 = vector.load %arg9[%c0_214, %c2_215, %c0_216, %c0_217] : memref<3x8x64x8xbf16, #tpu.memory_space<vmem>>, vector<1x1x64x8xbf16>
    %277 = vector.shape_cast %276 : vector<1x1x64x8xbf16> to vector<64x8xbf16>
    %278 = arith.truncf %165 : vector<8x128xf32> to vector<8x128xbf16>
    %cst_218 = arith.constant dense<0.000000e+00> : vector<64x128xf32>
    %279 = tpu.matmul %277, %278, %cst_218 {dimension_numbers = #tpu.dot_dimension_numbers<[1], [0], [0], [1], [0, 0, 1, 1], [], []>} : vector<64x8xbf16>, vector<8x128xbf16>, vector<64x128xf32> -> vector<64x128xf32>
    %280 = arith.addf %275, %279 : vector<64x128xf32>
    %c0_219 = arith.constant 0 : index
    %c3_220 = arith.constant 3 : index
    %c0_221 = arith.constant 0 : index
    %c0_222 = arith.constant 0 : index
    %281 = vector.load %arg9[%c0_219, %c3_220, %c0_221, %c0_222] : memref<3x8x64x8xbf16, #tpu.memory_space<vmem>>, vector<1x1x64x8xbf16>
    %282 = vector.shape_cast %281 : vector<1x1x64x8xbf16> to vector<64x8xbf16>
    %283 = arith.truncf %190 : vector<8x128xf32> to vector<8x128xbf16>
    %cst_223 = arith.constant dense<0.000000e+00> : vector<64x128xf32>
    %284 = tpu.matmul %282, %283, %cst_223 {dimension_numbers = #tpu.dot_dimension_numbers<[1], [0], [0], [1], [0, 0, 1, 1], [], []>} : vector<64x8xbf16>, vector<8x128xbf16>, vector<64x128xf32> -> vector<64x128xf32>
    %285 = arith.addf %280, %284 : vector<64x128xf32>
    %c0_224 = arith.constant 0 : index
    %c4_225 = arith.constant 4 : index
    %c0_226 = arith.constant 0 : index
    %c0_227 = arith.constant 0 : index
    %286 = vector.load %arg9[%c0_224, %c4_225, %c0_226, %c0_227] : memref<3x8x64x8xbf16, #tpu.memory_space<vmem>>, vector<1x1x64x8xbf16>
    %287 = vector.shape_cast %286 : vector<1x1x64x8xbf16> to vector<64x8xbf16>
    %288 = arith.truncf %215 : vector<8x128xf32> to vector<8x128xbf16>
    %cst_228 = arith.constant dense<0.000000e+00> : vector<64x128xf32>
    %289 = tpu.matmul %287, %288, %cst_228 {dimension_numbers = #tpu.dot_dimension_numbers<[1], [0], [0], [1], [0, 0, 1, 1], [], []>} : vector<64x8xbf16>, vector<8x128xbf16>, vector<64x128xf32> -> vector<64x128xf32>
    %290 = arith.addf %285, %289 : vector<64x128xf32>
    %c0_229 = arith.constant 0 : index
    %c5_230 = arith.constant 5 : index
    %c0_231 = arith.constant 0 : index
    %c0_232 = arith.constant 0 : index
    %291 = vector.load %arg9[%c0_229, %c5_230, %c0_231, %c0_232] : memref<3x8x64x8xbf16, #tpu.memory_space<vmem>>, vector<1x1x64x8xbf16>
    %292 = vector.shape_cast %291 : vector<1x1x64x8xbf16> to vector<64x8xbf16>
    %293 = arith.truncf %240 : vector<8x128xf32> to vector<8x128xbf16>
    %cst_233 = arith.constant dense<0.000000e+00> : vector<64x128xf32>
    %294 = tpu.matmul %292, %293, %cst_233 {dimension_numbers = #tpu.dot_dimension_numbers<[1], [0], [0], [1], [0, 0, 1, 1], [], []>} : vector<64x8xbf16>, vector<8x128xbf16>, vector<64x128xf32> -> vector<64x128xf32>
    %295 = arith.addf %290, %294 : vector<64x128xf32>
    %c0_234 = arith.constant 0 : index
    %c6_235 = arith.constant 6 : index
    %c0_236 = arith.constant 0 : index
    %c0_237 = arith.constant 0 : index
    %296 = vector.load %arg9[%c0_234, %c6_235, %c0_236, %c0_237] : memref<3x8x64x8xbf16, #tpu.memory_space<vmem>>, vector<1x1x64x8xbf16>
    %297 = vector.shape_cast %296 : vector<1x1x64x8xbf16> to vector<64x8xbf16>
    %298 = arith.truncf %265 : vector<8x128xf32> to vector<8x128xbf16>
    %cst_238 = arith.constant dense<0.000000e+00> : vector<64x128xf32>
    %299 = tpu.matmul %297, %298, %cst_238 {dimension_numbers = #tpu.dot_dimension_numbers<[1], [0], [0], [1], [0, 0, 1, 1], [], []>} : vector<64x8xbf16>, vector<8x128xbf16>, vector<64x128xf32> -> vector<64x128xf32>
    %300 = arith.addf %295, %299 : vector<64x128xf32>
    %c0_239 = arith.constant 0 : index
    %c7 = arith.constant 7 : index
    %c0_240 = arith.constant 0 : index
    %c0_241 = arith.constant 0 : index
    %301 = vector.load %arg9[%c0_239, %c7, %c0_240, %c0_241] : memref<3x8x64x8xbf16, #tpu.memory_space<vmem>>, vector<1x1x64x8xbf16>
    %302 = vector.shape_cast %301 : vector<1x1x64x8xbf16> to vector<64x8xbf16>
    %303 = arith.truncf %266 : vector<8x128xf32> to vector<8x128xbf16>
    %cst_242 = arith.constant dense<0.000000e+00> : vector<64x128xf32>
    %304 = tpu.matmul %302, %303, %cst_242 {dimension_numbers = #tpu.dot_dimension_numbers<[1], [0], [0], [1], [0, 0, 1, 1], [], []>} : vector<64x8xbf16>, vector<8x128xbf16>, vector<64x128xf32> -> vector<64x128xf32>
    %305 = arith.addf %300, %304 : vector<64x128xf32>
    %c0_243 = arith.constant 0 : index
    %c0_244 = arith.constant 0 : index
    %c0_245 = arith.constant 0 : index
    %c0_246 = arith.constant 0 : index
    %306 = vector.load %arg10[%c0_243, %c0_244, %c0_245, %c0_246] : memref<3x3x64x1xf32, #tpu.memory_space<vmem>>, vector<1x1x64x1xf32>
    %307 = vector.shape_cast %306 : vector<1x1x64x1xf32> to vector<64x1xf32>
    %308 = vector.broadcast %307 : vector<64x1xf32> to vector<64x128xf32>
    %309 = arith.addf %305, %308 : vector<64x128xf32>
    %cst_247 = arith.constant 0.000000e+00 : f32
    %310 = vector.broadcast %cst_247 : f32 to vector<64x128xf32>
    %311 = arith.maximumf %309, %310 : vector<64x128xf32>
    %c0_248 = arith.constant 0 : index
    %c1_249 = arith.constant 1 : index
    %c0_250 = arith.constant 0 : index
    %c0_251 = arith.constant 0 : index
    %312 = vector.load %arg10[%c0_248, %c1_249, %c0_250, %c0_251] : memref<3x3x64x1xf32, #tpu.memory_space<vmem>>, vector<1x1x64x1xf32>
    %313 = vector.shape_cast %312 : vector<1x1x64x1xf32> to vector<64x1xf32>
    %314 = vector.broadcast %313 : vector<64x1xf32> to vector<64x128xf32>
    %315 = arith.mulf %311, %314 : vector<64x128xf32>
    %c0_252 = arith.constant 0 : index
    %c2_253 = arith.constant 2 : index
    %c0_254 = arith.constant 0 : index
    %c0_255 = arith.constant 0 : index
    %316 = vector.load %arg10[%c0_252, %c2_253, %c0_254, %c0_255] : memref<3x3x64x1xf32, #tpu.memory_space<vmem>>, vector<1x1x64x1xf32>
    %317 = vector.shape_cast %316 : vector<1x1x64x1xf32> to vector<64x1xf32>
    %318 = vector.broadcast %317 : vector<64x1xf32> to vector<64x128xf32>
    %319 = arith.addf %315, %318 : vector<64x128xf32>
    %320 = vector.broadcast %4 : vector<1x128xf32> to vector<64x128xf32>
    %321 = arith.mulf %319, %320 : vector<64x128xf32>
    %cst_256 = arith.constant dense<0.000000e+00> : vector<64xf32>
    %322 = vector.multi_reduction <add>, %321, %cst_256 [1] : vector<64x128xf32> to vector<64xf32>
    %323 = vector.shape_cast %322 : vector<64xf32> to vector<64x1xf32>
    %cst_257 = arith.constant 6.250000e-02 : f32
    %324 = vector.broadcast %cst_257 : f32 to vector<64x1xf32>
    %325 = arith.mulf %323, %324 : vector<64x1xf32>
    %c0_258 = arith.constant 0 : index
    %c0_259 = arith.constant 0 : index
    %c0_260 = arith.constant 0 : index
    %326 = vector.load %arg11[%c0_258, %c0_259, %c0_260] : memref<3x32x64xf32, #tpu.memory_space<vmem>>, vector<1x32x64xf32>
    %327 = vector.shape_cast %326 : vector<1x32x64xf32> to vector<32x64xf32>
    %cst_261 = arith.constant dense<0.000000e+00> : vector<32x1xf32>
    %328 = tpu.matmul %327, %325, %cst_261 {dimension_numbers = #tpu.dot_dimension_numbers<[1], [0], [0], [1], [0, 0, 1, 1], [], []>} : vector<32x64xf32>, vector<64x1xf32>, vector<32x1xf32> -> vector<32x1xf32>
    %c0_262 = arith.constant 0 : index
    %c0_263 = arith.constant 0 : index
    %c0_264 = arith.constant 0 : index
    %329 = vector.load %arg12[%c0_262, %c0_263, %c0_264] : memref<3x32x1xf32, #tpu.memory_space<vmem>>, vector<1x32x1xf32>
    %330 = vector.shape_cast %329 : vector<1x32x1xf32> to vector<32x1xf32>
    %331 = arith.addf %328, %330 : vector<32x1xf32>
    %cst_265 = arith.constant 0.000000e+00 : f32
    %332 = vector.broadcast %cst_265 : f32 to vector<32x1xf32>
    %333 = arith.maximumf %331, %332 : vector<32x1xf32>
    %c0_266 = arith.constant 0 : index
    %c0_267 = arith.constant 0 : index
    %c0_268 = arith.constant 0 : index
    %334 = vector.load %arg13[%c0_266, %c0_267, %c0_268] : memref<3x64x32xf32, #tpu.memory_space<vmem>>, vector<1x64x32xf32>
    %335 = vector.shape_cast %334 : vector<1x64x32xf32> to vector<64x32xf32>
    %cst_269 = arith.constant dense<0.000000e+00> : vector<64x1xf32>
    %336 = tpu.matmul %335, %333, %cst_269 {dimension_numbers = #tpu.dot_dimension_numbers<[1], [0], [0], [1], [0, 0, 1, 1], [], []>} : vector<64x32xf32>, vector<32x1xf32>, vector<64x1xf32> -> vector<64x1xf32>
    %c0_270 = arith.constant 0 : index
    %c0_271 = arith.constant 0 : index
    %c0_272 = arith.constant 0 : index
    %337 = vector.load %arg14[%c0_270, %c0_271, %c0_272] : memref<3x64x1xf32, #tpu.memory_space<vmem>>, vector<1x64x1xf32>
    %338 = vector.shape_cast %337 : vector<1x64x1xf32> to vector<64x1xf32>
    %339 = arith.addf %336, %338 : vector<64x1xf32>
    %340 = arith.negf %339 : vector<64x1xf32>
    %341 = math.exp %340 : vector<64x1xf32>
    %cst_273 = arith.constant 1.000000e+00 : f32
    %342 = vector.broadcast %cst_273 : f32 to vector<64x1xf32>
    %343 = arith.addf %342, %341 : vector<64x1xf32>
    %344 = arith.divf %342, %343 : vector<64x1xf32>
    %345 = vector.broadcast %344 : vector<64x1xf32> to vector<64x128xf32>
    %346 = arith.mulf %321, %345 : vector<64x128xf32>
    %347 = arith.addf %346, %71 : vector<64x128xf32>
    %c1_274 = arith.constant 1 : index
    %c0_275 = arith.constant 0 : index
    %c0_276 = arith.constant 0 : index
    %348 = vector.load %arg5[%c1_274, %c0_275, %c0_276] : memref<3x64x64xbf16, #tpu.memory_space<vmem>>, vector<1x64x64xbf16>
    %349 = vector.shape_cast %348 : vector<1x64x64xbf16> to vector<64x64xbf16>
    %350 = arith.truncf %347 : vector<64x128xf32> to vector<64x128xbf16>
    %cst_277 = arith.constant dense<0.000000e+00> : vector<64x128xf32>
    %351 = tpu.matmul %349, %350, %cst_277 {dimension_numbers = #tpu.dot_dimension_numbers<[1], [0], [0], [1], [0, 0, 1, 1], [], []>} : vector<64x64xbf16>, vector<64x128xbf16>, vector<64x128xf32> -> vector<64x128xf32>
    %c1_278 = arith.constant 1 : index
    %c0_279 = arith.constant 0 : index
    %c0_280 = arith.constant 0 : index
    %c0_281 = arith.constant 0 : index
    %352 = vector.load %arg6[%c1_278, %c0_279, %c0_280, %c0_281] : memref<3x3x64x1xf32, #tpu.memory_space<vmem>>, vector<1x1x64x1xf32>
    %353 = vector.shape_cast %352 : vector<1x1x64x1xf32> to vector<64x1xf32>
    %354 = vector.broadcast %353 : vector<64x1xf32> to vector<64x128xf32>
    %355 = arith.addf %351, %354 : vector<64x128xf32>
    %cst_282 = arith.constant 0.000000e+00 : f32
    %356 = vector.broadcast %cst_282 : f32 to vector<64x128xf32>
    %357 = arith.maximumf %355, %356 : vector<64x128xf32>
    %c1_283 = arith.constant 1 : index
    %c1_284 = arith.constant 1 : index
    %c0_285 = arith.constant 0 : index
    %c0_286 = arith.constant 0 : index
    %358 = vector.load %arg6[%c1_283, %c1_284, %c0_285, %c0_286] : memref<3x3x64x1xf32, #tpu.memory_space<vmem>>, vector<1x1x64x1xf32>
    %359 = vector.shape_cast %358 : vector<1x1x64x1xf32> to vector<64x1xf32>
    %360 = vector.broadcast %359 : vector<64x1xf32> to vector<64x128xf32>
    %361 = arith.mulf %357, %360 : vector<64x128xf32>
    %c1_287 = arith.constant 1 : index
    %c2_288 = arith.constant 2 : index
    %c0_289 = arith.constant 0 : index
    %c0_290 = arith.constant 0 : index
    %362 = vector.load %arg6[%c1_287, %c2_288, %c0_289, %c0_290] : memref<3x3x64x1xf32, #tpu.memory_space<vmem>>, vector<1x1x64x1xf32>
    %363 = vector.shape_cast %362 : vector<1x1x64x1xf32> to vector<64x1xf32>
    %364 = vector.broadcast %363 : vector<64x1xf32> to vector<64x128xf32>
    %365 = arith.addf %361, %364 : vector<64x128xf32>
    %366 = vector.broadcast %4 : vector<1x128xf32> to vector<64x128xf32>
    %367 = arith.mulf %365, %366 : vector<64x128xf32>
    %368 = vector.extract_strided_slice %367 {offsets = [0, 0], sizes = [8, 128], strides = [1, 1]} : vector<64x128xf32> to vector<8x128xf32>
    %c3_i32 = arith.constant 3 : i32
    %369 = tpu.dynamic_rotate %368 by %c3_i32 dim 1 : vector<8x128xf32>, i32 -> vector<8x128xf32>
    %c125_i32 = arith.constant 125 : i32
    %370 = tpu.dynamic_rotate %368 by %c125_i32 dim 1 : vector<8x128xf32>, i32 -> vector<8x128xf32>
    %371 = tpu.concatenate %369, %368, %370 in 0 : vector<8x128xf32>, vector<8x128xf32>, vector<8x128xf32> -> vector<24x128xf32>
    %372 = arith.truncf %371 : vector<24x128xf32> to vector<24x128xbf16>
    %c1_291 = arith.constant 1 : index
    %c0_292 = arith.constant 0 : index
    %c0_293 = arith.constant 0 : index
    %c0_294 = arith.constant 0 : index
    %373 = vector.load %arg7[%c1_291, %c0_292, %c0_293, %c0_294] : memref<3x7x8x24xbf16, #tpu.memory_space<vmem>>, vector<1x1x8x24xbf16>
    %374 = vector.shape_cast %373 : vector<1x1x8x24xbf16> to vector<8x24xbf16>
    %cst_295 = arith.constant dense<0.000000e+00> : vector<8x128xf32>
    %375 = tpu.matmul %374, %372, %cst_295 {dimension_numbers = #tpu.dot_dimension_numbers<[1], [0], [0], [1], [0, 0, 1, 1], [], []>} : vector<8x24xbf16>, vector<24x128xbf16>, vector<8x128xf32> -> vector<8x128xf32>
    %c1_296 = arith.constant 1 : index
    %c0_297 = arith.constant 0 : index
    %c0_298 = arith.constant 0 : index
    %c0_299 = arith.constant 0 : index
    %c0_300 = arith.constant 0 : index
    %376 = vector.load %arg8[%c1_296, %c0_297, %c0_298, %c0_299, %c0_300] : memref<3x7x3x8x1xf32, #tpu.memory_space<vmem>>, vector<1x1x1x8x1xf32>
    %377 = vector.shape_cast %376 : vector<1x1x1x8x1xf32> to vector<8x1xf32>
    %378 = vector.broadcast %377 : vector<8x1xf32> to vector<8x128xf32>
    %379 = arith.addf %375, %378 : vector<8x128xf32>
    %cst_301 = arith.constant 0.000000e+00 : f32
    %380 = vector.broadcast %cst_301 : f32 to vector<8x128xf32>
    %381 = arith.maximumf %379, %380 : vector<8x128xf32>
    %c1_302 = arith.constant 1 : index
    %c0_303 = arith.constant 0 : index
    %c1_304 = arith.constant 1 : index
    %c0_305 = arith.constant 0 : index
    %c0_306 = arith.constant 0 : index
    %382 = vector.load %arg8[%c1_302, %c0_303, %c1_304, %c0_305, %c0_306] : memref<3x7x3x8x1xf32, #tpu.memory_space<vmem>>, vector<1x1x1x8x1xf32>
    %383 = vector.shape_cast %382 : vector<1x1x1x8x1xf32> to vector<8x1xf32>
    %384 = vector.broadcast %383 : vector<8x1xf32> to vector<8x128xf32>
    %385 = arith.mulf %381, %384 : vector<8x128xf32>
    %c1_307 = arith.constant 1 : index
    %c0_308 = arith.constant 0 : index
    %c2_309 = arith.constant 2 : index
    %c0_310 = arith.constant 0 : index
    %c0_311 = arith.constant 0 : index
    %386 = vector.load %arg8[%c1_307, %c0_308, %c2_309, %c0_310, %c0_311] : memref<3x7x3x8x1xf32, #tpu.memory_space<vmem>>, vector<1x1x1x8x1xf32>
    %387 = vector.shape_cast %386 : vector<1x1x1x8x1xf32> to vector<8x1xf32>
    %388 = vector.broadcast %387 : vector<8x1xf32> to vector<8x128xf32>
    %389 = arith.addf %385, %388 : vector<8x128xf32>
    %390 = vector.broadcast %4 : vector<1x128xf32> to vector<8x128xf32>
    %391 = arith.mulf %389, %390 : vector<8x128xf32>
    %392 = vector.extract_strided_slice %367 {offsets = [8, 0], sizes = [8, 128], strides = [1, 1]} : vector<64x128xf32> to vector<8x128xf32>
    %393 = arith.addf %391, %392 : vector<8x128xf32>
    %c3_i32_312 = arith.constant 3 : i32
    %394 = tpu.dynamic_rotate %393 by %c3_i32_312 dim 1 : vector<8x128xf32>, i32 -> vector<8x128xf32>
    %c125_i32_313 = arith.constant 125 : i32
    %395 = tpu.dynamic_rotate %393 by %c125_i32_313 dim 1 : vector<8x128xf32>, i32 -> vector<8x128xf32>
    %396 = tpu.concatenate %394, %393, %395 in 0 : vector<8x128xf32>, vector<8x128xf32>, vector<8x128xf32> -> vector<24x128xf32>
    %397 = arith.truncf %396 : vector<24x128xf32> to vector<24x128xbf16>
    %c1_314 = arith.constant 1 : index
    %c1_315 = arith.constant 1 : index
    %c0_316 = arith.constant 0 : index
    %c0_317 = arith.constant 0 : index
    %398 = vector.load %arg7[%c1_314, %c1_315, %c0_316, %c0_317] : memref<3x7x8x24xbf16, #tpu.memory_space<vmem>>, vector<1x1x8x24xbf16>
    %399 = vector.shape_cast %398 : vector<1x1x8x24xbf16> to vector<8x24xbf16>
    %cst_318 = arith.constant dense<0.000000e+00> : vector<8x128xf32>
    %400 = tpu.matmul %399, %397, %cst_318 {dimension_numbers = #tpu.dot_dimension_numbers<[1], [0], [0], [1], [0, 0, 1, 1], [], []>} : vector<8x24xbf16>, vector<24x128xbf16>, vector<8x128xf32> -> vector<8x128xf32>
    %c1_319 = arith.constant 1 : index
    %c1_320 = arith.constant 1 : index
    %c0_321 = arith.constant 0 : index
    %c0_322 = arith.constant 0 : index
    %c0_323 = arith.constant 0 : index
    %401 = vector.load %arg8[%c1_319, %c1_320, %c0_321, %c0_322, %c0_323] : memref<3x7x3x8x1xf32, #tpu.memory_space<vmem>>, vector<1x1x1x8x1xf32>
    %402 = vector.shape_cast %401 : vector<1x1x1x8x1xf32> to vector<8x1xf32>
    %403 = vector.broadcast %402 : vector<8x1xf32> to vector<8x128xf32>
    %404 = arith.addf %400, %403 : vector<8x128xf32>
    %cst_324 = arith.constant 0.000000e+00 : f32
    %405 = vector.broadcast %cst_324 : f32 to vector<8x128xf32>
    %406 = arith.maximumf %404, %405 : vector<8x128xf32>
    %c1_325 = arith.constant 1 : index
    %c1_326 = arith.constant 1 : index
    %c1_327 = arith.constant 1 : index
    %c0_328 = arith.constant 0 : index
    %c0_329 = arith.constant 0 : index
    %407 = vector.load %arg8[%c1_325, %c1_326, %c1_327, %c0_328, %c0_329] : memref<3x7x3x8x1xf32, #tpu.memory_space<vmem>>, vector<1x1x1x8x1xf32>
    %408 = vector.shape_cast %407 : vector<1x1x1x8x1xf32> to vector<8x1xf32>
    %409 = vector.broadcast %408 : vector<8x1xf32> to vector<8x128xf32>
    %410 = arith.mulf %406, %409 : vector<8x128xf32>
    %c1_330 = arith.constant 1 : index
    %c1_331 = arith.constant 1 : index
    %c2_332 = arith.constant 2 : index
    %c0_333 = arith.constant 0 : index
    %c0_334 = arith.constant 0 : index
    %411 = vector.load %arg8[%c1_330, %c1_331, %c2_332, %c0_333, %c0_334] : memref<3x7x3x8x1xf32, #tpu.memory_space<vmem>>, vector<1x1x1x8x1xf32>
    %412 = vector.shape_cast %411 : vector<1x1x1x8x1xf32> to vector<8x1xf32>
    %413 = vector.broadcast %412 : vector<8x1xf32> to vector<8x128xf32>
    %414 = arith.addf %410, %413 : vector<8x128xf32>
    %415 = vector.broadcast %4 : vector<1x128xf32> to vector<8x128xf32>
    %416 = arith.mulf %414, %415 : vector<8x128xf32>
    %417 = vector.extract_strided_slice %367 {offsets = [16, 0], sizes = [8, 128], strides = [1, 1]} : vector<64x128xf32> to vector<8x128xf32>
    %418 = arith.addf %416, %417 : vector<8x128xf32>
    %c3_i32_335 = arith.constant 3 : i32
    %419 = tpu.dynamic_rotate %418 by %c3_i32_335 dim 1 : vector<8x128xf32>, i32 -> vector<8x128xf32>
    %c125_i32_336 = arith.constant 125 : i32
    %420 = tpu.dynamic_rotate %418 by %c125_i32_336 dim 1 : vector<8x128xf32>, i32 -> vector<8x128xf32>
    %421 = tpu.concatenate %419, %418, %420 in 0 : vector<8x128xf32>, vector<8x128xf32>, vector<8x128xf32> -> vector<24x128xf32>
    %422 = arith.truncf %421 : vector<24x128xf32> to vector<24x128xbf16>
    %c1_337 = arith.constant 1 : index
    %c2_338 = arith.constant 2 : index
    %c0_339 = arith.constant 0 : index
    %c0_340 = arith.constant 0 : index
    %423 = vector.load %arg7[%c1_337, %c2_338, %c0_339, %c0_340] : memref<3x7x8x24xbf16, #tpu.memory_space<vmem>>, vector<1x1x8x24xbf16>
    %424 = vector.shape_cast %423 : vector<1x1x8x24xbf16> to vector<8x24xbf16>
    %cst_341 = arith.constant dense<0.000000e+00> : vector<8x128xf32>
    %425 = tpu.matmul %424, %422, %cst_341 {dimension_numbers = #tpu.dot_dimension_numbers<[1], [0], [0], [1], [0, 0, 1, 1], [], []>} : vector<8x24xbf16>, vector<24x128xbf16>, vector<8x128xf32> -> vector<8x128xf32>
    %c1_342 = arith.constant 1 : index
    %c2_343 = arith.constant 2 : index
    %c0_344 = arith.constant 0 : index
    %c0_345 = arith.constant 0 : index
    %c0_346 = arith.constant 0 : index
    %426 = vector.load %arg8[%c1_342, %c2_343, %c0_344, %c0_345, %c0_346] : memref<3x7x3x8x1xf32, #tpu.memory_space<vmem>>, vector<1x1x1x8x1xf32>
    %427 = vector.shape_cast %426 : vector<1x1x1x8x1xf32> to vector<8x1xf32>
    %428 = vector.broadcast %427 : vector<8x1xf32> to vector<8x128xf32>
    %429 = arith.addf %425, %428 : vector<8x128xf32>
    %cst_347 = arith.constant 0.000000e+00 : f32
    %430 = vector.broadcast %cst_347 : f32 to vector<8x128xf32>
    %431 = arith.maximumf %429, %430 : vector<8x128xf32>
    %c1_348 = arith.constant 1 : index
    %c2_349 = arith.constant 2 : index
    %c1_350 = arith.constant 1 : index
    %c0_351 = arith.constant 0 : index
    %c0_352 = arith.constant 0 : index
    %432 = vector.load %arg8[%c1_348, %c2_349, %c1_350, %c0_351, %c0_352] : memref<3x7x3x8x1xf32, #tpu.memory_space<vmem>>, vector<1x1x1x8x1xf32>
    %433 = vector.shape_cast %432 : vector<1x1x1x8x1xf32> to vector<8x1xf32>
    %434 = vector.broadcast %433 : vector<8x1xf32> to vector<8x128xf32>
    %435 = arith.mulf %431, %434 : vector<8x128xf32>
    %c1_353 = arith.constant 1 : index
    %c2_354 = arith.constant 2 : index
    %c2_355 = arith.constant 2 : index
    %c0_356 = arith.constant 0 : index
    %c0_357 = arith.constant 0 : index
    %436 = vector.load %arg8[%c1_353, %c2_354, %c2_355, %c0_356, %c0_357] : memref<3x7x3x8x1xf32, #tpu.memory_space<vmem>>, vector<1x1x1x8x1xf32>
    %437 = vector.shape_cast %436 : vector<1x1x1x8x1xf32> to vector<8x1xf32>
    %438 = vector.broadcast %437 : vector<8x1xf32> to vector<8x128xf32>
    %439 = arith.addf %435, %438 : vector<8x128xf32>
    %440 = vector.broadcast %4 : vector<1x128xf32> to vector<8x128xf32>
    %441 = arith.mulf %439, %440 : vector<8x128xf32>
    %442 = vector.extract_strided_slice %367 {offsets = [24, 0], sizes = [8, 128], strides = [1, 1]} : vector<64x128xf32> to vector<8x128xf32>
    %443 = arith.addf %441, %442 : vector<8x128xf32>
    %c3_i32_358 = arith.constant 3 : i32
    %444 = tpu.dynamic_rotate %443 by %c3_i32_358 dim 1 : vector<8x128xf32>, i32 -> vector<8x128xf32>
    %c125_i32_359 = arith.constant 125 : i32
    %445 = tpu.dynamic_rotate %443 by %c125_i32_359 dim 1 : vector<8x128xf32>, i32 -> vector<8x128xf32>
    %446 = tpu.concatenate %444, %443, %445 in 0 : vector<8x128xf32>, vector<8x128xf32>, vector<8x128xf32> -> vector<24x128xf32>
    %447 = arith.truncf %446 : vector<24x128xf32> to vector<24x128xbf16>
    %c1_360 = arith.constant 1 : index
    %c3_361 = arith.constant 3 : index
    %c0_362 = arith.constant 0 : index
    %c0_363 = arith.constant 0 : index
    %448 = vector.load %arg7[%c1_360, %c3_361, %c0_362, %c0_363] : memref<3x7x8x24xbf16, #tpu.memory_space<vmem>>, vector<1x1x8x24xbf16>
    %449 = vector.shape_cast %448 : vector<1x1x8x24xbf16> to vector<8x24xbf16>
    %cst_364 = arith.constant dense<0.000000e+00> : vector<8x128xf32>
    %450 = tpu.matmul %449, %447, %cst_364 {dimension_numbers = #tpu.dot_dimension_numbers<[1], [0], [0], [1], [0, 0, 1, 1], [], []>} : vector<8x24xbf16>, vector<24x128xbf16>, vector<8x128xf32> -> vector<8x128xf32>
    %c1_365 = arith.constant 1 : index
    %c3_366 = arith.constant 3 : index
    %c0_367 = arith.constant 0 : index
    %c0_368 = arith.constant 0 : index
    %c0_369 = arith.constant 0 : index
    %451 = vector.load %arg8[%c1_365, %c3_366, %c0_367, %c0_368, %c0_369] : memref<3x7x3x8x1xf32, #tpu.memory_space<vmem>>, vector<1x1x1x8x1xf32>
    %452 = vector.shape_cast %451 : vector<1x1x1x8x1xf32> to vector<8x1xf32>
    %453 = vector.broadcast %452 : vector<8x1xf32> to vector<8x128xf32>
    %454 = arith.addf %450, %453 : vector<8x128xf32>
    %cst_370 = arith.constant 0.000000e+00 : f32
    %455 = vector.broadcast %cst_370 : f32 to vector<8x128xf32>
    %456 = arith.maximumf %454, %455 : vector<8x128xf32>
    %c1_371 = arith.constant 1 : index
    %c3_372 = arith.constant 3 : index
    %c1_373 = arith.constant 1 : index
    %c0_374 = arith.constant 0 : index
    %c0_375 = arith.constant 0 : index
    %457 = vector.load %arg8[%c1_371, %c3_372, %c1_373, %c0_374, %c0_375] : memref<3x7x3x8x1xf32, #tpu.memory_space<vmem>>, vector<1x1x1x8x1xf32>
    %458 = vector.shape_cast %457 : vector<1x1x1x8x1xf32> to vector<8x1xf32>
    %459 = vector.broadcast %458 : vector<8x1xf32> to vector<8x128xf32>
    %460 = arith.mulf %456, %459 : vector<8x128xf32>
    %c1_376 = arith.constant 1 : index
    %c3_377 = arith.constant 3 : index
    %c2_378 = arith.constant 2 : index
    %c0_379 = arith.constant 0 : index
    %c0_380 = arith.constant 0 : index
    %461 = vector.load %arg8[%c1_376, %c3_377, %c2_378, %c0_379, %c0_380] : memref<3x7x3x8x1xf32, #tpu.memory_space<vmem>>, vector<1x1x1x8x1xf32>
    %462 = vector.shape_cast %461 : vector<1x1x1x8x1xf32> to vector<8x1xf32>
    %463 = vector.broadcast %462 : vector<8x1xf32> to vector<8x128xf32>
    %464 = arith.addf %460, %463 : vector<8x128xf32>
    %465 = vector.broadcast %4 : vector<1x128xf32> to vector<8x128xf32>
    %466 = arith.mulf %464, %465 : vector<8x128xf32>
    %467 = vector.extract_strided_slice %367 {offsets = [32, 0], sizes = [8, 128], strides = [1, 1]} : vector<64x128xf32> to vector<8x128xf32>
    %468 = arith.addf %466, %467 : vector<8x128xf32>
    %c3_i32_381 = arith.constant 3 : i32
    %469 = tpu.dynamic_rotate %468 by %c3_i32_381 dim 1 : vector<8x128xf32>, i32 -> vector<8x128xf32>
    %c125_i32_382 = arith.constant 125 : i32
    %470 = tpu.dynamic_rotate %468 by %c125_i32_382 dim 1 : vector<8x128xf32>, i32 -> vector<8x128xf32>
    %471 = tpu.concatenate %469, %468, %470 in 0 : vector<8x128xf32>, vector<8x128xf32>, vector<8x128xf32> -> vector<24x128xf32>
    %472 = arith.truncf %471 : vector<24x128xf32> to vector<24x128xbf16>
    %c1_383 = arith.constant 1 : index
    %c4_384 = arith.constant 4 : index
    %c0_385 = arith.constant 0 : index
    %c0_386 = arith.constant 0 : index
    %473 = vector.load %arg7[%c1_383, %c4_384, %c0_385, %c0_386] : memref<3x7x8x24xbf16, #tpu.memory_space<vmem>>, vector<1x1x8x24xbf16>
    %474 = vector.shape_cast %473 : vector<1x1x8x24xbf16> to vector<8x24xbf16>
    %cst_387 = arith.constant dense<0.000000e+00> : vector<8x128xf32>
    %475 = tpu.matmul %474, %472, %cst_387 {dimension_numbers = #tpu.dot_dimension_numbers<[1], [0], [0], [1], [0, 0, 1, 1], [], []>} : vector<8x24xbf16>, vector<24x128xbf16>, vector<8x128xf32> -> vector<8x128xf32>
    %c1_388 = arith.constant 1 : index
    %c4_389 = arith.constant 4 : index
    %c0_390 = arith.constant 0 : index
    %c0_391 = arith.constant 0 : index
    %c0_392 = arith.constant 0 : index
    %476 = vector.load %arg8[%c1_388, %c4_389, %c0_390, %c0_391, %c0_392] : memref<3x7x3x8x1xf32, #tpu.memory_space<vmem>>, vector<1x1x1x8x1xf32>
    %477 = vector.shape_cast %476 : vector<1x1x1x8x1xf32> to vector<8x1xf32>
    %478 = vector.broadcast %477 : vector<8x1xf32> to vector<8x128xf32>
    %479 = arith.addf %475, %478 : vector<8x128xf32>
    %cst_393 = arith.constant 0.000000e+00 : f32
    %480 = vector.broadcast %cst_393 : f32 to vector<8x128xf32>
    %481 = arith.maximumf %479, %480 : vector<8x128xf32>
    %c1_394 = arith.constant 1 : index
    %c4_395 = arith.constant 4 : index
    %c1_396 = arith.constant 1 : index
    %c0_397 = arith.constant 0 : index
    %c0_398 = arith.constant 0 : index
    %482 = vector.load %arg8[%c1_394, %c4_395, %c1_396, %c0_397, %c0_398] : memref<3x7x3x8x1xf32, #tpu.memory_space<vmem>>, vector<1x1x1x8x1xf32>
    %483 = vector.shape_cast %482 : vector<1x1x1x8x1xf32> to vector<8x1xf32>
    %484 = vector.broadcast %483 : vector<8x1xf32> to vector<8x128xf32>
    %485 = arith.mulf %481, %484 : vector<8x128xf32>
    %c1_399 = arith.constant 1 : index
    %c4_400 = arith.constant 4 : index
    %c2_401 = arith.constant 2 : index
    %c0_402 = arith.constant 0 : index
    %c0_403 = arith.constant 0 : index
    %486 = vector.load %arg8[%c1_399, %c4_400, %c2_401, %c0_402, %c0_403] : memref<3x7x3x8x1xf32, #tpu.memory_space<vmem>>, vector<1x1x1x8x1xf32>
    %487 = vector.shape_cast %486 : vector<1x1x1x8x1xf32> to vector<8x1xf32>
    %488 = vector.broadcast %487 : vector<8x1xf32> to vector<8x128xf32>
    %489 = arith.addf %485, %488 : vector<8x128xf32>
    %490 = vector.broadcast %4 : vector<1x128xf32> to vector<8x128xf32>
    %491 = arith.mulf %489, %490 : vector<8x128xf32>
    %492 = vector.extract_strided_slice %367 {offsets = [40, 0], sizes = [8, 128], strides = [1, 1]} : vector<64x128xf32> to vector<8x128xf32>
    %493 = arith.addf %491, %492 : vector<8x128xf32>
    %c3_i32_404 = arith.constant 3 : i32
    %494 = tpu.dynamic_rotate %493 by %c3_i32_404 dim 1 : vector<8x128xf32>, i32 -> vector<8x128xf32>
    %c125_i32_405 = arith.constant 125 : i32
    %495 = tpu.dynamic_rotate %493 by %c125_i32_405 dim 1 : vector<8x128xf32>, i32 -> vector<8x128xf32>
    %496 = tpu.concatenate %494, %493, %495 in 0 : vector<8x128xf32>, vector<8x128xf32>, vector<8x128xf32> -> vector<24x128xf32>
    %497 = arith.truncf %496 : vector<24x128xf32> to vector<24x128xbf16>
    %c1_406 = arith.constant 1 : index
    %c5_407 = arith.constant 5 : index
    %c0_408 = arith.constant 0 : index
    %c0_409 = arith.constant 0 : index
    %498 = vector.load %arg7[%c1_406, %c5_407, %c0_408, %c0_409] : memref<3x7x8x24xbf16, #tpu.memory_space<vmem>>, vector<1x1x8x24xbf16>
    %499 = vector.shape_cast %498 : vector<1x1x8x24xbf16> to vector<8x24xbf16>
    %cst_410 = arith.constant dense<0.000000e+00> : vector<8x128xf32>
    %500 = tpu.matmul %499, %497, %cst_410 {dimension_numbers = #tpu.dot_dimension_numbers<[1], [0], [0], [1], [0, 0, 1, 1], [], []>} : vector<8x24xbf16>, vector<24x128xbf16>, vector<8x128xf32> -> vector<8x128xf32>
    %c1_411 = arith.constant 1 : index
    %c5_412 = arith.constant 5 : index
    %c0_413 = arith.constant 0 : index
    %c0_414 = arith.constant 0 : index
    %c0_415 = arith.constant 0 : index
    %501 = vector.load %arg8[%c1_411, %c5_412, %c0_413, %c0_414, %c0_415] : memref<3x7x3x8x1xf32, #tpu.memory_space<vmem>>, vector<1x1x1x8x1xf32>
    %502 = vector.shape_cast %501 : vector<1x1x1x8x1xf32> to vector<8x1xf32>
    %503 = vector.broadcast %502 : vector<8x1xf32> to vector<8x128xf32>
    %504 = arith.addf %500, %503 : vector<8x128xf32>
    %cst_416 = arith.constant 0.000000e+00 : f32
    %505 = vector.broadcast %cst_416 : f32 to vector<8x128xf32>
    %506 = arith.maximumf %504, %505 : vector<8x128xf32>
    %c1_417 = arith.constant 1 : index
    %c5_418 = arith.constant 5 : index
    %c1_419 = arith.constant 1 : index
    %c0_420 = arith.constant 0 : index
    %c0_421 = arith.constant 0 : index
    %507 = vector.load %arg8[%c1_417, %c5_418, %c1_419, %c0_420, %c0_421] : memref<3x7x3x8x1xf32, #tpu.memory_space<vmem>>, vector<1x1x1x8x1xf32>
    %508 = vector.shape_cast %507 : vector<1x1x1x8x1xf32> to vector<8x1xf32>
    %509 = vector.broadcast %508 : vector<8x1xf32> to vector<8x128xf32>
    %510 = arith.mulf %506, %509 : vector<8x128xf32>
    %c1_422 = arith.constant 1 : index
    %c5_423 = arith.constant 5 : index
    %c2_424 = arith.constant 2 : index
    %c0_425 = arith.constant 0 : index
    %c0_426 = arith.constant 0 : index
    %511 = vector.load %arg8[%c1_422, %c5_423, %c2_424, %c0_425, %c0_426] : memref<3x7x3x8x1xf32, #tpu.memory_space<vmem>>, vector<1x1x1x8x1xf32>
    %512 = vector.shape_cast %511 : vector<1x1x1x8x1xf32> to vector<8x1xf32>
    %513 = vector.broadcast %512 : vector<8x1xf32> to vector<8x128xf32>
    %514 = arith.addf %510, %513 : vector<8x128xf32>
    %515 = vector.broadcast %4 : vector<1x128xf32> to vector<8x128xf32>
    %516 = arith.mulf %514, %515 : vector<8x128xf32>
    %517 = vector.extract_strided_slice %367 {offsets = [48, 0], sizes = [8, 128], strides = [1, 1]} : vector<64x128xf32> to vector<8x128xf32>
    %518 = arith.addf %516, %517 : vector<8x128xf32>
    %c3_i32_427 = arith.constant 3 : i32
    %519 = tpu.dynamic_rotate %518 by %c3_i32_427 dim 1 : vector<8x128xf32>, i32 -> vector<8x128xf32>
    %c125_i32_428 = arith.constant 125 : i32
    %520 = tpu.dynamic_rotate %518 by %c125_i32_428 dim 1 : vector<8x128xf32>, i32 -> vector<8x128xf32>
    %521 = tpu.concatenate %519, %518, %520 in 0 : vector<8x128xf32>, vector<8x128xf32>, vector<8x128xf32> -> vector<24x128xf32>
    %522 = arith.truncf %521 : vector<24x128xf32> to vector<24x128xbf16>
    %c1_429 = arith.constant 1 : index
    %c6_430 = arith.constant 6 : index
    %c0_431 = arith.constant 0 : index
    %c0_432 = arith.constant 0 : index
    %523 = vector.load %arg7[%c1_429, %c6_430, %c0_431, %c0_432] : memref<3x7x8x24xbf16, #tpu.memory_space<vmem>>, vector<1x1x8x24xbf16>
    %524 = vector.shape_cast %523 : vector<1x1x8x24xbf16> to vector<8x24xbf16>
    %cst_433 = arith.constant dense<0.000000e+00> : vector<8x128xf32>
    %525 = tpu.matmul %524, %522, %cst_433 {dimension_numbers = #tpu.dot_dimension_numbers<[1], [0], [0], [1], [0, 0, 1, 1], [], []>} : vector<8x24xbf16>, vector<24x128xbf16>, vector<8x128xf32> -> vector<8x128xf32>
    %c1_434 = arith.constant 1 : index
    %c6_435 = arith.constant 6 : index
    %c0_436 = arith.constant 0 : index
    %c0_437 = arith.constant 0 : index
    %c0_438 = arith.constant 0 : index
    %526 = vector.load %arg8[%c1_434, %c6_435, %c0_436, %c0_437, %c0_438] : memref<3x7x3x8x1xf32, #tpu.memory_space<vmem>>, vector<1x1x1x8x1xf32>
    %527 = vector.shape_cast %526 : vector<1x1x1x8x1xf32> to vector<8x1xf32>
    %528 = vector.broadcast %527 : vector<8x1xf32> to vector<8x128xf32>
    %529 = arith.addf %525, %528 : vector<8x128xf32>
    %cst_439 = arith.constant 0.000000e+00 : f32
    %530 = vector.broadcast %cst_439 : f32 to vector<8x128xf32>
    %531 = arith.maximumf %529, %530 : vector<8x128xf32>
    %c1_440 = arith.constant 1 : index
    %c6_441 = arith.constant 6 : index
    %c1_442 = arith.constant 1 : index
    %c0_443 = arith.constant 0 : index
    %c0_444 = arith.constant 0 : index
    %532 = vector.load %arg8[%c1_440, %c6_441, %c1_442, %c0_443, %c0_444] : memref<3x7x3x8x1xf32, #tpu.memory_space<vmem>>, vector<1x1x1x8x1xf32>
    %533 = vector.shape_cast %532 : vector<1x1x1x8x1xf32> to vector<8x1xf32>
    %534 = vector.broadcast %533 : vector<8x1xf32> to vector<8x128xf32>
    %535 = arith.mulf %531, %534 : vector<8x128xf32>
    %c1_445 = arith.constant 1 : index
    %c6_446 = arith.constant 6 : index
    %c2_447 = arith.constant 2 : index
    %c0_448 = arith.constant 0 : index
    %c0_449 = arith.constant 0 : index
    %536 = vector.load %arg8[%c1_445, %c6_446, %c2_447, %c0_448, %c0_449] : memref<3x7x3x8x1xf32, #tpu.memory_space<vmem>>, vector<1x1x1x8x1xf32>
    %537 = vector.shape_cast %536 : vector<1x1x1x8x1xf32> to vector<8x1xf32>
    %538 = vector.broadcast %537 : vector<8x1xf32> to vector<8x128xf32>
    %539 = arith.addf %535, %538 : vector<8x128xf32>
    %540 = vector.broadcast %4 : vector<1x128xf32> to vector<8x128xf32>
    %541 = arith.mulf %539, %540 : vector<8x128xf32>
    %542 = vector.extract_strided_slice %367 {offsets = [56, 0], sizes = [8, 128], strides = [1, 1]} : vector<64x128xf32> to vector<8x128xf32>
    %c1_450 = arith.constant 1 : index
    %c0_451 = arith.constant 0 : index
    %c0_452 = arith.constant 0 : index
    %c0_453 = arith.constant 0 : index
    %543 = vector.load %arg9[%c1_450, %c0_451, %c0_452, %c0_453] : memref<3x8x64x8xbf16, #tpu.memory_space<vmem>>, vector<1x1x64x8xbf16>
    %544 = vector.shape_cast %543 : vector<1x1x64x8xbf16> to vector<64x8xbf16>
    %545 = arith.truncf %391 : vector<8x128xf32> to vector<8x128xbf16>
    %cst_454 = arith.constant dense<0.000000e+00> : vector<64x128xf32>
    %546 = tpu.matmul %544, %545, %cst_454 {dimension_numbers = #tpu.dot_dimension_numbers<[1], [0], [0], [1], [0, 0, 1, 1], [], []>} : vector<64x8xbf16>, vector<8x128xbf16>, vector<64x128xf32> -> vector<64x128xf32>
    %c1_455 = arith.constant 1 : index
    %c1_456 = arith.constant 1 : index
    %c0_457 = arith.constant 0 : index
    %c0_458 = arith.constant 0 : index
    %547 = vector.load %arg9[%c1_455, %c1_456, %c0_457, %c0_458] : memref<3x8x64x8xbf16, #tpu.memory_space<vmem>>, vector<1x1x64x8xbf16>
    %548 = vector.shape_cast %547 : vector<1x1x64x8xbf16> to vector<64x8xbf16>
    %549 = arith.truncf %416 : vector<8x128xf32> to vector<8x128xbf16>
    %cst_459 = arith.constant dense<0.000000e+00> : vector<64x128xf32>
    %550 = tpu.matmul %548, %549, %cst_459 {dimension_numbers = #tpu.dot_dimension_numbers<[1], [0], [0], [1], [0, 0, 1, 1], [], []>} : vector<64x8xbf16>, vector<8x128xbf16>, vector<64x128xf32> -> vector<64x128xf32>
    %551 = arith.addf %546, %550 : vector<64x128xf32>
    %c1_460 = arith.constant 1 : index
    %c2_461 = arith.constant 2 : index
    %c0_462 = arith.constant 0 : index
    %c0_463 = arith.constant 0 : index
    %552 = vector.load %arg9[%c1_460, %c2_461, %c0_462, %c0_463] : memref<3x8x64x8xbf16, #tpu.memory_space<vmem>>, vector<1x1x64x8xbf16>
    %553 = vector.shape_cast %552 : vector<1x1x64x8xbf16> to vector<64x8xbf16>
    %554 = arith.truncf %441 : vector<8x128xf32> to vector<8x128xbf16>
    %cst_464 = arith.constant dense<0.000000e+00> : vector<64x128xf32>
    %555 = tpu.matmul %553, %554, %cst_464 {dimension_numbers = #tpu.dot_dimension_numbers<[1], [0], [0], [1], [0, 0, 1, 1], [], []>} : vector<64x8xbf16>, vector<8x128xbf16>, vector<64x128xf32> -> vector<64x128xf32>
    %556 = arith.addf %551, %555 : vector<64x128xf32>
    %c1_465 = arith.constant 1 : index
    %c3_466 = arith.constant 3 : index
    %c0_467 = arith.constant 0 : index
    %c0_468 = arith.constant 0 : index
    %557 = vector.load %arg9[%c1_465, %c3_466, %c0_467, %c0_468] : memref<3x8x64x8xbf16, #tpu.memory_space<vmem>>, vector<1x1x64x8xbf16>
    %558 = vector.shape_cast %557 : vector<1x1x64x8xbf16> to vector<64x8xbf16>
    %559 = arith.truncf %466 : vector<8x128xf32> to vector<8x128xbf16>
    %cst_469 = arith.constant dense<0.000000e+00> : vector<64x128xf32>
    %560 = tpu.matmul %558, %559, %cst_469 {dimension_numbers = #tpu.dot_dimension_numbers<[1], [0], [0], [1], [0, 0, 1, 1], [], []>} : vector<64x8xbf16>, vector<8x128xbf16>, vector<64x128xf32> -> vector<64x128xf32>
    %561 = arith.addf %556, %560 : vector<64x128xf32>
    %c1_470 = arith.constant 1 : index
    %c4_471 = arith.constant 4 : index
    %c0_472 = arith.constant 0 : index
    %c0_473 = arith.constant 0 : index
    %562 = vector.load %arg9[%c1_470, %c4_471, %c0_472, %c0_473] : memref<3x8x64x8xbf16, #tpu.memory_space<vmem>>, vector<1x1x64x8xbf16>
    %563 = vector.shape_cast %562 : vector<1x1x64x8xbf16> to vector<64x8xbf16>
    %564 = arith.truncf %491 : vector<8x128xf32> to vector<8x128xbf16>
    %cst_474 = arith.constant dense<0.000000e+00> : vector<64x128xf32>
    %565 = tpu.matmul %563, %564, %cst_474 {dimension_numbers = #tpu.dot_dimension_numbers<[1], [0], [0], [1], [0, 0, 1, 1], [], []>} : vector<64x8xbf16>, vector<8x128xbf16>, vector<64x128xf32> -> vector<64x128xf32>
    %566 = arith.addf %561, %565 : vector<64x128xf32>
    %c1_475 = arith.constant 1 : index
    %c5_476 = arith.constant 5 : index
    %c0_477 = arith.constant 0 : index
    %c0_478 = arith.constant 0 : index
    %567 = vector.load %arg9[%c1_475, %c5_476, %c0_477, %c0_478] : memref<3x8x64x8xbf16, #tpu.memory_space<vmem>>, vector<1x1x64x8xbf16>
    %568 = vector.shape_cast %567 : vector<1x1x64x8xbf16> to vector<64x8xbf16>
    %569 = arith.truncf %516 : vector<8x128xf32> to vector<8x128xbf16>
    %cst_479 = arith.constant dense<0.000000e+00> : vector<64x128xf32>
    %570 = tpu.matmul %568, %569, %cst_479 {dimension_numbers = #tpu.dot_dimension_numbers<[1], [0], [0], [1], [0, 0, 1, 1], [], []>} : vector<64x8xbf16>, vector<8x128xbf16>, vector<64x128xf32> -> vector<64x128xf32>
    %571 = arith.addf %566, %570 : vector<64x128xf32>
    %c1_480 = arith.constant 1 : index
    %c6_481 = arith.constant 6 : index
    %c0_482 = arith.constant 0 : index
    %c0_483 = arith.constant 0 : index
    %572 = vector.load %arg9[%c1_480, %c6_481, %c0_482, %c0_483] : memref<3x8x64x8xbf16, #tpu.memory_space<vmem>>, vector<1x1x64x8xbf16>
    %573 = vector.shape_cast %572 : vector<1x1x64x8xbf16> to vector<64x8xbf16>
    %574 = arith.truncf %541 : vector<8x128xf32> to vector<8x128xbf16>
    %cst_484 = arith.constant dense<0.000000e+00> : vector<64x128xf32>
    %575 = tpu.matmul %573, %574, %cst_484 {dimension_numbers = #tpu.dot_dimension_numbers<[1], [0], [0], [1], [0, 0, 1, 1], [], []>} : vector<64x8xbf16>, vector<8x128xbf16>, vector<64x128xf32> -> vector<64x128xf32>
    %576 = arith.addf %571, %575 : vector<64x128xf32>
    %c1_485 = arith.constant 1 : index
    %c7_486 = arith.constant 7 : index
    %c0_487 = arith.constant 0 : index
    %c0_488 = arith.constant 0 : index
    %577 = vector.load %arg9[%c1_485, %c7_486, %c0_487, %c0_488] : memref<3x8x64x8xbf16, #tpu.memory_space<vmem>>, vector<1x1x64x8xbf16>
    %578 = vector.shape_cast %577 : vector<1x1x64x8xbf16> to vector<64x8xbf16>
    %579 = arith.truncf %542 : vector<8x128xf32> to vector<8x128xbf16>
    %cst_489 = arith.constant dense<0.000000e+00> : vector<64x128xf32>
    %580 = tpu.matmul %578, %579, %cst_489 {dimension_numbers = #tpu.dot_dimension_numbers<[1], [0], [0], [1], [0, 0, 1, 1], [], []>} : vector<64x8xbf16>, vector<8x128xbf16>, vector<64x128xf32> -> vector<64x128xf32>
    %581 = arith.addf %576, %580 : vector<64x128xf32>
    %c1_490 = arith.constant 1 : index
    %c0_491 = arith.constant 0 : index
    %c0_492 = arith.constant 0 : index
    %c0_493 = arith.constant 0 : index
    %582 = vector.load %arg10[%c1_490, %c0_491, %c0_492, %c0_493] : memref<3x3x64x1xf32, #tpu.memory_space<vmem>>, vector<1x1x64x1xf32>
    %583 = vector.shape_cast %582 : vector<1x1x64x1xf32> to vector<64x1xf32>
    %584 = vector.broadcast %583 : vector<64x1xf32> to vector<64x128xf32>
    %585 = arith.addf %581, %584 : vector<64x128xf32>
    %cst_494 = arith.constant 0.000000e+00 : f32
    %586 = vector.broadcast %cst_494 : f32 to vector<64x128xf32>
    %587 = arith.maximumf %585, %586 : vector<64x128xf32>
    %c1_495 = arith.constant 1 : index
    %c1_496 = arith.constant 1 : index
    %c0_497 = arith.constant 0 : index
    %c0_498 = arith.constant 0 : index
    %588 = vector.load %arg10[%c1_495, %c1_496, %c0_497, %c0_498] : memref<3x3x64x1xf32, #tpu.memory_space<vmem>>, vector<1x1x64x1xf32>
    %589 = vector.shape_cast %588 : vector<1x1x64x1xf32> to vector<64x1xf32>
    %590 = vector.broadcast %589 : vector<64x1xf32> to vector<64x128xf32>
    %591 = arith.mulf %587, %590 : vector<64x128xf32>
    %c1_499 = arith.constant 1 : index
    %c2_500 = arith.constant 2 : index
    %c0_501 = arith.constant 0 : index
    %c0_502 = arith.constant 0 : index
    %592 = vector.load %arg10[%c1_499, %c2_500, %c0_501, %c0_502] : memref<3x3x64x1xf32, #tpu.memory_space<vmem>>, vector<1x1x64x1xf32>
    %593 = vector.shape_cast %592 : vector<1x1x64x1xf32> to vector<64x1xf32>
    %594 = vector.broadcast %593 : vector<64x1xf32> to vector<64x128xf32>
    %595 = arith.addf %591, %594 : vector<64x128xf32>
    %596 = vector.broadcast %4 : vector<1x128xf32> to vector<64x128xf32>
    %597 = arith.mulf %595, %596 : vector<64x128xf32>
    %cst_503 = arith.constant dense<0.000000e+00> : vector<64xf32>
    %598 = vector.multi_reduction <add>, %597, %cst_503 [1] : vector<64x128xf32> to vector<64xf32>
    %599 = vector.shape_cast %598 : vector<64xf32> to vector<64x1xf32>
    %cst_504 = arith.constant 6.250000e-02 : f32
    %600 = vector.broadcast %cst_504 : f32 to vector<64x1xf32>
    %601 = arith.mulf %599, %600 : vector<64x1xf32>
    %c1_505 = arith.constant 1 : index
    %c0_506 = arith.constant 0 : index
    %c0_507 = arith.constant 0 : index
    %602 = vector.load %arg11[%c1_505, %c0_506, %c0_507] : memref<3x32x64xf32, #tpu.memory_space<vmem>>, vector<1x32x64xf32>
    %603 = vector.shape_cast %602 : vector<1x32x64xf32> to vector<32x64xf32>
    %cst_508 = arith.constant dense<0.000000e+00> : vector<32x1xf32>
    %604 = tpu.matmul %603, %601, %cst_508 {dimension_numbers = #tpu.dot_dimension_numbers<[1], [0], [0], [1], [0, 0, 1, 1], [], []>} : vector<32x64xf32>, vector<64x1xf32>, vector<32x1xf32> -> vector<32x1xf32>
    %c1_509 = arith.constant 1 : index
    %c0_510 = arith.constant 0 : index
    %c0_511 = arith.constant 0 : index
    %605 = vector.load %arg12[%c1_509, %c0_510, %c0_511] : memref<3x32x1xf32, #tpu.memory_space<vmem>>, vector<1x32x1xf32>
    %606 = vector.shape_cast %605 : vector<1x32x1xf32> to vector<32x1xf32>
    %607 = arith.addf %604, %606 : vector<32x1xf32>
    %cst_512 = arith.constant 0.000000e+00 : f32
    %608 = vector.broadcast %cst_512 : f32 to vector<32x1xf32>
    %609 = arith.maximumf %607, %608 : vector<32x1xf32>
    %c1_513 = arith.constant 1 : index
    %c0_514 = arith.constant 0 : index
    %c0_515 = arith.constant 0 : index
    %610 = vector.load %arg13[%c1_513, %c0_514, %c0_515] : memref<3x64x32xf32, #tpu.memory_space<vmem>>, vector<1x64x32xf32>
    %611 = vector.shape_cast %610 : vector<1x64x32xf32> to vector<64x32xf32>
    %cst_516 = arith.constant dense<0.000000e+00> : vector<64x1xf32>
    %612 = tpu.matmul %611, %609, %cst_516 {dimension_numbers = #tpu.dot_dimension_numbers<[1], [0], [0], [1], [0, 0, 1, 1], [], []>} : vector<64x32xf32>, vector<32x1xf32>, vector<64x1xf32> -> vector<64x1xf32>
    %c1_517 = arith.constant 1 : index
    %c0_518 = arith.constant 0 : index
    %c0_519 = arith.constant 0 : index
    %613 = vector.load %arg14[%c1_517, %c0_518, %c0_519] : memref<3x64x1xf32, #tpu.memory_space<vmem>>, vector<1x64x1xf32>
    %614 = vector.shape_cast %613 : vector<1x64x1xf32> to vector<64x1xf32>
    %615 = arith.addf %612, %614 : vector<64x1xf32>
    %616 = arith.negf %615 : vector<64x1xf32>
    %617 = math.exp %616 : vector<64x1xf32>
    %cst_520 = arith.constant 1.000000e+00 : f32
    %618 = vector.broadcast %cst_520 : f32 to vector<64x1xf32>
    %619 = arith.addf %618, %617 : vector<64x1xf32>
    %620 = arith.divf %618, %619 : vector<64x1xf32>
    %621 = vector.broadcast %620 : vector<64x1xf32> to vector<64x128xf32>
    %622 = arith.mulf %597, %621 : vector<64x128xf32>
    %623 = arith.addf %622, %347 : vector<64x128xf32>
    %c2_521 = arith.constant 2 : index
    %c0_522 = arith.constant 0 : index
    %c0_523 = arith.constant 0 : index
    %624 = vector.load %arg5[%c2_521, %c0_522, %c0_523] : memref<3x64x64xbf16, #tpu.memory_space<vmem>>, vector<1x64x64xbf16>
    %625 = vector.shape_cast %624 : vector<1x64x64xbf16> to vector<64x64xbf16>
    %626 = arith.truncf %623 : vector<64x128xf32> to vector<64x128xbf16>
    %cst_524 = arith.constant dense<0.000000e+00> : vector<64x128xf32>
    %627 = tpu.matmul %625, %626, %cst_524 {dimension_numbers = #tpu.dot_dimension_numbers<[1], [0], [0], [1], [0, 0, 1, 1], [], []>} : vector<64x64xbf16>, vector<64x128xbf16>, vector<64x128xf32> -> vector<64x128xf32>
    %c2_525 = arith.constant 2 : index
    %c0_526 = arith.constant 0 : index
    %c0_527 = arith.constant 0 : index
    %c0_528 = arith.constant 0 : index
    %628 = vector.load %arg6[%c2_525, %c0_526, %c0_527, %c0_528] : memref<3x3x64x1xf32, #tpu.memory_space<vmem>>, vector<1x1x64x1xf32>
    %629 = vector.shape_cast %628 : vector<1x1x64x1xf32> to vector<64x1xf32>
    %630 = vector.broadcast %629 : vector<64x1xf32> to vector<64x128xf32>
    %631 = arith.addf %627, %630 : vector<64x128xf32>
    %cst_529 = arith.constant 0.000000e+00 : f32
    %632 = vector.broadcast %cst_529 : f32 to vector<64x128xf32>
    %633 = arith.maximumf %631, %632 : vector<64x128xf32>
    %c2_530 = arith.constant 2 : index
    %c1_531 = arith.constant 1 : index
    %c0_532 = arith.constant 0 : index
    %c0_533 = arith.constant 0 : index
    %634 = vector.load %arg6[%c2_530, %c1_531, %c0_532, %c0_533] : memref<3x3x64x1xf32, #tpu.memory_space<vmem>>, vector<1x1x64x1xf32>
    %635 = vector.shape_cast %634 : vector<1x1x64x1xf32> to vector<64x1xf32>
    %636 = vector.broadcast %635 : vector<64x1xf32> to vector<64x128xf32>
    %637 = arith.mulf %633, %636 : vector<64x128xf32>
    %c2_534 = arith.constant 2 : index
    %c2_535 = arith.constant 2 : index
    %c0_536 = arith.constant 0 : index
    %c0_537 = arith.constant 0 : index
    %638 = vector.load %arg6[%c2_534, %c2_535, %c0_536, %c0_537] : memref<3x3x64x1xf32, #tpu.memory_space<vmem>>, vector<1x1x64x1xf32>
    %639 = vector.shape_cast %638 : vector<1x1x64x1xf32> to vector<64x1xf32>
    %640 = vector.broadcast %639 : vector<64x1xf32> to vector<64x128xf32>
    %641 = arith.addf %637, %640 : vector<64x128xf32>
    %642 = vector.broadcast %4 : vector<1x128xf32> to vector<64x128xf32>
    %643 = arith.mulf %641, %642 : vector<64x128xf32>
    %644 = vector.extract_strided_slice %643 {offsets = [0, 0], sizes = [8, 128], strides = [1, 1]} : vector<64x128xf32> to vector<8x128xf32>
    %c4_i32 = arith.constant 4 : i32
    %645 = tpu.dynamic_rotate %644 by %c4_i32 dim 1 : vector<8x128xf32>, i32 -> vector<8x128xf32>
    %c124_i32 = arith.constant 124 : i32
    %646 = tpu.dynamic_rotate %644 by %c124_i32 dim 1 : vector<8x128xf32>, i32 -> vector<8x128xf32>
    %647 = tpu.concatenate %645, %644, %646 in 0 : vector<8x128xf32>, vector<8x128xf32>, vector<8x128xf32> -> vector<24x128xf32>
    %648 = arith.truncf %647 : vector<24x128xf32> to vector<24x128xbf16>
    %c2_538 = arith.constant 2 : index
    %c0_539 = arith.constant 0 : index
    %c0_540 = arith.constant 0 : index
    %c0_541 = arith.constant 0 : index
    %649 = vector.load %arg7[%c2_538, %c0_539, %c0_540, %c0_541] : memref<3x7x8x24xbf16, #tpu.memory_space<vmem>>, vector<1x1x8x24xbf16>
    %650 = vector.shape_cast %649 : vector<1x1x8x24xbf16> to vector<8x24xbf16>
    %cst_542 = arith.constant dense<0.000000e+00> : vector<8x128xf32>
    %651 = tpu.matmul %650, %648, %cst_542 {dimension_numbers = #tpu.dot_dimension_numbers<[1], [0], [0], [1], [0, 0, 1, 1], [], []>} : vector<8x24xbf16>, vector<24x128xbf16>, vector<8x128xf32> -> vector<8x128xf32>
    %c2_543 = arith.constant 2 : index
    %c0_544 = arith.constant 0 : index
    %c0_545 = arith.constant 0 : index
    %c0_546 = arith.constant 0 : index
    %c0_547 = arith.constant 0 : index
    %652 = vector.load %arg8[%c2_543, %c0_544, %c0_545, %c0_546, %c0_547] : memref<3x7x3x8x1xf32, #tpu.memory_space<vmem>>, vector<1x1x1x8x1xf32>
    %653 = vector.shape_cast %652 : vector<1x1x1x8x1xf32> to vector<8x1xf32>
    %654 = vector.broadcast %653 : vector<8x1xf32> to vector<8x128xf32>
    %655 = arith.addf %651, %654 : vector<8x128xf32>
    %cst_548 = arith.constant 0.000000e+00 : f32
    %656 = vector.broadcast %cst_548 : f32 to vector<8x128xf32>
    %657 = arith.maximumf %655, %656 : vector<8x128xf32>
    %c2_549 = arith.constant 2 : index
    %c0_550 = arith.constant 0 : index
    %c1_551 = arith.constant 1 : index
    %c0_552 = arith.constant 0 : index
    %c0_553 = arith.constant 0 : index
    %658 = vector.load %arg8[%c2_549, %c0_550, %c1_551, %c0_552, %c0_553] : memref<3x7x3x8x1xf32, #tpu.memory_space<vmem>>, vector<1x1x1x8x1xf32>
    %659 = vector.shape_cast %658 : vector<1x1x1x8x1xf32> to vector<8x1xf32>
    %660 = vector.broadcast %659 : vector<8x1xf32> to vector<8x128xf32>
    %661 = arith.mulf %657, %660 : vector<8x128xf32>
    %c2_554 = arith.constant 2 : index
    %c0_555 = arith.constant 0 : index
    %c2_556 = arith.constant 2 : index
    %c0_557 = arith.constant 0 : index
    %c0_558 = arith.constant 0 : index
    %662 = vector.load %arg8[%c2_554, %c0_555, %c2_556, %c0_557, %c0_558] : memref<3x7x3x8x1xf32, #tpu.memory_space<vmem>>, vector<1x1x1x8x1xf32>
    %663 = vector.shape_cast %662 : vector<1x1x1x8x1xf32> to vector<8x1xf32>
    %664 = vector.broadcast %663 : vector<8x1xf32> to vector<8x128xf32>
    %665 = arith.addf %661, %664 : vector<8x128xf32>
    %666 = vector.broadcast %4 : vector<1x128xf32> to vector<8x128xf32>
    %667 = arith.mulf %665, %666 : vector<8x128xf32>
    %668 = vector.extract_strided_slice %643 {offsets = [8, 0], sizes = [8, 128], strides = [1, 1]} : vector<64x128xf32> to vector<8x128xf32>
    %669 = arith.addf %667, %668 : vector<8x128xf32>
    %c4_i32_559 = arith.constant 4 : i32
    %670 = tpu.dynamic_rotate %669 by %c4_i32_559 dim 1 : vector<8x128xf32>, i32 -> vector<8x128xf32>
    %c124_i32_560 = arith.constant 124 : i32
    %671 = tpu.dynamic_rotate %669 by %c124_i32_560 dim 1 : vector<8x128xf32>, i32 -> vector<8x128xf32>
    %672 = tpu.concatenate %670, %669, %671 in 0 : vector<8x128xf32>, vector<8x128xf32>, vector<8x128xf32> -> vector<24x128xf32>
    %673 = arith.truncf %672 : vector<24x128xf32> to vector<24x128xbf16>
    %c2_561 = arith.constant 2 : index
    %c1_562 = arith.constant 1 : index
    %c0_563 = arith.constant 0 : index
    %c0_564 = arith.constant 0 : index
    %674 = vector.load %arg7[%c2_561, %c1_562, %c0_563, %c0_564] : memref<3x7x8x24xbf16, #tpu.memory_space<vmem>>, vector<1x1x8x24xbf16>
    %675 = vector.shape_cast %674 : vector<1x1x8x24xbf16> to vector<8x24xbf16>
    %cst_565 = arith.constant dense<0.000000e+00> : vector<8x128xf32>
    %676 = tpu.matmul %675, %673, %cst_565 {dimension_numbers = #tpu.dot_dimension_numbers<[1], [0], [0], [1], [0, 0, 1, 1], [], []>} : vector<8x24xbf16>, vector<24x128xbf16>, vector<8x128xf32> -> vector<8x128xf32>
    %c2_566 = arith.constant 2 : index
    %c1_567 = arith.constant 1 : index
    %c0_568 = arith.constant 0 : index
    %c0_569 = arith.constant 0 : index
    %c0_570 = arith.constant 0 : index
    %677 = vector.load %arg8[%c2_566, %c1_567, %c0_568, %c0_569, %c0_570] : memref<3x7x3x8x1xf32, #tpu.memory_space<vmem>>, vector<1x1x1x8x1xf32>
    %678 = vector.shape_cast %677 : vector<1x1x1x8x1xf32> to vector<8x1xf32>
    %679 = vector.broadcast %678 : vector<8x1xf32> to vector<8x128xf32>
    %680 = arith.addf %676, %679 : vector<8x128xf32>
    %cst_571 = arith.constant 0.000000e+00 : f32
    %681 = vector.broadcast %cst_571 : f32 to vector<8x128xf32>
    %682 = arith.maximumf %680, %681 : vector<8x128xf32>
    %c2_572 = arith.constant 2 : index
    %c1_573 = arith.constant 1 : index
    %c1_574 = arith.constant 1 : index
    %c0_575 = arith.constant 0 : index
    %c0_576 = arith.constant 0 : index
    %683 = vector.load %arg8[%c2_572, %c1_573, %c1_574, %c0_575, %c0_576] : memref<3x7x3x8x1xf32, #tpu.memory_space<vmem>>, vector<1x1x1x8x1xf32>
    %684 = vector.shape_cast %683 : vector<1x1x1x8x1xf32> to vector<8x1xf32>
    %685 = vector.broadcast %684 : vector<8x1xf32> to vector<8x128xf32>
    %686 = arith.mulf %682, %685 : vector<8x128xf32>
    %c2_577 = arith.constant 2 : index
    %c1_578 = arith.constant 1 : index
    %c2_579 = arith.constant 2 : index
    %c0_580 = arith.constant 0 : index
    %c0_581 = arith.constant 0 : index
    %687 = vector.load %arg8[%c2_577, %c1_578, %c2_579, %c0_580, %c0_581] : memref<3x7x3x8x1xf32, #tpu.memory_space<vmem>>, vector<1x1x1x8x1xf32>
    %688 = vector.shape_cast %687 : vector<1x1x1x8x1xf32> to vector<8x1xf32>
    %689 = vector.broadcast %688 : vector<8x1xf32> to vector<8x128xf32>
    %690 = arith.addf %686, %689 : vector<8x128xf32>
    %691 = vector.broadcast %4 : vector<1x128xf32> to vector<8x128xf32>
    %692 = arith.mulf %690, %691 : vector<8x128xf32>
    %693 = vector.extract_strided_slice %643 {offsets = [16, 0], sizes = [8, 128], strides = [1, 1]} : vector<64x128xf32> to vector<8x128xf32>
    %694 = arith.addf %692, %693 : vector<8x128xf32>
    %c4_i32_582 = arith.constant 4 : i32
    %695 = tpu.dynamic_rotate %694 by %c4_i32_582 dim 1 : vector<8x128xf32>, i32 -> vector<8x128xf32>
    %c124_i32_583 = arith.constant 124 : i32
    %696 = tpu.dynamic_rotate %694 by %c124_i32_583 dim 1 : vector<8x128xf32>, i32 -> vector<8x128xf32>
    %697 = tpu.concatenate %695, %694, %696 in 0 : vector<8x128xf32>, vector<8x128xf32>, vector<8x128xf32> -> vector<24x128xf32>
    %698 = arith.truncf %697 : vector<24x128xf32> to vector<24x128xbf16>
    %c2_584 = arith.constant 2 : index
    %c2_585 = arith.constant 2 : index
    %c0_586 = arith.constant 0 : index
    %c0_587 = arith.constant 0 : index
    %699 = vector.load %arg7[%c2_584, %c2_585, %c0_586, %c0_587] : memref<3x7x8x24xbf16, #tpu.memory_space<vmem>>, vector<1x1x8x24xbf16>
    %700 = vector.shape_cast %699 : vector<1x1x8x24xbf16> to vector<8x24xbf16>
    %cst_588 = arith.constant dense<0.000000e+00> : vector<8x128xf32>
    %701 = tpu.matmul %700, %698, %cst_588 {dimension_numbers = #tpu.dot_dimension_numbers<[1], [0], [0], [1], [0, 0, 1, 1], [], []>} : vector<8x24xbf16>, vector<24x128xbf16>, vector<8x128xf32> -> vector<8x128xf32>
    %c2_589 = arith.constant 2 : index
    %c2_590 = arith.constant 2 : index
    %c0_591 = arith.constant 0 : index
    %c0_592 = arith.constant 0 : index
    %c0_593 = arith.constant 0 : index
    %702 = vector.load %arg8[%c2_589, %c2_590, %c0_591, %c0_592, %c0_593] : memref<3x7x3x8x1xf32, #tpu.memory_space<vmem>>, vector<1x1x1x8x1xf32>
    %703 = vector.shape_cast %702 : vector<1x1x1x8x1xf32> to vector<8x1xf32>
    %704 = vector.broadcast %703 : vector<8x1xf32> to vector<8x128xf32>
    %705 = arith.addf %701, %704 : vector<8x128xf32>
    %cst_594 = arith.constant 0.000000e+00 : f32
    %706 = vector.broadcast %cst_594 : f32 to vector<8x128xf32>
    %707 = arith.maximumf %705, %706 : vector<8x128xf32>
    %c2_595 = arith.constant 2 : index
    %c2_596 = arith.constant 2 : index
    %c1_597 = arith.constant 1 : index
    %c0_598 = arith.constant 0 : index
    %c0_599 = arith.constant 0 : index
    %708 = vector.load %arg8[%c2_595, %c2_596, %c1_597, %c0_598, %c0_599] : memref<3x7x3x8x1xf32, #tpu.memory_space<vmem>>, vector<1x1x1x8x1xf32>
    %709 = vector.shape_cast %708 : vector<1x1x1x8x1xf32> to vector<8x1xf32>
    %710 = vector.broadcast %709 : vector<8x1xf32> to vector<8x128xf32>
    %711 = arith.mulf %707, %710 : vector<8x128xf32>
    %c2_600 = arith.constant 2 : index
    %c2_601 = arith.constant 2 : index
    %c2_602 = arith.constant 2 : index
    %c0_603 = arith.constant 0 : index
    %c0_604 = arith.constant 0 : index
    %712 = vector.load %arg8[%c2_600, %c2_601, %c2_602, %c0_603, %c0_604] : memref<3x7x3x8x1xf32, #tpu.memory_space<vmem>>, vector<1x1x1x8x1xf32>
    %713 = vector.shape_cast %712 : vector<1x1x1x8x1xf32> to vector<8x1xf32>
    %714 = vector.broadcast %713 : vector<8x1xf32> to vector<8x128xf32>
    %715 = arith.addf %711, %714 : vector<8x128xf32>
    %716 = vector.broadcast %4 : vector<1x128xf32> to vector<8x128xf32>
    %717 = arith.mulf %715, %716 : vector<8x128xf32>
    %718 = vector.extract_strided_slice %643 {offsets = [24, 0], sizes = [8, 128], strides = [1, 1]} : vector<64x128xf32> to vector<8x128xf32>
    %719 = arith.addf %717, %718 : vector<8x128xf32>
    %c4_i32_605 = arith.constant 4 : i32
    %720 = tpu.dynamic_rotate %719 by %c4_i32_605 dim 1 : vector<8x128xf32>, i32 -> vector<8x128xf32>
    %c124_i32_606 = arith.constant 124 : i32
    %721 = tpu.dynamic_rotate %719 by %c124_i32_606 dim 1 : vector<8x128xf32>, i32 -> vector<8x128xf32>
    %722 = tpu.concatenate %720, %719, %721 in 0 : vector<8x128xf32>, vector<8x128xf32>, vector<8x128xf32> -> vector<24x128xf32>
    %723 = arith.truncf %722 : vector<24x128xf32> to vector<24x128xbf16>
    %c2_607 = arith.constant 2 : index
    %c3_608 = arith.constant 3 : index
    %c0_609 = arith.constant 0 : index
    %c0_610 = arith.constant 0 : index
    %724 = vector.load %arg7[%c2_607, %c3_608, %c0_609, %c0_610] : memref<3x7x8x24xbf16, #tpu.memory_space<vmem>>, vector<1x1x8x24xbf16>
    %725 = vector.shape_cast %724 : vector<1x1x8x24xbf16> to vector<8x24xbf16>
    %cst_611 = arith.constant dense<0.000000e+00> : vector<8x128xf32>
    %726 = tpu.matmul %725, %723, %cst_611 {dimension_numbers = #tpu.dot_dimension_numbers<[1], [0], [0], [1], [0, 0, 1, 1], [], []>} : vector<8x24xbf16>, vector<24x128xbf16>, vector<8x128xf32> -> vector<8x128xf32>
    %c2_612 = arith.constant 2 : index
    %c3_613 = arith.constant 3 : index
    %c0_614 = arith.constant 0 : index
    %c0_615 = arith.constant 0 : index
    %c0_616 = arith.constant 0 : index
    %727 = vector.load %arg8[%c2_612, %c3_613, %c0_614, %c0_615, %c0_616] : memref<3x7x3x8x1xf32, #tpu.memory_space<vmem>>, vector<1x1x1x8x1xf32>
    %728 = vector.shape_cast %727 : vector<1x1x1x8x1xf32> to vector<8x1xf32>
    %729 = vector.broadcast %728 : vector<8x1xf32> to vector<8x128xf32>
    %730 = arith.addf %726, %729 : vector<8x128xf32>
    %cst_617 = arith.constant 0.000000e+00 : f32
    %731 = vector.broadcast %cst_617 : f32 to vector<8x128xf32>
    %732 = arith.maximumf %730, %731 : vector<8x128xf32>
    %c2_618 = arith.constant 2 : index
    %c3_619 = arith.constant 3 : index
    %c1_620 = arith.constant 1 : index
    %c0_621 = arith.constant 0 : index
    %c0_622 = arith.constant 0 : index
    %733 = vector.load %arg8[%c2_618, %c3_619, %c1_620, %c0_621, %c0_622] : memref<3x7x3x8x1xf32, #tpu.memory_space<vmem>>, vector<1x1x1x8x1xf32>
    %734 = vector.shape_cast %733 : vector<1x1x1x8x1xf32> to vector<8x1xf32>
    %735 = vector.broadcast %734 : vector<8x1xf32> to vector<8x128xf32>
    %736 = arith.mulf %732, %735 : vector<8x128xf32>
    %c2_623 = arith.constant 2 : index
    %c3_624 = arith.constant 3 : index
    %c2_625 = arith.constant 2 : index
    %c0_626 = arith.constant 0 : index
    %c0_627 = arith.constant 0 : index
    %737 = vector.load %arg8[%c2_623, %c3_624, %c2_625, %c0_626, %c0_627] : memref<3x7x3x8x1xf32, #tpu.memory_space<vmem>>, vector<1x1x1x8x1xf32>
    %738 = vector.shape_cast %737 : vector<1x1x1x8x1xf32> to vector<8x1xf32>
    %739 = vector.broadcast %738 : vector<8x1xf32> to vector<8x128xf32>
    %740 = arith.addf %736, %739 : vector<8x128xf32>
    %741 = vector.broadcast %4 : vector<1x128xf32> to vector<8x128xf32>
    %742 = arith.mulf %740, %741 : vector<8x128xf32>
    %743 = vector.extract_strided_slice %643 {offsets = [32, 0], sizes = [8, 128], strides = [1, 1]} : vector<64x128xf32> to vector<8x128xf32>
    %744 = arith.addf %742, %743 : vector<8x128xf32>
    %c4_i32_628 = arith.constant 4 : i32
    %745 = tpu.dynamic_rotate %744 by %c4_i32_628 dim 1 : vector<8x128xf32>, i32 -> vector<8x128xf32>
    %c124_i32_629 = arith.constant 124 : i32
    %746 = tpu.dynamic_rotate %744 by %c124_i32_629 dim 1 : vector<8x128xf32>, i32 -> vector<8x128xf32>
    %747 = tpu.concatenate %745, %744, %746 in 0 : vector<8x128xf32>, vector<8x128xf32>, vector<8x128xf32> -> vector<24x128xf32>
    %748 = arith.truncf %747 : vector<24x128xf32> to vector<24x128xbf16>
    %c2_630 = arith.constant 2 : index
    %c4_631 = arith.constant 4 : index
    %c0_632 = arith.constant 0 : index
    %c0_633 = arith.constant 0 : index
    %749 = vector.load %arg7[%c2_630, %c4_631, %c0_632, %c0_633] : memref<3x7x8x24xbf16, #tpu.memory_space<vmem>>, vector<1x1x8x24xbf16>
    %750 = vector.shape_cast %749 : vector<1x1x8x24xbf16> to vector<8x24xbf16>
    %cst_634 = arith.constant dense<0.000000e+00> : vector<8x128xf32>
    %751 = tpu.matmul %750, %748, %cst_634 {dimension_numbers = #tpu.dot_dimension_numbers<[1], [0], [0], [1], [0, 0, 1, 1], [], []>} : vector<8x24xbf16>, vector<24x128xbf16>, vector<8x128xf32> -> vector<8x128xf32>
    %c2_635 = arith.constant 2 : index
    %c4_636 = arith.constant 4 : index
    %c0_637 = arith.constant 0 : index
    %c0_638 = arith.constant 0 : index
    %c0_639 = arith.constant 0 : index
    %752 = vector.load %arg8[%c2_635, %c4_636, %c0_637, %c0_638, %c0_639] : memref<3x7x3x8x1xf32, #tpu.memory_space<vmem>>, vector<1x1x1x8x1xf32>
    %753 = vector.shape_cast %752 : vector<1x1x1x8x1xf32> to vector<8x1xf32>
    %754 = vector.broadcast %753 : vector<8x1xf32> to vector<8x128xf32>
    %755 = arith.addf %751, %754 : vector<8x128xf32>
    %cst_640 = arith.constant 0.000000e+00 : f32
    %756 = vector.broadcast %cst_640 : f32 to vector<8x128xf32>
    %757 = arith.maximumf %755, %756 : vector<8x128xf32>
    %c2_641 = arith.constant 2 : index
    %c4_642 = arith.constant 4 : index
    %c1_643 = arith.constant 1 : index
    %c0_644 = arith.constant 0 : index
    %c0_645 = arith.constant 0 : index
    %758 = vector.load %arg8[%c2_641, %c4_642, %c1_643, %c0_644, %c0_645] : memref<3x7x3x8x1xf32, #tpu.memory_space<vmem>>, vector<1x1x1x8x1xf32>
    %759 = vector.shape_cast %758 : vector<1x1x1x8x1xf32> to vector<8x1xf32>
    %760 = vector.broadcast %759 : vector<8x1xf32> to vector<8x128xf32>
    %761 = arith.mulf %757, %760 : vector<8x128xf32>
    %c2_646 = arith.constant 2 : index
    %c4_647 = arith.constant 4 : index
    %c2_648 = arith.constant 2 : index
    %c0_649 = arith.constant 0 : index
    %c0_650 = arith.constant 0 : index
    %762 = vector.load %arg8[%c2_646, %c4_647, %c2_648, %c0_649, %c0_650] : memref<3x7x3x8x1xf32, #tpu.memory_space<vmem>>, vector<1x1x1x8x1xf32>
    %763 = vector.shape_cast %762 : vector<1x1x1x8x1xf32> to vector<8x1xf32>
    %764 = vector.broadcast %763 : vector<8x1xf32> to vector<8x128xf32>
    %765 = arith.addf %761, %764 : vector<8x128xf32>
    %766 = vector.broadcast %4 : vector<1x128xf32> to vector<8x128xf32>
    %767 = arith.mulf %765, %766 : vector<8x128xf32>
    %768 = vector.extract_strided_slice %643 {offsets = [40, 0], sizes = [8, 128], strides = [1, 1]} : vector<64x128xf32> to vector<8x128xf32>
    %769 = arith.addf %767, %768 : vector<8x128xf32>
    %c4_i32_651 = arith.constant 4 : i32
    %770 = tpu.dynamic_rotate %769 by %c4_i32_651 dim 1 : vector<8x128xf32>, i32 -> vector<8x128xf32>
    %c124_i32_652 = arith.constant 124 : i32
    %771 = tpu.dynamic_rotate %769 by %c124_i32_652 dim 1 : vector<8x128xf32>, i32 -> vector<8x128xf32>
    %772 = tpu.concatenate %770, %769, %771 in 0 : vector<8x128xf32>, vector<8x128xf32>, vector<8x128xf32> -> vector<24x128xf32>
    %773 = arith.truncf %772 : vector<24x128xf32> to vector<24x128xbf16>
    %c2_653 = arith.constant 2 : index
    %c5_654 = arith.constant 5 : index
    %c0_655 = arith.constant 0 : index
    %c0_656 = arith.constant 0 : index
    %774 = vector.load %arg7[%c2_653, %c5_654, %c0_655, %c0_656] : memref<3x7x8x24xbf16, #tpu.memory_space<vmem>>, vector<1x1x8x24xbf16>
    %775 = vector.shape_cast %774 : vector<1x1x8x24xbf16> to vector<8x24xbf16>
    %cst_657 = arith.constant dense<0.000000e+00> : vector<8x128xf32>
    %776 = tpu.matmul %775, %773, %cst_657 {dimension_numbers = #tpu.dot_dimension_numbers<[1], [0], [0], [1], [0, 0, 1, 1], [], []>} : vector<8x24xbf16>, vector<24x128xbf16>, vector<8x128xf32> -> vector<8x128xf32>
    %c2_658 = arith.constant 2 : index
    %c5_659 = arith.constant 5 : index
    %c0_660 = arith.constant 0 : index
    %c0_661 = arith.constant 0 : index
    %c0_662 = arith.constant 0 : index
    %777 = vector.load %arg8[%c2_658, %c5_659, %c0_660, %c0_661, %c0_662] : memref<3x7x3x8x1xf32, #tpu.memory_space<vmem>>, vector<1x1x1x8x1xf32>
    %778 = vector.shape_cast %777 : vector<1x1x1x8x1xf32> to vector<8x1xf32>
    %779 = vector.broadcast %778 : vector<8x1xf32> to vector<8x128xf32>
    %780 = arith.addf %776, %779 : vector<8x128xf32>
    %cst_663 = arith.constant 0.000000e+00 : f32
    %781 = vector.broadcast %cst_663 : f32 to vector<8x128xf32>
    %782 = arith.maximumf %780, %781 : vector<8x128xf32>
    %c2_664 = arith.constant 2 : index
    %c5_665 = arith.constant 5 : index
    %c1_666 = arith.constant 1 : index
    %c0_667 = arith.constant 0 : index
    %c0_668 = arith.constant 0 : index
    %783 = vector.load %arg8[%c2_664, %c5_665, %c1_666, %c0_667, %c0_668] : memref<3x7x3x8x1xf32, #tpu.memory_space<vmem>>, vector<1x1x1x8x1xf32>
    %784 = vector.shape_cast %783 : vector<1x1x1x8x1xf32> to vector<8x1xf32>
    %785 = vector.broadcast %784 : vector<8x1xf32> to vector<8x128xf32>
    %786 = arith.mulf %782, %785 : vector<8x128xf32>
    %c2_669 = arith.constant 2 : index
    %c5_670 = arith.constant 5 : index
    %c2_671 = arith.constant 2 : index
    %c0_672 = arith.constant 0 : index
    %c0_673 = arith.constant 0 : index
    %787 = vector.load %arg8[%c2_669, %c5_670, %c2_671, %c0_672, %c0_673] : memref<3x7x3x8x1xf32, #tpu.memory_space<vmem>>, vector<1x1x1x8x1xf32>
    %788 = vector.shape_cast %787 : vector<1x1x1x8x1xf32> to vector<8x1xf32>
    %789 = vector.broadcast %788 : vector<8x1xf32> to vector<8x128xf32>
    %790 = arith.addf %786, %789 : vector<8x128xf32>
    %791 = vector.broadcast %4 : vector<1x128xf32> to vector<8x128xf32>
    %792 = arith.mulf %790, %791 : vector<8x128xf32>
    %793 = vector.extract_strided_slice %643 {offsets = [48, 0], sizes = [8, 128], strides = [1, 1]} : vector<64x128xf32> to vector<8x128xf32>
    %794 = arith.addf %792, %793 : vector<8x128xf32>
    %c4_i32_674 = arith.constant 4 : i32
    %795 = tpu.dynamic_rotate %794 by %c4_i32_674 dim 1 : vector<8x128xf32>, i32 -> vector<8x128xf32>
    %c124_i32_675 = arith.constant 124 : i32
    %796 = tpu.dynamic_rotate %794 by %c124_i32_675 dim 1 : vector<8x128xf32>, i32 -> vector<8x128xf32>
    %797 = tpu.concatenate %795, %794, %796 in 0 : vector<8x128xf32>, vector<8x128xf32>, vector<8x128xf32> -> vector<24x128xf32>
    %798 = arith.truncf %797 : vector<24x128xf32> to vector<24x128xbf16>
    %c2_676 = arith.constant 2 : index
    %c6_677 = arith.constant 6 : index
    %c0_678 = arith.constant 0 : index
    %c0_679 = arith.constant 0 : index
    %799 = vector.load %arg7[%c2_676, %c6_677, %c0_678, %c0_679] : memref<3x7x8x24xbf16, #tpu.memory_space<vmem>>, vector<1x1x8x24xbf16>
    %800 = vector.shape_cast %799 : vector<1x1x8x24xbf16> to vector<8x24xbf16>
    %cst_680 = arith.constant dense<0.000000e+00> : vector<8x128xf32>
    %801 = tpu.matmul %800, %798, %cst_680 {dimension_numbers = #tpu.dot_dimension_numbers<[1], [0], [0], [1], [0, 0, 1, 1], [], []>} : vector<8x24xbf16>, vector<24x128xbf16>, vector<8x128xf32> -> vector<8x128xf32>
    %c2_681 = arith.constant 2 : index
    %c6_682 = arith.constant 6 : index
    %c0_683 = arith.constant 0 : index
    %c0_684 = arith.constant 0 : index
    %c0_685 = arith.constant 0 : index
    %802 = vector.load %arg8[%c2_681, %c6_682, %c0_683, %c0_684, %c0_685] : memref<3x7x3x8x1xf32, #tpu.memory_space<vmem>>, vector<1x1x1x8x1xf32>
    %803 = vector.shape_cast %802 : vector<1x1x1x8x1xf32> to vector<8x1xf32>
    %804 = vector.broadcast %803 : vector<8x1xf32> to vector<8x128xf32>
    %805 = arith.addf %801, %804 : vector<8x128xf32>
    %cst_686 = arith.constant 0.000000e+00 : f32
    %806 = vector.broadcast %cst_686 : f32 to vector<8x128xf32>
    %807 = arith.maximumf %805, %806 : vector<8x128xf32>
    %c2_687 = arith.constant 2 : index
    %c6_688 = arith.constant 6 : index
    %c1_689 = arith.constant 1 : index
    %c0_690 = arith.constant 0 : index
    %c0_691 = arith.constant 0 : index
    %808 = vector.load %arg8[%c2_687, %c6_688, %c1_689, %c0_690, %c0_691] : memref<3x7x3x8x1xf32, #tpu.memory_space<vmem>>, vector<1x1x1x8x1xf32>
    %809 = vector.shape_cast %808 : vector<1x1x1x8x1xf32> to vector<8x1xf32>
    %810 = vector.broadcast %809 : vector<8x1xf32> to vector<8x128xf32>
    %811 = arith.mulf %807, %810 : vector<8x128xf32>
    %c2_692 = arith.constant 2 : index
    %c6_693 = arith.constant 6 : index
    %c2_694 = arith.constant 2 : index
    %c0_695 = arith.constant 0 : index
    %c0_696 = arith.constant 0 : index
    %812 = vector.load %arg8[%c2_692, %c6_693, %c2_694, %c0_695, %c0_696] : memref<3x7x3x8x1xf32, #tpu.memory_space<vmem>>, vector<1x1x1x8x1xf32>
    %813 = vector.shape_cast %812 : vector<1x1x1x8x1xf32> to vector<8x1xf32>
    %814 = vector.broadcast %813 : vector<8x1xf32> to vector<8x128xf32>
    %815 = arith.addf %811, %814 : vector<8x128xf32>
    %816 = vector.broadcast %4 : vector<1x128xf32> to vector<8x128xf32>
    %817 = arith.mulf %815, %816 : vector<8x128xf32>
    %818 = vector.extract_strided_slice %643 {offsets = [56, 0], sizes = [8, 128], strides = [1, 1]} : vector<64x128xf32> to vector<8x128xf32>
    %c2_697 = arith.constant 2 : index
    %c0_698 = arith.constant 0 : index
    %c0_699 = arith.constant 0 : index
    %c0_700 = arith.constant 0 : index
    %819 = vector.load %arg9[%c2_697, %c0_698, %c0_699, %c0_700] : memref<3x8x64x8xbf16, #tpu.memory_space<vmem>>, vector<1x1x64x8xbf16>
    %820 = vector.shape_cast %819 : vector<1x1x64x8xbf16> to vector<64x8xbf16>
    %821 = arith.truncf %667 : vector<8x128xf32> to vector<8x128xbf16>
    %cst_701 = arith.constant dense<0.000000e+00> : vector<64x128xf32>
    %822 = tpu.matmul %820, %821, %cst_701 {dimension_numbers = #tpu.dot_dimension_numbers<[1], [0], [0], [1], [0, 0, 1, 1], [], []>} : vector<64x8xbf16>, vector<8x128xbf16>, vector<64x128xf32> -> vector<64x128xf32>
    %c2_702 = arith.constant 2 : index
    %c1_703 = arith.constant 1 : index
    %c0_704 = arith.constant 0 : index
    %c0_705 = arith.constant 0 : index
    %823 = vector.load %arg9[%c2_702, %c1_703, %c0_704, %c0_705] : memref<3x8x64x8xbf16, #tpu.memory_space<vmem>>, vector<1x1x64x8xbf16>
    %824 = vector.shape_cast %823 : vector<1x1x64x8xbf16> to vector<64x8xbf16>
    %825 = arith.truncf %692 : vector<8x128xf32> to vector<8x128xbf16>
    %cst_706 = arith.constant dense<0.000000e+00> : vector<64x128xf32>
    %826 = tpu.matmul %824, %825, %cst_706 {dimension_numbers = #tpu.dot_dimension_numbers<[1], [0], [0], [1], [0, 0, 1, 1], [], []>} : vector<64x8xbf16>, vector<8x128xbf16>, vector<64x128xf32> -> vector<64x128xf32>
    %827 = arith.addf %822, %826 : vector<64x128xf32>
    %c2_707 = arith.constant 2 : index
    %c2_708 = arith.constant 2 : index
    %c0_709 = arith.constant 0 : index
    %c0_710 = arith.constant 0 : index
    %828 = vector.load %arg9[%c2_707, %c2_708, %c0_709, %c0_710] : memref<3x8x64x8xbf16, #tpu.memory_space<vmem>>, vector<1x1x64x8xbf16>
    %829 = vector.shape_cast %828 : vector<1x1x64x8xbf16> to vector<64x8xbf16>
    %830 = arith.truncf %717 : vector<8x128xf32> to vector<8x128xbf16>
    %cst_711 = arith.constant dense<0.000000e+00> : vector<64x128xf32>
    %831 = tpu.matmul %829, %830, %cst_711 {dimension_numbers = #tpu.dot_dimension_numbers<[1], [0], [0], [1], [0, 0, 1, 1], [], []>} : vector<64x8xbf16>, vector<8x128xbf16>, vector<64x128xf32> -> vector<64x128xf32>
    %832 = arith.addf %827, %831 : vector<64x128xf32>
    %c2_712 = arith.constant 2 : index
    %c3_713 = arith.constant 3 : index
    %c0_714 = arith.constant 0 : index
    %c0_715 = arith.constant 0 : index
    %833 = vector.load %arg9[%c2_712, %c3_713, %c0_714, %c0_715] : memref<3x8x64x8xbf16, #tpu.memory_space<vmem>>, vector<1x1x64x8xbf16>
    %834 = vector.shape_cast %833 : vector<1x1x64x8xbf16> to vector<64x8xbf16>
    %835 = arith.truncf %742 : vector<8x128xf32> to vector<8x128xbf16>
    %cst_716 = arith.constant dense<0.000000e+00> : vector<64x128xf32>
    %836 = tpu.matmul %834, %835, %cst_716 {dimension_numbers = #tpu.dot_dimension_numbers<[1], [0], [0], [1], [0, 0, 1, 1], [], []>} : vector<64x8xbf16>, vector<8x128xbf16>, vector<64x128xf32> -> vector<64x128xf32>
    %837 = arith.addf %832, %836 : vector<64x128xf32>
    %c2_717 = arith.constant 2 : index
    %c4_718 = arith.constant 4 : index
    %c0_719 = arith.constant 0 : index
    %c0_720 = arith.constant 0 : index
    %838 = vector.load %arg9[%c2_717, %c4_718, %c0_719, %c0_720] : memref<3x8x64x8xbf16, #tpu.memory_space<vmem>>, vector<1x1x64x8xbf16>
    %839 = vector.shape_cast %838 : vector<1x1x64x8xbf16> to vector<64x8xbf16>
    %840 = arith.truncf %767 : vector<8x128xf32> to vector<8x128xbf16>
    %cst_721 = arith.constant dense<0.000000e+00> : vector<64x128xf32>
    %841 = tpu.matmul %839, %840, %cst_721 {dimension_numbers = #tpu.dot_dimension_numbers<[1], [0], [0], [1], [0, 0, 1, 1], [], []>} : vector<64x8xbf16>, vector<8x128xbf16>, vector<64x128xf32> -> vector<64x128xf32>
    %842 = arith.addf %837, %841 : vector<64x128xf32>
    %c2_722 = arith.constant 2 : index
    %c5_723 = arith.constant 5 : index
    %c0_724 = arith.constant 0 : index
    %c0_725 = arith.constant 0 : index
    %843 = vector.load %arg9[%c2_722, %c5_723, %c0_724, %c0_725] : memref<3x8x64x8xbf16, #tpu.memory_space<vmem>>, vector<1x1x64x8xbf16>
    %844 = vector.shape_cast %843 : vector<1x1x64x8xbf16> to vector<64x8xbf16>
    %845 = arith.truncf %792 : vector<8x128xf32> to vector<8x128xbf16>
    %cst_726 = arith.constant dense<0.000000e+00> : vector<64x128xf32>
    %846 = tpu.matmul %844, %845, %cst_726 {dimension_numbers = #tpu.dot_dimension_numbers<[1], [0], [0], [1], [0, 0, 1, 1], [], []>} : vector<64x8xbf16>, vector<8x128xbf16>, vector<64x128xf32> -> vector<64x128xf32>
    %847 = arith.addf %842, %846 : vector<64x128xf32>
    %c2_727 = arith.constant 2 : index
    %c6_728 = arith.constant 6 : index
    %c0_729 = arith.constant 0 : index
    %c0_730 = arith.constant 0 : index
    %848 = vector.load %arg9[%c2_727, %c6_728, %c0_729, %c0_730] : memref<3x8x64x8xbf16, #tpu.memory_space<vmem>>, vector<1x1x64x8xbf16>
    %849 = vector.shape_cast %848 : vector<1x1x64x8xbf16> to vector<64x8xbf16>
    %850 = arith.truncf %817 : vector<8x128xf32> to vector<8x128xbf16>
    %cst_731 = arith.constant dense<0.000000e+00> : vector<64x128xf32>
    %851 = tpu.matmul %849, %850, %cst_731 {dimension_numbers = #tpu.dot_dimension_numbers<[1], [0], [0], [1], [0, 0, 1, 1], [], []>} : vector<64x8xbf16>, vector<8x128xbf16>, vector<64x128xf32> -> vector<64x128xf32>
    %852 = arith.addf %847, %851 : vector<64x128xf32>
    %c2_732 = arith.constant 2 : index
    %c7_733 = arith.constant 7 : index
    %c0_734 = arith.constant 0 : index
    %c0_735 = arith.constant 0 : index
    %853 = vector.load %arg9[%c2_732, %c7_733, %c0_734, %c0_735] : memref<3x8x64x8xbf16, #tpu.memory_space<vmem>>, vector<1x1x64x8xbf16>
    %854 = vector.shape_cast %853 : vector<1x1x64x8xbf16> to vector<64x8xbf16>
    %855 = arith.truncf %818 : vector<8x128xf32> to vector<8x128xbf16>
    %cst_736 = arith.constant dense<0.000000e+00> : vector<64x128xf32>
    %856 = tpu.matmul %854, %855, %cst_736 {dimension_numbers = #tpu.dot_dimension_numbers<[1], [0], [0], [1], [0, 0, 1, 1], [], []>} : vector<64x8xbf16>, vector<8x128xbf16>, vector<64x128xf32> -> vector<64x128xf32>
    %857 = arith.addf %852, %856 : vector<64x128xf32>
    %c2_737 = arith.constant 2 : index
    %c0_738 = arith.constant 0 : index
    %c0_739 = arith.constant 0 : index
    %c0_740 = arith.constant 0 : index
    %858 = vector.load %arg10[%c2_737, %c0_738, %c0_739, %c0_740] : memref<3x3x64x1xf32, #tpu.memory_space<vmem>>, vector<1x1x64x1xf32>
    %859 = vector.shape_cast %858 : vector<1x1x64x1xf32> to vector<64x1xf32>
    %860 = vector.broadcast %859 : vector<64x1xf32> to vector<64x128xf32>
    %861 = arith.addf %857, %860 : vector<64x128xf32>
    %cst_741 = arith.constant 0.000000e+00 : f32
    %862 = vector.broadcast %cst_741 : f32 to vector<64x128xf32>
    %863 = arith.maximumf %861, %862 : vector<64x128xf32>
    %c2_742 = arith.constant 2 : index
    %c1_743 = arith.constant 1 : index
    %c0_744 = arith.constant 0 : index
    %c0_745 = arith.constant 0 : index
    %864 = vector.load %arg10[%c2_742, %c1_743, %c0_744, %c0_745] : memref<3x3x64x1xf32, #tpu.memory_space<vmem>>, vector<1x1x64x1xf32>
    %865 = vector.shape_cast %864 : vector<1x1x64x1xf32> to vector<64x1xf32>
    %866 = vector.broadcast %865 : vector<64x1xf32> to vector<64x128xf32>
    %867 = arith.mulf %863, %866 : vector<64x128xf32>
    %c2_746 = arith.constant 2 : index
    %c2_747 = arith.constant 2 : index
    %c0_748 = arith.constant 0 : index
    %c0_749 = arith.constant 0 : index
    %868 = vector.load %arg10[%c2_746, %c2_747, %c0_748, %c0_749] : memref<3x3x64x1xf32, #tpu.memory_space<vmem>>, vector<1x1x64x1xf32>
    %869 = vector.shape_cast %868 : vector<1x1x64x1xf32> to vector<64x1xf32>
    %870 = vector.broadcast %869 : vector<64x1xf32> to vector<64x128xf32>
    %871 = arith.addf %867, %870 : vector<64x128xf32>
    %872 = vector.broadcast %4 : vector<1x128xf32> to vector<64x128xf32>
    %873 = arith.mulf %871, %872 : vector<64x128xf32>
    %cst_750 = arith.constant dense<0.000000e+00> : vector<64xf32>
    %874 = vector.multi_reduction <add>, %873, %cst_750 [1] : vector<64x128xf32> to vector<64xf32>
    %875 = vector.shape_cast %874 : vector<64xf32> to vector<64x1xf32>
    %cst_751 = arith.constant 6.250000e-02 : f32
    %876 = vector.broadcast %cst_751 : f32 to vector<64x1xf32>
    %877 = arith.mulf %875, %876 : vector<64x1xf32>
    %c2_752 = arith.constant 2 : index
    %c0_753 = arith.constant 0 : index
    %c0_754 = arith.constant 0 : index
    %878 = vector.load %arg11[%c2_752, %c0_753, %c0_754] : memref<3x32x64xf32, #tpu.memory_space<vmem>>, vector<1x32x64xf32>
    %879 = vector.shape_cast %878 : vector<1x32x64xf32> to vector<32x64xf32>
    %cst_755 = arith.constant dense<0.000000e+00> : vector<32x1xf32>
    %880 = tpu.matmul %879, %877, %cst_755 {dimension_numbers = #tpu.dot_dimension_numbers<[1], [0], [0], [1], [0, 0, 1, 1], [], []>} : vector<32x64xf32>, vector<64x1xf32>, vector<32x1xf32> -> vector<32x1xf32>
    %c2_756 = arith.constant 2 : index
    %c0_757 = arith.constant 0 : index
    %c0_758 = arith.constant 0 : index
    %881 = vector.load %arg12[%c2_756, %c0_757, %c0_758] : memref<3x32x1xf32, #tpu.memory_space<vmem>>, vector<1x32x1xf32>
    %882 = vector.shape_cast %881 : vector<1x32x1xf32> to vector<32x1xf32>
    %883 = arith.addf %880, %882 : vector<32x1xf32>
    %cst_759 = arith.constant 0.000000e+00 : f32
    %884 = vector.broadcast %cst_759 : f32 to vector<32x1xf32>
    %885 = arith.maximumf %883, %884 : vector<32x1xf32>
    %c2_760 = arith.constant 2 : index
    %c0_761 = arith.constant 0 : index
    %c0_762 = arith.constant 0 : index
    %886 = vector.load %arg13[%c2_760, %c0_761, %c0_762] : memref<3x64x32xf32, #tpu.memory_space<vmem>>, vector<1x64x32xf32>
    %887 = vector.shape_cast %886 : vector<1x64x32xf32> to vector<64x32xf32>
    %cst_763 = arith.constant dense<0.000000e+00> : vector<64x1xf32>
    %888 = tpu.matmul %887, %885, %cst_763 {dimension_numbers = #tpu.dot_dimension_numbers<[1], [0], [0], [1], [0, 0, 1, 1], [], []>} : vector<64x32xf32>, vector<32x1xf32>, vector<64x1xf32> -> vector<64x1xf32>
    %c2_764 = arith.constant 2 : index
    %c0_765 = arith.constant 0 : index
    %c0_766 = arith.constant 0 : index
    %889 = vector.load %arg14[%c2_764, %c0_765, %c0_766] : memref<3x64x1xf32, #tpu.memory_space<vmem>>, vector<1x64x1xf32>
    %890 = vector.shape_cast %889 : vector<1x64x1xf32> to vector<64x1xf32>
    %891 = arith.addf %888, %890 : vector<64x1xf32>
    %892 = arith.negf %891 : vector<64x1xf32>
    %893 = math.exp %892 : vector<64x1xf32>
    %cst_767 = arith.constant 1.000000e+00 : f32
    %894 = vector.broadcast %cst_767 : f32 to vector<64x1xf32>
    %895 = arith.addf %894, %893 : vector<64x1xf32>
    %896 = arith.divf %894, %895 : vector<64x1xf32>
    %897 = vector.broadcast %896 : vector<64x1xf32> to vector<64x128xf32>
    %898 = arith.mulf %873, %897 : vector<64x128xf32>
    %899 = arith.addf %898, %623 : vector<64x128xf32>
    %c0_768 = arith.constant 0 : index
    %c0_769 = arith.constant 0 : index
    %c0_770 = arith.constant 0 : index
    %900 = vector.load %arg15[%c0_768, %c0_769, %c0_770] : memref<3x128x64xbf16, #tpu.memory_space<vmem>>, vector<1x128x64xbf16>
    %901 = vector.shape_cast %900 : vector<1x128x64xbf16> to vector<128x64xbf16>
    %902 = arith.truncf %347 : vector<64x128xf32> to vector<64x128xbf16>
    %cst_771 = arith.constant dense<0.000000e+00> : vector<128x128xf32>
    %903 = tpu.matmul %901, %902, %cst_771 {dimension_numbers = #tpu.dot_dimension_numbers<[1], [0], [0], [1], [0, 0, 1, 1], [], []>} : vector<128x64xbf16>, vector<64x128xbf16>, vector<128x128xf32> -> vector<128x128xf32>
    %c1_772 = arith.constant 1 : index
    %c0_773 = arith.constant 0 : index
    %c0_774 = arith.constant 0 : index
    %904 = vector.load %arg15[%c1_772, %c0_773, %c0_774] : memref<3x128x64xbf16, #tpu.memory_space<vmem>>, vector<1x128x64xbf16>
    %905 = vector.shape_cast %904 : vector<1x128x64xbf16> to vector<128x64xbf16>
    %906 = arith.truncf %623 : vector<64x128xf32> to vector<64x128xbf16>
    %cst_775 = arith.constant dense<0.000000e+00> : vector<128x128xf32>
    %907 = tpu.matmul %905, %906, %cst_775 {dimension_numbers = #tpu.dot_dimension_numbers<[1], [0], [0], [1], [0, 0, 1, 1], [], []>} : vector<128x64xbf16>, vector<64x128xbf16>, vector<128x128xf32> -> vector<128x128xf32>
    %908 = arith.addf %903, %907 : vector<128x128xf32>
    %c2_776 = arith.constant 2 : index
    %c0_777 = arith.constant 0 : index
    %c0_778 = arith.constant 0 : index
    %909 = vector.load %arg15[%c2_776, %c0_777, %c0_778] : memref<3x128x64xbf16, #tpu.memory_space<vmem>>, vector<1x128x64xbf16>
    %910 = vector.shape_cast %909 : vector<1x128x64xbf16> to vector<128x64xbf16>
    %911 = arith.truncf %899 : vector<64x128xf32> to vector<64x128xbf16>
    %cst_779 = arith.constant dense<0.000000e+00> : vector<128x128xf32>
    %912 = tpu.matmul %910, %911, %cst_779 {dimension_numbers = #tpu.dot_dimension_numbers<[1], [0], [0], [1], [0, 0, 1, 1], [], []>} : vector<128x64xbf16>, vector<64x128xbf16>, vector<128x128xf32> -> vector<128x128xf32>
    %913 = arith.addf %908, %912 : vector<128x128xf32>
    %c0_780 = arith.constant 0 : index
    %c0_781 = arith.constant 0 : index
    %914 = vector.load %arg16[%c0_780, %c0_781] : memref<128x1xf32, #tpu.memory_space<vmem>>, vector<128x1xf32>
    %915 = vector.broadcast %914 : vector<128x1xf32> to vector<128x128xf32>
    %916 = arith.addf %913, %915 : vector<128x128xf32>
    %917 = vector.extract_strided_slice %916 {offsets = [0, 0], sizes = [128, 16], strides = [1, 1]} : vector<128x128xf32> to vector<128x16xf32>
    %c0_782 = arith.constant 0 : index
    %c0_783 = arith.constant 0 : index
    %c0_784 = arith.constant 0 : index
    %918 = vector.load %arg25[%c0_782, %c0_783, %c0_784] : memref<1x128x16xf32, #tpu.memory_space<vmem>>, vector<1x128x16xf32>
    %919 = vector.shape_cast %918 : vector<1x128x16xf32> to vector<128x16xf32>
    %920 = vector.shape_cast %917 : vector<128x16xf32> to vector<1x128x16xf32>
    tpu.vector_store %arg25[%c0_782, %c0_783, %c0_784], %920 {strides = array<i32>} : memref<1x128x16xf32, #tpu.memory_space<vmem>>, vector<1x128x16xf32>,
    %cst_785 = arith.constant 0.000000e+00 : f32
    %921 = vector.broadcast %cst_785 : f32 to vector<128x128xf32>
    %922 = arith.maximumf %916, %921 : vector<128x128xf32>
    %923 = vector.broadcast %4 : vector<1x128xf32> to vector<128x128xf32>
    %924 = arith.mulf %922, %923 : vector<128x128xf32>
    %c0_786 = arith.constant 0 : index
    %c0_787 = arith.constant 0 : index
    %925 = vector.load %arg17[%c0_786, %c0_787] : memref<32x128xbf16, #tpu.memory_space<vmem>>, vector<32x128xbf16>
    %926 = arith.truncf %924 : vector<128x128xf32> to vector<128x128xbf16>
    %cst_788 = arith.constant dense<0.000000e+00> : vector<32x128xf32>
    %927 = tpu.matmul %925, %926, %cst_788 {dimension_numbers = #tpu.dot_dimension_numbers<[1], [0], [0], [1], [0, 0, 1, 1], [], []>} : vector<32x128xbf16>, vector<128x128xbf16>, vector<32x128xf32> -> vector<32x128xf32>
    %c0_789 = arith.constant 0 : index
    %c0_790 = arith.constant 0 : index
    %928 = vector.load %arg18[%c0_789, %c0_790] : memref<32x1xf32, #tpu.memory_space<vmem>>, vector<32x1xf32>
    %929 = vector.broadcast %928 : vector<32x1xf32> to vector<32x128xf32>
    %930 = arith.addf %927, %929 : vector<32x128xf32>
    %931 = math.tanh %930 : vector<32x128xf32>
    %c0_791 = arith.constant 0 : index
    %c0_792 = arith.constant 0 : index
    %932 = vector.load %arg19[%c0_791, %c0_792] : memref<128x32xbf16, #tpu.memory_space<vmem>>, vector<128x32xbf16>
    %933 = arith.truncf %931 : vector<32x128xf32> to vector<32x128xbf16>
    %cst_793 = arith.constant dense<0.000000e+00> : vector<128x128xf32>
    %934 = tpu.matmul %932, %933, %cst_793 {dimension_numbers = #tpu.dot_dimension_numbers<[1], [0], [0], [1], [0, 0, 1, 1], [], []>} : vector<128x32xbf16>, vector<32x128xbf16>, vector<128x128xf32> -> vector<128x128xf32>
    %c0_794 = arith.constant 0 : index
    %c0_795 = arith.constant 0 : index
    %935 = vector.load %arg20[%c0_794, %c0_795] : memref<128x1xf32, #tpu.memory_space<vmem>>, vector<128x1xf32>
    %936 = vector.broadcast %935 : vector<128x1xf32> to vector<128x128xf32>
    %937 = arith.addf %934, %936 : vector<128x128xf32>
    %938 = vector.broadcast %4 : vector<1x128xf32> to vector<128x128xf32>
    %939 = arith.mulf %937, %938 : vector<128x128xf32>
    %cst_796 = arith.constant 1.000000e+00 : f32
    %940 = vector.broadcast %cst_796 : f32 to vector<1x128xf32>
    %941 = arith.subf %940, %4 : vector<1x128xf32>
    %cst_797 = arith.constant 1.000000e+30 : f32
    %942 = vector.broadcast %cst_797 : f32 to vector<1x128xf32>
    %943 = arith.mulf %942, %941 : vector<1x128xf32>
    %944 = vector.broadcast %943 : vector<1x128xf32> to vector<128x128xf32>
    %945 = arith.subf %939, %944 : vector<128x128xf32>
    %cst_798 = arith.constant dense<0xFF800000> : vector<128xf32>
    %946 = vector.multi_reduction <maximumf>, %945, %cst_798 [1] : vector<128x128xf32> to vector<128xf32>
    %947 = vector.shape_cast %946 : vector<128xf32> to vector<128x1xf32>
    %948 = vector.broadcast %947 : vector<128x1xf32> to vector<128x128xf32>
    %949 = arith.subf %945, %948 : vector<128x128xf32>
    %950 = math.exp %949 : vector<128x128xf32>
    %cst_799 = arith.constant dense<0.000000e+00> : vector<128xf32>
    %951 = vector.multi_reduction <add>, %950, %cst_799 [1] : vector<128x128xf32> to vector<128xf32>
    %952 = vector.shape_cast %951 : vector<128xf32> to vector<128x1xf32>
    %953 = vector.broadcast %952 : vector<128x1xf32> to vector<128x128xf32>
    %954 = arith.divf %950, %953 : vector<128x128xf32>
    %955 = arith.mulf %954, %924 : vector<128x128xf32>
    %cst_800 = arith.constant dense<0.000000e+00> : vector<128xf32>
    %956 = vector.multi_reduction <add>, %955, %cst_800 [1] : vector<128x128xf32> to vector<128xf32>
    %957 = vector.shape_cast %956 : vector<128xf32> to vector<128x1xf32>
    %958 = arith.mulf %954, %924 : vector<128x128xf32>
    %959 = arith.mulf %958, %924 : vector<128x128xf32>
    %cst_801 = arith.constant dense<0.000000e+00> : vector<128xf32>
    %960 = vector.multi_reduction <add>, %959, %cst_801 [1] : vector<128x128xf32> to vector<128xf32>
    %961 = vector.shape_cast %960 : vector<128xf32> to vector<128x1xf32>
    %962 = arith.mulf %957, %957 : vector<128x1xf32>
    %963 = arith.subf %961, %962 : vector<128x1xf32>
    %cst_802 = arith.constant 9.99999971E-10 : f32
    %964 = vector.broadcast %cst_802 : f32 to vector<128x1xf32>
    %965 = arith.maximumf %963, %964 : vector<128x1xf32>
    %966 = math.sqrt %965 : vector<128x1xf32>
    %c0_803 = arith.constant 0 : index
    %c0_804 = arith.constant 0 : index
    %c0_805 = arith.constant 0 : index
    %967 = vector.load %arg21[%c0_803, %c0_804, %c0_805] : memref<4x128x1xf32, #tpu.memory_space<vmem>>, vector<1x128x1xf32>
    %968 = vector.shape_cast %967 : vector<1x128x1xf32> to vector<128x1xf32>
    %969 = arith.mulf %957, %968 : vector<128x1xf32>
    %c1_806 = arith.constant 1 : index
    %c0_807 = arith.constant 0 : index
    %c0_808 = arith.constant 0 : index
    %970 = vector.load %arg21[%c1_806, %c0_807, %c0_808] : memref<4x128x1xf32, #tpu.memory_space<vmem>>, vector<1x128x1xf32>
    %971 = vector.shape_cast %970 : vector<1x128x1xf32> to vector<128x1xf32>
    %972 = arith.addf %969, %971 : vector<128x1xf32>
    %c2_809 = arith.constant 2 : index
    %c0_810 = arith.constant 0 : index
    %c0_811 = arith.constant 0 : index
    %973 = vector.load %arg21[%c2_809, %c0_810, %c0_811] : memref<4x128x1xf32, #tpu.memory_space<vmem>>, vector<1x128x1xf32>
    %974 = vector.shape_cast %973 : vector<1x128x1xf32> to vector<128x1xf32>
    %975 = arith.mulf %966, %974 : vector<128x1xf32>
    %c3_812 = arith.constant 3 : index
    %c0_813 = arith.constant 0 : index
    %c0_814 = arith.constant 0 : index
    %976 = vector.load %arg21[%c3_812, %c0_813, %c0_814] : memref<4x128x1xf32, #tpu.memory_space<vmem>>, vector<1x128x1xf32>
    %977 = vector.shape_cast %976 : vector<1x128x1xf32> to vector<128x1xf32>
    %978 = arith.addf %975, %977 : vector<128x1xf32>
    %c0_815 = arith.constant 0 : index
    %c0_816 = arith.constant 0 : index
    %979 = vector.load %arg22[%c0_815, %c0_816] : memref<128x32xf32, #tpu.memory_space<vmem>>, vector<128x32xf32>
    %980 = vector.broadcast %972 : vector<128x1xf32> to vector<128x32xf32>
    %981 = arith.mulf %980, %979 : vector<128x32xf32>
    %cst_817 = arith.constant dense<0.000000e+00> : vector<32xf32>
    %982 = vector.multi_reduction <add>, %981, %cst_817 [0] : vector<128x32xf32> to vector<32xf32>
    %983 = vector.shape_cast %982 : vector<32xf32> to vector<1x32xf32>
    %c0_818 = arith.constant 0 : index
    %c0_819 = arith.constant 0 : index
    %984 = vector.load %arg23[%c0_818, %c0_819] : memref<128x32xf32, #tpu.memory_space<vmem>>, vector<128x32xf32>
    %985 = vector.broadcast %978 : vector<128x1xf32> to vector<128x32xf32>
    %986 = arith.mulf %985, %984 : vector<128x32xf32>
    %cst_820 = arith.constant dense<0.000000e+00> : vector<32xf32>
    %987 = vector.multi_reduction <add>, %986, %cst_820 [0] : vector<128x32xf32> to vector<32xf32>
    %988 = vector.shape_cast %987 : vector<32xf32> to vector<1x32xf32>
    %989 = arith.addf %983, %988 : vector<1x32xf32>
    %c0_821 = arith.constant 0 : index
    %c0_822 = arith.constant 0 : index
    %990 = vector.load %arg24[%c0_821, %c0_822] : memref<1x32xf32, #tpu.memory_space<vmem>>, vector<1x32xf32>
    %991 = arith.addf %989, %990 : vector<1x32xf32>
    %c0_823 = arith.constant 0 : index
    %c0_824 = arith.constant 0 : index
    %c0_825 = arith.constant 0 : index
    %992 = vector.load %arg26[%c0_823, %c0_824, %c0_825] : memref<1x1x32xf32, #tpu.memory_space<vmem>>, vector<1x1x32xf32>
    %993 = vector.shape_cast %992 : vector<1x1x32xf32> to vector<1x32xf32>
    %994 = vector.shape_cast %991 : vector<1x32xf32> to vector<1x1x32xf32>
    tpu.vector_store %arg26[%c0_823, %c0_824, %c0_825], %994 {strides = array<i32>} : memref<1x1x32xf32, #tpu.memory_space<vmem>>, vector<1x1x32xf32>,
    return
  }
  func.func @transform_0(%arg0: i32) -> i32 {
    %c0_i32 = arith.constant 0 : i32
    %c0_i32_0 = arith.constant 0 : i32
    return %c0_i32 : i32
  }
  func.func @transform_1(%arg0: i32) -> (i32, i32, i32, i32) {
    %c0_i32 = arith.constant 0 : i32
    %c0_i32_0 = arith.constant 0 : i32
    %c0_i32_1 = arith.constant 0 : i32
    %c0_i32_2 = arith.constant 0 : i32
    return %c0_i32, %arg0, %c0_i32_0, %c0_i32_1 : i32, i32, i32, i32
  }
  func.func @transform_2(%arg0: i32) -> (i32, i32) {
    %c0_i32 = arith.constant 0 : i32
    %c0_i32_0 = arith.constant 0 : i32
    %c0_i32_1 = arith.constant 0 : i32
    return %c0_i32, %c0_i32_0 : i32, i32
  }
  func.func @transform_3(%arg0: i32) -> (i32, i32, i32) {
    %c0_i32 = arith.constant 0 : i32
    %c0_i32_0 = arith.constant 0 : i32
    %c0_i32_1 = arith.constant 0 : i32
    %c0_i32_2 = arith.constant 0 : i32
    return %c0_i32, %c0_i32_0, %c0_i32_1 : i32, i32, i32
  }
  func.func @transform_4(%arg0: i32) -> (i32, i32, i32) {
    %c0_i32 = arith.constant 0 : i32
    %c0_i32_0 = arith.constant 0 : i32
    %c0_i32_1 = arith.constant 0 : i32
    %c0_i32_2 = arith.constant 0 : i32
    return %c0_i32, %c0_i32_0, %c0_i32_1 : i32, i32, i32
  }
  func.func @transform_5(%arg0: i32) -> (i32, i32, i32, i32) {
    %c0_i32 = arith.constant 0 : i32
    %c0_i32_0 = arith.constant 0 : i32
    %c0_i32_1 = arith.constant 0 : i32
    %c0_i32_2 = arith.constant 0 : i32
    %c0_i32_3 = arith.constant 0 : i32
    return %c0_i32, %c0_i32_0, %c0_i32_1, %c0_i32_2 : i32, i32, i32, i32
  }
  func.func @transform_6(%arg0: i32) -> (i32, i32, i32, i32) {
    %c0_i32 = arith.constant 0 : i32
    %c0_i32_0 = arith.constant 0 : i32
    %c0_i32_1 = arith.constant 0 : i32
    %c0_i32_2 = arith.constant 0 : i32
    %c0_i32_3 = arith.constant 0 : i32
    return %c0_i32, %c0_i32_0, %c0_i32_1, %c0_i32_2 : i32, i32, i32, i32
  }
  func.func @transform_7(%arg0: i32) -> (i32, i32, i32, i32, i32) {
    %c0_i32 = arith.constant 0 : i32
    %c0_i32_0 = arith.constant 0 : i32
    %c0_i32_1 = arith.constant 0 : i32
    %c0_i32_2 = arith.constant 0 : i32
    %c0_i32_3 = arith.constant 0 : i32
    %c0_i32_4 = arith.constant 0 : i32
    return %c0_i32, %c0_i32_0, %c0_i32_1, %c0_i32_2, %c0_i32_3 : i32, i32, i32, i32, i32
  }
  func.func @transform_8(%arg0: i32) -> (i32, i32, i32, i32) {
    %c0_i32 = arith.constant 0 : i32
    %c0_i32_0 = arith.constant 0 : i32
    %c0_i32_1 = arith.constant 0 : i32
    %c0_i32_2 = arith.constant 0 : i32
    %c0_i32_3 = arith.constant 0 : i32
    return %c0_i32, %c0_i32_0, %c0_i32_1, %c0_i32_2 : i32, i32, i32, i32
  }
  func.func @transform_9(%arg0: i32) -> (i32, i32, i32, i32) {
    %c0_i32 = arith.constant 0 : i32
    %c0_i32_0 = arith.constant 0 : i32
    %c0_i32_1 = arith.constant 0 : i32
    %c0_i32_2 = arith.constant 0 : i32
    %c0_i32_3 = arith.constant 0 : i32
    return %c0_i32, %c0_i32_0, %c0_i32_1, %c0_i32_2 : i32, i32, i32, i32
  }
  func.func @transform_10(%arg0: i32) -> (i32, i32, i32) {
    %c0_i32 = arith.constant 0 : i32
    %c0_i32_0 = arith.constant 0 : i32
    %c0_i32_1 = arith.constant 0 : i32
    %c0_i32_2 = arith.constant 0 : i32
    return %c0_i32, %c0_i32_0, %c0_i32_1 : i32, i32, i32
  }
  func.func @transform_11(%arg0: i32) -> (i32, i32, i32) {
    %c0_i32 = arith.constant 0 : i32
    %c0_i32_0 = arith.constant 0 : i32
    %c0_i32_1 = arith.constant 0 : i32
    %c0_i32_2 = arith.constant 0 : i32
    return %c0_i32, %c0_i32_0, %c0_i32_1 : i32, i32, i32
  }
  func.func @transform_12(%arg0: i32) -> (i32, i32, i32) {
    %c0_i32 = arith.constant 0 : i32
    %c0_i32_0 = arith.constant 0 : i32
    %c0_i32_1 = arith.constant 0 : i32
    %c0_i32_2 = arith.constant 0 : i32
    return %c0_i32, %c0_i32_0, %c0_i32_1 : i32, i32, i32
  }
  func.func @transform_13(%arg0: i32) -> (i32, i32, i32) {
    %c0_i32 = arith.constant 0 : i32
    %c0_i32_0 = arith.constant 0 : i32
    %c0_i32_1 = arith.constant 0 : i32
    %c0_i32_2 = arith.constant 0 : i32
    return %c0_i32, %c0_i32_0, %c0_i32_1 : i32, i32, i32
  }
  func.func @transform_14(%arg0: i32) -> (i32, i32, i32) {
    %c0_i32 = arith.constant 0 : i32
    %c0_i32_0 = arith.constant 0 : i32
    %c0_i32_1 = arith.constant 0 : i32
    %c0_i32_2 = arith.constant 0 : i32
    return %c0_i32, %c0_i32_0, %c0_i32_1 : i32, i32, i32
  }
  func.func @transform_15(%arg0: i32) -> (i32, i32) {
    %c0_i32 = arith.constant 0 : i32
    %c0_i32_0 = arith.constant 0 : i32
    %c0_i32_1 = arith.constant 0 : i32
    return %c0_i32, %c0_i32_0 : i32, i32
  }
  func.func @transform_16(%arg0: i32) -> (i32, i32) {
    %c0_i32 = arith.constant 0 : i32
    %c0_i32_0 = arith.constant 0 : i32
    %c0_i32_1 = arith.constant 0 : i32
    return %c0_i32, %c0_i32_0 : i32, i32
  }
  func.func @transform_17(%arg0: i32) -> (i32, i32) {
    %c0_i32 = arith.constant 0 : i32
    %c0_i32_0 = arith.constant 0 : i32
    %c0_i32_1 = arith.constant 0 : i32
    return %c0_i32, %c0_i32_0 : i32, i32
  }
  func.func @transform_18(%arg0: i32) -> (i32, i32) {
    %c0_i32 = arith.constant 0 : i32
    %c0_i32_0 = arith.constant 0 : i32
    %c0_i32_1 = arith.constant 0 : i32
    return %c0_i32, %c0_i32_0 : i32, i32
  }
  func.func @transform_19(%arg0: i32) -> (i32, i32) {
    %c0_i32 = arith.constant 0 : i32
    %c0_i32_0 = arith.constant 0 : i32
    %c0_i32_1 = arith.constant 0 : i32
    return %c0_i32, %c0_i32_0 : i32, i32
  }
  func.func @transform_20(%arg0: i32) -> (i32, i32, i32) {
    %c0_i32 = arith.constant 0 : i32
    %c0_i32_0 = arith.constant 0 : i32
    %c0_i32_1 = arith.constant 0 : i32
    %c0_i32_2 = arith.constant 0 : i32
    return %c0_i32, %c0_i32_0, %c0_i32_1 : i32, i32, i32
  }
  func.func @transform_21(%arg0: i32) -> (i32, i32) {
    %c0_i32 = arith.constant 0 : i32
    %c0_i32_0 = arith.constant 0 : i32
    %c0_i32_1 = arith.constant 0 : i32
    return %c0_i32, %c0_i32_0 : i32, i32
  }
  func.func @transform_22(%arg0: i32) -> (i32, i32) {
    %c0_i32 = arith.constant 0 : i32
    %c0_i32_0 = arith.constant 0 : i32
    %c0_i32_1 = arith.constant 0 : i32
    return %c0_i32, %c0_i32_0 : i32, i32
  }
  func.func @transform_23(%arg0: i32) -> (i32, i32) {
    %c0_i32 = arith.constant 0 : i32
    %c0_i32_0 = arith.constant 0 : i32
    %c0_i32_1 = arith.constant 0 : i32
    return %c0_i32, %c0_i32_0 : i32, i32
  }
  func.func @transform_24(%arg0: i32) -> (i32, i32, i32) {
    %c0_i32 = arith.constant 0 : i32
    %c0_i32_0 = arith.constant 0 : i32
    %c0_i32_1 = arith.constant 0 : i32
    return %arg0, %c0_i32, %c0_i32_0 : i32, i32, i32
  }
  func.func @transform_25(%arg0: i32) -> (i32, i32, i32) {
    %c0_i32 = arith.constant 0 : i32
    %c0_i32_0 = arith.constant 0 : i32
    %c0_i32_1 = arith.constant 0 : i32
    return %arg0, %c0_i32, %c0_i32_0 : i32, i32, i32
  }
}

</mosaic_0001>

<bundles_post_ra>
// kernel: ecapa_forward.1
= control target key start
LH: loop header
LB: loop body
LE: loop exit
PB: predicated region body
PF: predicated region fallthrough
CT: control target
= control target key end

     0   :  { %s18315_s0 = inlined_call_operand.vmem [shape: f32[3], index: 0, kind: input, shape index: {}]   ;;  %s18316_s1 = inlined_call_operand.vmem [shape: f32[3,2,128,128], index: 1, kind: input, shape index: {}]   ;;  %s18317_s2 = inlined_call_operand.vmem [shape: bf16[64,640], index: 2, kind: input, shape index: {}]   ;;  %s18318_s3 = inlined_call_operand.vmem [shape: f32[3,64,1], index: 3, kind: input, shape index: {}]   ;;  %s18319_s4 = inlined_call_operand.vmem [shape: bf16[3,64,64], index: 4, kind: input, shape index: {}]   ;;  %s18320_s5 = inlined_call_operand.vmem [shape: f32[3,3,64,1], index: 5, kind: input, shape index: {}]   ;;  %s18321_s6 = inlined_call_operand.vmem [shape: bf16[3,7,8,24], index: 6, kind: input, shape index: {}]   ;;  %s18322_s7 = inlined_call_operand.vmem [shape: f32[3,7,3,8,1], index: 7, kind: input, shape index: {}]   ;;  %s18323_s8 = inlined_call_operand.vmem [shape: bf16[3,8,64,8], index: 8, kind: input, shape index: {}]   ;;  %s18324_s9 = inlined_call_operand.vmem [shape: f32[3,3,64,1], index: 9, kind: input, shape index: {}]   ;;  %s18325_s10 = inlined_call_operand.vmem [shape: f32[3,32,64], index: 10, kind: input, shape index: {}]   ;;  %s18326_s11 = inlined_call_operand.vmem [shape: f32[3,32,1], index: 11, kind: input, shape index: {}]   ;;  %s18327_s12 = inlined_call_operand.vmem [shape: f32[3,64,32], index: 12, kind: input, shape index: {}]   ;;  %s18328_s13 = inlined_call_operand.vmem [shape: f32[3,64,1], index: 13, kind: input, shape index: {}]   ;;  %s18329_s14 = inlined_call_operand.vmem [shape: bf16[3,128,64], index: 14, kind: input, shape index: {}]   ;;  %s18330_s15 = inlined_call_operand.vmem [shape: f32[128,1], index: 15, kind: input, shape index: {}]   ;;  %s18331_s16 = inlined_call_operand.vmem [shape: bf16[32,128], index: 16, kind: input, shape index: {}]   ;;  %s18332_s17 = inlined_call_operand.vmem [shape: f32[32,1], index: 17, kind: input, shape index: {}]   ;;  %s18333_s18 = inlined_call_operand.vmem [shape: bf16[128,32], index: 18, kind: input, shape index: {}]   ;;  %s18334_s19 = inlined_call_operand.vmem [shape: f32[128,1], index: 19, kind: input, shape index: {}]   ;;  %s18335_s20 = inlined_call_operand.vmem [shape: f32[4,128,1], index: 20, kind: input, shape index: {}]   ;;  %s18336_s21 = inlined_call_operand.vmem [shape: f32[128,32], index: 21, kind: input, shape index: {}]   ;;  %s18337_s22 = inlined_call_operand.vmem [shape: f32[128,32], index: 22, kind: input, shape index: {}]   ;;  %s18338_s23 = inlined_call_operand.vmem [shape: f32[1,32], index: 23, kind: input, shape index: {}]   ;;  %s18339_s24 = inlined_call_operand.vmem [shape: f32[2,128,16], index: 24, kind: output, shape index: {0}]   ;;  %s18340_s25 = inlined_call_operand.hbm [shape: f32[2,1,32], index: 25, kind: output, shape index: {1}]  }
   0x1   :  { %18377 = sst [smem:[#allocation18_spill]] %s18315_s0 }
   0x2   :  { %18378 = sst [smem:[#allocation19_spill]] %s18316_s1 }
   0x3   :  { %18379 = sst [smem:[#allocation20_spill]] %s18317_s2 }
   0x4   :  { %18380 = sst [smem:[#allocation21_spill]] %s18318_s3 }
   0x5   :  { %18381 = sst [smem:[#allocation22_spill]] %s18319_s4 }
   0x6   :  { %18382 = sst [smem:[#allocation23_spill]] %s18320_s5 }
   0x7   :  { %18383 = sst [smem:[#allocation24_spill]] %s18321_s6 }
   0x8   :  { %18384 = sst [smem:[#allocation25_spill]] %s18322_s7 }
   0x9   :  { %18385 = sst [smem:[#allocation26_spill]] %s18323_s8 }
   0xa   :  { %18386 = sst [smem:[#allocation27_spill]] %s18324_s9 }
   0xb   :  { %18387 = sst [smem:[#allocation28_spill]] %s18336_s21 }
   0xc   :  { %18388 = sst [smem:[#allocation29_spill]] %s18337_s22 }
   0xd   :  { %18389 = sst [smem:[#allocation30_spill]] %s18338_s23 }
   0xe   :  { %18390 = sst [smem:[#allocation31_spill]] %s18340_s25 }
   0xf   :  { %31 = vsyncpa [#allocation4], 0 }
  0x10   :  { %32 = vsyncpa [#allocation3], 0 }
  0x11   :  { %34 = vsyncpa [#allocation3 + $0x1], 0  ;;  %s14455_s29 = smov 0   ;;  %s14457_s2 = smov 0  }
  0x12   :  { %s14459_s6 = smov 0   ;;  %s14461_s30 = smov 0  }
  0x13 LB: > { %18391 = sst [smem:[#allocation9_spill]] %s14298_s29  ;;  %s14476_s7 = sadd.s32 4294967295, %s14310_s30   ;;  %s14310_s30 = sphi %s14461_s30, %s18430_s30   ;;  %s14306_s6 = sphi %s14459_s6, %s18433_s6   ;;  %s14302_s2 = sphi %s14457_s2, %s18432_s2   ;;  %s14298_s29 = sphi %s14455_s29, %s18431_s29  }
  0x14   : > { %18392 = sst [smem:[#allocation10_spill]] %s14302_s2  ;;  %s11166_s3 = sadd.s32 4294967294, %s14310_s30  }
  0x15   : > { %18393 = sst [smem:[#allocation11_spill]] %s14306_s6  ;;  %s14480_s26 = sadd.s32 1, %s14310_s30  }
  0x16   : > { %18394 = sst [smem:[#allocation12_spill]] %s14310_s30  ;;  %s68_s1 = sadd.s32 1, %s14306_s6 }
  0x17   : > { %18395 = sst [smem:[#allocation13_spill]] %s14480_s26  ;;  %s65_s8 = ssub.s32 %s14310_s30, %s14480_s26 }
  0x18   : > { %p75_p0 = scmp.ne.s32.totalorder %s14306_s6, %s14302_s2  ;;  %p66_p1 = scmp.eq.s32.totalorder %s65_s8, 0 }
  0x19   : > { %p76_p2 = scmp.eq.s32.totalorder %s14310_s30, 0  ;;  %p593_p3 = scmp.eq.s32.totalorder %s14476_s7, 1 }
  0x1a   : > { %p598_p4 = scmp.ne.s32.totalorder %s14302_s2, %s14298_s29  ;;  %p599_p7 = scmp.eq.s32.totalorder %s11166_s3, 1 }
  0x1b   : > { %s14492_s27 = scalar_select %p66_p1, %s14306_s6, %s68_s1  }
  0x1c   : > { %p14494_p5 = por %p76_p2, %p75_p0  ;;  %p14498_p6 = por %p593_p3, %p75_p0 }
  0x1d   : > { %18396 = sst [smem:[#allocation14_spill]] %s14492_s27  ;;  %p11167_p8 = scmp.ge.s32.totalorder %s14310_s30, 1 }
  0x1e   : > { %s18398_s28 = scalar_select %p14498_p6, 1, 0 }
  0x1f   : > { %p606_p9 = scmp.lt.s32.totalorder %s14310_s30, 3  ;;  %p14504_p10 = por %p599_p7, %p598_p4 }
  0x20   : > { %18399 = sst [smem:[#allocation15_spill]] %s18398_s28  ;;  %p13618_p11 = scmp.eq.s32.totalorder %s14476_s7, 0 }
  0x21   : > { %s18400_s9 = scalar_select %p14504_p10, 1, 0 }
  0x22   : > { %p14509_p12 = pnand %p11167_p8, %p606_p9  ;;  %s18403_s8 = sld [smem:[#allocation18_spill]] }
  0x23   : > { %18401 = sst [smem:[#allocation16_spill]] %s18400_s9 }
  0x24   : > { %p13610_p13 = pneg %p14509_p12 }
  0x26   : > { %p13611_p0 = pnand %p13618_p11, %p13610_p13 }
  0x28   : > { %s619_s27 = sshll.u32 %s18403_s8, 4  ;;  %p14231_p2 = pneg %p13611_p0  ;;  %s620_s27 = int_to_ptr.vmem [resolvable:$true] %s619_s27 }
  0x29   : > { %s14229_s3 = scalar_lea.vmem %s620_s27, 16  ;;  %p14237_p7 = scmp.lt.s32.totalorder %s620_s27, %s620_s27 }
  0x2a   : > { %p14230_p1 = scmp.ne.s32.totalorder %s620_s27, %s14229_s3  ;;  %p14238_p8 = scmp.lt.s32.totalorder %s14229_s3, %s14229_s3 }
  0x2c   : > { %p14232_p3 = pnand %p14231_p2, %p14230_p1  ;;  %p14239_p9 = por %p14238_p8, %p14237_p7 }
  0x2e   : > { %p14233_p4 = pneg %p14232_p3 }
  0x30   : > { %p14240_p10 = pnand %p14239_p9, %p14233_p4 }
  0x32   : > { %14243 = shalt.err (!%p14240_p10)
}
  0x33   : > { %s14312_s26 = smov [#allocation2]   ;;  %p11169_p6 = scmp.ge.s32.totalorder %s14310_s30, 2 }
  0x34   : > { %13613 = dma.vmem_to_smem (!%p13611_p0), %s620_s27, 16, %s14312_s26, [#allocation4]  }
  0x35   : > { %692 = sbr.rel (%p11169_p6) target bundleno = 95 (0x5f), region = 108 }
  0x3c   : > { %695 = sbr.rel (!%p14494_p5) target bundleno = 95 (0x5f), region = 112  ;;  %s697_s0 = sand.u32 (%p14494_p5), 1, %s14306_s6  }
  0x3d   : > { %s12151_s1 = sshll.u32 (%p14494_p5), %s14310_s30, 7  ;;  %s13602_s8 = smul.u32 (%p14494_p5), 384, %s697_s0 }
  0x3e   : > { %s18404_s29 = sld [smem:[#allocation19_spill]] (%p14494_p5) }
  0x44   : > { %s14530_s25 = scalar_lea.vmem %s18404_s29, %s12151_s1  ;;  %s14538_s29 = scalar_lea.vmem [#allocation5], %s13602_s8 }
  0x45   : > { %v824_v0 = vld [vmem:[%s14530_s25] sm:$0xff]  ;;  %v826_v1 = vld [vmem:[%s14530_s25 + $0x8] sm:$0xff]  ;;  %v828_v2 = vld [vmem:[%s14530_s25 + $0x10] sm:$0xff] }
  0x46   : > { %v830_v3 = vld [vmem:[%s14530_s25 + $0x18] sm:$0xff]  ;;  %v832_v4 = vld [vmem:[%s14530_s25 + $0x20] sm:$0xff]  ;;  %v834_v5 = vld [vmem:[%s14530_s25 + $0x28] sm:$0xff]  ;;  %825 = vst [vmem:[%s14538_s29] sm:$0xff] %v824_v0 }
  0x47   : > { %827 = vst [vmem:[%s14538_s29 + $0x8] sm:$0xff] %v826_v1  ;;  %829 = vst [vmem:[%s14538_s29 + $0x10] sm:$0xff] %v828_v2  ;;  %v836_v6 = vld [vmem:[%s14530_s25 + $0x30] sm:$0xff]  ;;  %v838_v7 = vld [vmem:[%s14530_s25 + $0x38] sm:$0xff] }
  0x48   : > { %831 = vst [vmem:[%s14538_s29 + $0x18] sm:$0xff] %v830_v3  ;;  %833 = vst [vmem:[%s14538_s29 + $0x20] sm:$0xff] %v832_v4  ;;  %v840_v8 = vld [vmem:[%s14530_s25 + $0x40] sm:$0xff]  ;;  %v842_v9 = vld [vmem:[%s14530_s25 + $0x48] sm:$0xff] }
  0x49   : > { %835 = vst [vmem:[%s14538_s29 + $0x28] sm:$0xff] %v834_v5  ;;  %837 = vst [vmem:[%s14538_s29 + $0x30] sm:$0xff] %v836_v6  ;;  %v844_v10 = vld [vmem:[%s14530_s25 + $0x50] sm:$0xff]  ;;  %v846_v11 = vld [vmem:[%s14530_s25 + $0x58] sm:$0xff] }
  0x4a   : > { %839 = vst [vmem:[%s14538_s29 + $0x38] sm:$0xff] %v838_v7  ;;  %841 = vst [vmem:[%s14538_s29 + $0x40] sm:$0xff] %v840_v8  ;;  %v848_v12 = vld [vmem:[%s14530_s25 + $0x60] sm:$0xff]  ;;  %v850_v13 = vld [vmem:[%s14530_s25 + $0x68] sm:$0xff] }
  0x4b   : > { %843 = vst [vmem:[%s14538_s29 + $0x48] sm:$0xff] %v842_v9  ;;  %845 = vst [vmem:[%s14538_s29 + $0x50] sm:$0xff] %v844_v10  ;;  %v852_v14 = vld [vmem:[%s14530_s25 + $0x70] sm:$0xff]  ;;  %v854_v15 = vld [vmem:[%s14530_s25 + $0x78] sm:$0xff] }
  0x4c   : > { %847 = vst [vmem:[%s14538_s29 + $0x58] sm:$0xff] %v846_v11  ;;  %849 = vst [vmem:[%s14538_s29 + $0x60] sm:$0xff] %v848_v12  ;;  %v856_v16 = vld [vmem:[%s14530_s25 + $0x100] sm:$0xff]  ;;  %v858_v17 = vld [vmem:[%s14530_s25 + $0x108] sm:$0xff] }
  0x4d   : > { %851 = vst [vmem:[%s14538_s29 + $0x68] sm:$0xff] %v850_v13  ;;  %853 = vst [vmem:[%s14538_s29 + $0x70] sm:$0xff] %v852_v14  ;;  %v860_v18 = vld [vmem:[%s14530_s25 + $0x110] sm:$0xff]  ;;  %v862_v19 = vld [vmem:[%s14530_s25 + $0x118] sm:$0xff] }
  0x4e   : > { %855 = vst [vmem:[%s14538_s29 + $0x78] sm:$0xff] %v854_v15  ;;  %857 = vst [vmem:[%s14538_s29 + $0x80] sm:$0xff] %v856_v16  ;;  %v864_v20 = vld [vmem:[%s14530_s25 + $0x120] sm:$0xff]  ;;  %v866_v21 = vld [vmem:[%s14530_s25 + $0x128] sm:$0xff] }
  0x4f   : > { %859 = vst [vmem:[%s14538_s29 + $0x88] sm:$0xff] %v858_v17  ;;  %861 = vst [vmem:[%s14538_s29 + $0x90] sm:$0xff] %v860_v18  ;;  %v868_v22 = vld [vmem:[%s14530_s25 + $0x130] sm:$0xff]  ;;  %v870_v23 = vld [vmem:[%s14530_s25 + $0x138] sm:$0xff] }
  0x50   : > { %863 = vst [vmem:[%s14538_s29 + $0x98] sm:$0xff] %v862_v19  ;;  %865 = vst [vmem:[%s14538_s29 + $0xa0] sm:$0xff] %v864_v20  ;;  %v872_v24 = vld [vmem:[%s14530_s25 + $0x140] sm:$0xff]  ;;  %v874_v25 = vld [vmem:[%s14530_s25 + $0x148] sm:$0xff] }
  0x51   : > { %867 = vst [vmem:[%s14538_s29 + $0xa8] sm:$0xff] %v866_v21  ;;  %869 = vst [vmem:[%s14538_s29 + $0xb0] sm:$0xff] %v868_v22  ;;  %v876_v26 = vld [vmem:[%s14530_s25 + $0x150] sm:$0xff]  ;;  %v878_v27 = vld [vmem:[%s14530_s25 + $0x158] sm:$0xff] }
  0x52   : > { %871 = vst [vmem:[%s14538_s29 + $0xb8] sm:$0xff] %v870_v23  ;;  %873 = vst [vmem:[%s14538_s29 + $0xc0] sm:$0xff] %v872_v24  ;;  %v880_v28 = vld [vmem:[%s14530_s25 + $0x160] sm:$0xff]  ;;  %v882_v29 = vld [vmem:[%s14530_s25 + $0x168] sm:$0xff] }
  0x53   : > { %875 = vst [vmem:[%s14538_s29 + $0xc8] sm:$0xff] %v874_v25  ;;  %877 = vst [vmem:[%s14538_s29 + $0xd0] sm:$0xff] %v876_v26  ;;  %v884_v30 = vld [vmem:[%s14530_s25 + $0x170] sm:$0xff]  ;;  %v886_v31 = vld [vmem:[%s14530_s25 + $0x178] sm:$0xff] }
  0x54   : > { %879 = vst [vmem:[%s14538_s29 + $0xd8] sm:$0xff] %v878_v27  ;;  %881 = vst [vmem:[%s14538_s29 + $0xe0] sm:$0xff] %v880_v28  ;;  %v888_v32 = vld [vmem:[%s14530_s25 + $0x200] sm:$0xff]  ;;  %v890_v33 = vld [vmem:[%s14530_s25 + $0x208] sm:$0xff] }
  0x55   : > { %883 = vst [vmem:[%s14538_s29 + $0xe8] sm:$0xff] %v882_v29  ;;  %885 = vst [vmem:[%s14538_s29 + $0xf0] sm:$0xff] %v884_v30  ;;  %v892_v34 = vld [vmem:[%s14530_s25 + $0x210] sm:$0xff]  ;;  %v894_v35 = vld [vmem:[%s14530_s25 + $0x218] sm:$0xff] }
  0x56   : > { %887 = vst [vmem:[%s14538_s29 + $0xf8] sm:$0xff] %v886_v31  ;;  %889 = vst [vmem:[%s14538_s29 + $0x100] sm:$0xff] %v888_v32  ;;  %v896_v36 = vld [vmem:[%s14530_s25 + $0x220] sm:$0xff]  ;;  %v898_v37 = vld [vmem:[%s14530_s25 + $0x228] sm:$0xff] }
  0x57   : > { %891 = vst [vmem:[%s14538_s29 + $0x108] sm:$0xff] %v890_v33  ;;  %893 = vst [vmem:[%s14538_s29 + $0x110] sm:$0xff] %v892_v34  ;;  %v900_v38 = vld [vmem:[%s14530_s25 + $0x230] sm:$0xff]  ;;  %v902_v39 = vld [vmem:[%s14530_s25 + $0x238] sm:$0xff] }
  0x58   : > { %895 = vst [vmem:[%s14538_s29 + $0x118] sm:$0xff] %v894_v35  ;;  %897 = vst [vmem:[%s14538_s29 + $0x120] sm:$0xff] %v896_v36  ;;  %v904_v40 = vld [vmem:[%s14530_s25 + $0x240] sm:$0xff]  ;;  %v906_v41 = vld [vmem:[%s14530_s25 + $0x248] sm:$0xff] }
  0x59   : > { %899 = vst [vmem:[%s14538_s29 + $0x128] sm:$0xff] %v898_v37  ;;  %901 = vst [vmem:[%s14538_s29 + $0x130] sm:$0xff] %v900_v38  ;;  %v908_v42 = vld [vmem:[%s14530_s25 + $0x250] sm:$0xff]  ;;  %v910_v43 = vld [vmem:[%s14530_s25 + $0x258] sm:$0xff] }
  0x5a   : > { %903 = vst [vmem:[%s14538_s29 + $0x138] sm:$0xff] %v902_v39  ;;  %905 = vst [vmem:[%s14538_s29 + $0x140] sm:$0xff] %v904_v40  ;;  %v912_v44 = vld [vmem:[%s14530_s25 + $0x260] sm:$0xff]  ;;  %v914_v45 = vld [vmem:[%s14530_s25 + $0x268] sm:$0xff] }
  0x5b   : > { %907 = vst [vmem:[%s14538_s29 + $0x148] sm:$0xff] %v906_v41  ;;  %909 = vst [vmem:[%s14538_s29 + $0x150] sm:$0xff] %v908_v42  ;;  %v916_v46 = vld [vmem:[%s14530_s25 + $0x270] sm:$0xff]  ;;  %v918_v47 = vld [vmem:[%s14530_s25 + $0x278] sm:$0xff] }
  0x5c   : > { %911 = vst [vmem:[%s14538_s29 + $0x158] sm:$0xff] %v910_v43  ;;  %913 = vst [vmem:[%s14538_s29 + $0x160] sm:$0xff] %v912_v44 }
  0x5d   : > { %915 = vst [vmem:[%s14538_s29 + $0x168] sm:$0xff] %v914_v45  ;;  %917 = vst [vmem:[%s14538_s29 + $0x170] sm:$0xff] %v916_v46 }
  0x5e   : > { %919 = vst [vmem:[%s14538_s29 + $0x178] sm:$0xff] %v918_v47 }
  0x5f PF: > { %928 = sbr.rel (%p14509_p12) target bundleno = 13377 (0x3441), region = 150 }
  0x66   : > { %14289 = dma.done.wait (%p13618_p11), [#allocation4], 16  }
  0x67   : > { %14291 = vsyncadd (%p13618_p11), [#allocation4], 4294967280  ;;  %s14637_s26 = sand.u32 1, %s14302_s2  }
  0x68   : > { %18405 = sst [smem:[#allocation17_spill]] %s14637_s26  ;;  %s13603_s27 = smul.u32 384, %s14637_s26 }
  0x6a   : > { %s14640_s25 = scalar_lea.vmem [#allocation5], %s13603_s27 }
  0x6b   : > { %941 = sfence }
  0x6c   : > { %v1013_v48 = vlaneseq  ;;  %s1018_s4 = sld [smem:[#allocation2]]  ;;  %s11177_s9 = sld [smem:[#allocation2 + $0x1]]  ;;  %v1019_v50 = vld [vmem:[%s14640_s25] sm:$0xff]  ;;  %v1021_v53 = vld [vmem:[%s14640_s25 + $0x10] sm:$0xff]  ;;  %v1020_v56 = vld [vmem:[%s14640_s25 + $0x8] sm:$0xff]  ;;  %v14313_v58 = vmov 0.0  }
  0x6d   : > { %s11194_s5 = sld [smem:[#allocation2 + $0x2]]  ;;  %v11178_v51 = vld [vmem:[%s14640_s25 + $0x80] sm:$0xff]  ;;  %v11180_v54 = vld [vmem:[%s14640_s25 + $0x90] sm:$0xff]  ;;  %v11179_v57 = vld [vmem:[%s14640_s25 + $0x88] sm:$0xff]  ;;  %s18355_s0 = smov 2   ;;  %vm2127_vm1 = vcmask 523264  }
  0x6e   : > { %v1014_v49 = vand.u32 127, %v1013_v48  ;;  %v11195_v52 = vld [vmem:[%s14640_s25 + $0x100] sm:$0xff]  ;;  %v11197_v55 = vld [vmem:[%s14640_s25 + $0x110] sm:$0xff]  ;;  %v11196_v62 = vld [vmem:[%s14640_s25 + $0x108] sm:$0xff]  ;;  %s14315_s1 = smov 1   ;;  %s14316_s8 = smov 127  }
  0x6f   : > { %v1022_v63 = vld [vmem:[%s14640_s25 + $0x18] sm:$0xff]  ;;  %v1023_v6 = vld [vmem:[%s14640_s25 + $0x20] sm:$0xff]  ;;  %v1024_v17 = vld [vmem:[%s14640_s25 + $0x28] sm:$0xff]  ;;  %s18406_s27 = sld [smem:[#allocation20_spill]]  ;;  %s18407_s3 = sld [smem:[#allocation21_spill]]  ;;  %vm14319_vm2 = vmmov 0  }
  0x70   : > { %vm1015_vm0 = vcmp.lt.s32.totalorder %v1014_v49, 16  ;;  %v11181_v4 = vld [vmem:[%s14640_s25 + $0x98] sm:$0xff]  ;;  %v11182_v11 = vld [vmem:[%s14640_s25 + $0xa0] sm:$0xff]  ;;  %v11183_v18 = vld [vmem:[%s14640_s25 + $0xa8] sm:$0xff]  ;;  %vm2352_vm3 = vcmask 1043456   ;;  %s18413_s28 = sld [smem:[#allocation24_spill]] }
  0x71   : > { %v14651_v59 = vsel %vm1015_vm0, 1.0, %v14313_v58  ;;  %v11198_v5 = vld [vmem:[%s14640_s25 + $0x118] sm:$0xff]  ;;  %v11199_v12 = vld [vmem:[%s14640_s25 + $0x120] sm:$0xff]  ;;  %v11200_v23 = vld [vmem:[%s14640_s25 + $0x128] sm:$0xff]  ;;  %vm2348_vm4 = vcmask 195584   ;;  %s18414_s26 = sld [smem:[#allocation26_spill]] }
  0x72   : > { %v14653_v60 = vstv %s1018_s4  ;;  %v14655_v61 = vstv %s11177_s9  ;;  %v1025_v28 = vld [vmem:[%s14640_s25 + $0x30] sm:$0xff]  ;;  %v1026_v43 = vld [vmem:[%s14640_s25 + $0x38] sm:$0xff]  ;;  %s18412_s9 = sld [smem:[#allocation25_spill]]  ;;  %vm2933_vm5 = vcmask 64512   ;;  %s18415_s30 = sld [smem:[#allocation27_spill]]  ;;  %vm4157_vm6 = vcmask 261120  }
  0x73   : > { %v1036_v0 = vmul.f32 %v14653_v60, %v1019_v50  ;;  %v1071_v1 = vmul.f32 %v11178_v51, %v14655_v61  ;;  %v14661_v2 = vstv %s11194_s5  ;;  %v1038_v3 = vmul.f32 %v14653_v60, %v1021_v53  ;;  %v11184_v33 = vld [vmem:[%s14640_s25 + $0xb0] sm:$0xff]  ;;  %v11185_v44 = vld [vmem:[%s14640_s25 + $0xb8] sm:$0xff]  ;;  %v1027_v50 = vld [vmem:[%s14640_s25 + $0x40] sm:$0xff]  ;;  %s18408_s5 = sld [smem:[#allocation23_spill]]  ;;  %s18371_s2 = smov 125  }
  0x74   : > { %v1122_v7 = vmul.f32 %v11195_v52, %v14661_v2  ;;  %v1073_v8 = vmul.f32 %v11180_v54, %v14655_v61  ;;  %v1124_v9 = vmul.f32 %v11197_v55, %v14661_v2  ;;  %v1037_v10 = vmul.f32 %v14653_v60, %v1020_v56  ;;  %v11201_v38 = vld [vmem:[%s14640_s25 + $0x130] sm:$0xff]  ;;  %v11202_v45 = vld [vmem:[%s14640_s25 + $0x138] sm:$0xff]  ;;  %v11186_v51 = vld [vmem:[%s14640_s25 + $0xc0] sm:$0xff]  ;;  %p1007_p5 = scmp.lt.s32.totalorder %s14476_s7, 1  ;;  %s12148_s6 = sshll.u32 %s14476_s7, 4 }
  0x75   : > { %v1087_v13 = vadd.f32 %v1071_v1, %v1036_v0  ;;  %v1072_v14 = vmul.f32 %v11179_v57, %v14655_v61  ;;  %v1123_v15 = vmul.f32 %v11196_v62, %v14661_v2  ;;  %v1039_v16 = vmul.f32 %v14653_v60, %v1022_v63  ;;  %v11203_v52 = vld [vmem:[%s14640_s25 + $0x140] sm:$0xff]  ;;  %v1028_v57 = vld [vmem:[%s14640_s25 + $0x48] sm:$0xff] }
  0x76   : > { %v1089_v19 = vadd.f32 %v1073_v8, %v1038_v3  ;;  %v1074_v20 = vmul.f32 %v11181_v4, %v14655_v61  ;;  %v1125_v21 = vmul.f32 %v11198_v5, %v14661_v2  ;;  %v1040_v22 = vmul.f32 %v14653_v60, %v1023_v6  ;;  %v11187_v62 = vld [vmem:[%s14640_s25 + $0xc8] sm:$0xff]  ;;  %v1029_v5 = vld [vmem:[%s14640_s25 + $0x50] sm:$0xff] }
  0x77   : > { %v1138_v24 = vadd.f32 %v1122_v7, %v1087_v13  ;;  %v1088_v25 = vadd.f32 %v1072_v14, %v1037_v10  ;;  %v1075_v26 = vmul.f32 %v11182_v11, %v14655_v61  ;;  %v1126_v27 = vmul.f32 %v11199_v12, %v14661_v2  ;;  %v11204_v63 = vld [vmem:[%s14640_s25 + $0x148] sm:$0xff]  ;;  %v11188_v6 = vld [vmem:[%s14640_s25 + $0xd0] sm:$0xff]  ;;  %v1030_v12 = vld [vmem:[%s14640_s25 + $0x58] sm:$0xff] }
  0x78   : > { %v1140_v29 = vadd.f32 %v1124_v9, %v1089_v19  ;;  %v1090_v30 = vadd.f32 %v1074_v20, %v1039_v16  ;;  %v1041_v31 = vmul.f32 %v14653_v60, %v1024_v17  ;;  %v1076_v32 = vmul.f32 %v11183_v18, %v14655_v61  ;;  %v11205_v7 = vld [vmem:[%s14640_s25 + $0x150] sm:$0xff]  ;;  %v11189_v17 = vld [vmem:[%s14640_s25 + $0xd8] sm:$0xff]  ;;  %s18416_s23 = smov %s18415_s30 }
  0x79   : > { %v14688_v34 = vadd.f32 1e-06, %v1138_v24  ;;  %v1139_v35 = vadd.f32 %v1123_v15, %v1088_v25  ;;  %v1091_v36 = vadd.f32 %v1075_v26, %v1040_v22  ;;  %v1127_v37 = vmul.f32 %v11200_v23, %v14661_v2  ;;  %v11206_v18 = vld [vmem:[%s14640_s25 + $0x158] sm:$0xff]  ;;  %v1031_v23 = vld [vmem:[%s14640_s25 + $0x60] sm:$0xff] }
  0x7a   : > { %v14692_v39 = vadd.f32 1e-06, %v1140_v29  ;;  %v1141_v40 = vadd.f32 %v1125_v21, %v1090_v30  ;;  %v1092_v41 = vadd.f32 %v1076_v32, %v1041_v31  ;;  %v1042_v42 = vmul.f32 %v14653_v60, %v1025_v28  ;;  %v11190_v24 = vld [vmem:[%s14640_s25 + $0xe0] sm:$0xff] }
  0x7b   : > { %v1170_v46 = vmul.f32 %v14651_v59, %v14688_v34  ;;  %v14700_v47 = vadd.f32 1e-06, %v1139_v35  ;;  %v1142_v48 = vadd.f32 %v1126_v27, %v1091_v36  ;;  %v1077_v49 = vmul.f32 %v11184_v33, %v14655_v61  ;;  %v11207_v29 = vld [vmem:[%s14640_s25 + $0x160] sm:$0xff]  ;;  %v1032_v35 = vld [vmem:[%s14640_s25 + $0x68] sm:$0xff] }
  0x7c   : > { %v1172_v53 = vmul.f32 %v14651_v59, %v14692_v39  ;;  %v14708_v54 = vadd.f32 1e-06, %v1141_v40  ;;  %v1143_v55 = vadd.f32 %v1127_v37, %v1092_v41  ;;  %v1128_v56 = vmul.f32 %v11201_v38, %v14661_v2  ;;  %v11191_v41 = vld [vmem:[%s14640_s25 + $0xe8] sm:$0xff] }
  0x7d   : > { %1186 = vadd.xlane.f32.xlu0 %v1170_v46  ;;  %v1171_v0 = vmul.f32 %v14651_v59, %v14700_v47  ;;  %v14716_v1 = vadd.f32 1e-06, %v1142_v48  ;;  %v1093_v3 = vadd.f32 %v1077_v49, %v1042_v42  ;;  %v1043_v4 = vmul.f32 %v14653_v60, %v1026_v43  ;;  %v11208_v42 = vld [vmem:[%s14640_s25 + $0x168] sm:$0xff]  ;;  %v1033_v48 = vld [vmem:[%s14640_s25 + $0x70] sm:$0xff] }
  0x7e   : > { %1190 = vadd.xlane.f32.xlu1 %v1172_v53  ;;  %v1173_v8 = vmul.f32 %v14651_v59, %v14708_v54  ;;  %v14724_v9 = vadd.f32 1e-06, %v1143_v55  ;;  %v1078_v10 = vmul.f32 %v11185_v44, %v14655_v61  ;;  %v1129_v11 = vmul.f32 %v11202_v45, %v14661_v2  ;;  %v11192_v49 = vld [vmem:[%s14640_s25 + $0xf0] sm:$0xff] }
  0x7f   : > { %v1174_v13 = vmul.f32 %v14651_v59, %v14716_v1  ;;  %v1144_v14 = vadd.f32 %v1128_v56, %v1093_v3  ;;  %v1044_v15 = vmul.f32 %v14653_v60, %v1027_v50  ;;  %v1079_v16 = vmul.f32 %v11186_v51, %v14655_v61  ;;  %v11209_v55 = vld [vmem:[%s14640_s25 + $0x170] sm:$0xff]  ;;  %v11193_v3 = vld [vmem:[%s14640_s25 + $0xf8] sm:$0xff] }
  0x80   : > { %v1175_v19 = vmul.f32 %v14651_v59, %v14724_v9  ;;  %v1094_v20 = vadd.f32 %v1078_v10, %v1043_v4  ;;  %v1130_v21 = vmul.f32 %v11203_v52, %v14661_v2  ;;  %v1045_v22 = vmul.f32 %v14653_v60, %v1028_v57 }
  0x81   : > { %1188 = vadd.xlane.f32.xlu0 %v1171_v0  ;;  %v14741_v25 = vadd.f32 1e-06, %v1144_v14  ;;  %v1095_v26 = vadd.f32 %v1079_v16, %v1044_v15  ;;  %v1080_v27 = vmul.f32 %v11187_v62, %v14655_v61  ;;  %v1131_v28 = vmul.f32 %v11204_v63, %v14661_v2  ;;  %v1034_v0 = vld [vmem:[%s14640_s25 + $0x78] sm:$0xff] }
  0x82   : > { %1192 = vadd.xlane.f32.xlu1 %v1173_v8  ;;  %v1145_v30 = vadd.f32 %v1129_v11, %v1094_v20  ;;  %v1046_v31 = vmul.f32 %v14653_v60, %v1029_v5  ;;  %v1081_v32 = vmul.f32 %v11188_v6, %v14655_v61  ;;  %v1132_v33 = vmul.f32 %v11205_v7, %v14661_v2  ;;  %v11210_v7 = vld [vmem:[%s14640_s25 + $0x178] sm:$0xff]  ;;  %s18358_s25 = smov 126  }
  0x83   : > { %v1176_v36 = vmul.f32 %v14651_v59, %v14741_v25  ;;  %v1146_v37 = vadd.f32 %v1130_v21, %v1095_v26  ;;  %v1096_v38 = vadd.f32 %v1080_v27, %v1045_v22  ;;  %v1047_v40 = vmul.f32 %v14653_v60, %v1030_v12 }
  0x84   : > { %v14755_v43 = vadd.f32 1e-06, %v1145_v30  ;;  %v1097_v44 = vadd.f32 %v1081_v32, %v1046_v31  ;;  %v1082_v45 = vmul.f32 %v11189_v17, %v14655_v61  ;;  %v1133_v46 = vmul.f32 %v11206_v18, %v14661_v2 }
  0x85   : > { %1194 = vadd.xlane.f32.xlu0 %v1174_v13  ;;  %v14761_v50 = vadd.f32 1e-06, %v1146_v37  ;;  %v1147_v51 = vadd.f32 %v1131_v28, %v1096_v38  ;;  %v1048_v52 = vmul.f32 %v14653_v60, %v1031_v23  ;;  %v1083_v53 = vmul.f32 %v11190_v24, %v14655_v61 }
  0x86   : > { %1196 = vadd.xlane.f32.xlu1 %v1175_v19  ;;  %v1177_v56 = vmul.f32 %v14651_v59, %v14755_v43  ;;  %v1148_v57 = vadd.f32 %v1132_v33, %v1097_v44  ;;  %v1098_v62 = vadd.f32 %v1082_v45, %v1047_v40  ;;  %v1134_v63 = vmul.f32 %v11207_v29, %v14661_v2 }
  0x87   : > { %v14771_v4 = vadd.f32 1e-06, %v1147_v51  ;;  %v1099_v5 = vadd.f32 %v1083_v53, %v1048_v52  ;;  %v1049_v6 = vmul.f32 %v14653_v60, %v1032_v35  ;;  %v1084_v11 = vmul.f32 %v11191_v41, %v14655_v61 }
  0x88   : > { %v14775_v8 = vadd.f32 1e-06, %v1148_v57  ;;  %v1149_v10 = vadd.f32 %v1133_v46, %v1098_v62  ;;  %v1135_v12 = vmul.f32 %v11208_v42, %v14661_v2  ;;  %v1178_v13 = vmul.f32 %v14651_v59, %v14761_v50 }
  0x89   : > { %1198 = vadd.xlane.f32.xlu0 %v1176_v36  ;;  %v1150_v14 = vadd.f32 %v1134_v63, %v1099_v5  ;;  %v1050_v15 = vmul.f32 %v14653_v60, %v1033_v48  ;;  %v1085_v16 = vmul.f32 %v11192_v49, %v14655_v61  ;;  %v1179_v17 = vmul.f32 %v14651_v59, %v14771_v4 }
  0x8a   : > { %1200 = vadd.xlane.f32.xlu1 %v1177_v56  ;;  %v14785_v18 = vadd.f32 1e-06, %v1149_v10  ;;  %v1100_v19 = vadd.f32 %v1084_v11, %v1049_v6  ;;  %v1136_v20 = vmul.f32 %v11209_v55, %v14661_v2  ;;  %v1051_v23 = vmul.f32 %v14653_v60, %v1034_v0 }
  0x8b   : > { %v14788_v21 = vadd.f32 1e-06, %v1150_v14  ;;  %v1101_v22 = vadd.f32 %v1085_v16, %v1050_v15  ;;  %v1086_v24 = vmul.f32 %v11193_v3, %v14655_v61  ;;  %v1137_v27 = vmul.f32 %v11210_v7, %v14661_v2 }
  0x8c   : > { %v1151_v26 = vadd.f32 %v1135_v12, %v1100_v19  ;;  %v1180_v28 = vmul.f32 %v14651_v59, %v14775_v8  ;;  %v1181_v31 = vmul.f32 %v14651_v59, %v14785_v18  ;;  %vm9754_vm7 = vcmask 130048  }
  0x8d   : > { %1202 = vadd.xlane.f32.xlu0 %v1178_v13  ;;  %v1152_v29 = vadd.f32 %v1136_v20, %v1101_v22  ;;  %v1102_v30 = vadd.f32 %v1086_v24, %v1051_v23  ;;  %v1182_v61 = vmul.f32 %v14651_v59, %v14788_v21 }
  0x8e   : > { %1204 = vadd.xlane.f32.xlu1 %v1179_v17  ;;  %v14797_v32 = vadd.f32 1e-06, %v1151_v26 }
  0x8f   : > { %v14799_v33 = vadd.f32 1e-06, %v1152_v29  ;;  %v1153_v60 = vadd.f32 %v1137_v27, %v1102_v30 }
  0x90   : > { %v1183_v35 = vmul.f32 %v14651_v59, %v14797_v32 }
  0x91   : > { %1206 = vadd.xlane.f32.xlu0 %v1180_v28  ;;  %v14803_v2 = vadd.f32 1e-06, %v1153_v60  ;;  %v1184_v36 = vmul.f32 %v14651_v59, %v14799_v33 }
  0x92   : > { %1208 = vadd.xlane.f32.xlu1 %v1181_v31 }
  0x93   : > { %v1185_v37 = vmul.f32 %v14651_v59, %v14803_v2 }
  0x95   : > { %1210 = vadd.xlane.f32.xlu0 %v1182_v61 }
  0x96   : > { %1212 = vadd.xlane.f32.xlu1 %v1183_v35 }
  0x99   : > { %1214 = vadd.xlane.f32.xlu0 %v1184_v36 }
  0x9a   : > { %1216 = vadd.xlane.f32.xlu1 %v1185_v37 }
 0x10a   : > { %v1187_v38 = vpop.xlane.xlu0 %1186 }
 0x10b   : > { %v1218_v40 = vmul.f32 0.0625, %v1187_v38  ;;  %v1191_v41 = vpop.xlane.xlu1 %1190 }
 0x10c   : > { %v1220_v42 = vmul.f32 0.0625, %v1191_v41 }
 0x10d   : > { %v1234_v44 = vsub.f32 %v14688_v34, %v1218_v40 }
 0x10e   : > { %v1236_v45 = vsub.f32 %v14692_v39, %v1220_v42  ;;  %v1189_v46 = vpop.xlane.xlu0 %1188 }
 0x10f   : > { %v1219_v48 = vmul.f32 0.0625, %v1189_v46  ;;  %v1193_v49 = vpop.xlane.xlu1 %1192  ;;  %v14814_v51 = vmul.f32 %v14651_v59, %v1234_v44 }
 0x110   : > { %v1221_v52 = vmul.f32 0.0625, %v1193_v49  ;;  %v14817_v53 = vmul.f32 %v14651_v59, %v1236_v45 }
 0x111   : > { %v1235_v55 = vsub.f32 %v14700_v47, %v1219_v48  ;;  %v1266_v56 = vmul.f32 %v14814_v51, %v14814_v51 }
 0x112   : > { %v1237_v57 = vsub.f32 %v14708_v54, %v1221_v52  ;;  %v1195_v34 = vpop.xlane.xlu0 %1194  ;;  %v1268_v63 = vmul.f32 %v14817_v53, %v14817_v53 }
 0x113   : > { %v1222_v62 = vmul.f32 0.0625, %v1195_v34  ;;  %1282 = vadd.xlane.f32.xlu0 %v1266_v56  ;;  %v1197_v39 = vpop.xlane.xlu1 %1196  ;;  %v14826_v0 = vmul.f32 %v14651_v59, %v1235_v55 }
 0x114   : > { %v1223_v3 = vmul.f32 0.0625, %v1197_v39  ;;  %v14829_v5 = vmul.f32 %v14651_v59, %v1237_v57 }
 0x115   : > { %v1238_v47 = vsub.f32 %v14716_v1, %v1222_v62  ;;  %v1267_v6 = vmul.f32 %v14826_v0, %v14826_v0 }
 0x116   : > { %v1239_v54 = vsub.f32 %v14724_v9, %v1223_v3  ;;  %v1199_v7 = vpop.xlane.xlu0 %1198  ;;  %v1269_v12 = vmul.f32 %v14829_v5, %v14829_v5 }
 0x117   : > { %v1224_v10 = vmul.f32 0.0625, %v1199_v7  ;;  %1286 = vadd.xlane.f32.xlu0 %v1268_v63  ;;  %1284 = vadd.xlane.f32.xlu1 %v1267_v6  ;;  %v1201_v11 = vpop.xlane.xlu1 %1200  ;;  %v14838_v13 = vmul.f32 %v14651_v59, %v1238_v47 }
 0x118   : > { %v1225_v14 = vmul.f32 0.0625, %v1201_v11  ;;  %v14841_v15 = vmul.f32 %v14651_v59, %v1239_v54 }
 0x119   : > { %v1240_v1 = vsub.f32 %v14741_v25, %v1224_v10  ;;  %v1270_v9 = vmul.f32 %v14838_v13, %v14838_v13 }
 0x11a   : > { %v1241_v16 = vsub.f32 %v14755_v43, %v1225_v14  ;;  %v1203_v17 = vpop.xlane.xlu0 %1202  ;;  %v1271_v22 = vmul.f32 %v14841_v15, %v14841_v15 }
 0x11b   : > { %v1226_v19 = vmul.f32 0.0625, %v1203_v17  ;;  %1288 = vadd.xlane.f32.xlu1 %v1269_v12  ;;  %1290 = vadd.xlane.f32.xlu0 %v1270_v9  ;;  %v1205_v20 = vpop.xlane.xlu1 %1204  ;;  %v14850_v23 = vmul.f32 %v14651_v59, %v1240_v1 }
 0x11c   : > { %v1227_v24 = vmul.f32 0.0625, %v1205_v20  ;;  %v14853_v26 = vmul.f32 %v14651_v59, %v1241_v16 }
 0x11d   : > { %v1242_v25 = vsub.f32 %v14761_v50, %v1226_v19  ;;  %v1272_v43 = vmul.f32 %v14850_v23, %v14850_v23 }
 0x11e   : > { %v1243_v27 = vsub.f32 %v14771_v4, %v1227_v24  ;;  %v1207_v28 = vpop.xlane.xlu0 %1206  ;;  %v1273_v31 = vmul.f32 %v14853_v26, %v14853_v26 }
 0x11f   : > { %v1228_v29 = vmul.f32 0.0625, %v1207_v28  ;;  %1292 = vadd.xlane.f32.xlu1 %v1271_v22  ;;  %1294 = vadd.xlane.f32.xlu0 %v1272_v43  ;;  %v1209_v30 = vpop.xlane.xlu1 %1208  ;;  %v14862_v60 = vmul.f32 %v14651_v59, %v1242_v25 }
 0x120   : > { %v1229_v61 = vmul.f32 0.0625, %v1209_v30  ;;  %v14865_v35 = vmul.f32 %v14651_v59, %v1243_v27 }
 0x121   : > { %v1244_v50 = vsub.f32 %v14775_v8, %v1228_v29  ;;  %v1274_v4 = vmul.f32 %v14862_v60, %v14862_v60 }
 0x122   : > { %v1245_v36 = vsub.f32 %v14785_v18, %v1229_v61  ;;  %v1211_v37 = vpop.xlane.xlu0 %1210  ;;  %v1275_v41 = vmul.f32 %v14865_v35, %v14865_v35 }
 0x123   : > { %v1230_v38 = vmul.f32 0.0625, %v1211_v37  ;;  %1296 = vadd.xlane.f32.xlu1 %v1273_v31  ;;  %1298 = vadd.xlane.f32.xlu0 %v1274_v4  ;;  %v1213_v40 = vpop.xlane.xlu1 %1212  ;;  %v14874_v42 = vmul.f32 %v14651_v59, %v1244_v50 }
 0x124   : > { %v1231_v44 = vmul.f32 0.0625, %v1213_v40  ;;  %v14877_v45 = vmul.f32 %v14651_v59, %v1245_v36 }
 0x125   : > { %v1246_v8 = vsub.f32 %v14788_v21, %v1230_v38  ;;  %v1276_v18 = vmul.f32 %v14874_v42, %v14874_v42 }
 0x126   : > { %v1247_v46 = vsub.f32 %v14797_v32, %v1231_v44  ;;  %v1215_v48 = vpop.xlane.xlu0 %1214  ;;  %v1277_v55 = vmul.f32 %v14877_v45, %v14877_v45 }
 0x127   : > { %v1232_v49 = vmul.f32 0.0625, %v1215_v48  ;;  %1300 = vadd.xlane.f32.xlu1 %v1275_v41  ;;  %1302 = vadd.xlane.f32.xlu0 %v1276_v18  ;;  %v1217_v52 = vpop.xlane.xlu1 %1216  ;;  %v14886_v56 = vmul.f32 %v14651_v59, %v1246_v8 }
 0x128   : > { %v1233_v57 = vmul.f32 0.0625, %v1217_v52  ;;  %v14889_v34 = vmul.f32 %v14651_v59, %v1247_v46 }
 0x129   : > { %v1248_v21 = vsub.f32 %v14799_v33, %v1232_v49  ;;  %v1278_v32 = vmul.f32 %v14886_v56, %v14886_v56 }
 0x12a   : > { %v1249_v62 = vsub.f32 %v14803_v2, %v1233_v57  ;;  %v1279_v39 = vmul.f32 %v14889_v34, %v14889_v34 }
 0x12b   : > { %1304 = vadd.xlane.f32.xlu1 %v1277_v55  ;;  %1306 = vadd.xlane.f32.xlu0 %v1278_v32  ;;  %v14898_v63 = vmul.f32 %v14651_v59, %v1248_v21 }
 0x12c   : > { %v14901_v3 = vmul.f32 %v14651_v59, %v1249_v62 }
 0x12d   : > { %v1280_v47 = vmul.f32 %v14898_v63, %v14898_v63 }
 0x12e   : > { %v1281_v33 = vmul.f32 %v14901_v3, %v14901_v3 }
 0x12f   : > { %1308 = vadd.xlane.f32.xlu1 %v1279_v39  ;;  %1310 = vadd.xlane.f32.xlu0 %v1280_v47 }
 0x133   : > { %1312 = vadd.xlane.f32.xlu1 %v1281_v33 }
 0x1a0   : > { %v1283_v2 = vpop.xlane.xlu0 %1282 }
 0x1a1   : > { %v1314_v6 = vmul.f32 0.0625, %v1283_v2 }
 0x1a3   : > { %v1330_v54 = vadd.f32 1e-05, %v1314_v6 }
 0x1a4   : > { %v1285_v7 = vpop.xlane.xlu1 %1284  ;;  %v1287_v10 = vpop.xlane.xlu0 %1286 }
 0x1a5   : > { %v1315_v11 = vmul.f32 0.0625, %v1285_v7  ;;  %v1316_v12 = vmul.f32 0.0625, %v1287_v10  ;;  %13997 = vrsqrt.f32 %v1330_v54 }
 0x1a7   : > { %v1331_v14 = vadd.f32 1e-05, %v1315_v11  ;;  %v1332_v1 = vadd.f32 1e-05, %v1316_v12 }
 0x1a8   : > { %v1289_v9 = vpop.xlane.xlu1 %1288  ;;  %v1291_v16 = vpop.xlane.xlu0 %1290 }
 0x1a9   : > { %13999 = vrsqrt.f32 %v1331_v14  ;;  %v1317_v17 = vmul.f32 0.0625, %v1289_v9  ;;  %v1318_v19 = vmul.f32 0.0625, %v1291_v16 }
 0x1aa   : > { %14001 = vrsqrt.f32 %v1332_v1 }
 0x1ab   : > { %v1333_v20 = vadd.f32 1e-05, %v1317_v17  ;;  %v1334_v22 = vadd.f32 1e-05, %v1318_v19 }
 0x1ac   : > { %v1293_v24 = vpop.xlane.xlu1 %1292  ;;  %v1295_v25 = vpop.xlane.xlu0 %1294 }
 0x1ad   : > { %14003 = vrsqrt.f32 %v1333_v20  ;;  %v1319_v43 = vmul.f32 0.0625, %v1293_v24  ;;  %v1320_v27 = vmul.f32 0.0625, %v1295_v25 }
 0x1ae   : > { %14005 = vrsqrt.f32 %v1334_v22 }
 0x1af   : > { %v1335_v28 = vadd.f32 1e-05, %v1319_v43  ;;  %v1336_v29 = vadd.f32 1e-05, %v1320_v27  ;;  %v13998_v61 = vpop.eup %13997 }
 0x1b0   : > { %v1297_v30 = vpop.xlane.xlu1 %1296  ;;  %v1299_v31 = vpop.xlane.xlu0 %1298  ;;  %v14908_v40 = vmul.f32 %v13998_v61, %v14814_v51 }
 0x1b1   : > { %14007 = vrsqrt.f32 %v1335_v28  ;;  %v1321_v50 = vmul.f32 0.0625, %v1297_v30  ;;  %v1322_v4 = vmul.f32 0.0625, %v1299_v31 }
 0x1b2   : > { %14009 = vrsqrt.f32 %v1336_v29 }
 0x1b3   : > { %v14000_v36 = vpop.eup %13999  ;;  %v1337_v37 = vadd.f32 1e-05, %v1321_v50  ;;  %v1338_v38 = vadd.f32 1e-05, %v1322_v4 }
 0x1b4   : > { %v14911_v41 = vmul.f32 %v14000_v36, %v14826_v0  ;;  %v1301_v44 = vpop.xlane.xlu1 %1300  ;;  %v1303_v8 = vpop.xlane.xlu0 %1302 }
 0x1b5   : > { %v14002_v18 = vpop.eup %14001  ;;  %14011 = vrsqrt.f32 %v1337_v37  ;;  %v1323_v46 = vmul.f32 0.0625, %v1301_v44  ;;  %v1324_v48 = vmul.f32 0.0625, %v1303_v8 }
 0x1b6   : > { %v14915_v49 = vpack.i.bf16 %v14911_v41, %v14908_v40  ;;  %14013 = vrsqrt.f32 %v1338_v38  ;;  %v1458_v51 = vpack.c.bf16 %v14911_v41, %v14908_v40  ;;  %v14920_v57 = vmul.f32 %v14002_v18, %v14817_v53 }
 0x1b7   : > { %v14004_v52 = vpop.eup %14003  ;;  %v1339_v55 = vadd.f32 1e-05, %v1323_v46  ;;  %v1340_v21 = vadd.f32 1e-05, %v1324_v48 }
 0x1b8   : > { %v14923_v0 = vmul.f32 %v14004_v52, %v14829_v5  ;;  %v1305_v32 = vpop.xlane.xlu1 %1304  ;;  %13671 = vrot.lane.b32.xlu1 %v14915_v49, %s18355_s0  ;;  %13666 = vrot.lane.b32.xlu0 %v14915_v49, %s14315_s1  ;;  %v1307_v62 = vpop.xlane.xlu0 %1306 }
 0x1b9   : > { %v14006_v39 = vpop.eup %14005  ;;  %14015 = vrsqrt.f32 %v1339_v55  ;;  %v1325_v47 = vmul.f32 0.0625, %v1305_v32  ;;  %v1326_v33 = vmul.f32 0.0625, %v1307_v62  ;;  %v13835_v55 = vld [vmem:[%s18406_s27 + $0xc] ss:$20 sps:$4 sm:$0xff]   ;;  %v1572_v62 = vld [vmem:[%s18407_s3 + $0x10] sm:$0xff] }
 0x1ba   : > { %v14931_v53 = vpack.i.bf16 %v14923_v0, %v14920_v57  ;;  %v1459_v6 = vpack.c.bf16 %v14923_v0, %v14920_v57  ;;  %v14936_v54 = vmul.f32 %v14006_v39, %v14838_v13  ;;  %14017 = vrsqrt.f32 %v1340_v21  ;;  %1819 = vmatprep.mubr.bf16.mxu1 %v13835_v55  ;;  %v1571_v21 = vld [vmem:[%s18407_s3 + $0x8] sm:$0xff]  ;;  %v1570_v32 = vld [vmem:[%s18407_s3] sm:$0xff]  ;;  %v1573_v39 = vld [vmem:[%s18407_s3 + $0x18] sm:$0xff] }
 0x1bb   : > { %v14008_v5 = vpop.eup %14007  ;;  %v1341_v2 = vadd.f32 1e-05, %v1325_v47  ;;  %v1342_v10 = vadd.f32 1e-05, %v1326_v33  ;;  %v1574_v47 = vld [vmem:[%s18407_s3 + $0x20] sm:$0xff]  ;;  %v1575_v33 = vld [vmem:[%s18407_s3 + $0x28] sm:$0xff] }
 0x1bc   : > { %v14939_v7 = vmul.f32 %v14008_v5, %v14841_v15  ;;  %v1309_v11 = vpop.xlane.xlu1 %1308  ;;  %13676 = vrot.lane.b32.xlu1 %v14931_v53, %s14315_s1  ;;  %v1311_v12 = vpop.xlane.xlu0 %1310  ;;  %v11232_v5 = vld [vmem:[%s18407_s3 + $0x48] sm:$0xff]  ;;  %v2059_v55 = vld [vmem:[%s18408_s5] sm:$0xff] }
 0x1bd   : > { %v14010_v14 = vpop.eup %14009  ;;  %14019 = vrsqrt.f32 %v1341_v2  ;;  %v1327_v1 = vmul.f32 0.0625, %v1309_v11  ;;  %v1328_v9 = vmul.f32 0.0625, %v1311_v12  ;;  %v11239_v2 = vld [vmem:[%s18407_s3 + $0x80] sm:$0xff]  ;;  %v1576_v11 = vld [vmem:[%s18407_s3 + $0x30] sm:$0xff]  ;;  %v1577_v12 = vld [vmem:[%s18407_s3 + $0x38] sm:$0xff] }
 0x1be   : > { %v14945_v16 = vpack.i.bf16 %v14939_v7, %v14936_v54  ;;  %v1460_v15 = vpack.c.bf16 %v14939_v7, %v14936_v54  ;;  %v14950_v19 = vmul.f32 %v14010_v14, %v14850_v23  ;;  %14021 = vrsqrt.f32 %v1342_v10  ;;  %v11240_v10 = vld [vmem:[%s18407_s3 + $0x88] sm:$0xff]  ;;  %v11233_v14 = vld [vmem:[%s18407_s3 + $0x50] sm:$0xff] }
 0x1bf   : > { %v14012_v13 = vpop.eup %14011  ;;  %v1343_v17 = vadd.f32 1e-05, %v1327_v1  ;;  %v1344_v22 = vadd.f32 1e-05, %v1328_v9  ;;  %v11234_v1 = vld [vmem:[%s18407_s3 + $0x58] sm:$0xff]  ;;  %v11241_v9 = vld [vmem:[%s18407_s3 + $0x90] sm:$0xff] }
 0x1c0   : > { %v14953_v20 = vmul.f32 %v14012_v13, %v14853_v26  ;;  %v1313_v24 = vpop.xlane.xlu1 %1312  ;;  %13681 = vrot.lane.b32.xlu1 %v14931_v53, %s18355_s0  ;;  %13686 = vrot.lane.b32.xlu0 %v14945_v16, %s14315_s1  ;;  %v14014_v25 = vpop.eup %14013  ;;  %v11235_v13 = vld [vmem:[%s18407_s3 + $0x60] sm:$0xff] }
 0x1c1   : > { %14023 = vrsqrt.f32 %v1343_v17  ;;  %v1329_v43 = vmul.f32 0.0625, %v1313_v24  ;;  %v14964_v29 = vmul.f32 %v14014_v25, %v14862_v60  ;;  %v11236_v17 = vld [vmem:[%s18407_s3 + $0x68] sm:$0xff]  ;;  %v11237_v25 = vld [vmem:[%s18407_s3 + $0x70] sm:$0xff] }
 0x1c2   : > { %v13695_v27 = vpack.i.bf16 %v14953_v20, %v14950_v19  ;;  %v1461_v26 = vpack.c.bf16 %v14953_v20, %v14950_v19  ;;  %14025 = vrsqrt.f32 %v1344_v22  ;;  %v11243_v22 = vld [vmem:[%s18407_s3 + $0xa0] sm:$0xff]  ;;  %v11244_v24 = vld [vmem:[%s18407_s3 + $0xa8] sm:$0xff] }
 0x1c3   : > { %v14016_v23 = vpop.eup %14015  ;;  %v1345_v28 = vadd.f32 1e-05, %v1329_v43  ;;  %v11238_v43 = vld [vmem:[%s18407_s3 + $0x78] sm:$0xff]  ;;  %v13827_v54 = vld [vmem:[%s18406_s27] ss:$20 sps:$4 sm:$0xff]  }
 0x1c4   : > { %v14967_v30 = vmul.f32 %v14016_v23, %v14865_v35  ;;  %13691 = vrot.lane.b32.xlu1 %v14945_v16, %s18355_s0  ;;  %13696 = vrot.lane.b32.xlu0 %v13695_v27, %s14315_s1  ;;  %v14018_v31 = vpop.eup %14017 }
 0x1c5   : > { %14027 = vrsqrt.f32 %v1345_v28  ;;  %v14982_v35 = vmul.f32 %v14018_v31, %v14874_v42 }
 0x1c6   : > { %v13705_v61 = vpack.i.bf16 %v14967_v30, %v14964_v29  ;;  %v1462_v4 = vpack.c.bf16 %v14967_v30, %v14964_v29 }
 0x1c7   : > { %v14020_v50 = vpop.eup %14019 }
 0x1c8   : > { %v14977_v60 = vmul.f32 %v14020_v50, %v14877_v45  ;;  %13701 = vrot.lane.b32.xlu1 %v13695_v27, %s18355_s0  ;;  %13706 = vrot.lane.b32.xlu0 %v13705_v61, %s14315_s1  ;;  %v14022_v36 = vpop.eup %14021 }
 0x1c9   : > { %v14993_v45 = vmul.f32 %v14022_v36, %v14886_v56 }
 0x1ca   : > { %v1463_v38 = vpack.c.bf16 %v14977_v60, %v14982_v35  ;;  %v13720_v42 = vpack.i.bf16 %v14977_v60, %v14982_v35 }
 0x1cb   : > { %v14024_v37 = vpop.eup %14023 }
 0x1cc   : > { %v14987_v44 = vmul.f32 %v14024_v37, %v14889_v34  ;;  %13711 = vrot.lane.b32.xlu1 %v14915_v49, %s14316_s8  ;;  %13716 = vrot.lane.b32.xlu0 %v13705_v61, %s18355_s0  ;;  %v14026_v8 = vpop.eup %14025 }
 0x1cd   : > { %v15006_v48 = vmul.f32 %v14026_v8, %v14898_v63  ;;  %v13829_v63 = vld [vmem:[%s18406_s27 + $0x4] ss:$20 sps:$4 sm:$0xff]   ;;  %v11245_v8 = vld [vmem:[%s18407_s3 + $0xb0] sm:$0xff] }
 0x1ce   : > { %v1464_v46 = vpack.c.bf16 %v14987_v44, %v14993_v45  ;;  %v13735_v56 = vpack.i.bf16 %v14987_v44, %v14993_v45  ;;  %1754 = vmatprep.mubr.bf16.mxu0 %v13829_v63  ;;  %v13833_v44 = vld [vmem:[%s18406_s27 + $0x8] ss:$20 sps:$4 sm:$0xff]  }
 0x1cf   : > { %v14028_v18 = vpop.eup %14027  ;;  %v13839_v45 = vld [vmem:[%s18406_s27 + $0x34] ss:$20 sps:$4 sm:$0xff]  }
 0x1d0   : > { %v15000_v34 = vmul.f32 %v14028_v18, %v14901_v3  ;;  %13726 = vrot.lane.b32.xlu0 %v14931_v53, %s14316_s8  ;;  %13721 = vrot.lane.b32.xlu1 %v13720_v42, %s14315_s1  ;;  %v11246_v18 = vld [vmem:[%s18407_s3 + $0xb8] sm:$0xff] }
 0x1d2   : > { %v1465_v52 = vpack.c.bf16 %v15000_v34, %v15006_v48  ;;  %v13750_v3 = vpack.i.bf16 %v15000_v34, %v15006_v48  ;;  %v13842_v34 = vld [vmem:[%s18406_s27 + $0x7c] ss:$20 sps:$4 sm:$0xff]  }
 0x1d4   : > { %13731 = vrot.lane.b32.xlu1 %v13720_v42, %s18355_s0  ;;  %13736 = vrot.lane.b32.xlu0 %v13735_v56, %s14315_s1 }
 0x1d8   : > { %13741 = vrot.lane.b32.xlu1 %v14945_v16, %s14316_s8  ;;  %13746 = vrot.lane.b32.xlu0 %v13735_v56, %s18355_s0 }
 0x1dc   : > { %13756 = vrot.lane.b32.xlu0 %v13695_v27, %s14316_s8  ;;  %13751 = vrot.lane.b32.xlu1 %v13750_v3, %s14315_s1  ;;  %s18410_s1 = smov 126  }
 0x1e0   : > { %13766 = vrot.lane.b32.xlu0 %v13705_v61, %s14316_s8  ;;  %13761 = vrot.lane.b32.xlu1 %v13750_v3, %s18355_s0  ;;  %s18409_s0 = sld [smem:[#allocation22_spill]] }
 0x1e4   : > { %13776 = vrot.lane.b32.xlu0 %v13720_v42, %s14316_s8  ;;  %13771 = vrot.lane.b32.xlu1 %v14915_v49, %s18358_s25  ;;  %v14318_v49 = vmov 0  }
 0x1e5   : > { %13826 = vset.pattern.permute.xlu1 %v14318_v49  ;;  %13825 = vset.pattern.permute.xlu0 %v14318_v49 }
 0x1e8   : > { %13786 = vrot.lane.b32.xlu0 %v13735_v56, %s14316_s8  ;;  %13781 = vrot.lane.b32.xlu1 %v14931_v53, %s18358_s25  ;;  %v11231_v53 = vld [vmem:[%s18407_s3 + $0x40] sm:$0xff] }
 0x1ec   : > { %13796 = vrot.lane.b32.xlu0 %v13750_v3, %s14316_s8  ;;  %13791 = vrot.lane.b32.xlu1 %v14945_v16, %s18358_s25  ;;  %v11242_v16 = vld [vmem:[%s18407_s3 + $0x98] sm:$0xff]  ;;  %s18411_s8 = smov 2  }
 0x1f0   : > { %13806 = vrot.lane.b32.xlu0 %v13705_v61, %s18358_s25  ;;  %13801 = vrot.lane.b32.xlu1 %v13695_v27, %s18358_s25 }
 0x1f4   : > { %13816 = vrot.lane.b32.xlu0 %v13735_v56, %s18358_s25  ;;  %13811 = vrot.lane.b32.xlu1 %v13720_v42, %s18358_s25 }
 0x1f8   : > { %13821 = vrot.lane.b32.xlu1 %v13750_v3, %s18358_s25  ;;  %1580 = vperm.xlu0 %13825, %v1570_v32   ;;  %v11255_v32 = vld [vmem:[%s18408_s5 + $0x40] sm:$0xff]  ;;  %s18369_s25 = smov 3  }
 0x1fc   : > { %1585 = vperm.xlu1 %13826, %v1571_v21   ;;  %1595 = vperm.xlu0 %13825, %v1573_v39  }
 0x200   : > { %1590 = vperm.xlu1 %13826, %v1572_v62   ;;  %1605 = vperm.xlu0 %13825, %v1575_v33  }
 0x204   : > { %1600 = vperm.xlu1 %13826, %v1574_v47   ;;  %1941 = vperm.xlu0 %13825, %v11232_v5  }
 0x208   : > { %1936 = vperm.xlu1 %13826, %v11231_v53   ;;  %1998 = vperm.xlu0 %13825, %v11240_v10  }
 0x20c   : > { %1993 = vperm.xlu1 %13826, %v11239_v2   ;;  %1615 = vperm.xlu0 %13825, %v1577_v12   ;;  %v11263_v2 = vld [vmem:[%s18408_s5 + $0x80] sm:$0xff] }
 0x210   : > { %1610 = vperm.xlu1 %13826, %v1576_v11   ;;  %1951 = vperm.xlu0 %13825, %v11234_v1  }
 0x214   : > { %1946 = vperm.xlu1 %13826, %v11233_v14   ;;  %2008 = vperm.xlu0 %13825, %v11242_v16  }
 0x218   : > { %2003 = vperm.xlu1 %13826, %v11241_v9   ;;  %1961 = vperm.xlu0 %13825, %v11236_v17  }
 0x21c   : > { %1956 = vperm.xlu1 %13826, %v11235_v13   ;;  %2018 = vperm.xlu0 %13825, %v11244_v24  }
 0x220   : > { %2013 = vperm.xlu1 %13826, %v11243_v22   ;;  %1971 = vperm.xlu0 %13825, %v11238_v43  }
 0x224   : > { %1966 = vperm.xlu1 %13826, %v11237_v25   ;;  %2028 = vperm.xlu0 %13825, %v11246_v18  }
 0x228   : > { %2023 = vperm.xlu1 %13826, %v11245_v8   ;;  %2224 = vperm.xlu0 %13825, %v11255_v32  }
 0x22a   : > { %v13672_v27 = vpop.permute.xlu1 %13671  ;;  %v13667_v23 = vpop.permute.xlu0 %13666 }
 0x22b   : > { %v13669_v28 = vunpack.i.h.bf16 %v13667_v23  ;;  %v13668_v31 = vunpack.i.l.bf16 %v13667_v23  ;;  %v13674_v61 = vunpack.i.h.bf16 %v13672_v27  ;;  %v13673_v50 = vunpack.i.l.bf16 %v13672_v27 }
 0x22c   : > { %2069 = vperm.xlu1 %13826, %v2059_v55  }
 0x22d   : > { %v1450_v36 = vpack.c.bf16 %v13669_v28, %v13668_v31  ;;  %v1410_v37 = vpack.c.bf16 %v13674_v61, %v13673_v50 }
 0x22e   : > { %v13677_v42 = vpop.permute.xlu1 %13676 }
 0x22f   : > { %v13679_v56 = vunpack.i.h.bf16 %v13677_v42  ;;  %v13678_v63 = vunpack.i.l.bf16 %v13677_v42  ;;  %12153 = vmatprep.subr.bf16.mxu0 %v1450_v36 }
 0x230   : > { %12154 = vmatpush3.bf16.msra.mxu0 %v1410_v37  ;;  %2281 = vperm.xlu1 %13826, %v11263_v2  }
 0x231   : > { %v1451_v3 = vpack.c.bf16 %v13679_v56, %v13678_v63 }
 0x232   : > { %v13682_v49 = vpop.permute.xlu1 %13681  ;;  %v13687_v21 = vpop.permute.xlu0 %13686 }
 0x233   : > { %v13684_v62 = vunpack.i.h.bf16 %v13682_v49  ;;  %v13683_v39 = vunpack.i.l.bf16 %v13682_v49  ;;  %v13689_v47 = vunpack.i.h.bf16 %v13687_v21  ;;  %v13688_v33 = vunpack.i.l.bf16 %v13687_v21  ;;  %12155 = vmatprep.subr.bf16.mxu0 %v1451_v3 }
 0x235   : > { %v1411_v53 = vpack.c.bf16 %v13684_v62, %v13683_v39  ;;  %v1452_v5 = vpack.c.bf16 %v13689_v47, %v13688_v33 }
 0x236   : > { %v13692_v10 = vpop.permute.xlu1 %13691  ;;  %v13697_v11 = vpop.permute.xlu0 %13696 }
 0x237   : > { %v13694_v12 = vunpack.i.h.bf16 %v13692_v10  ;;  %v13693_v14 = vunpack.i.l.bf16 %v13692_v10  ;;  %v13699_v1 = vunpack.i.h.bf16 %v13697_v11  ;;  %v13698_v9 = vunpack.i.l.bf16 %v13697_v11  ;;  %12156 = vmatpush3.bf16.msra.mxu0 %v1411_v53 }
 0x238   : > { %12157 = vmatprep.subr.bf16.mxu0 %v1452_v5 }
 0x239   : > { %v1412_v16 = vpack.c.bf16 %v13694_v12, %v13693_v14  ;;  %v1453_v13 = vpack.c.bf16 %v13699_v1, %v13698_v9 }
 0x23a   : > { %v13702_v17 = vpop.permute.xlu1 %13701  ;;  %v13707_v22 = vpop.permute.xlu0 %13706 }
 0x23b   : > { %v13704_v24 = vunpack.i.h.bf16 %v13702_v17  ;;  %v13703_v25 = vunpack.i.l.bf16 %v13702_v17  ;;  %v13709_v43 = vunpack.i.h.bf16 %v13707_v22  ;;  %v13708_v27 = vunpack.i.l.bf16 %v13707_v22  ;;  %12158 = vmatpush3.bf16.msra.mxu0 %v1412_v16 }
 0x23c   : > { %12159 = vmatprep.subr.bf16.mxu0 %v1453_v13 }
 0x23d   : > { %v1413_v23 = vpack.c.bf16 %v13704_v24, %v13703_v25  ;;  %v1454_v28 = vpack.c.bf16 %v13709_v43, %v13708_v27 }
 0x23e   : > { %v13712_v31 = vpop.permute.xlu1 %13711  ;;  %v13717_v61 = vpop.permute.xlu0 %13716 }
 0x23f   : > { %v13719_v50 = vunpack.i.h.bf16 %v13717_v61  ;;  %v13718_v36 = vunpack.i.l.bf16 %v13717_v61  ;;  %12160 = vmatpush3.bf16.msra.mxu0 %v1413_v23  ;;  %v13714_v37 = vunpack.i.h.bf16 %v13712_v31  ;;  %v13713_v8 = vunpack.i.l.bf16 %v13712_v31 }
 0x240   : > { %12161 = vmatprep.subr.bf16.mxu0 %v1454_v28 }
 0x241   : > { %v1414_v42 = vpack.c.bf16 %v13719_v50, %v13718_v36  ;;  %v1498_v18 = vpack.c.bf16 %v13714_v37, %v13713_v8 }
 0x242   : > { %v13722_v56 = vpop.permute.xlu1 %13721  ;;  %v13727_v63 = vpop.permute.xlu0 %13726 }
 0x243   : > { %v13724_v3 = vunpack.i.h.bf16 %v13722_v56  ;;  %v13723_v55 = vunpack.i.l.bf16 %v13722_v56  ;;  %v13729_v49 = vunpack.i.h.bf16 %v13727_v63  ;;  %v13728_v21 = vunpack.i.l.bf16 %v13727_v63  ;;  %12162 = vmatpush3.bf16.msra.mxu0 %v1414_v42  ;;  %12193 = vmatprep.subr.bf16.mxu1 %v1498_v18 }
 0x244   : > { %12194 = vmatpush3.bf16.msra.mxu1 %v1458_v51 }
 0x245   : > { %v1455_v32 = vpack.c.bf16 %v13724_v3, %v13723_v55  ;;  %v1499_v62 = vpack.c.bf16 %v13729_v49, %v13728_v21 }
 0x246   : > { %v13732_v39 = vpop.permute.xlu1 %13731  ;;  %v13737_v47 = vpop.permute.xlu0 %13736 }
 0x247   : > { %v13734_v33 = vunpack.i.h.bf16 %v13732_v39  ;;  %v13733_v53 = vunpack.i.l.bf16 %v13732_v39  ;;  %v13739_v5 = vunpack.i.h.bf16 %v13737_v47  ;;  %v13738_v2 = vunpack.i.l.bf16 %v13737_v47  ;;  %12163 = vmatprep.subr.bf16.mxu0 %v1455_v32  ;;  %12195 = vmatprep.subr.bf16.mxu1 %v1499_v62  ;;  %v13832_v62 = vld [vmem:[%s18406_s27 + $0x28] ss:$20 sps:$4 sm:$0xff]  }
 0x248   : > { %12196 = vmatpush3.bf16.msra.mxu1 %v1459_v6 }
 0x249   : > { %v1415_v10 = vpack.c.bf16 %v13734_v33, %v13733_v53  ;;  %v1456_v11 = vpack.c.bf16 %v13739_v5, %v13738_v2 }
 0x24a   : > { %v13742_v12 = vpop.permute.xlu1 %13741  ;;  %v13747_v14 = vpop.permute.xlu0 %13746 }
 0x24b   : > { %v13744_v40 = vunpack.i.h.bf16 %v13742_v12  ;;  %v13743_v41 = vunpack.i.l.bf16 %v13742_v12  ;;  %v13749_v51 = vunpack.i.h.bf16 %v13747_v14  ;;  %v13748_v1 = vunpack.i.l.bf16 %v13747_v14  ;;  %12164 = vmatpush3.bf16.msra.mxu0 %v1415_v10 }
 0x24c   : > { %12165 = vmatprep.subr.bf16.mxu0 %v1456_v11 }
 0x24d   : > { %v1416_v9 = vpack.c.bf16 %v13749_v51, %v13748_v1  ;;  %v1500_v16 = vpack.c.bf16 %v13744_v40, %v13743_v41  ;;  %v13838_v41 = vld [vmem:[%s18406_s27 + $0x50] ss:$20 sps:$4 sm:$0xff]  }
 0x24e   : > { %v13752_v13 = vpop.permute.xlu1 %13751  ;;  %v13757_v17 = vpop.permute.xlu0 %13756 }
 0x24f   : > { %v13754_v22 = vunpack.i.h.bf16 %v13752_v13  ;;  %v13753_v24 = vunpack.i.l.bf16 %v13752_v13  ;;  %v13759_v25 = vunpack.i.h.bf16 %v13757_v17  ;;  %v13758_v43 = vunpack.i.l.bf16 %v13757_v17  ;;  %12166 = vmatpush3.bf16.msra.mxu0 %v1416_v9  ;;  %12197 = vmatprep.subr.bf16.mxu1 %v1500_v16  ;;  %v13841_v17 = vld [vmem:[%s18406_s27 + $0x30] ss:$20 sps:$4 sm:$0xff]  }
 0x250   : > { %12198 = vmatpush3.bf16.msra.mxu1 %v1460_v15 }
 0x251   : > { %v1457_v57 = vpack.c.bf16 %v13754_v22, %v13753_v24  ;;  %v1501_v0 = vpack.c.bf16 %v13759_v25, %v13758_v43  ;;  %v13845_v24 = vld [vmem:[%s18406_s27 + $0x5c] ss:$20 sps:$4 sm:$0xff]   ;;  %v13844_v25 = vld [vmem:[%s18406_s27 + $0x78] ss:$20 sps:$4 sm:$0xff]  }
 0x252   : > { %v13762_v6 = vpop.permute.xlu1 %13761  ;;  %v13767_v27 = vpop.permute.xlu0 %13766 }
 0x253   : > { %v13764_v23 = vunpack.i.h.bf16 %v13762_v6  ;;  %v13763_v28 = vunpack.i.l.bf16 %v13762_v6  ;;  %v13769_v31 = vunpack.i.h.bf16 %v13767_v27  ;;  %v13768_v61 = vunpack.i.l.bf16 %v13767_v27  ;;  %12167 = vmatprep.subr.bf16.mxu0 %v1457_v57  ;;  %12199 = vmatprep.subr.bf16.mxu1 %v1501_v0  ;;  %v13848_v6 = vld [vmem:[%s18406_s27 + $0x10] ss:$20 sps:$4 sm:$0xff]  }
 0x254   : > { %12200 = vmatpush3.bf16.msra.mxu1 %v1461_v26  ;;  %v13830_v26 = vld [vmem:[%s18406_s27 + $0x2c] ss:$20 sps:$4 sm:$0xff]  }
 0x255   : > { %v1417_v50 = vpack.c.bf16 %v13764_v23, %v13763_v28  ;;  %v1502_v36 = vpack.c.bf16 %v13769_v31, %v13768_v61  ;;  %v13847_v23 = vld [vmem:[%s18406_s27 + $0x58] ss:$20 sps:$4 sm:$0xff]   ;;  %v13853_v61 = vld [vmem:[%s18406_s27 + $0x60] ss:$20 sps:$4 sm:$0xff]  }
 0x256   : > { %v13772_v37 = vpop.permute.xlu1 %13771  ;;  %v13777_v8 = vpop.permute.xlu0 %13776  ;;  %v13850_v28 = vld [vmem:[%s18406_s27 + $0x84] ss:$20 sps:$4 sm:$0xff]  }
 0x257   : > { %v13774_v7 = vunpack.i.h.bf16 %v13772_v37  ;;  %v13773_v15 = vunpack.i.l.bf16 %v13772_v37  ;;  %v13779_v42 = vunpack.i.h.bf16 %v13777_v8  ;;  %v13778_v18 = vunpack.i.l.bf16 %v13777_v8  ;;  %12168 = vmatpush3.bf16.msra.mxu0 %v1417_v50  ;;  %12201 = vmatprep.subr.bf16.mxu1 %v1502_v36  ;;  %v13849_v31 = vld [vmem:[%s18406_s27 + $0x38] ss:$20 sps:$4 sm:$0xff]   ;;  %v13852_v50 = vld [vmem:[%s18406_s27 + $0x80] ss:$20 sps:$4 sm:$0xff]   ;;  %v13854_v36 = vld [vmem:[%s18406_s27 + $0x88] ss:$20 sps:$4 sm:$0xff]  }
 0x258   : > { %12202 = vmatpush3.bf16.msra.mxu1 %v1462_v4  ;;  %v13855_v37 = vld [vmem:[%s18409_s0] sm:$0xff]  }
 0x259   : > { %v1503_v19 = vpack.c.bf16 %v13779_v42, %v13778_v18  ;;  %v1538_v20 = vpack.c.bf16 %v13774_v7, %v13773_v15 }
 0x25a   : > { %v13782_v56 = vpop.permute.xlu1 %13781  ;;  %v13787_v63 = vpop.permute.xlu0 %13786  ;;  %1755 = vmatmul.mubr.bf16.vlgmr.msra.gmra.mrb[0].mxu0 %v13827_v54 }
 0x25b   : > { %v13784_v3 = vunpack.i.h.bf16 %v13782_v56  ;;  %v13783_v55 = vunpack.i.l.bf16 %v13782_v56  ;;  %v13789_v49 = vunpack.i.h.bf16 %v13787_v63  ;;  %v13788_v21 = vunpack.i.l.bf16 %v13787_v63  ;;  %12203 = vmatprep.subr.bf16.mxu1 %v1503_v19  ;;  %12580 = vmatprep.subr.bf16.mxu0 %v1538_v20 }
 0x25c   : > { %12204 = vmatpush3.bf16.msra.mxu1 %v1463_v38  ;;  %12581 = vmatpush3.bf16.msra.mxu0 %v1538_v20  ;;  %v13836_v38 = vld [vmem:[%s18406_s27 + $0x54] ss:$20 sps:$4 sm:$0xff]  }
 0x25d   : > { %v1504_v29 = vpack.c.bf16 %v13789_v49, %v13788_v21  ;;  %v1539_v30 = vpack.c.bf16 %v13784_v3, %v13783_v55  ;;  %1762 = vmatprep.mubr.bf16.mxu0 %v13830_v26 }
 0x25e   : > { %v13792_v4 = vpop.permute.xlu1 %13791  ;;  %v13797_v32 = vpop.permute.xlu0 %13796 }
 0x25f   : > { %v13794_v39 = vunpack.i.h.bf16 %v13792_v4  ;;  %v13793_v47 = vunpack.i.l.bf16 %v13792_v4  ;;  %v13799_v33 = vunpack.i.h.bf16 %v13797_v32  ;;  %v13798_v53 = vunpack.i.l.bf16 %v13797_v32  ;;  %12205 = vmatprep.subr.bf16.mxu1 %v1504_v29  ;;  %12582 = vmatprep.subr.bf16.mxu0 %v1539_v30 }
 0x260   : > { %12206 = vmatpush3.bf16.msra.mxu1 %v1464_v46  ;;  %12583 = vmatpush3.bf16.msra.mxu0 %v1539_v30 }
 0x261   : > { %v1505_v60 = vpack.c.bf16 %v13799_v33, %v13798_v53  ;;  %v1540_v35 = vpack.c.bf16 %v13794_v39, %v13793_v47 }
 0x262   : > { %v13802_v5 = vpop.permute.xlu1 %13801  ;;  %v13807_v2 = vpop.permute.xlu0 %13806  ;;  %1763 = vmatmul.mubr.bf16.gmra.mrb[4].mxu0 %v13832_v62 }
 0x263   : > { %v13804_v10 = vunpack.i.h.bf16 %v13802_v5  ;;  %v13803_v11 = vunpack.i.l.bf16 %v13802_v5  ;;  %v13809_v12 = vunpack.i.h.bf16 %v13807_v2  ;;  %v13808_v14 = vunpack.i.l.bf16 %v13807_v2  ;;  %12207 = vmatprep.subr.bf16.mxu1 %v1505_v60  ;;  %12584 = vmatprep.subr.bf16.mxu0 %v1540_v35 }
 0x264   : > { %12208 = vmatpush3.bf16.msra.mxu1 %v1465_v52  ;;  %12585 = vmatpush3.bf16.msra.mxu0 %v1540_v35 }
 0x265   : > { %v1541_v46 = vpack.c.bf16 %v13804_v10, %v13803_v11  ;;  %1770 = vmatprep.mubr.bf16.mxu0 %v13836_v38  ;;  %v1542_v9 = vpack.c.bf16 %v13809_v12, %v13808_v14 }
 0x266   : > { %v13812_v40 = vpop.permute.xlu1 %13811  ;;  %v13817_v48 = vpop.permute.xlu0 %13816 }
 0x267   : > { %v13814_v51 = vunpack.i.h.bf16 %v13812_v40  ;;  %v13813_v1 = vunpack.i.l.bf16 %v13812_v40  ;;  %1820 = vmatmul.mubr.bf16.vlgmr.msra.gmra.mrb[0].mxu1 %v13833_v44  ;;  %12586 = vmatprep.subr.bf16.mxu0 %v1541_v46  ;;  %v13819_v52 = vunpack.i.h.bf16 %v13817_v48  ;;  %v13818_v16 = vunpack.i.l.bf16 %v13817_v48 }
 0x268   : > { %12587 = vmatpush3.bf16.msra.mxu0 %v1541_v46  ;;  %1827 = vmatprep.mubr.bf16.mxu1 %v13839_v45 }
 0x269   : > { %12588 = vmatprep.subr.bf16.mxu0 %v1542_v9  ;;  %v1543_v13 = vpack.c.bf16 %v13814_v51, %v13813_v1  ;;  %v1544_v0 = vpack.c.bf16 %v13819_v52, %v13818_v16 }
 0x26a   : > { %1771 = vmatmul.mubr.bf16.gmra.mrb[8].mxu0 %v13838_v41  ;;  %v13822_v22 = vpop.permute.xlu1 %13821 }
 0x26b   : > { %1778 = vmatprep.mubr.bf16.mxu0 %v13842_v34  ;;  %v13824_v43 = vunpack.i.h.bf16 %v13822_v22  ;;  %v13823_v57 = vunpack.i.l.bf16 %v13822_v22 }
 0x26c   : > { %12589 = vmatpush3.bf16.msra.mxu0 %v1542_v9 }
 0x26d   : > { %12590 = vmatprep.subr.bf16.mxu0 %v1543_v13  ;;  %v1545_v27 = vpack.c.bf16 %v13824_v43, %v13823_v57 }
 0x26f   : > { %1828 = vmatmul.mubr.bf16.gmra.mrb[4].mxu1 %v13841_v17 }
 0x270   : > { %12591 = vmatpush3.bf16.msra.mxu0 %v1543_v13  ;;  %1835 = vmatprep.mubr.bf16.mxu1 %v13845_v24 }
 0x271   : > { %12592 = vmatprep.subr.bf16.mxu0 %v1544_v0 }
 0x272   : > { %1779 = vmatmul.mubr.bf16.gmra.mrb[12].mxu0 %v13844_v25 }
 0x273   : > { %12596 = vmatprep.mubr.bf16.mxu0 %v13848_v6 }
 0x274   : > { %12593 = vmatpush3.bf16.msra.mxu0 %v1544_v0 }
 0x275   : > { %12594 = vmatprep.subr.bf16.mxu0 %v1545_v27 }
 0x277   : > { %1836 = vmatmul.mubr.bf16.gmra.mrb[8].mxu1 %v13847_v23  ;;  %v1581_v54 = vpop.permute.xlu0 %1580 }
 0x278   : > { %12595 = vmatpush3.bf16.msra.mxu0 %v1545_v27  ;;  %1843 = vmatprep.mubr.bf16.mxu1 %v13850_v28 }
 0x27b   : > { %12597 = vmatmul.mubr.bf16.vlgmr.msra.gmra.mrb[16].mxu0 %v13849_v31  ;;  %v1586_v8 = vpop.permute.xlu1 %1585  ;;  %v1596_v15 = vpop.permute.xlu0 %1595 }
 0x27c   : > { %12600 = vmatprep.mubr.bf16.mxu0 %v13853_v61 }
 0x27f   : > { %1844 = vmatmul.mubr.bf16.gmra.mrb[12].mxu1 %v13852_v50  ;;  %v1591_v7 = vpop.permute.xlu1 %1590  ;;  %v15206_v18 = vpop.permute.xlu0 %1605 }
 0x283   : > { %12601 = vmatmul.mubr.bf16.gmra.mrb[20].mxu0 %v13854_v36  ;;  %v1601_v42 = vpop.permute.xlu1 %1600  ;;  %v15210_v3 = vpop.permute.xlu0 %1941 }
 0x284   : > { %12612 = vmatprep.mubr.msk.bf16.mxu0 %vm2127_vm1, %v13855_v37 }
 0x287   : > { %v15208_v26 = vpop.permute.xlu1 %1936  ;;  %v15214_v30 = vpop.permute.xlu0 %1998 }
 0x28b   : > { %v15212_v21 = vpop.permute.xlu1 %1993  ;;  %v15218_v35 = vpop.permute.xlu0 %1615 }
 0x28f   : > { %v15216_v53 = vpop.permute.xlu1 %1610  ;;  %v1952_v34 = vpop.permute.xlu0 %1951 }
 0x293   : > { %v1947_v1 = vpop.permute.xlu1 %1946  ;;  %v2009_v28 = vpop.permute.xlu0 %2008 }
 0x297   : > { %v2004_v6 = vpop.permute.xlu1 %2003 }
 0x32d   : > { %v12169_v19 = vpop.f32.mrb[0].mxu0 }
 0x32e   : > { %v12170_v20 = vpop.f32.mrb[1].mxu0 }
 0x32f   : > { %v12171_v56 = vadd.f32 %v12170_v20, %v12169_v19  ;;  %v12172_v63 = vpop.f32.mrb[2].mxu0  ;;  %v1957_v19 = vpop.permute.xlu1 %1956 }
 0x330   : > { %v12173_v55 = vpop.f32.mrb[3].mxu0 }
 0x331   : > { %v12174_v49 = vadd.f32 %v12173_v55, %v12172_v63  ;;  %v1757_v38 = vadd.f32 %v12171_v56, %v1581_v54  ;;  %v1962_v56 = vpop.permute.xlu0 %1961 }
 0x333   : > { %v1760_v12 = vadd.f32 %v12174_v49, %v1586_v8 }
 0x335   : > { %v12175_v29 = vpop.f32.mrb[4].mxu0 }
 0x336   : > { %v12176_v4 = vpop.f32.mrb[5].mxu0 }
 0x337   : > { %v12177_v32 = vadd.f32 %v12176_v4, %v12175_v29  ;;  %v12178_v62 = vpop.f32.mrb[6].mxu0 }
 0x338   : > { %v12179_v39 = vpop.f32.mrb[7].mxu0 }
 0x339   : > { %v12180_v47 = vadd.f32 %v12179_v39, %v12178_v62  ;;  %v1765_v16 = vadd.f32 %v12177_v32, %v1591_v7 }
 0x33a   : > { %v12209_v33 = vpop.f32.mrb[0].mxu1 }
 0x33b   : > { %v12210_v60 = vpop.f32.mrb[1].mxu1  ;;  %v1768_v25 = vadd.f32 %v12180_v47, %v1596_v15 }
 0x33c   : > { %v12211_v5 = vadd.f32 %v12210_v60, %v12209_v33  ;;  %v12212_v2 = vpop.f32.mrb[2].mxu1 }
 0x33d   : > { %v12181_v10 = vpop.f32.mrb[8].mxu0  ;;  %v12213_v11 = vpop.f32.mrb[3].mxu1 }
 0x33e   : > { %v12214_v14 = vadd.f32 %v12213_v11, %v12212_v2  ;;  %v12182_v44 = vpop.f32.mrb[9].mxu0  ;;  %v1822_v45 = vadd.f32 %v12211_v5, %v1757_v38  ;;  %v2014_v2 = vpop.permute.xlu1 %2013 }
 0x33f   : > { %v12183_v46 = vadd.f32 %v12182_v44, %v12181_v10  ;;  %v12184_v40 = vpop.f32.mrb[10].mxu0 }
 0x340   : > { %v12185_v41 = vpop.f32.mrb[11].mxu0  ;;  %v1825_v51 = vadd.f32 %v12214_v14, %v1760_v12  ;;  %v2019_v14 = vpop.permute.xlu0 %2018 }
 0x341   : > { %v12186_v9 = vadd.f32 %v12185_v41, %v12184_v40  ;;  %v1773_v8 = vadd.f32 %v12183_v46, %v1601_v42 }
 0x342   : > { %v12215_v48 = vpop.f32.mrb[4].mxu1 }
 0x343   : > { %v12216_v52 = vpop.f32.mrb[5].mxu1  ;;  %v1776_v15 = vadd.f32 %v12186_v9, %v15206_v18 }
 0x344   : > { %v12217_v13 = vadd.f32 %v12216_v52, %v12215_v48  ;;  %v12218_v17 = vpop.f32.mrb[6].mxu1 }
 0x345   : > { %v12187_v22 = vpop.f32.mrb[12].mxu0  ;;  %v12219_v24 = vpop.f32.mrb[7].mxu1 }
 0x346   : > { %v12220_v43 = vadd.f32 %v12219_v24, %v12218_v17  ;;  %v12188_v57 = vpop.f32.mrb[13].mxu0  ;;  %v1830_v0 = vadd.f32 %v12217_v13, %v1765_v16 }
 0x347   : > { %v12189_v27 = vadd.f32 %v12188_v57, %v12187_v22  ;;  %v12190_v23 = vpop.f32.mrb[14].mxu0  ;;  %v1967_v57 = vpop.permute.xlu1 %1966 }
 0x348   : > { %v12191_v31 = vpop.f32.mrb[15].mxu0  ;;  %v1833_v61 = vadd.f32 %v12220_v43, %v1768_v25 }
 0x349   : > { %v12192_v50 = vadd.f32 %v12191_v31, %v12190_v23  ;;  %v1781_v18 = vadd.f32 %v12189_v27, %v15216_v53  ;;  %v1972_v27 = vpop.permute.xlu0 %1971 }
 0x34a   : > { %v12221_v36 = vpop.f32.mrb[8].mxu1 }
 0x34b   : > { %v12222_v37 = vpop.f32.mrb[9].mxu1 }
 0x34c   : > { %v12223_v54 = vadd.f32 %v12222_v37, %v12221_v36  ;;  %v12224_v7 = vpop.f32.mrb[10].mxu1 }
 0x34d   : > { %v12225_v20 = vpop.f32.mrb[11].mxu1 }
 0x34e   : > { %v12226_v63 = vadd.f32 %v12225_v20, %v12224_v7  ;;  %v12598_v55 = vpop.f32.mrb[16].mxu0  ;;  %v1838_v49 = vadd.f32 %v12223_v54, %v1773_v8 }
 0x34f   : > { %v1895_v29 = vadd.f32 %v12598_v55, %v1830_v0  ;;  %v1886_v4 = vpop.f32.mrb[17].mxu0  ;;  %v2029_v55 = vpop.permute.xlu0 %2028 }
 0x350   : > { %v1887_v32 = vadd.f32 %v1886_v4, %v1822_v45  ;;  %v12599_v62 = vpop.f32.mrb[18].mxu0  ;;  %v1841_v39 = vadd.f32 %v12226_v63, %v1776_v15  ;;  %v2024_v15 = vpop.permute.xlu1 %2023 }
 0x351   : > { %v1919_v47 = vmax.f32 %v1895_v29, 0.0  ;;  %v1898_v33 = vadd.f32 %v12599_v62, %v1833_v61  ;;  %v1889_v60 = vpop.f32.mrb[19].mxu0 }
 0x352   : > { %v1917_v38 = vmax.f32 %v1887_v32, 0.0  ;;  %v1890_v42 = vadd.f32 %v1889_v60, %v1825_v51  ;;  %v12227_v5 = vpop.f32.mrb[12].mxu1 }
 0x353   : > { %v1976_v10 = vmul.f32 %v1947_v1, %v1919_v47  ;;  %v1920_v11 = vmax.f32 %v1898_v33, 0.0  ;;  %v12228_v12 = vpop.f32.mrb[13].mxu1  ;;  %v1784_v1 = vadd.f32 %v12192_v50, %v15218_v35  ;;  %v13856_v33 = vld [vmem:[%s18409_s0 + $0x8] sm:$0xff]  }
 0x354   : > { %v1974_v44 = vmul.f32 %v15208_v26, %v1917_v38  ;;  %v1918_v46 = vmax.f32 %v1890_v42, 0.0  ;;  %v12229_v40 = vadd.f32 %v12228_v12, %v12227_v5  ;;  %v12230_v45 = vpop.f32.mrb[14].mxu1  ;;  %v2070_v38 = vpop.permute.xlu1 %2069 }
 0x355   : > { %v1977_v41 = vmul.f32 %v1952_v34, %v1920_v11  ;;  %v12231_v9 = vpop.f32.mrb[15].mxu1  ;;  %v2033_v17 = vadd.f32 %v2004_v6, %v1976_v10  ;;  %v2225_v12 = vpop.permute.xlu0 %2224 }
 0x356   : > { %v2031_v48 = vadd.f32 %v15212_v21, %v1974_v44  ;;  %v1975_v52 = vmul.f32 %v15210_v3, %v1918_v46  ;;  %v12232_v51 = vadd.f32 %v12231_v9, %v12230_v45  ;;  %v1846_v16 = vadd.f32 %v12229_v40, %v1781_v18  ;;  %v12602_v13 = vpop.f32.mrb[20].mxu0  ;;  %v2342_v40 = vld [vmem:[%s18412_s9] sm:$0xff]  ;;  %v2060_v45 = vld [vmem:[%s18408_s5 + $0x8] sm:$0xff] }
 0x357   : > { %v2034_v22 = vadd.f32 %v2009_v28, %v1977_v41  ;;  %v1902_v24 = vpop.f32.mrb[21].mxu0  ;;  %v11272_v41 = vld [vmem:[%s18412_s9 + $0x8] sm:$0xff] }
 0x358   : > { %v2032_v53 = vadd.f32 %v15214_v30, %v1975_v52  ;;  %v1911_v26 = vadd.f32 %v12602_v13, %v1846_v16  ;;  %v1903_v25 = vadd.f32 %v1902_v24, %v1838_v49  ;;  %v12603_v43 = vpop.f32.mrb[22].mxu0  ;;  %v15228_v34 = vmul.f32 %v14651_v59, %v2031_v48  ;;  %v2282_v18 = vpop.permute.xlu1 %2281  ;;  %v11256_v9 = vld [vmem:[%s18408_s5 + $0x48] sm:$0xff]  ;;  %v11273_v48 = vld [vmem:[%s18412_s9 + $0x10] sm:$0xff] }
 0x359   : > { %v15231_v21 = vmul.f32 %v14651_v59, %v2034_v22  ;;  %v1849_v3 = vadd.f32 %v12232_v51, %v1784_v1  ;;  %v1905_v0 = vpop.f32.mrb[23].mxu0  ;;  %v15237_v30 = vmul.f32 %v14651_v59, %v2033_v17  ;;  %v11264_v52 = vld [vmem:[%s18408_s5 + $0x88] sm:$0xff]  ;;  %v2341_v22 = vld [vmem:[%s18413_s28] sm:$0xf]  ;;  %v13857_v24 = vld [vmem:[%s18409_s0 + $0x10] sm:$0xff]  }
 0x35a   : > { %v15234_v35 = vmul.f32 %v14651_v59, %v2032_v53  ;;  %v1923_v6 = vmax.f32 %v1911_v26, 0.0  ;;  %v1921_v23 = vmax.f32 %v1903_v25, 0.0  ;;  %v1906_v28 = vadd.f32 %v1905_v0, %v1841_v39  ;;  %v13858_v53 = vld [vmem:[%s18409_s0 + $0x18] sm:$0xff]   ;;  %12616 = vmatprep.mubr.msk.bf16.mxu1 %vm2127_vm1, %v13857_v24 }
 0x35b   : > { %v1914_v31 = vadd.f32 %v12603_v43, %v1849_v3  ;;  %v2056_v20 = vpack.c.bf16 %v15231_v21, %v15237_v30 }
 0x35c   : > { %v1980_v61 = vmul.f32 %v1967_v57, %v1923_v6  ;;  %v1978_v50 = vmul.f32 %v1957_v19, %v1921_v23  ;;  %v1922_v36 = vmax.f32 %v1906_v28, 0.0  ;;  %v2055_v37 = vpack.c.bf16 %v15234_v35, %v15228_v34 }
 0x35d   : > { %v1924_v8 = vmax.f32 %v1914_v31, 0.0 }
 0x35e   : > { %v2035_v54 = vadd.f32 %v2014_v2, %v1978_v50  ;;  %v1979_v7 = vmul.f32 %v1962_v56, %v1922_v36  ;;  %12604 = vmatprep.subr.bf16.mxu0 %v2055_v37  ;;  %13370 = vmatprep.subr.bf16.mxu1 %v2055_v37  ;;  %v2037_v49 = vadd.f32 %v2024_v15, %v1980_v61 }
 0x35f   : > { %v1981_v63 = vmul.f32 %v1972_v27, %v1924_v8  ;;  %12605 = vmatpush3.bf16.msra.mxu0 %v2055_v37  ;;  %13374 = vmatpush3.bf16.msra.mxu1 %v2055_v37 }
 0x360   : > { %v2036_v29 = vadd.f32 %v2019_v14, %v1979_v7  ;;  %12606 = vmatprep.subr.bf16.mxu0 %v2056_v20  ;;  %13371 = vmatprep.subr.bf16.mxu1 %v2056_v20  ;;  %v15244_v4 = vmul.f32 %v14651_v59, %v2035_v54  ;;  %v15253_v62 = vmul.f32 %v14651_v59, %v2037_v49  ;;  %v2061_v49 = vld [vmem:[%s18408_s5 + $0x10] sm:$0xff] }
 0x361   : > { %v2038_v19 = vadd.f32 %v2029_v55, %v1981_v63  ;;  %v11275_v55 = vld [vmem:[%s18412_s9 + $0x18] sm:$0xff] }
 0x362   : > { %v15247_v56 = vmul.f32 %v14651_v59, %v2036_v29  ;;  %v11277_v29 = vld [vmem:[%s18412_s9 + $0x20] sm:$0xff] }
 0x363   : > { %v15250_v32 = vmul.f32 %v14651_v59, %v2038_v19  ;;  %12607 = vmatpush3.bf16.msra.mxu0 %v2056_v20  ;;  %13375 = vmatpush3.bf16.msra.mxu1 %v2056_v20  ;;  %v11257_v19 = vld [vmem:[%s18408_s5 + $0x50] sm:$0xff] }
 0x364   : > { %v2057_v39 = vpack.c.bf16 %v15247_v56, %v15244_v4 }
 0x365   : > { %v2058_v47 = vpack.c.bf16 %v15250_v32, %v15253_v62 }
 0x366   : > { %12608 = vmatprep.subr.bf16.mxu0 %v2057_v39  ;;  %13372 = vmatprep.subr.bf16.mxu1 %v2057_v39 }
 0x367   : > { %12609 = vmatpush3.bf16.msra.mxu0 %v2057_v39  ;;  %13376 = vmatpush3.bf16.msra.mxu1 %v2057_v39  ;;  %v11278_v39 = vld [vmem:[%s18412_s9 + $0x28] sm:$0xff] }
 0x368   : > { %12610 = vmatprep.subr.bf16.mxu0 %v2058_v47  ;;  %13373 = vmatprep.subr.bf16.mxu1 %v2058_v47 }
 0x36b   : > { %12611 = vmatpush3.bf16.msra.mxu0 %v2058_v47  ;;  %13377 = vmatpush3.bf16.msra.mxu1 %v2058_v47  ;;  %v11265_v47 = vld [vmem:[%s18408_s5 + $0x90] sm:$0xff] }
 0x36c   : > { %12620 = vmatprep.subr.bf16.mxu0 %v14313_v58  ;;  %12628 = vmatprep.subr.bf16.mxu1 %v14313_v58 }
 0x36e   : > { %12613 = vmatmul.mubr.msk.bf16.vlgmr.msra.gmra.mrb[24].mxu0 %vm2127_vm1, %v13856_v33  ;;  %12617 = vmatmul.mubr.msk.bf16.vlgmr.msra.gmra.mrb[16].mxu1 %vm2127_vm1, %v13858_v53 }
 0x36f   : > { %12624 = vmatprep.mubr.msk.bf16.mxu0 %vm14319_vm2, %v14313_v58  ;;  %12632 = vmatprep.mubr.msk.bf16.mxu1 %vm14319_vm2, %v14313_v58 }
 0x441   : > { %v15265_v60 = vpop.f32.mrb[24].mxu0  ;;  %v15336_v33 = vpop.f32.mrb[16].mxu1 }
 0x442   : > { %v2174_v42 = vpop.f32.mrb[25].mxu0 }
 0x443   : > { %v2175_v5 = vadd.f32 %v2174_v42, %v2070_v38  ;;  %v15267_v2 = vpop.f32.mrb[26].mxu0  ;;  %v15338_v38 = vpop.f32.mrb[17].mxu1 }
 0x444   : > { %v2177_v10 = vpop.f32.mrb[27].mxu0  ;;  %v15340_v42 = vpop.f32.mrb[18].mxu1 }
 0x445   : > { %v2205_v11 = vmax.f32 %v2175_v5, 0.0  ;;  %v15342_v5 = vpop.f32.mrb[19].mxu1 }
 0x447   : > { %v2262_v14 = vmul.f32 %v2225_v12, %v2205_v11 }
 0x449   : > { %v2319_v44 = vadd.f32 %v2282_v18, %v2262_v14 }
 0x44b   : > { %v2327_v46 = vmul.f32 %v14651_v59, %v2319_v44  ;;  %v11274_v44 = vld [vmem:[%s18413_s28 + $0x4] sm:$0xf] }
 0x44d   : > { %2337 = vrot.lane.b32.xlu1 %v2327_v46, %s18410_s1  ;;  %2335 = vrot.lane.b32.xlu0 %v2327_v46, %s18411_s8 }
 0x451   : > { %2345 = vperm.xlu1 %13826, %v2342_v40   ;;  %2074 = vperm.xlu0 %13825, %v2060_v45  }
 0x455   : > { %2401 = vperm.xlu1 %13826, %v11272_v41   ;;  %2229 = vperm.xlu0 %13825, %v11256_v9  }
 0x459   : > { %2409 = vperm.xlu1 %13826, %v11273_v48   ;;  %2286 = vperm.xlu0 %13825, %v11264_v52  }
 0x4bf   : > { %v2338_v51 = vpop.permute.xlu1 %2337  ;;  %v2336_v16 = vpop.permute.xlu0 %2335 }
 0x4c0   : > { %v2339_v13 = vpack.c.bf16 %v2327_v46, %v2336_v16  ;;  %v2340_v1 = vpack.c.bf16 %v2338_v51, %v2338_v51 }
 0x4c2   : > { %12621 = vmatpush3.bf16.msra.mxu0 %v2339_v13  ;;  %v2354_v17 = vsel %vm2352_vm3, %v2340_v1, 0 }
 0x4c3   : > { %12622 = vmatprep.subr.bf16.mxu0 %v14313_v58 }
 0x4c6   : > { %12623 = vmatpush3.bf16.msra.mxu0 %v2354_v17 }
 0x4c7   : > { %12636 = vmatprep.subr.bf16.mxu0 %v14313_v58 }
 0x4c9   : > { %12625 = vmatmul.mubr.msk.bf16.vlgmr.msra.gmra.mrb[28].mxu0 %vm2348_vm4, %v2341_v22 }
 0x4ca   : > { %12640 = vmatprep.mubr.msk.bf16.mxu0 %vm14319_vm2, %v14313_v58 }
 0x4d0   : > { %v2075_v26 = vpop.permute.xlu0 %2074  ;;  %v2346_v25 = vpop.permute.xlu1 %2345 }
 0x4d1   : > { %v2178_v43 = vadd.f32 %v2177_v10, %v2075_v26 }
 0x4d3   : > { %v2206_v3 = vmax.f32 %v2178_v43, 0.0 }
 0x4d4   : > { %v2230_v57 = vpop.permute.xlu0 %2229  ;;  %v2402_v0 = vpop.permute.xlu1 %2401 }
 0x4d5   : > { %v2263_v61 = vmul.f32 %v2230_v57, %v2206_v3 }
 0x4d8   : > { %v2287_v28 = vpop.permute.xlu0 %2286  ;;  %v2410_v54 = vpop.permute.xlu1 %2409 }
 0x4d9   : > { %v2320_v37 = vadd.f32 %v2287_v28, %v2263_v61  ;;  %v11283_v28 = vld [vmem:[%s18412_s9 + $0x40] sm:$0xff] }
 0x4db   : > { %v2328_v20 = vmul.f32 %v14651_v59, %v2320_v37 }
 0x59c   : > { %v2390_v27 = vpop.f32.mrb[28].mxu0 }
 0x59d   : > { %v2391_v6 = vadd.f32 %v2390_v27, %v2346_v25  ;;  %v12626_v23 = vpop.f32.mrb[29].mxu0  ;;  %v2062_v27 = vld [vmem:[%s18408_s5 + $0x18] sm:$0xff] }
 0x59e   : > { %v2393_v31 = vpop.f32.mrb[30].mxu0  ;;  %v11258_v23 = vld [vmem:[%s18408_s5 + $0x58] sm:$0xff] }
 0x59f   : > { %v2396_v50 = vmax.f32 %v2391_v6, 0.0  ;;  %v12627_v36 = vpop.f32.mrb[31].mxu0  ;;  %v11282_v6 = vld [vmem:[%s18412_s9 + $0x38] sm:$0xff] }
 0x5a0   : > { %v11266_v31 = vld [vmem:[%s18408_s5 + $0x98] sm:$0xff] }
 0x5a1   : > { %v2404_v8 = vmul.f32 %v2402_v0, %v2396_v50  ;;  %v11280_v0 = vld [vmem:[%s18412_s9 + $0x30] sm:$0xff] }
 0x5a3   : > { %v2412_v7 = vadd.f32 %v2410_v54, %v2404_v8  ;;  %v11279_v54 = vld [vmem:[%s18413_s28 + $0x8] sm:$0xf] }
 0x5a5   : > { %v15313_v15 = vmul.f32 %v14651_v59, %v2412_v7 }
 0x5a7   : > { %v2414_v63 = vadd.f32 %v15313_v15, %v2328_v20 }
 0x5a9   : > { %2417 = vrot.lane.b32.xlu1 %v2414_v63, %s18410_s1  ;;  %2415 = vrot.lane.b32.xlu0 %v2414_v63, %s18411_s8 }
 0x5ad   : > { %2427 = vperm.xlu1 %13826, %v11275_v55   ;;  %2079 = vperm.xlu0 %13825, %v2061_v49  }
 0x5b1   : > { %2481 = vperm.xlu1 %13826, %v11277_v29   ;;  %2234 = vperm.xlu0 %13825, %v11257_v19  }
 0x5b5   : > { %2489 = vperm.xlu1 %13826, %v11278_v39   ;;  %2291 = vperm.xlu0 %13825, %v11265_v47  }
 0x61b   : > { %v2418_v10 = vpop.permute.xlu1 %2417  ;;  %v2416_v11 = vpop.permute.xlu0 %2415 }
 0x61c   : > { %v2419_v12 = vpack.c.bf16 %v2414_v63, %v2416_v11  ;;  %v2420_v14 = vpack.c.bf16 %v2418_v10, %v2418_v10 }
 0x61e   : > { %12629 = vmatpush3.bf16.msra.mxu1 %v2419_v12  ;;  %v2434_v18 = vsel %vm2352_vm3, %v2420_v14, 0 }
 0x61f   : > { %12630 = vmatprep.subr.bf16.mxu1 %v14313_v58 }
 0x622   : > { %12631 = vmatpush3.bf16.msra.mxu1 %v2434_v18 }
 0x623   : > { %12644 = vmatprep.subr.bf16.mxu1 %v14313_v58 }
 0x625   : > { %12633 = vmatmul.mubr.msk.bf16.vlgmr.msra.gmra.mrb[20].mxu1 %vm2348_vm4, %v11274_v44 }
 0x626   : > { %12648 = vmatprep.mubr.msk.bf16.mxu1 %vm14319_vm2, %v14313_v58 }
 0x62c   : > { %v2080_v46 = vpop.permute.xlu0 %2079  ;;  %v2428_v40 = vpop.permute.xlu1 %2427 }
 0x62d   : > { %v2183_v45 = vadd.f32 %v15265_v60, %v2080_v46 }
 0x62f   : > { %v2207_v9 = vmax.f32 %v2183_v45, 0.0 }
 0x630   : > { %v2235_v41 = vpop.permute.xlu0 %2234  ;;  %v2482_v48 = vpop.permute.xlu1 %2481 }
 0x631   : > { %v2264_v17 = vmul.f32 %v2235_v41, %v2207_v9 }
 0x634   : > { %v2292_v13 = vpop.permute.xlu0 %2291  ;;  %v2490_v25 = vpop.permute.xlu1 %2489 }
 0x635   : > { %v2321_v53 = vadd.f32 %v2292_v13, %v2264_v17  ;;  %v11288_v13 = vld [vmem:[%s18412_s9 + $0x58] sm:$0xff] }
 0x637   : > { %v2329_v57 = vmul.f32 %v14651_v59, %v2321_v53 }
 0x6f8   : > { %v2470_v52 = vpop.f32.mrb[20].mxu1 }
 0x6f9   : > { %v2471_v51 = vadd.f32 %v2470_v52, %v2428_v40  ;;  %v12634_v16 = vpop.f32.mrb[21].mxu1  ;;  %v2063_v52 = vld [vmem:[%s18408_s5 + $0x20] sm:$0xff] }
 0x6fa   : > { %v2473_v1 = vpop.f32.mrb[22].mxu1  ;;  %v11259_v16 = vld [vmem:[%s18408_s5 + $0x60] sm:$0xff] }
 0x6fb   : > { %v2476_v22 = vmax.f32 %v2471_v51, 0.0  ;;  %v12635_v24 = vpop.f32.mrb[23].mxu1  ;;  %v11287_v51 = vld [vmem:[%s18412_s9 + $0x50] sm:$0xff]  ;;  %v11267_v1 = vld [vmem:[%s18408_s5 + $0xa0] sm:$0xff] }
 0x6fd   : > { %v2484_v26 = vmul.f32 %v2482_v48, %v2476_v22  ;;  %v11285_v48 = vld [vmem:[%s18412_s9 + $0x48] sm:$0xff] }
 0x6ff   : > { %v2492_v43 = vadd.f32 %v2490_v25, %v2484_v26  ;;  %v11284_v25 = vld [vmem:[%s18413_s28 + $0xc] sm:$0xf] }
 0x701   : > { %v15356_v3 = vmul.f32 %v14651_v59, %v2492_v43 }
 0x703   : > { %v2494_v60 = vadd.f32 %v15356_v3, %v2329_v57 }
 0x705   : > { %2497 = vrot.lane.b32.xlu1 %v2494_v60, %s18410_s1  ;;  %2495 = vrot.lane.b32.xlu0 %v2494_v60, %s18411_s8 }
 0x709   : > { %2507 = vperm.xlu1 %13826, %v11280_v0   ;;  %2084 = vperm.xlu0 %13825, %v2062_v27  }
 0x70d   : > { %2561 = vperm.xlu1 %13826, %v11282_v6   ;;  %2239 = vperm.xlu0 %13825, %v11258_v23  }
 0x711   : > { %2569 = vperm.xlu1 %13826, %v11283_v28   ;;  %2296 = vperm.xlu0 %13825, %v11266_v31  }
 0x777   : > { %v2498_v61 = vpop.permute.xlu1 %2497  ;;  %v2496_v50 = vpop.permute.xlu0 %2495 }
 0x778   : > { %v2499_v36 = vpack.c.bf16 %v2494_v60, %v2496_v50  ;;  %v2500_v37 = vpack.c.bf16 %v2498_v61, %v2498_v61 }
 0x77a   : > { %12637 = vmatpush3.bf16.msra.mxu0 %v2499_v36  ;;  %v2514_v8 = vsel %vm2352_vm3, %v2500_v37, 0 }
 0x77b   : > { %12638 = vmatprep.subr.bf16.mxu0 %v14313_v58 }
 0x77e   : > { %12639 = vmatpush3.bf16.msra.mxu0 %v2514_v8 }
 0x77f   : > { %12652 = vmatprep.subr.bf16.mxu0 %v14313_v58 }
 0x781   : > { %12641 = vmatmul.mubr.msk.bf16.vlgmr.msra.gmra.mrb[32].mxu0 %vm2348_vm4, %v11279_v54 }
 0x782   : > { %12656 = vmatprep.mubr.msk.bf16.mxu0 %vm14319_vm2, %v14313_v58 }
 0x788   : > { %v2085_v7 = vpop.permute.xlu0 %2084  ;;  %v2508_v20 = vpop.permute.xlu1 %2507 }
 0x789   : > { %v2186_v63 = vadd.f32 %v15267_v2, %v2085_v7 }
 0x78b   : > { %v2208_v49 = vmax.f32 %v2186_v63, 0.0 }
 0x78c   : > { %v2240_v55 = vpop.permute.xlu0 %2239  ;;  %v2562_v29 = vpop.permute.xlu1 %2561 }
 0x78d   : > { %v2265_v12 = vmul.f32 %v2240_v55, %v2208_v49 }
 0x790   : > { %v2297_v10 = vpop.permute.xlu0 %2296  ;;  %v2570_v40 = vpop.permute.xlu1 %2569 }
 0x791   : > { %v2322_v44 = vadd.f32 %v2297_v10, %v2265_v12  ;;  %v11293_v10 = vld [vmem:[%s18412_s9 + $0x70] sm:$0xff] }
 0x793   : > { %v2330_v41 = vmul.f32 %v14651_v59, %v2322_v44 }
 0x854   : > { %v2550_v19 = vpop.f32.mrb[32].mxu0 }
 0x855   : > { %v2551_v39 = vadd.f32 %v2550_v19, %v2508_v20  ;;  %v12642_v47 = vpop.f32.mrb[33].mxu0  ;;  %v2064_v19 = vld [vmem:[%s18408_s5 + $0x28] sm:$0xff] }
 0x856   : > { %v2553_v11 = vpop.f32.mrb[34].mxu0  ;;  %v11260_v47 = vld [vmem:[%s18408_s5 + $0x68] sm:$0xff] }
 0x857   : > { %v2556_v14 = vmax.f32 %v2551_v39, 0.0  ;;  %v12643_v18 = vpop.f32.mrb[35].mxu0  ;;  %v11292_v39 = vld [vmem:[%s18412_s9 + $0x68] sm:$0xff] }
 0x858   : > { %v11268_v11 = vld [vmem:[%s18408_s5 + $0xa8] sm:$0xff] }
 0x859   : > { %v2564_v46 = vmul.f32 %v2562_v29, %v2556_v14  ;;  %v11290_v29 = vld [vmem:[%s18412_s9 + $0x60] sm:$0xff] }
 0x85b   : > { %v2572_v45 = vadd.f32 %v2570_v40, %v2564_v46  ;;  %v11289_v40 = vld [vmem:[%s18413_s28 + $0x10] sm:$0xf] }
 0x85d   : > { %v15391_v9 = vmul.f32 %v14651_v59, %v2572_v45 }
 0x85f   : > { %v2574_v2 = vadd.f32 %v15391_v9, %v2330_v41 }
 0x861   : > { %2577 = vrot.lane.b32.xlu1 %v2574_v2, %s18410_s1  ;;  %2575 = vrot.lane.b32.xlu0 %v2574_v2, %s18411_s8 }
 0x865   : > { %2587 = vperm.xlu1 %13826, %v11285_v48   ;;  %2089 = vperm.xlu0 %13825, %v2063_v52  }
 0x869   : > { %2641 = vperm.xlu1 %13826, %v11287_v51   ;;  %2244 = vperm.xlu0 %13825, %v11259_v16  }
 0x86d   : > { %2649 = vperm.xlu1 %13826, %v11288_v13   ;;  %2301 = vperm.xlu0 %13825, %v11267_v1  }
 0x8d3   : > { %v2578_v17 = vpop.permute.xlu1 %2577  ;;  %v2576_v22 = vpop.permute.xlu0 %2575 }
 0x8d4   : > { %v2579_v24 = vpack.c.bf16 %v2574_v2, %v2576_v22  ;;  %v2580_v53 = vpack.c.bf16 %v2578_v17, %v2578_v17 }
 0x8d6   : > { %12645 = vmatpush3.bf16.msra.mxu1 %v2579_v24  ;;  %v2594_v26 = vsel %vm2352_vm3, %v2580_v53, 0 }
 0x8d7   : > { %12646 = vmatprep.subr.bf16.mxu1 %v14313_v58 }
 0x8da   : > { %12647 = vmatpush3.bf16.msra.mxu1 %v2594_v26 }
 0x8db   : > { %12660 = vmatprep.subr.bf16.mxu1 %v14313_v58 }
 0x8dd   : > { %12649 = vmatmul.mubr.msk.bf16.vlgmr.msra.gmra.mrb[24].mxu1 %vm2348_vm4, %v11284_v25 }
 0x8de   : > { %12664 = vmatprep.mubr.msk.bf16.mxu1 %vm14319_vm2, %v14313_v58 }
 0x8e4   : > { %v2090_v43 = vpop.permute.xlu0 %2089  ;;  %v2588_v57 = vpop.permute.xlu1 %2587 }
 0x8e5   : > { %v2191_v60 = vadd.f32 %v15338_v38, %v2090_v43 }
 0x8e7   : > { %v2209_v27 = vmax.f32 %v2191_v60, 0.0 }
 0x8e8   : > { %v2245_v0 = vpop.permute.xlu0 %2244  ;;  %v2642_v6 = vpop.permute.xlu1 %2641 }
 0x8e9   : > { %v2266_v36 = vmul.f32 %v2245_v0, %v2209_v27 }
 0x8ec   : > { %v2302_v61 = vpop.permute.xlu0 %2301  ;;  %v2650_v20 = vpop.permute.xlu1 %2649 }
 0x8ed   : > { %v2323_v54 = vadd.f32 %v2302_v61, %v2266_v36  ;;  %v11298_v61 = vld [vmem:[%s18412_s9 + $0x88] sm:$0xff] }
 0x8ef   : > { %v2331_v55 = vmul.f32 %v14651_v59, %v2323_v54 }
 0x9b0   : > { %v2630_v23 = vpop.f32.mrb[24].mxu1 }
 0x9b1   : > { %v2631_v28 = vadd.f32 %v2630_v23, %v2588_v57  ;;  %v12650_v31 = vpop.f32.mrb[25].mxu1  ;;  %v2065_v23 = vld [vmem:[%s18408_s5 + $0x30] sm:$0xff] }
 0x9b2   : > { %v2633_v50 = vpop.f32.mrb[26].mxu1  ;;  %v11261_v31 = vld [vmem:[%s18408_s5 + $0x70] sm:$0xff] }
 0x9b3   : > { %v2636_v37 = vmax.f32 %v2631_v28, 0.0  ;;  %v12651_v8 = vpop.f32.mrb[27].mxu1  ;;  %v11297_v28 = vld [vmem:[%s18412_s9 + $0x80] sm:$0xff]  ;;  %v11269_v50 = vld [vmem:[%s18408_s5 + $0xb0] sm:$0xff] }
 0x9b5   : > { %v2644_v7 = vmul.f32 %v2642_v6, %v2636_v37  ;;  %v11295_v6 = vld [vmem:[%s18412_s9 + $0x78] sm:$0xff] }
 0x9b7   : > { %v2652_v63 = vadd.f32 %v2650_v20, %v2644_v7  ;;  %v2912_v20 = vpack.c.bf16 %v15356_v3, %v15356_v3  ;;  %v13860_v3 = vld [vmem:[%s18414_s26 + $0x28] sm:$0xff]  }
 0x9b9   : > { %v15426_v49 = vmul.f32 %v14651_v59, %v2652_v63  ;;  %v11294_v63 = vld [vmem:[%s18413_s28 + $0x14] sm:$0xf] }
 0x9bb   : > { %v2654_v38 = vadd.f32 %v15426_v49, %v2331_v55  ;;  %v13859_v55 = vld [vmem:[%s18414_s26 + $0x20] sm:$0xff]  }
 0x9bd   : > { %2657 = vrot.lane.b32.xlu1 %v2654_v38, %s18410_s1  ;;  %2655 = vrot.lane.b32.xlu0 %v2654_v38, %s18411_s8 }
 0x9c1   : > { %2667 = vperm.xlu1 %13826, %v11290_v29   ;;  %2094 = vperm.xlu0 %13825, %v2064_v19   ;;  %v2902_v29 = vpack.c.bf16 %v15313_v15, %v15313_v15  ;;  %v13861_v19 = vld [vmem:[%s18414_s26 + $0x30] sm:$0xff]   ;;  %v3123_v15 = vpack.c.bf16 %v15391_v9, %v15391_v9  ;;  %v13864_v9 = vld [vmem:[%s18414_s26 + $0x8] sm:$0xff]  }
 0x9c5   : > { %2721 = vperm.xlu1 %13826, %v11292_v39   ;;  %2249 = vperm.xlu0 %13825, %v11260_v47   ;;  %v3047_v39 = vsel %vm2352_vm3, %v2902_v29, 0  ;;  %v13862_v47 = vld [vmem:[%s18414_s26 + $0x38] sm:$0xff]  }
 0x9c9   : > { %2729 = vperm.xlu1 %13826, %v11293_v10   ;;  %2306 = vperm.xlu0 %13825, %v11268_v11   ;;  %v13863_v10 = vld [vmem:[%s18414_s26] sm:$0xff]   ;;  %v13865_v11 = vld [vmem:[%s18414_s26 + $0x10] sm:$0xff]  }
 0xa2f   : > { %v2658_v12 = vpop.permute.xlu1 %2657  ;;  %v2656_v14 = vpop.permute.xlu0 %2655 }
 0xa30   : > { %v2659_v18 = vpack.c.bf16 %v2654_v38, %v2656_v14  ;;  %v2660_v44 = vpack.c.bf16 %v2658_v12, %v2658_v12  ;;  %v2947_v38 = vsel %vm2352_vm3, %v2912_v20, 0  ;;  %v3157_v12 = vsel %vm2352_vm3, %v3123_v15, 0 }
 0xa31   : > { %v3241_v14 = vpack.c.bf16 %v15426_v49, %v15426_v49  ;;  %v13868_v49 = vld [vmem:[%s18414_s26 + $0x48] sm:$0xff]  }
 0xa32   : > { %12653 = vmatpush3.bf16.msra.mxu0 %v2659_v18  ;;  %v2674_v46 = vsel %vm2352_vm3, %v2660_v44, 0  ;;  %v13866_v18 = vld [vmem:[%s18414_s26 + $0x18] sm:$0xff]   ;;  %v13867_v44 = vld [vmem:[%s18414_s26 + $0x40] sm:$0xff]  }
 0xa33   : > { %12654 = vmatprep.subr.bf16.mxu0 %v14313_v58 }
 0xa36   : > { %12655 = vmatpush3.bf16.msra.mxu0 %v2674_v46  ;;  %v13869_v46 = vld [vmem:[%s18414_s26 + $0x50] sm:$0xff]  }
 0xa37   : > { %12668 = vmatprep.subr.bf16.mxu0 %v14313_v58 }
 0xa39   : > { %12657 = vmatmul.mubr.msk.bf16.vlgmr.msra.gmra.mrb[36].mxu0 %vm2348_vm4, %v11289_v40  ;;  %v3275_v40 = vsel %vm2352_vm3, %v3241_v14, 0 }
 0xa3a   : > { %12672 = vmatprep.mubr.msk.bf16.mxu0 %vm14319_vm2, %v14313_v58 }
 0xa40   : > { %v2095_v45 = vpop.permute.xlu0 %2094  ;;  %v2668_v41 = vpop.permute.xlu1 %2667 }
 0xa41   : > { %v2194_v2 = vadd.f32 %v15342_v5, %v2095_v45 }
 0xa43   : > { %v2210_v52 = vmax.f32 %v2194_v2, 0.0  ;;  %v13871_v2 = vld [vmem:[%s18414_s26 + $0x60] sm:$0xff]  }
 0xa44   : > { %v2250_v48 = vpop.permute.xlu0 %2249  ;;  %v2722_v51 = vpop.permute.xlu1 %2721 }
 0xa45   : > { %v2267_v24 = vmul.f32 %v2250_v48, %v2210_v52  ;;  %v13872_v48 = vld [vmem:[%s18414_s26 + $0x68] sm:$0xff]  }
 0xa48   : > { %v2307_v17 = vpop.permute.xlu0 %2306  ;;  %v2730_v57 = vpop.permute.xlu1 %2729 }
 0xa49   : > { %v2324_v25 = vadd.f32 %v2307_v17, %v2267_v24 }
 0xa4b   : > { %v2332_v0 = vmul.f32 %v14651_v59, %v2324_v25 }
 0xb0c   : > { %v2710_v16 = vpop.f32.mrb[36].mxu0 }
 0xb0d   : > { %v2711_v13 = vadd.f32 %v2710_v16, %v2668_v41  ;;  %v12658_v1 = vpop.f32.mrb[37].mxu0  ;;  %v13870_v41 = vld [vmem:[%s18414_s26 + $0x58] sm:$0xff]  }
 0xb0e   : > { %v2713_v22 = vpop.f32.mrb[38].mxu0  ;;  %v13874_v16 = vld [vmem:[%s18414_s26 + $0x78] sm:$0xff]   ;;  %v13876_v1 = vld [vmem:[%s18414_s26 + $0x88] sm:$0xff]  }
 0xb0f   : > { %v2716_v53 = vmax.f32 %v2711_v13, 0.0  ;;  %v12659_v26 = vpop.f32.mrb[39].mxu0  ;;  %v13875_v13 = vld [vmem:[%s18414_s26 + $0x80] sm:$0xff]  }
 0xb11   : > { %v2724_v43 = vmul.f32 %v2722_v51, %v2716_v53  ;;  %v13873_v51 = vld [vmem:[%s18414_s26 + $0x70] sm:$0xff]  }
 0xb13   : > { %v2732_v60 = vadd.f32 %v2730_v57, %v2724_v43 }
 0xb15   : > { %v15461_v27 = vmul.f32 %v14651_v59, %v2732_v60 }
 0xb17   : > { %v2734_v5 = vadd.f32 %v15461_v27, %v2332_v0  ;;  %v3359_v45 = vpack.c.bf16 %v15461_v27, %v15461_v27 }
 0xb19   : > { %2737 = vrot.lane.b32.xlu1 %v2734_v5, %s18410_s1  ;;  %2735 = vrot.lane.b32.xlu0 %v2734_v5, %s18411_s8  ;;  %v3393_v52 = vsel %vm2352_vm3, %v3359_v45, 0 }
 0xb1d   : > { %2747 = vperm.xlu1 %13826, %v11295_v6   ;;  %2099 = vperm.xlu0 %13825, %v2065_v23  }
 0xb21   : > { %2801 = vperm.xlu1 %13826, %v11297_v28   ;;  %2254 = vperm.xlu0 %13825, %v11261_v31  }
 0xb25   : > { %2809 = vperm.xlu1 %13826, %v11298_v61   ;;  %2311 = vperm.xlu0 %13825, %v11269_v50  }
 0xb8b   : > { %v2738_v36 = vpop.permute.xlu1 %2737  ;;  %v2736_v37 = vpop.permute.xlu0 %2735 }
 0xb8c   : > { %v2739_v8 = vpack.c.bf16 %v2734_v5, %v2736_v37  ;;  %v2740_v54 = vpack.c.bf16 %v2738_v36, %v2738_v36 }
 0xb8e   : > { %12661 = vmatpush3.bf16.msra.mxu1 %v2739_v8  ;;  %v2754_v7 = vsel %vm2352_vm3, %v2740_v54, 0 }
 0xb8f   : > { %12662 = vmatprep.subr.bf16.mxu1 %v14313_v58 }
 0xb92   : > { %12663 = vmatpush3.bf16.msra.mxu1 %v2754_v7  ;;  %v11302_v7 = vld [vmem:[%s18412_s9 + $0x98] sm:$0xff] }
 0xb93   : > { %13578 = vmatprep.subr.msk.bf16.mxu1 %vm2352_vm3, %v2912_v20  ;;  %v11300_v20 = vld [vmem:[%s18412_s9 + $0x90] sm:$0xff] }
 0xb95   : > { %12665 = vmatmul.mubr.msk.bf16.vlgmr.msra.gmra.mrb[28].mxu1 %vm2348_vm4, %v11294_v63  ;;  %v2066_v63 = vld [vmem:[%s18408_s5 + $0x38] sm:$0xff] }
 0xb96   : > { %12677 = vmatpush3.bf16.msra.mxu1 %v2947_v38  ;;  %12678 = vmatprep.mubr.msk.bf16.mxu1 %vm2933_vm5, %v13859_v55  ;;  %v11303_v55 = vld [vmem:[%s18412_s9 + $0xa0] sm:$0xff]  ;;  %v11270_v38 = vld [vmem:[%s18408_s5 + $0xb8] sm:$0xff] }
 0xb97   : > { %13579 = vmatprep.subr.msk.bf16.mxu1 %vm2352_vm3, %v2902_v29  ;;  %v11262_v29 = vld [vmem:[%s18408_s5 + $0x78] sm:$0xff] }
 0xb9c   : > { %v2100_v17 = vpop.permute.xlu0 %2099  ;;  %v2748_v22 = vpop.permute.xlu1 %2747 }
 0xb9d   : > { %12679 = vmatmul.mubr.msk.bf16.vlgmr.msra.gmra.mrb[32].mxu1 %vm2933_vm5, %v13860_v3  ;;  %v2199_v24 = vadd.f32 %v15336_v33, %v2100_v17  ;;  %v3823_v3 = vld [vmem:[%s18415_s30 + $0x8] sm:$0xff]  ;;  %v13877_v17 = vld [vmem:[%s18414_s26 + $0x90] sm:$0xff]   ;;  %s18417_s30 = smov 3  }
 0xb9e   : > { %12687 = vmatpush3.bf16.msra.mxu1 %v3047_v39  ;;  %12682 = vmatprep.mubr.msk.bf16.mxu1 %vm2933_vm5, %v13861_v19  ;;  %v3822_v19 = vld [vmem:[%s18416_s23] sm:$0xff]  ;;  %v3825_v39 = vld [vmem:[%s18416_s23 + $0x18] sm:$0xff] }
 0xb9f   : > { %13580 = vmatprep.subr.msk.bf16.mxu1 %vm2352_vm3, %v3123_v15  ;;  %v2211_v26 = vmax.f32 %v2199_v24, 0.0  ;;  %v3824_v15 = vld [vmem:[%s18416_s23 + $0x10] sm:$0xff] }
 0xba0   : > { %v2255_v53 = vpop.permute.xlu0 %2254  ;;  %v2802_v25 = vpop.permute.xlu1 %2801 }
 0xba1   : > { %v2268_v5 = vmul.f32 %v2255_v53, %v2211_v26 }
 0xba4   : > { %v2312_v0 = vpop.permute.xlu0 %2311  ;;  %v2810_v61 = vpop.permute.xlu1 %2809 }
 0xba5   : > { %12683 = vmatmul.mubr.msk.bf16.gmra.mrb[36].mxu1 %vm2933_vm5, %v13862_v47  ;;  %v2325_v28 = vadd.f32 %v2312_v0, %v2268_v5  ;;  %v11425_v47 = vld [vmem:[%s18416_s23 + $0x48] sm:$0xff]  ;;  %v13882_v5 = vld [vmem:[%s18414_s26 + $0xb8] sm:$0xff]  }
 0xba6   : > { %12688 = vmatprep.mubr.msk.bf16.mxu1 %vm2933_vm5, %v13863_v10  ;;  %v11424_v10 = vld [vmem:[%s18416_s23 + $0x40] sm:$0xff]  ;;  %v13880_v0 = vld [vmem:[%s18414_s26 + $0xa8] sm:$0xff]  }
 0xba7   : > { %v2333_v36 = vmul.f32 %v14651_v59, %v2325_v28 }
 0xbad   : > { %12689 = vmatmul.mubr.msk.bf16.vlgmr.msra.gmra.mrb[32].mxu1 %vm2933_vm5, %v13864_v9  ;;  %v11433_v9 = vld [vmem:[%s18416_s23 + $0x88] sm:$0xff] }
 0xbae   : > { %12697 = vmatpush3.bf16.msra.mxu1 %v3157_v12  ;;  %12692 = vmatprep.mubr.msk.bf16.mxu1 %vm2933_vm5, %v13865_v11  ;;  %v11432_v11 = vld [vmem:[%s18416_s23 + $0x80] sm:$0xff]  ;;  %v3827_v12 = vld [vmem:[%s18416_s23 + $0x28] sm:$0xff] }
 0xbaf   : > { %13581 = vmatprep.subr.msk.bf16.mxu1 %vm2352_vm3, %v3241_v14  ;;  %v3826_v14 = vld [vmem:[%s18416_s23 + $0x20] sm:$0xff] }
 0xbb5   : > { %12693 = vmatmul.mubr.msk.bf16.gmra.mrb[36].mxu1 %vm2933_vm5, %v13866_v18  ;;  %v11427_v18 = vld [vmem:[%s18416_s23 + $0x58] sm:$0xff] }
 0xbb6   : > { %12698 = vmatprep.mubr.msk.bf16.mxu1 %vm2933_vm5, %v13867_v44  ;;  %v11426_v44 = vld [vmem:[%s18416_s23 + $0x50] sm:$0xff] }
 0xbbd   : > { %12699 = vmatmul.mubr.msk.bf16.vlgmr.msra.gmra.mrb[32].mxu1 %vm2933_vm5, %v13868_v49  ;;  %v11435_v49 = vld [vmem:[%s18416_s23 + $0x98] sm:$0xff] }
 0xbbe   : > { %12707 = vmatpush3.bf16.msra.mxu1 %v3275_v40  ;;  %12702 = vmatprep.mubr.msk.bf16.mxu1 %vm2933_vm5, %v13869_v46  ;;  %v11434_v46 = vld [vmem:[%s18416_s23 + $0x90] sm:$0xff]  ;;  %v3829_v40 = vld [vmem:[%s18416_s23 + $0x38] sm:$0xff] }
 0xbbf   : > { %13582 = vmatprep.subr.msk.bf16.mxu1 %vm2352_vm3, %v3359_v45  ;;  %v3828_v45 = vld [vmem:[%s18416_s23 + $0x30] sm:$0xff] }
 0xbc5   : > { %12703 = vmatmul.mubr.msk.bf16.gmra.mrb[36].mxu1 %vm2933_vm5, %v13870_v41  ;;  %v11429_v41 = vld [vmem:[%s18416_s23 + $0x68] sm:$0xff] }
 0xbc6   : > { %12708 = vmatprep.mubr.msk.bf16.mxu1 %vm2933_vm5, %v13871_v2  ;;  %v11428_v2 = vld [vmem:[%s18416_s23 + $0x60] sm:$0xff] }
 0xbcd   : > { %12709 = vmatmul.mubr.msk.bf16.vlgmr.msra.gmra.mrb[32].mxu1 %vm2933_vm5, %v13872_v48  ;;  %v11437_v48 = vld [vmem:[%s18416_s23 + $0xa8] sm:$0xff] }
 0xbce   : > { %12717 = vmatpush3.bf16.msra.mxu1 %v3393_v52  ;;  %12712 = vmatprep.mubr.msk.bf16.mxu1 %vm2933_vm5, %v13873_v51  ;;  %v11436_v52 = vld [vmem:[%s18416_s23 + $0xa0] sm:$0xff]  ;;  %v11431_v51 = vld [vmem:[%s18416_s23 + $0x78] sm:$0xff] }
 0xbd5   : > { %12713 = vmatmul.mubr.msk.bf16.gmra.mrb[36].mxu1 %vm2933_vm5, %v13874_v16  ;;  %v11430_v16 = vld [vmem:[%s18416_s23 + $0x70] sm:$0xff] }
 0xbd6   : > { %12718 = vmatprep.mubr.msk.bf16.mxu1 %vm2933_vm5, %v13875_v13  ;;  %v11439_v13 = vld [vmem:[%s18416_s23 + $0xb8] sm:$0xff] }
 0xbdd   : > { %12719 = vmatmul.mubr.msk.bf16.vlgmr.msra.gmra.mrb[32].mxu1 %vm2933_vm5, %v13876_v1  ;;  %v11438_v1 = vld [vmem:[%s18416_s23 + $0xb0] sm:$0xff] }
 0xbde   : > { %12722 = vmatprep.mubr.msk.bf16.mxu1 %vm2933_vm5, %v13877_v17 }
 0xc68   : > { %v2790_v43 = vpop.f32.mrb[28].mxu1 }
 0xc69   : > { %v2791_v57 = vadd.f32 %v2790_v43, %v2748_v22  ;;  %v12666_v60 = vpop.f32.mrb[29].mxu1  ;;  %v13878_v22 = vld [vmem:[%s18414_s26 + $0x98] sm:$0xff]  }
 0xc6a   : > { %v2793_v27 = vpop.f32.mrb[30].mxu1  ;;  %12723 = vmatmul.mubr.msk.bf16.gmra.mrb[36].mxu1 %vm2933_vm5, %v13878_v22  ;;  %v13879_v60 = vld [vmem:[%s18414_s26 + $0xa0] sm:$0xff]  }
 0xc6b   : > { %v2796_v6 = vmax.f32 %v2791_v57, 0.0  ;;  %v12667_v23 = vpop.f32.mrb[31].mxu1  ;;  %v11299_v57 = vld [vmem:[%s18413_s28 + $0x18] sm:$0xf]  ;;  %12728 = vmatprep.mubr.msk.bf16.mxu1 %vm2933_vm5, %v13879_v60  ;;  %v13881_v27 = vld [vmem:[%s18414_s26 + $0xb0] sm:$0xff]  }
 0xc6d   : > { %v2804_v31 = vmul.f32 %v2802_v25, %v2796_v6  ;;  %v13883_v6 = vld [vmem:[%s18414_s26 + $0xc0] sm:$0xff]  }
 0xc6f   : > { %v2812_v50 = vadd.f32 %v2810_v61, %v2804_v31 }
 0xc71   : > { %v2813_v37 = vmul.f32 %v14651_v59, %v2812_v50 }
 0xc73   : > { %v3477_v33 = vpack.c.bf16 %v2813_v37, %v2813_v37  ;;  %v15585_v8 = vadd.f32 %v2813_v37, %v2333_v36 }
 0xc75   : > { %13583 = vmatprep.subr.msk.bf16.mxu1 %vm2352_vm3, %v3477_v33  ;;  %2817 = vrot.lane.b32.xlu1 %v15585_v8, %s18410_s1  ;;  %v3511_v54 = vsel %vm2352_vm3, %v3477_v33, 0 }
 0xc76   : > { %2815 = vrot.lane.b32.xlu0 %v15585_v8, %s18411_s8  ;;  %12727 = vmatpush3.bf16.msra.mxu1 %v3511_v54  ;;  %s18423_s8 = sld [smem:[#allocation30_spill]] }
 0xc79   : > { %2881 = vperm.xlu1 %13826, %v11302_v7   ;;  %12729 = vmatmul.mubr.msk.bf16.vlgmr.msra.gmra.mrb[32].mxu1 %vm2933_vm5, %v13880_v0 }
 0xc7a   : > { %2827 = vperm.xlu0 %13825, %v11300_v20   ;;  %12732 = vmatprep.mubr.msk.bf16.mxu1 %vm2933_vm5, %v13881_v27 }
 0xc7d   : > { %2104 = vperm.xlu1 %13826, %v2066_v63  }
 0xc7e   : > { %2889 = vperm.xlu0 %13825, %v11303_v55  }
 0xc81   : > { %2316 = vperm.xlu1 %13826, %v11270_v38   ;;  %12733 = vmatmul.mubr.msk.bf16.gmra.mrb[36].mxu1 %vm2933_vm5, %v13882_v5 }
 0xc82   : > { %2259 = vperm.xlu0 %13825, %v11262_v29   ;;  %12738 = vmatprep.mubr.msk.bf16.mxu1 %vm2933_vm5, %v13883_v6 }
 0xc85   : > { %3837 = vperm.xlu1 %13826, %v3823_v3  }
 0xc86   : > { %3832 = vperm.xlu0 %13825, %v3822_v19  }
 0xc89   : > { %3847 = vperm.xlu1 %13826, %v3825_v39  }
 0xc8a   : > { %3842 = vperm.xlu0 %13825, %v3824_v15  }
 0xc8d   : > { %3902 = vperm.xlu1 %13826, %v11425_v47  }
 0xc8e   : > { %3897 = vperm.xlu0 %13825, %v11424_v10  }
 0xc91   : > { %3959 = vperm.xlu1 %13826, %v11433_v9   ;;  %v13884_v9 = vld [vmem:[%s18414_s26 + $0xc8] sm:$0xff]  }
 0xc92   : > { %3954 = vperm.xlu0 %13825, %v11432_v11   ;;  %v13885_v11 = vld [vmem:[%s18414_s26 + $0xd0] sm:$0xff]  }
 0xc95   : > { %3857 = vperm.xlu1 %13826, %v3827_v12  }
 0xc96   : > { %3852 = vperm.xlu0 %13825, %v3826_v14   ;;  %v13886_v14 = vld [vmem:[%s18414_s26 + $0xd8] sm:$0xff]  }
 0xc99   : > { %3912 = vperm.xlu1 %13826, %v11427_v18   ;;  %v13887_v18 = vld [vmem:[%s18414_s26 + $0xe0] sm:$0xff]  }
 0xc9a   : > { %3907 = vperm.xlu0 %13825, %v11426_v44   ;;  %v13888_v44 = vld [vmem:[%s18414_s26 + $0xe8] sm:$0xff]  }
 0xc9d   : > { %3969 = vperm.xlu1 %13826, %v11435_v49   ;;  %v13889_v49 = vld [vmem:[%s18414_s26 + $0xf0] sm:$0xff]  }
 0xc9e   : > { %3964 = vperm.xlu0 %13825, %v11434_v46   ;;  %v13890_v46 = vld [vmem:[%s18414_s26 + $0xf8] sm:$0xff]  }
 0xca1   : > { %3867 = vperm.xlu1 %13826, %v3829_v40  }
 0xca2   : > { %3862 = vperm.xlu0 %13825, %v3828_v45  }
 0xca5   : > { %3922 = vperm.xlu1 %13826, %v11429_v41  }
 0xca6   : > { %3917 = vperm.xlu0 %13825, %v11428_v2  }
 0xca9   : > { %3979 = vperm.xlu1 %13826, %v11437_v48  }
 0xcaa   : > { %3974 = vperm.xlu0 %13825, %v11436_v52  }
 0xcad   : > { %3932 = vperm.xlu1 %13826, %v11431_v51  }
 0xcae   : > { %3927 = vperm.xlu0 %13825, %v11430_v16  }
 0xcb1   : > { %3989 = vperm.xlu1 %13826, %v11439_v13  }
 0xcb2   : > { %3984 = vperm.xlu0 %13825, %v11438_v1  }
 0xce7   : > { %v2818_v24 = vpop.permute.xlu1 %2817 }
 0xce8   : > { %v2816_v53 = vpop.permute.xlu0 %2815  ;;  %v2820_v25 = vpack.c.bf16 %v2818_v24, %v2818_v24 }
 0xce9   : > { %v2819_v26 = vpack.c.bf16 %v15585_v8, %v2816_v53 }
 0xcea   : > { %v2834_v43 = vsel %vm2352_vm3, %v2820_v25, 0 }
 0xceb   : > { %12669 = vmatpush3.bf16.msra.mxu0 %v2819_v26 }
 0xcec   : > { %12670 = vmatprep.subr.bf16.mxu0 %v14313_v58 }
 0xcef   : > { %12671 = vmatpush3.bf16.msra.mxu0 %v2834_v43 }
 0xcf2   : > { %12673 = vmatmul.mubr.msk.bf16.vlgmr.msra.gmra.mrb[40].mxu0 %vm2348_vm4, %v11299_v57 }
 0xcf8   : > { %v2882_v23 = vpop.permute.xlu1 %2881 }
 0xcf9   : > { %v2828_v28 = vpop.permute.xlu0 %2827 }
 0xcfc   : > { %v2105_v31 = vpop.permute.xlu1 %2104 }
 0xcfd   : > { %v2890_v61 = vpop.permute.xlu0 %2889  ;;  %v2202_v50 = vadd.f32 %v15340_v42, %v2105_v31 }
 0xcff   : > { %v2212_v36 = vmax.f32 %v2202_v50, 0.0 }
 0xd00   : > { %v2317_v38 = vpop.permute.xlu1 %2316 }
 0xd01   : > { %v2260_v37 = vpop.permute.xlu0 %2259 }
 0xd02   : > { %v2269_v8 = vmul.f32 %v2260_v37, %v2212_v36 }
 0xd04   : > { %v2326_v29 = vadd.f32 %v2317_v38, %v2269_v8  ;;  %v3838_v40 = vpop.permute.xlu1 %3837 }
 0xd05   : > { %v3833_v45 = vpop.permute.xlu0 %3832 }
 0xd06   : > { %v2334_v39 = vmul.f32 %v14651_v59, %v2326_v29 }
 0xd08   : > { %v3713_v10 = vpack.c.bf16 %v2334_v39, %v2334_v39  ;;  %v3848_v41 = vpop.permute.xlu1 %3847 }
 0xd09   : > { %v3843_v2 = vpop.permute.xlu0 %3842 }
 0xd0a   : > { %v3747_v12 = vsel %vm2352_vm3, %v3713_v10, 0 }
 0xd0c   : > { %v3903_v48 = vpop.permute.xlu1 %3902 }
 0xd0d   : > { %v3898_v52 = vpop.permute.xlu0 %3897 }
 0xd10   : > { %v3960_v51 = vpop.permute.xlu1 %3959 }
 0xd11   : > { %v3955_v16 = vpop.permute.xlu0 %3954 }
 0xd14   : > { %v3858_v13 = vpop.permute.xlu1 %3857 }
 0xd15   : > { %v3853_v1 = vpop.permute.xlu0 %3852 }
 0xd18   : > { %v3913_v17 = vpop.permute.xlu1 %3912 }
 0xd19   : > { %v3908_v22 = vpop.permute.xlu0 %3907 }
 0xd1c   : > { %v3970_v24 = vpop.permute.xlu1 %3969 }
 0xd1d   : > { %v3965_v53 = vpop.permute.xlu0 %3964 }
 0xd20   : > { %v3868_v26 = vpop.permute.xlu1 %3867 }
 0xd21   : > { %v3863_v25 = vpop.permute.xlu0 %3862 }
 0xd24   : > { %v3923_v57 = vpop.permute.xlu1 %3922 }
 0xd25   : > { %v3918_v6 = vpop.permute.xlu0 %3917 }
 0xdc5   : > { %v2870_v33 = vpop.f32.mrb[40].mxu0 }
 0xdc6   : > { %v2871_v54 = vadd.f32 %v2870_v33, %v2828_v28  ;;  %v12674_v7 = vpop.f32.mrb[41].mxu0 }
 0xdc7   : > { %v2873_v20 = vpop.f32.mrb[42].mxu0 }
 0xdc8   : > { %v2876_v63 = vmax.f32 %v2871_v54, 0.0  ;;  %v12675_v55 = vpop.f32.mrb[43].mxu0  ;;  %v3980_v54 = vpop.permute.xlu1 %3979 }
 0xdc9   : > { %v3975_v55 = vpop.permute.xlu0 %3974 }
 0xdca   : > { %v2884_v3 = vmul.f32 %v2882_v23, %v2876_v63 }
 0xdcc   : > { %v2892_v19 = vadd.f32 %v2890_v61, %v2884_v3 }
 0xdce   : > { %v2893_v15 = vmul.f32 %v14651_v59, %v2892_v19 }
 0xdd0   : > { %v3595_v47 = vpack.c.bf16 %v2893_v15, %v2893_v15 }
 0xdd2   : > { %13584 = vmatprep.subr.msk.bf16.mxu1 %vm2352_vm3, %v3595_v47  ;;  %v3629_v42 = vsel %vm2352_vm3, %v3595_v47, 0 }
 0xdd3   : > { %12737 = vmatpush3.bf16.msra.mxu1 %v3629_v42 }
 0xdd4   : > { %13585 = vmatprep.subr.msk.bf16.mxu1 %vm2352_vm3, %v3713_v10 }
 0xdd6   : > { %12739 = vmatmul.mubr.msk.bf16.vlgmr.msra.gmra.mrb[32].mxu1 %vm2933_vm5, %v13884_v9 }
 0xdd7   : > { %12747 = vmatpush3.bf16.msra.mxu1 %v3747_v12  ;;  %12742 = vmatprep.mubr.msk.bf16.mxu1 %vm2933_vm5, %v13885_v11 }
 0xdde   : > { %12743 = vmatmul.mubr.msk.bf16.gmra.mrb[36].mxu1 %vm2933_vm5, %v13886_v14 }
 0xddf   : > { %12748 = vmatprep.mubr.msk.bf16.mxu1 %vm2933_vm5, %v13887_v18  ;;  %v3933_v18 = vpop.permute.xlu1 %3932 }
 0xde6   : > { %12749 = vmatmul.mubr.msk.bf16.vlgmr.msra.gmra.mrb[32].mxu1 %vm2933_vm5, %v13888_v44 }
 0xde7   : > { %12752 = vmatprep.mubr.msk.bf16.mxu1 %vm2933_vm5, %v13889_v49 }
 0xdee   : > { %12753 = vmatmul.mubr.msk.bf16.gmra.mrb[36].mxu1 %vm2933_vm5, %v13890_v46 }
 0xeb9   : > { %v12750_v43 = vpop.f32.mrb[32].mxu1 }
 0xeba   : > { %v3872_v60 = vadd.f32 %v12750_v43, %v3843_v2  ;;  %v3783_v0 = vpop.f32.mrb[33].mxu1  ;;  %v3928_v2 = vpop.permute.xlu0 %3927 }
 0xebb   : > { %v3870_v27 = vadd.f32 %v3833_v45, %v3783_v0  ;;  %v12751_v5 = vpop.f32.mrb[34].mxu1 }
 0xebc   : > { %v3880_v23 = vmax.f32 %v3872_v60, 0.0  ;;  %v3873_v28 = vadd.f32 %v12751_v5, %v3848_v41  ;;  %v3786_v31 = vpop.f32.mrb[35].mxu1  ;;  %v4032_v60 = vld [vmem:[%s18325_s10] sm:$0xff] }
 0xebd   : > { %v3878_v61 = vmax.f32 %v3870_v27, 0.0  ;;  %v3871_v50 = vadd.f32 %v3838_v40, %v3786_v31  ;;  %12772 = vmatprep.mubr.msk.f32.mxu0 %vm2127_vm1, %v4032_v60  ;;  %v4145_v60 = vld [vmem:[%s18327_s12 + $0x20] sm:$0xff] }
 0xebe   : > { %v3937_v36 = vmul.f32 %v3908_v22, %v3880_v23  ;;  %v3881_v37 = vmax.f32 %v3873_v28, 0.0 }
 0xebf   : > { %v3935_v33 = vmul.f32 %v3898_v52, %v3878_v61  ;;  %v3879_v8 = vmax.f32 %v3871_v50, 0.0 }
 0xec0   : > { %v3994_v38 = vadd.f32 %v3965_v53, %v3937_v36  ;;  %v3938_v29 = vmul.f32 %v3913_v17, %v3881_v37  ;;  %v3990_v17 = vpop.permute.xlu1 %3989  ;;  %v3985_v53 = vpop.permute.xlu0 %3984 }
 0xec1   : > { %v3992_v7 = vadd.f32 %v3955_v16, %v3935_v33  ;;  %v3936_v20 = vmul.f32 %v3903_v48, %v3879_v8  ;;  %v12754_v63 = vpop.f32.mrb[36].mxu1 }
 0xec2   : > { %v3799_v3 = vpop.f32.mrb[37].mxu1  ;;  %v3876_v39 = vadd.f32 %v12754_v63, %v3863_v25  ;;  %v3995_v44 = vadd.f32 %v3970_v24, %v3938_v29  ;;  %v15762_v41 = vmul.f32 %v14651_v59, %v3994_v38 }
 0xec3   : > { %v3993_v19 = vadd.f32 %v3960_v51, %v3936_v20  ;;  %v3874_v15 = vadd.f32 %v3853_v1, %v3799_v3  ;;  %v12755_v47 = vpop.f32.mrb[38].mxu1  ;;  %v15754_v10 = vmul.f32 %v14651_v59, %v3992_v7  ;;  %v4033_v3 = vld [vmem:[%s18325_s10 + $0x8] sm:$0xff] }
 0xec4   : > { %v3877_v42 = vadd.f32 %v12755_v47, %v3868_v26  ;;  %v3802_v9 = vpop.f32.mrb[39].mxu1  ;;  %v3884_v46 = vmax.f32 %v3876_v39, 0.0  ;;  %v15766_v1 = vmul.f32 %v14651_v59, %v3995_v44  ;;  %v4035_v39 = vld [vmem:[%s18325_s10 + $0x18] sm:$0xff]  ;;  %v4037_v47 = vld [vmem:[%s18326_s11 + $0x8] sm:$0xff] }
 0xec5   : > { %v3882_v11 = vmax.f32 %v3874_v15, 0.0  ;;  %v3875_v12 = vadd.f32 %v3858_v13, %v3802_v9  ;;  %4008 = vadd.xlane.f32.xlu0 %v15754_v10  ;;  %v15758_v14 = vmul.f32 %v14651_v59, %v3993_v19  ;;  %v4034_v19 = vld [vmem:[%s18325_s10 + $0x10] sm:$0xff]  ;;  %v4141_v15 = vld [vmem:[%s18327_s12] sm:$0xff]  ;;  %v4039_v44 = vld [vmem:[%s18326_s11 + $0x18] sm:$0xff] }
 0xec6   : > { %v3885_v49 = vmax.f32 %v3877_v42, 0.0  ;;  %v3941_v51 = vmul.f32 %v3928_v2, %v3884_v46  ;;  %v4036_v42 = vld [vmem:[%s18326_s11] sm:$0xff]  ;;  %v4038_v46 = vld [vmem:[%s18326_s11 + $0x10] sm:$0xff] }
 0xec7   : > { %v3939_v40 = vmul.f32 %v3918_v6, %v3882_v11  ;;  %v3883_v45 = vmax.f32 %v3875_v12, 0.0  ;;  %4010 = vadd.xlane.f32.xlu1 %v15758_v14 }
 0xec8   : > { %v3942_v48 = vmul.f32 %v3933_v18, %v3885_v49  ;;  %v3998_v26 = vadd.f32 %v3985_v53, %v3941_v51  ;;  %v4143_v53 = vld [vmem:[%s18327_s12 + $0x10] sm:$0xff] }
 0xec9   : > { %v3940_v52 = vmul.f32 %v3923_v57, %v3883_v45  ;;  %4012 = vadd.xlane.f32.xlu0 %v15762_v41  ;;  %v3996_v16 = vadd.f32 %v3975_v55, %v3939_v40 }
 0xeca   : > { %v3999_v22 = vadd.f32 %v3990_v17, %v3942_v48  ;;  %v15782_v57 = vmul.f32 %v14651_v59, %v3998_v26  ;;  %v4144_v26 = vld [vmem:[%s18327_s12 + $0x18] sm:$0xff] }
 0xecb   : > { %v3997_v13 = vadd.f32 %v3980_v54, %v3940_v52  ;;  %v15774_v25 = vmul.f32 %v14651_v59, %v3996_v16 }
 0xecc   : > { %v15778_v43 = vmul.f32 %v14651_v59, %v3999_v22  ;;  %v4142_v22 = vld [vmem:[%s18327_s12 + $0x8] sm:$0xff] }
 0xecd   : > { %4014 = vadd.xlane.f32.xlu0 %v15766_v1  ;;  %v15770_v24 = vmul.f32 %v14651_v59, %v3997_v13 }
 0xecf   : > { %4018 = vadd.xlane.f32.xlu1 %v15770_v24 }
 0xed1   : > { %4016 = vadd.xlane.f32.xlu0 %v15774_v25 }
 0xed3   : > { %4022 = vadd.xlane.f32.xlu1 %v15778_v43 }
 0xed5   : > { %4020 = vadd.xlane.f32.xlu0 %v15782_v57 }
 0xf52   : > { %v4009_v0 = vpop.xlane.xlu0 %4008 }
 0xf53   : > { %v4024_v5 = vmul.f32 0.0625, %v4009_v0  ;;  %v4146_v0 = vld [vmem:[%s18327_s12 + $0x28] sm:$0xff] }
 0xf54   : > { %v4011_v27 = vpop.xlane.xlu1 %4010 }
 0xf55   : > { %v4025_v6 = vmul.f32 0.0625, %v4011_v27  ;;  %v4147_v27 = vld [vmem:[%s18327_s12 + $0x30] sm:$0xff] }
 0xf56   : > { %v4013_v23 = vpop.xlane.xlu0 %4012 }
 0xf57   : > { %v13298_v28 = vpack.c.bf16 %v4025_v6, %v4024_v5  ;;  %v4026_v61 = vmul.f32 0.0625, %v4013_v23  ;;  %v4148_v5 = vld [vmem:[%s18327_s12 + $0x38] sm:$0xff]  ;;  %v4150_v6 = vld [vmem:[%s18328_s13 + $0x8] sm:$0xff]  ;;  %v4149_v23 = vld [vmem:[%s18328_s13] sm:$0xff] }
 0xf59   : > { %13299 = vmatprep.subr.bf16.mxu0 %v13298_v28 }
 0xf5a   : > { %13301 = vmatpush3.bf16.msra.mxu0 %v13298_v28  ;;  %v4015_v31 = vpop.xlane.xlu0 %4014 }
 0xf5b   : > { %v4027_v50 = vmul.f32 0.0625, %v4015_v31 }
 0xf5c   : > { %v4019_v36 = vpop.xlane.xlu1 %4018 }
 0xf5d   : > { %v13302_v37 = vpack.c.bf16 %v4027_v50, %v4026_v61  ;;  %v4029_v8 = vmul.f32 0.0625, %v4019_v36  ;;  %v4152_v36 = vld [vmem:[%s18328_s13 + $0x18] sm:$0xff] }
 0xf5e   : > { %v4017_v33 = vpop.xlane.xlu0 %4016 }
 0xf5f   : > { %v4028_v54 = vmul.f32 0.0625, %v4017_v33  ;;  %13303 = vmatprep.subr.bf16.mxu0 %v13302_v37  ;;  %v4151_v33 = vld [vmem:[%s18328_s13 + $0x10] sm:$0xff] }
 0xf60   : > { %v4023_v7 = vpop.xlane.xlu1 %4022  ;;  %13305 = vmatpush3.bf16.msra.mxu0 %v13302_v37 }
 0xf61   : > { %v13306_v20 = vpack.c.bf16 %v4029_v8, %v4028_v54  ;;  %v4031_v55 = vmul.f32 0.0625, %v4023_v7 }
 0xf62   : > { %v4021_v63 = vpop.xlane.xlu0 %4020 }
 0xf63   : > { %v4030_v38 = vmul.f32 0.0625, %v4021_v63  ;;  %13307 = vmatprep.subr.bf16.mxu0 %v13306_v20 }
 0xf64   : > { %13309 = vmatpush3.bf16.msra.mxu0 %v13306_v20 }
 0xf65   : > { %v13310_v29 = vpack.c.bf16 %v4031_v55, %v4030_v38  ;;  %v4154_v55 = vld [vmem:[%s18328_s13 + $0x28] sm:$0xff] }
 0xf67   : > { %13311 = vmatprep.subr.bf16.mxu0 %v13310_v29 }
 0xf68   : > { %13313 = vmatpush3.bf16.msra.mxu0 %v13310_v29  ;;  %v4153_v29 = vld [vmem:[%s18328_s13 + $0x20] sm:$0xff] }
 0xf6b   : > { %12773 = vmatmul.mubr.msk.f32.vlgmr.msra.gmra.mrb[44].mxu0 %vm2127_vm1, %v4033_v3 }
 0xf6c   : > { %12775 = vmatprep.mubr.msk.f32.mxu0 %vm2127_vm1, %v4034_v19 }
 0xf6f   : > { %12776 = vmatmul.mubr.msk.f32.gmra.mrb[46].mxu0 %vm2127_vm1, %v4035_v39 }
 0xf70   : > { %12786 = vmatprep.mubr.msk.f32.mxu0 %vm4157_vm6, %v4141_v15 }
0x103e   : > { %v12774_v9 = vpop.f32.mrb[44].mxu0 }
0x103f   : > { %v4124_v11 = vadd.f32 %v12774_v9, %v4037_v47  ;;  %v4118_v12 = vpop.f32.mrb[45].mxu0 }
0x1040   : > { %v4119_v18 = vadd.f32 %v4118_v12, %v4036_v42  ;;  %v4156_v42 = vld [vmem:[%s18328_s13 + $0x38] sm:$0xff] }
0x1041   : > { %v4138_v49 = vmax.f32 %v4124_v11, 0.0  ;;  %v4155_v11 = vld [vmem:[%s18328_s13 + $0x30] sm:$0xff] }
0x1042   : > { %v4137_v40 = vmax.f32 %v4119_v18, 0.0  ;;  %v12777_v45 = vpop.f32.mrb[46].mxu0 }
0x1043   : > { %v4134_v2 = vadd.f32 %v12777_v45, %v4039_v44  ;;  %v4128_v48 = vpop.f32.mrb[47].mxu0 }
0x1044   : > { %v13314_v52 = vpack.c.bf16 %v4138_v49, %v4137_v40  ;;  %v4129_v51 = vadd.f32 %v4128_v48, %v4038_v46 }
0x1045   : > { %v4140_v16 = vmax.f32 %v4134_v2, 0.0 }
0x1046   : > { %v4139_v13 = vmax.f32 %v4129_v51, 0.0  ;;  %13315 = vmatprep.subr.bf16.mxu0 %v13314_v52 }
0x1047   : > { %13317 = vmatpush3.bf16.msra.mxu0 %v13314_v52 }
0x1048   : > { %v13318_v17 = vpack.c.bf16 %v4140_v16, %v4139_v13 }
0x104a   : > { %13319 = vmatprep.subr.bf16.mxu0 %v13318_v17 }
0x104b   : > { %13321 = vmatpush3.bf16.msra.mxu0 %v13318_v17 }
0x104e   : > { %12787 = vmatmul.mubr.msk.f32.vlgmr.msra.gmra.mrb[48].mxu0 %vm4157_vm6, %v4142_v22 }
0x104f   : > { %12789 = vmatprep.mubr.msk.f32.mxu0 %vm4157_vm6, %v4143_v53 }
0x1052   : > { %12790 = vmatmul.mubr.msk.f32.gmra.mrb[50].mxu0 %vm4157_vm6, %v4144_v26 }
0x1053   : > { %12792 = vmatprep.mubr.msk.f32.mxu0 %vm4157_vm6, %v4145_v60 }
0x1056   : > { %12793 = vmatmul.mubr.msk.f32.gmra.mrb[52].mxu0 %vm4157_vm6, %v4146_v0 }
0x1057   : > { %12795 = vmatprep.mubr.msk.f32.mxu0 %vm4157_vm6, %v4147_v27 }
0x105a   : > { %12796 = vmatmul.mubr.msk.f32.gmra.mrb[54].mxu0 %vm4157_vm6, %v4148_v5 }
0x1121   : > { %v12788_v28 = vpop.f32.mrb[48].mxu0 }
0x1122   : > { %v4254_v31 = vadd.f32 %v12788_v28, %v4150_v6  ;;  %v4248_v61 = vpop.f32.mrb[49].mxu0 }
0x1123   : > { %v4249_v50 = vadd.f32 %v4248_v61, %v4149_v23 }
0x1124   : > { %v11453_v37 = vmul.f32 -1.442695, %v4254_v31 }
0x1125   : > { %v11452_v8 = vmul.f32 -1.442695, %v4249_v50  ;;  %v12791_v54 = vpop.f32.mrb[50].mxu0 }
0x1126   : > { %14029 = vpow2.f32 %v11453_v37  ;;  %v4264_v7 = vadd.f32 %v12791_v54, %v4152_v36  ;;  %v4258_v20 = vpop.f32.mrb[51].mxu0  ;;  %v11468_v54 = vld [vmem:[%s18408_s5 + $0xc0] sm:$0xff] }
0x1127   : > { %14031 = vpow2.f32 %v11452_v8  ;;  %v4259_v63 = vadd.f32 %v4258_v20, %v4151_v33  ;;  %v11492_v20 = vld [vmem:[%s18408_s5 + $0x140] sm:$0xff] }
0x1128   : > { %v11455_v38 = vmul.f32 -1.442695, %v4264_v7  ;;  %v11484_v7 = vld [vmem:[%s18408_s5 + $0x100] sm:$0xff] }
0x1129   : > { %v11454_v3 = vmul.f32 -1.442695, %v4259_v63  ;;  %v12794_v19 = vpop.f32.mrb[52].mxu0  ;;  %v13891_v63 = vld [vmem:[%s18409_s0 + $0x20] sm:$0xff]  }
0x112a   : > { %14033 = vpow2.f32 %v11455_v38  ;;  %v4274_v39 = vadd.f32 %v12794_v19, %v4154_v55  ;;  %v4268_v15 = vpop.f32.mrb[53].mxu0  ;;  %12806 = vmatprep.mubr.msk.bf16.mxu0 %vm2127_vm1, %v13891_v63 }
0x112b   : > { %14035 = vpow2.f32 %v11454_v3  ;;  %v4269_v47 = vadd.f32 %v4268_v15, %v4153_v29 }
0x112c   : > { %v11457_v9 = vmul.f32 -1.442695, %v4274_v39 }
0x112d   : > { %v11456_v12 = vmul.f32 -1.442695, %v4269_v47  ;;  %v12797_v18 = vpop.f32.mrb[54].mxu0 }
0x112e   : > { %14037 = vpow2.f32 %v11457_v9  ;;  %v4284_v44 = vadd.f32 %v12797_v18, %v4156_v42  ;;  %v4278_v49 = vpop.f32.mrb[55].mxu0 }
0x112f   : > { %14039 = vpow2.f32 %v11456_v12  ;;  %v4279_v46 = vadd.f32 %v4278_v49, %v4155_v11 }
0x1130   : > { %v14030_v40 = vpop.eup %14029  ;;  %v11459_v45 = vmul.f32 -1.442695, %v4284_v44 }
0x1131   : > { %v14032_v2 = vpop.eup %14031  ;;  %v4312_v48 = vadd.f32 1.0, %v14030_v40  ;;  %v11458_v52 = vmul.f32 -1.442695, %v4279_v46 }
0x1132   : > { %v4311_v51 = vadd.f32 1.0, %v14032_v2  ;;  %14041 = vpow2.f32 %v11459_v45 }
0x1133   : > { %14043 = vrcp.f32 %v4312_v48 }
0x1134   : > { %v14034_v16 = vpop.eup %14033  ;;  %14045 = vrcp.f32 %v4311_v51 }
0x1135   : > { %v14036_v13 = vpop.eup %14035  ;;  %v4314_v17 = vadd.f32 1.0, %v14034_v16  ;;  %14047 = vpow2.f32 %v11458_v52 }
0x1136   : > { %v4313_v22 = vadd.f32 1.0, %v14036_v13 }
0x1137   : > { %14049 = vrcp.f32 %v4314_v17 }
0x1138   : > { %v14038_v53 = vpop.eup %14037  ;;  %14051 = vrcp.f32 %v4313_v22 }
0x1139   : > { %v14040_v26 = vpop.eup %14039  ;;  %v4316_v60 = vadd.f32 1.0, %v14038_v53 }
0x113a   : > { %v4315_v0 = vadd.f32 1.0, %v14040_v26  ;;  %v11501_v26 = vld [vmem:[%s18412_s9 + $0xa8] sm:$0xff] }
0x113c   : > { %v14042_v27 = vpop.eup %14041  ;;  %14053 = vrcp.f32 %v4315_v0  ;;  %v11503_v0 = vld [vmem:[%s18412_s9 + $0xb0] sm:$0xff] }
0x113d   : > { %v14044_v5 = vpop.eup %14043  ;;  %14055 = vrcp.f32 %v4316_v60  ;;  %v4318_v6 = vadd.f32 1.0, %v14042_v27  ;;  %v11469_v60 = vld [vmem:[%s18408_s5 + $0xc8] sm:$0xff] }
0x113e   : > { %v14046_v23 = vpop.eup %14045  ;;  %4342 = vperm.xlu1 %13826, %v14044_v5   ;;  %v11485_v27 = vld [vmem:[%s18408_s5 + $0x108] sm:$0xff]  ;;  %v11504_v5 = vld [vmem:[%s18412_s9 + $0xb8] sm:$0xff] }
0x113f   : > { %v14048_v28 = vpop.eup %14047  ;;  %4337 = vperm.xlu0 %13825, %v14046_v23   ;;  %14057 = vrcp.f32 %v4318_v6  ;;  %v11493_v6 = vld [vmem:[%s18408_s5 + $0x148] sm:$0xff] }
0x1140   : > { %v4317_v31 = vadd.f32 1.0, %v14048_v28 }
0x1141   : > { %v14050_v61 = vpop.eup %14049 }
0x1142   : > { %14059 = vrcp.f32 %v4317_v31  ;;  %4352 = vperm.xlu1 %13826, %v14050_v61   ;;  %v14052_v50 = vpop.eup %14051 }
0x1146   : > { %v14054_v36 = vpop.eup %14053  ;;  %4347 = vperm.xlu1 %13826, %v14052_v50  }
0x1147   : > { %v14056_v37 = vpop.eup %14055  ;;  %4357 = vperm.xlu0 %13825, %v14054_v36  }
0x1149   : > { %v14058_v33 = vpop.eup %14057 }
0x114a   : > { %4362 = vperm.xlu1 %13826, %v14056_v37  }
0x114c   : > { %v14060_v8 = vpop.eup %14059 }
0x114d   : > { %4367 = vperm.xlu0 %13825, %v14060_v8  }
0x114e   : > { %4372 = vperm.xlu1 %13826, %v14058_v33  }
0x1151   : > { %4415 = vperm.xlu0 %13825, %v11468_v54   ;;  %v11500_v54 = vld [vmem:[%s18413_s28 + $0x1c] sm:$0xf] }
0x1152   : > { %4569 = vperm.xlu1 %13826, %v11484_v7  }
0x1155   : > { %4626 = vperm.xlu0 %13825, %v11492_v20  }
0x11bd   : > { %v4343_v55 = vpop.permute.xlu1 %4342 }
0x11be   : > { %v4376_v38 = vmul.f32 %v4343_v55, %v15758_v14  ;;  %v4338_v29 = vpop.permute.xlu0 %4337 }
0x11bf   : > { %v4375_v3 = vmul.f32 %v4338_v29, %v15754_v10 }
0x11c0   : > { %v15885_v19 = vadd.f32 %v4376_v38, %v15234_v35 }
0x11c1   : > { %v15888_v39 = vadd.f32 %v4375_v3, %v15228_v34  ;;  %v4353_v15 = vpop.permute.xlu1 %4352 }
0x11c2   : > { %v4378_v42 = vmul.f32 %v4353_v15, %v15766_v1 }
0x11c3   : > { %v15892_v47 = vpack.c.bf16 %v15885_v19, %v15888_v39 }
0x11c4   : > { %v15899_v35 = vadd.f32 %v4378_v42, %v15231_v21 }
0x11c5   : > { %v4348_v9 = vpop.permute.xlu1 %4347  ;;  %12798 = vmatprep.subr.bf16.mxu0 %v15892_v47 }
0x11c6   : > { %v4377_v14 = vmul.f32 %v4348_v9, %v15762_v41  ;;  %12799 = vmatpush3.bf16.msra.mxu0 %v15892_v47  ;;  %v4358_v10 = vpop.permute.xlu0 %4357 }
0x11c7   : > { %v4379_v11 = vmul.f32 %v4358_v10, %v15774_v25 }
0x11c8   : > { %v15902_v34 = vadd.f32 %v4377_v14, %v15237_v30 }
0x11c9   : > { %v4363_v12 = vpop.permute.xlu1 %4362  ;;  %v15911_v41 = vadd.f32 %v4379_v11, %v15244_v4 }
0x11ca   : > { %v15907_v1 = vpack.c.bf16 %v15899_v35, %v15902_v34  ;;  %v4380_v18 = vmul.f32 %v4363_v12, %v15770_v24 }
0x11cc   : > { %v15914_v44 = vadd.f32 %v4380_v18, %v15247_v56  ;;  %v4368_v21 = vpop.permute.xlu0 %4367  ;;  %12800 = vmatprep.subr.bf16.mxu0 %v15907_v1 }
0x11cd   : > { %v4381_v30 = vmul.f32 %v4368_v21, %v15782_v57  ;;  %v4373_v49 = vpop.permute.xlu1 %4372  ;;  %12801 = vmatpush3.bf16.msra.mxu0 %v15907_v1 }
0x11ce   : > { %v15921_v25 = vpack.c.bf16 %v15914_v44, %v15911_v41  ;;  %v4382_v24 = vmul.f32 %v4373_v49, %v15778_v43  ;;  %v13892_v43 = vld [vmem:[%s18409_s0 + $0x28] sm:$0xff]  }
0x11cf   : > { %v15925_v4 = vadd.f32 %v4381_v30, %v15253_v62  ;;  %v13894_v62 = vld [vmem:[%s18409_s0 + $0x38] sm:$0xff]  }
0x11d0   : > { %v15928_v56 = vadd.f32 %v4382_v24, %v15250_v32  ;;  %12802 = vmatprep.subr.bf16.mxu0 %v15921_v25  ;;  %v13893_v32 = vld [vmem:[%s18409_s0 + $0x30] sm:$0xff]   ;;  %v4416_v40 = vpop.permute.xlu0 %4415 }
0x11d1   : > { %12803 = vmatpush3.bf16.msra.mxu0 %v15921_v25  ;;  %v4570_v16 = vpop.permute.xlu1 %4569 }
0x11d2   : > { %v15934_v57 = vpack.c.bf16 %v15928_v56, %v15925_v4 }
0x11d4   : > { %12804 = vmatprep.subr.bf16.mxu0 %v15934_v57  ;;  %v4627_v17 = vpop.permute.xlu0 %4626 }
0x11d5   : > { %12805 = vmatpush3.bf16.msra.mxu0 %v15934_v57 }
0x11d6   : > { %12814 = vmatprep.subr.bf16.mxu0 %v14313_v58 }
0x11d8   : > { %12807 = vmatmul.mubr.msk.bf16.vlgmr.msra.gmra.mrb[56].mxu0 %vm2127_vm1, %v13892_v43 }
0x11d9   : > { %12810 = vmatprep.mubr.msk.bf16.mxu0 %vm2127_vm1, %v13893_v32 }
0x11e0   : > { %12811 = vmatmul.mubr.msk.bf16.gmra.mrb[60].mxu0 %vm2127_vm1, %v13894_v62  ;;  %v11506_v62 = vld [vmem:[%s18412_s9 + $0xc0] sm:$0xff] }
0x11e1   : > { %12818 = vmatprep.mubr.msk.bf16.mxu0 %vm14319_vm2, %v14313_v58 }
0x12ab   : > { %v15953_v46 = vpop.f32.mrb[56].mxu0 }
0x12ac   : > { %v4519_v45 = vpop.f32.mrb[57].mxu0 }
0x12ad   : > { %v4520_v2 = vadd.f32 %v4519_v45, %v4416_v40  ;;  %v15955_v48 = vpop.f32.mrb[58].mxu0  ;;  %v11470_v40 = vld [vmem:[%s18408_s5 + $0xd0] sm:$0xff]  ;;  %v11508_v45 = vld [vmem:[%s18412_s9 + $0xc8] sm:$0xff] }
0x12ae   : > { %v4522_v52 = vpop.f32.mrb[59].mxu0 }
0x12af   : > { %v4550_v51 = vmax.f32 %v4520_v2, 0.0  ;;  %v11486_v2 = vld [vmem:[%s18408_s5 + $0x110] sm:$0xff] }
0x12b1   : > { %v4607_v13 = vmul.f32 %v4570_v16, %v4550_v51  ;;  %v11494_v51 = vld [vmem:[%s18408_s5 + $0x150] sm:$0xff] }
0x12b3   : > { %v4664_v22 = vadd.f32 %v4627_v17, %v4607_v13  ;;  %v15978_v23 = vpop.f32.mrb[60].mxu0 }
0x12b4   : > { %v15980_v28 = vpop.f32.mrb[61].mxu0 }
0x12b5   : > { %v4672_v53 = vmul.f32 %v14651_v59, %v4664_v22  ;;  %v15982_v31 = vpop.f32.mrb[62].mxu0 }
0x12b6   : > { %v15984_v61 = vpop.f32.mrb[63].mxu0 }
0x12b7   : > { %4682 = vrot.lane.b32.xlu0 %v4672_v53, %s18371_s2  ;;  %4680 = vrot.lane.b32.xlu1 %v4672_v53, %s18369_s25  ;;  %s18419_s25 = sld [smem:[#allocation28_spill]] }
0x12bb   : > { %4692 = vperm.xlu0 %13825, %v11501_v26   ;;  %4420 = vperm.xlu1 %13826, %v11469_v60   ;;  %v11505_v26 = vld [vmem:[%s18413_s28 + $0x20] sm:$0xf] }
0x12bf   : > { %4746 = vperm.xlu0 %13825, %v11503_v0   ;;  %4574 = vperm.xlu1 %13826, %v11485_v27  }
0x12c3   : > { %4754 = vperm.xlu0 %13825, %v11504_v5   ;;  %4631 = vperm.xlu1 %13826, %v11493_v6  }
0x1329   : > { %v4683_v50 = vpop.permute.xlu0 %4682  ;;  %v4681_v36 = vpop.permute.xlu1 %4680 }
0x132a   : > { %v4684_v37 = vpack.c.bf16 %v4672_v53, %v4681_v36  ;;  %v4685_v33 = vpack.c.bf16 %v4683_v50, %v4683_v50 }
0x132c   : > { %12815 = vmatpush3.bf16.msra.mxu0 %v4684_v37  ;;  %v4699_v8 = vsel %vm2352_vm3, %v4685_v33, 0 }
0x132d   : > { %12816 = vmatprep.subr.bf16.mxu0 %v14313_v58 }
0x1330   : > { %12817 = vmatpush3.bf16.msra.mxu0 %v4699_v8 }
0x1331   : > { %12822 = vmatprep.subr.bf16.mxu0 %v14313_v58 }
0x1333   : > { %12819 = vmatmul.mubr.msk.bf16.vlgmr.msra.gmra.mrb[64].mxu0 %vm2348_vm4, %v11500_v54 }
0x1334   : > { %12826 = vmatprep.mubr.msk.bf16.mxu0 %vm14319_vm2, %v14313_v58 }
0x133a   : > { %v4421_v7 = vpop.permute.xlu1 %4420  ;;  %v4693_v20 = vpop.permute.xlu0 %4692 }
0x133b   : > { %v4523_v63 = vadd.f32 %v4522_v52, %v4421_v7  ;;  %v11509_v52 = vld [vmem:[%s18412_s9 + $0xd0] sm:$0xff] }
0x133d   : > { %v4551_v38 = vmax.f32 %v4523_v63, 0.0 }
0x133e   : > { %v4575_v55 = vpop.permute.xlu1 %4574  ;;  %v4747_v29 = vpop.permute.xlu0 %4746 }
0x133f   : > { %v4608_v10 = vmul.f32 %v4575_v55, %v4551_v38 }
0x1342   : > { %v4632_v9 = vpop.permute.xlu1 %4631  ;;  %v4755_v30 = vpop.permute.xlu0 %4754 }
0x1343   : > { %v4665_v18 = vadd.f32 %v4632_v9, %v4608_v10  ;;  %v11511_v9 = vld [vmem:[%s18412_s9 + $0xd8] sm:$0xff]  ;;  %v11513_v10 = vld [vmem:[%s18412_s9 + $0xe0] sm:$0xff] }
0x1345   : > { %v4673_v24 = vmul.f32 %v14651_v59, %v4665_v18  ;;  %v11495_v18 = vld [vmem:[%s18408_s5 + $0x158] sm:$0xff] }
0x1406   : > { %v4735_v3 = vpop.f32.mrb[64].mxu0 }
0x1407   : > { %v4736_v15 = vadd.f32 %v4735_v3, %v4693_v20  ;;  %v12820_v42 = vpop.f32.mrb[65].mxu0 }
0x1408   : > { %v4738_v14 = vpop.f32.mrb[66].mxu0 }
0x1409   : > { %v4741_v11 = vmax.f32 %v4736_v15, 0.0  ;;  %v12821_v12 = vpop.f32.mrb[67].mxu0  ;;  %v11471_v14 = vld [vmem:[%s18408_s5 + $0xd8] sm:$0xff] }
0x140a   : > { %v11514_v12 = vld [vmem:[%s18412_s9 + $0xe8] sm:$0xff] }
0x140b   : > { %v4749_v21 = vmul.f32 %v4747_v29, %v4741_v11  ;;  %v11487_v11 = vld [vmem:[%s18408_s5 + $0x118] sm:$0xff] }
0x140d   : > { %v4757_v49 = vadd.f32 %v4755_v30, %v4749_v21 }
0x140f   : > { %v15997_v43 = vmul.f32 %v14651_v59, %v4757_v49 }
0x1411   : > { %v4759_v32 = vadd.f32 %v15997_v43, %v4673_v24 }
0x1413   : > { %4762 = vrot.lane.b32.xlu0 %v4759_v32, %s18371_s2  ;;  %4760 = vrot.lane.b32.xlu1 %v4759_v32, %s18417_s30  ;;  %s18418_s2 = smov 125  }
0x1417   : > { %4772 = vperm.xlu0 %13825, %v11506_v62   ;;  %4425 = vperm.xlu1 %13826, %v11470_v40   ;;  %v11510_v62 = vld [vmem:[%s18413_s28 + $0x24] sm:$0xf] }
0x141b   : > { %4826 = vperm.xlu0 %13825, %v11508_v45   ;;  %4579 = vperm.xlu1 %13826, %v11486_v2  }
0x141f   : > { %4834 = vperm.xlu0 %13825, %v11509_v52   ;;  %4636 = vperm.xlu1 %13826, %v11494_v51  }
0x1485   : > { %v4763_v16 = vpop.permute.xlu0 %4762  ;;  %v4761_v13 = vpop.permute.xlu1 %4760 }
0x1486   : > { %v4764_v17 = vpack.c.bf16 %v4759_v32, %v4761_v13  ;;  %v4765_v22 = vpack.c.bf16 %v4763_v16, %v4763_v16 }
0x1488   : > { %12823 = vmatpush3.bf16.msra.mxu0 %v4764_v17  ;;  %v4779_v53 = vsel %vm2352_vm3, %v4765_v22, 0 }
0x1489   : > { %12824 = vmatprep.subr.bf16.mxu0 %v14313_v58 }
0x148c   : > { %12825 = vmatpush3.bf16.msra.mxu0 %v4779_v53 }
0x148d   : > { %12830 = vmatprep.subr.bf16.mxu0 %v14313_v58 }
0x148f   : > { %12827 = vmatmul.mubr.msk.bf16.vlgmr.msra.gmra.mrb[68].mxu0 %vm2348_vm4, %v11505_v26 }
0x1490   : > { %12834 = vmatprep.mubr.msk.bf16.mxu0 %vm14319_vm2, %v14313_v58 }
0x1496   : > { %v4426_v60 = vpop.permute.xlu1 %4425  ;;  %v4773_v0 = vpop.permute.xlu0 %4772 }
0x1497   : > { %v4528_v27 = vadd.f32 %v15953_v46, %v4426_v60 }
0x1499   : > { %v4552_v6 = vmax.f32 %v4528_v27, 0.0 }
0x149a   : > { %v4580_v5 = vpop.permute.xlu1 %4579  ;;  %v4827_v50 = vpop.permute.xlu0 %4826 }
0x149b   : > { %v4609_v7 = vmul.f32 %v4580_v5, %v4552_v6 }
0x149e   : > { %v4637_v8 = vpop.permute.xlu1 %4636  ;;  %v4835_v29 = vpop.permute.xlu0 %4834 }
0x149f   : > { %v4666_v55 = vadd.f32 %v4637_v8, %v4609_v7  ;;  %v11516_v8 = vld [vmem:[%s18412_s9 + $0xf0] sm:$0xff]  ;;  %v11518_v7 = vld [vmem:[%s18412_s9 + $0xf8] sm:$0xff] }
0x14a1   : > { %v4674_v15 = vmul.f32 %v14651_v59, %v4666_v55  ;;  %v11496_v55 = vld [vmem:[%s18408_s5 + $0x160] sm:$0xff] }
0x1562   : > { %v4815_v36 = vpop.f32.mrb[68].mxu0 }
0x1563   : > { %v4816_v37 = vadd.f32 %v4815_v36, %v4773_v0  ;;  %v12828_v33 = vpop.f32.mrb[69].mxu0 }
0x1564   : > { %v4818_v54 = vpop.f32.mrb[70].mxu0 }
0x1565   : > { %v4821_v20 = vmax.f32 %v4816_v37, 0.0  ;;  %v12829_v63 = vpop.f32.mrb[71].mxu0  ;;  %v11472_v54 = vld [vmem:[%s18408_s5 + $0xe0] sm:$0xff] }
0x1566   : > { %v11519_v63 = vld [vmem:[%s18412_s9 + $0x100] sm:$0xff] }
0x1567   : > { %v4829_v38 = vmul.f32 %v4827_v50, %v4821_v20  ;;  %v11488_v20 = vld [vmem:[%s18408_s5 + $0x120] sm:$0xff] }
0x1569   : > { %v4837_v3 = vadd.f32 %v4835_v29, %v4829_v38 }
0x156b   : > { %v16032_v42 = vmul.f32 %v14651_v59, %v4837_v3 }
0x156d   : > { %v4839_v46 = vadd.f32 %v16032_v42, %v4674_v15 }
0x156f   : > { %4842 = vrot.lane.b32.xlu0 %v4839_v46, %s18418_s2  ;;  %4840 = vrot.lane.b32.xlu1 %v4839_v46, %s18417_s30 }
0x1573   : > { %4852 = vperm.xlu0 %13825, %v11511_v9   ;;  %4430 = vperm.xlu1 %13826, %v11471_v14   ;;  %v11515_v9 = vld [vmem:[%s18413_s28 + $0x28] sm:$0xf] }
0x1577   : > { %4906 = vperm.xlu0 %13825, %v11513_v10   ;;  %4584 = vperm.xlu1 %13826, %v11487_v11  }
0x157b   : > { %4914 = vperm.xlu0 %13825, %v11514_v12   ;;  %4641 = vperm.xlu1 %13826, %v11495_v18  }
0x15e1   : > { %v4843_v21 = vpop.permute.xlu0 %4842  ;;  %v4841_v30 = vpop.permute.xlu1 %4840 }
0x15e2   : > { %v4844_v49 = vpack.c.bf16 %v4839_v46, %v4841_v30  ;;  %v4845_v24 = vpack.c.bf16 %v4843_v21, %v4843_v21 }
0x15e4   : > { %12831 = vmatpush3.bf16.msra.mxu0 %v4844_v49  ;;  %v4859_v32 = vsel %vm2352_vm3, %v4845_v24, 0 }
0x15e5   : > { %12832 = vmatprep.subr.bf16.mxu0 %v14313_v58 }
0x15e8   : > { %12833 = vmatpush3.bf16.msra.mxu0 %v4859_v32 }
0x15e9   : > { %12838 = vmatprep.subr.bf16.mxu0 %v14313_v58 }
0x15eb   : > { %12835 = vmatmul.mubr.msk.bf16.vlgmr.msra.gmra.mrb[72].mxu0 %vm2348_vm4, %v11510_v62 }
0x15ec   : > { %12842 = vmatprep.mubr.msk.bf16.mxu0 %vm14319_vm2, %v14313_v58 }
0x15f2   : > { %v4431_v40 = vpop.permute.xlu1 %4430  ;;  %v4853_v45 = vpop.permute.xlu0 %4852 }
0x15f3   : > { %v4531_v2 = vadd.f32 %v15955_v48, %v4431_v40 }
0x15f5   : > { %v4553_v51 = vmax.f32 %v4531_v2, 0.0 }
0x15f6   : > { %v4585_v52 = vpop.permute.xlu1 %4584  ;;  %v4907_v16 = vpop.permute.xlu0 %4906 }
0x15f7   : > { %v4610_v60 = vmul.f32 %v4585_v52, %v4553_v51 }
0x15fa   : > { %v4642_v53 = vpop.permute.xlu1 %4641  ;;  %v4915_v50 = vpop.permute.xlu0 %4914 }
0x15fb   : > { %v4667_v5 = vadd.f32 %v4642_v53, %v4610_v60  ;;  %v11521_v53 = vld [vmem:[%s18412_s9 + $0x108] sm:$0xff]  ;;  %v11523_v60 = vld [vmem:[%s18412_s9 + $0x110] sm:$0xff] }
0x15fd   : > { %v4675_v37 = vmul.f32 %v14651_v59, %v4667_v5  ;;  %v11497_v5 = vld [vmem:[%s18408_s5 + $0x168] sm:$0xff] }
0x16be   : > { %v4895_v13 = vpop.f32.mrb[72].mxu0 }
0x16bf   : > { %v4896_v17 = vadd.f32 %v4895_v13, %v4853_v45  ;;  %v12836_v22 = vpop.f32.mrb[73].mxu0 }
0x16c0   : > { %v4898_v26 = vpop.f32.mrb[74].mxu0 }
0x16c1   : > { %v4901_v0 = vmax.f32 %v4896_v17, 0.0  ;;  %v12837_v27 = vpop.f32.mrb[75].mxu0  ;;  %v11473_v26 = vld [vmem:[%s18408_s5 + $0xe8] sm:$0xff] }
0x16c2   : > { %v11524_v27 = vld [vmem:[%s18412_s9 + $0x118] sm:$0xff] }
0x16c3   : > { %v4909_v6 = vmul.f32 %v4907_v16, %v4901_v0  ;;  %v11489_v0 = vld [vmem:[%s18408_s5 + $0x128] sm:$0xff] }
0x16c5   : > { %v4917_v36 = vadd.f32 %v4915_v50, %v4909_v6 }
0x16c7   : > { %v16067_v33 = vmul.f32 %v14651_v59, %v4917_v36 }
0x16c9   : > { %v4919_v48 = vadd.f32 %v16067_v33, %v4675_v37 }
0x16cb   : > { %4922 = vrot.lane.b32.xlu0 %v4919_v48, %s18418_s2  ;;  %4920 = vrot.lane.b32.xlu1 %v4919_v48, %s18417_s30 }
0x16cf   : > { %4932 = vperm.xlu0 %13825, %v11516_v8   ;;  %4435 = vperm.xlu1 %13826, %v11472_v54   ;;  %v11520_v8 = vld [vmem:[%s18413_s28 + $0x2c] sm:$0xf] }
0x16d3   : > { %4986 = vperm.xlu0 %13825, %v11518_v7   ;;  %4589 = vperm.xlu1 %13826, %v11488_v20  }
0x16d7   : > { %4994 = vperm.xlu0 %13825, %v11519_v63   ;;  %4646 = vperm.xlu1 %13826, %v11496_v55  }
0x173d   : > { %v4923_v38 = vpop.permute.xlu0 %4922  ;;  %v4921_v29 = vpop.permute.xlu1 %4920 }
0x173e   : > { %v4924_v3 = vpack.c.bf16 %v4919_v48, %v4921_v29  ;;  %v4925_v15 = vpack.c.bf16 %v4923_v38, %v4923_v38 }
0x1740   : > { %12839 = vmatpush3.bf16.msra.mxu0 %v4924_v3  ;;  %v4939_v46 = vsel %vm2352_vm3, %v4925_v15, 0 }
0x1741   : > { %12840 = vmatprep.subr.bf16.mxu0 %v14313_v58 }
0x1744   : > { %12841 = vmatpush3.bf16.msra.mxu0 %v4939_v46 }
0x1745   : > { %12846 = vmatprep.subr.bf16.mxu0 %v14313_v58 }
0x1747   : > { %12843 = vmatmul.mubr.msk.bf16.vlgmr.msra.gmra.mrb[76].mxu0 %vm2348_vm4, %v11515_v9 }
0x1748   : > { %12850 = vmatprep.mubr.msk.bf16.mxu0 %vm14319_vm2, %v14313_v58 }
0x174e   : > { %v4436_v14 = vpop.permute.xlu1 %4435  ;;  %v4933_v10 = vpop.permute.xlu0 %4932 }
0x174f   : > { %v4536_v11 = vadd.f32 %v15980_v28, %v4436_v14 }
0x1751   : > { %v4554_v18 = vmax.f32 %v4536_v11, 0.0 }
0x1752   : > { %v4590_v12 = vpop.permute.xlu1 %4589  ;;  %v4987_v21 = vpop.permute.xlu0 %4986 }
0x1753   : > { %v4611_v40 = vmul.f32 %v4590_v12, %v4554_v18 }
0x1756   : > { %v4647_v32 = vpop.permute.xlu1 %4646  ;;  %v4995_v16 = vpop.permute.xlu0 %4994 }
0x1757   : > { %v4668_v52 = vadd.f32 %v4647_v32, %v4611_v40  ;;  %v11526_v32 = vld [vmem:[%s18412_s9 + $0x120] sm:$0xff]  ;;  %v11528_v40 = vld [vmem:[%s18412_s9 + $0x128] sm:$0xff] }
0x1759   : > { %v4676_v17 = vmul.f32 %v14651_v59, %v4668_v52  ;;  %v11498_v52 = vld [vmem:[%s18408_s5 + $0x170] sm:$0xff] }
0x181a   : > { %v4975_v30 = vpop.f32.mrb[76].mxu0 }
0x181b   : > { %v4976_v49 = vadd.f32 %v4975_v30, %v4933_v10  ;;  %v12844_v24 = vpop.f32.mrb[77].mxu0 }
0x181c   : > { %v4978_v62 = vpop.f32.mrb[78].mxu0 }
0x181d   : > { %v4981_v45 = vmax.f32 %v4976_v49, 0.0  ;;  %v12845_v2 = vpop.f32.mrb[79].mxu0  ;;  %v11474_v62 = vld [vmem:[%s18408_s5 + $0xf0] sm:$0xff] }
0x181e   : > { %v11529_v2 = vld [vmem:[%s18412_s9 + $0x130] sm:$0xff] }
0x181f   : > { %v4989_v51 = vmul.f32 %v4987_v21, %v4981_v45  ;;  %v11490_v45 = vld [vmem:[%s18408_s5 + $0x130] sm:$0xff] }
0x1821   : > { %v4997_v13 = vadd.f32 %v4995_v16, %v4989_v51 }
0x1823   : > { %v16102_v22 = vmul.f32 %v14651_v59, %v4997_v13 }
0x1825   : > { %v4999_v28 = vadd.f32 %v16102_v22, %v4676_v17 }
0x1827   : > { %5002 = vrot.lane.b32.xlu0 %v4999_v28, %s18418_s2  ;;  %5000 = vrot.lane.b32.xlu1 %v4999_v28, %s18417_s30 }
0x182b   : > { %5012 = vperm.xlu0 %13825, %v11521_v53   ;;  %4440 = vperm.xlu1 %13826, %v11473_v26   ;;  %v11525_v53 = vld [vmem:[%s18413_s28 + $0x30] sm:$0xf] }
0x182f   : > { %5066 = vperm.xlu0 %13825, %v11523_v60   ;;  %4594 = vperm.xlu1 %13826, %v11489_v0  }
0x1833   : > { %5074 = vperm.xlu0 %13825, %v11524_v27   ;;  %4651 = vperm.xlu1 %13826, %v11497_v5  }
0x1899   : > { %v5003_v6 = vpop.permute.xlu0 %5002  ;;  %v5001_v50 = vpop.permute.xlu1 %5000 }
0x189a   : > { %v5004_v36 = vpack.c.bf16 %v4999_v28, %v5001_v50  ;;  %v5005_v37 = vpack.c.bf16 %v5003_v6, %v5003_v6 }
0x189c   : > { %12847 = vmatpush3.bf16.msra.mxu0 %v5004_v36  ;;  %v5019_v48 = vsel %vm2352_vm3, %v5005_v37, 0 }
0x189d   : > { %12848 = vmatprep.subr.bf16.mxu0 %v14313_v58 }
0x18a0   : > { %12849 = vmatpush3.bf16.msra.mxu0 %v5019_v48 }
0x18a1   : > { %12854 = vmatprep.subr.bf16.mxu0 %v14313_v58 }
0x18a3   : > { %12851 = vmatmul.mubr.msk.bf16.vlgmr.msra.gmra.mrb[80].mxu0 %vm2348_vm4, %v11520_v8 }
0x18a4   : > { %12858 = vmatprep.mubr.msk.bf16.mxu0 %vm14319_vm2, %v14313_v58 }
0x18aa   : > { %v4441_v54 = vpop.permute.xlu1 %4440  ;;  %v5013_v7 = vpop.permute.xlu0 %5012 }
0x18ab   : > { %v4539_v20 = vadd.f32 %v15984_v61, %v4441_v54 }
0x18ad   : > { %v4555_v55 = vmax.f32 %v4539_v20, 0.0 }
0x18ae   : > { %v4595_v63 = vpop.permute.xlu1 %4594  ;;  %v5067_v38 = vpop.permute.xlu0 %5066 }
0x18af   : > { %v4612_v14 = vmul.f32 %v4595_v63, %v4555_v55 }
0x18b2   : > { %v4652_v46 = vpop.permute.xlu1 %4651  ;;  %v5075_v21 = vpop.permute.xlu0 %5074 }
0x18b3   : > { %v4669_v12 = vadd.f32 %v4652_v46, %v4612_v14  ;;  %v11533_v46 = vld [vmem:[%s18412_s9 + $0x140] sm:$0xff]  ;;  %v11475_v14 = vld [vmem:[%s18408_s5 + $0xf8] sm:$0xff] }
0x18b5   : > { %v4677_v49 = vmul.f32 %v14651_v59, %v4669_v12  ;;  %v11491_v12 = vld [vmem:[%s18408_s5 + $0x138] sm:$0xff] }
0x1976   : > { %v5055_v29 = vpop.f32.mrb[80].mxu0 }
0x1977   : > { %v5056_v3 = vadd.f32 %v5055_v29, %v5013_v7  ;;  %v12852_v15 = vpop.f32.mrb[81].mxu0 }
0x1978   : > { %v5058_v9 = vpop.f32.mrb[82].mxu0 }
0x1979   : > { %v5061_v10 = vmax.f32 %v5056_v3, 0.0  ;;  %v12853_v11 = vpop.f32.mrb[83].mxu0  ;;  %v11531_v9 = vld [vmem:[%s18412_s9 + $0x138] sm:$0xff] }
0x197a   : > { %v11499_v11 = vld [vmem:[%s18408_s5 + $0x178] sm:$0xff] }
0x197b   : > { %v5069_v18 = vmul.f32 %v5067_v38, %v5061_v10  ;;  %v11534_v10 = vld [vmem:[%s18412_s9 + $0x148] sm:$0xff] }
0x197d   : > { %v5077_v30 = vadd.f32 %v5075_v21, %v5069_v18  ;;  %v11664_v18 = vld [vmem:[%s18416_s23 + $0xc8] sm:$0xff]  ;;  %v11663_v21 = vld [vmem:[%s18416_s23 + $0xc0] sm:$0xff] }
0x197f   : > { %v16137_v24 = vmul.f32 %v14651_v59, %v5077_v30  ;;  %v11666_v30 = vld [vmem:[%s18416_s23 + $0xd8] sm:$0xff] }
0x1981   : > { %v5079_v61 = vadd.f32 %v16137_v24, %v4677_v49  ;;  %v11665_v49 = vld [vmem:[%s18416_s23 + $0xd0] sm:$0xff] }
0x1983   : > { %5082 = vrot.lane.b32.xlu0 %v5079_v61, %s18418_s2  ;;  %5080 = vrot.lane.b32.xlu1 %v5079_v61, %s18417_s30 }
0x1987   : > { %5092 = vperm.xlu0 %13825, %v11526_v32   ;;  %4445 = vperm.xlu1 %13826, %v11474_v62   ;;  %v11671_v32 = vld [vmem:[%s18416_s23 + $0x100] sm:$0xff]  ;;  %v11680_v62 = vld [vmem:[%s18416_s23 + $0x148] sm:$0xff] }
0x198b   : > { %5146 = vperm.xlu0 %13825, %v11528_v40   ;;  %4599 = vperm.xlu1 %13826, %v11490_v45   ;;  %v11679_v40 = vld [vmem:[%s18416_s23 + $0x140] sm:$0xff]  ;;  %v11668_v45 = vld [vmem:[%s18416_s23 + $0xe8] sm:$0xff] }
0x198f   : > { %5154 = vperm.xlu0 %13825, %v11529_v2   ;;  %4656 = vperm.xlu1 %13826, %v11498_v52   ;;  %v11667_v2 = vld [vmem:[%s18416_s23 + $0xe0] sm:$0xff]  ;;  %v11674_v52 = vld [vmem:[%s18416_s23 + $0x118] sm:$0xff] }
0x19f5   : > { %v5083_v51 = vpop.permute.xlu0 %5082  ;;  %v5081_v16 = vpop.permute.xlu1 %5080 }
0x19f6   : > { %v5084_v13 = vpack.c.bf16 %v5079_v61, %v5081_v16  ;;  %v5085_v17 = vpack.c.bf16 %v5083_v51, %v5083_v51  ;;  %v11672_v61 = vld [vmem:[%s18416_s23 + $0x108] sm:$0xff]  ;;  %v11673_v51 = vld [vmem:[%s18416_s23 + $0x110] sm:$0xff]  ;;  %v11682_v16 = vld [vmem:[%s18416_s23 + $0x158] sm:$0xff] }
0x19f8   : > { %12855 = vmatpush3.bf16.msra.mxu0 %v5084_v13  ;;  %v5099_v28 = vsel %vm2352_vm3, %v5085_v17, 0  ;;  %v11681_v13 = vld [vmem:[%s18416_s23 + $0x150] sm:$0xff]  ;;  %v11670_v17 = vld [vmem:[%s18416_s23 + $0xf8] sm:$0xff] }
0x19f9   : > { %12856 = vmatprep.subr.bf16.mxu0 %v14313_v58 }
0x19fc   : > { %12857 = vmatpush3.bf16.msra.mxu0 %v5099_v28  ;;  %v11669_v28 = vld [vmem:[%s18416_s23 + $0xf0] sm:$0xff] }
0x19fd   : > { %12862 = vmatprep.subr.bf16.mxu0 %v14313_v58 }
0x19ff   : > { %12859 = vmatmul.mubr.msk.bf16.vlgmr.msra.gmra.mrb[84].mxu0 %vm2348_vm4, %v11525_v53  ;;  %v11676_v53 = vld [vmem:[%s18416_s23 + $0x128] sm:$0xff] }
0x1a00   : > { %12866 = vmatprep.mubr.msk.bf16.mxu0 %vm14319_vm2, %v14313_v58 }
0x1a06   : > { %v4446_v26 = vpop.permute.xlu1 %4445  ;;  %v5093_v60 = vpop.permute.xlu0 %5092 }
0x1a07   : > { %v4544_v0 = vadd.f32 %v15978_v23, %v4446_v26  ;;  %v11675_v26 = vld [vmem:[%s18416_s23 + $0x120] sm:$0xff] }
0x1a09   : > { %v4556_v5 = vmax.f32 %v4544_v0, 0.0  ;;  %v11683_v0 = vld [vmem:[%s18416_s23 + $0x160] sm:$0xff] }
0x1a0a   : > { %v4600_v27 = vpop.permute.xlu1 %4599  ;;  %v5147_v6 = vpop.permute.xlu0 %5146 }
0x1a0b   : > { %v4613_v54 = vmul.f32 %v4600_v27, %v4556_v5  ;;  %v11678_v27 = vld [vmem:[%s18416_s23 + $0x138] sm:$0xff]  ;;  %v11677_v5 = vld [vmem:[%s18416_s23 + $0x130] sm:$0xff] }
0x1a0e   : > { %v4657_v48 = vpop.permute.xlu1 %4656  ;;  %v5155_v38 = vpop.permute.xlu0 %5154 }
0x1a0f   : > { %v4670_v63 = vadd.f32 %v4657_v48, %v4613_v54 }
0x1a11   : > { %v4678_v3 = vmul.f32 %v14651_v59, %v4670_v63  ;;  %v13895_v63 = vld [vmem:[%s18414_s26 + $0x120] sm:$0xff]  }
0x1ad2   : > { %v5135_v50 = vpop.f32.mrb[84].mxu0 }
0x1ad3   : > { %v5136_v36 = vadd.f32 %v5135_v50, %v5093_v60  ;;  %v12860_v37 = vpop.f32.mrb[85].mxu0  ;;  %v11684_v60 = vld [vmem:[%s18416_s23 + $0x168] sm:$0xff]  ;;  %v11685_v50 = vld [vmem:[%s18416_s23 + $0x170] sm:$0xff] }
0x1ad4   : > { %v5138_v8 = vpop.f32.mrb[86].mxu0 }
0x1ad5   : > { %v5141_v7 = vmax.f32 %v5136_v36, 0.0  ;;  %v12861_v20 = vpop.f32.mrb[87].mxu0 }
0x1ad6   : > { %v11530_v20 = vld [vmem:[%s18413_s28 + $0x34] sm:$0xf] }
0x1ad7   : > { %v5149_v55 = vmul.f32 %v5147_v6, %v5141_v7  ;;  %v11686_v6 = vld [vmem:[%s18416_s23 + $0x178] sm:$0xff]  ;;  %v5258_v7 = vpack.c.bf16 %v16032_v42, %v16032_v42  ;;  %v13896_v42 = vld [vmem:[%s18414_s26 + $0x128] sm:$0xff]  }
0x1ad9   : > { %v5157_v29 = vadd.f32 %v5155_v38, %v5149_v55  ;;  %v5292_v55 = vsel %vm2352_vm3, %v5258_v7, 0  ;;  %v5248_v38 = vpack.c.bf16 %v15997_v43, %v15997_v43  ;;  %v5468_v43 = vpack.c.bf16 %v16067_v33, %v16067_v33  ;;  %v13900_v33 = vld [vmem:[%s18414_s26 + $0x108] sm:$0xff]  }
0x1adb   : > { %v16172_v15 = vmul.f32 %v14651_v59, %v5157_v29  ;;  %v13897_v29 = vld [vmem:[%s18414_s26 + $0x130] sm:$0xff]  }
0x1add   : > { %v16175_v23 = vadd.f32 %v16172_v15, %v4678_v3  ;;  %v5392_v3 = vsel %vm2352_vm3, %v5248_v38, 0 }
0x1adf   : > { %5162 = vrot.lane.b32.xlu0 %v16175_v23, %s18418_s2  ;;  %5160 = vrot.lane.b32.xlu1 %v16175_v23, %s18417_s30  ;;  %s14322_s30 = smov 124   ;;  %s14323_s2 = smov 4  }
0x1ae3   : > { %5226 = vperm.xlu0 %13825, %v11533_v46   ;;  %5172 = vperm.xlu1 %13826, %v11531_v9   ;;  %v13899_v46 = vld [vmem:[%s18414_s26 + $0x100] sm:$0xff]   ;;  %v13901_v9 = vld [vmem:[%s18414_s26 + $0x110] sm:$0xff]  }
0x1ae7   : > { %4450 = vperm.xlu0 %13825, %v11475_v14   ;;  %5234 = vperm.xlu1 %13826, %v11534_v10   ;;  %v5502_v14 = vsel %vm2352_vm3, %v5468_v43, 0  ;;  %v5586_v10 = vpack.c.bf16 %v16102_v22, %v16102_v22  ;;  %v13904_v22 = vld [vmem:[%s18414_s26 + $0x148] sm:$0xff]  }
0x1aeb   : > { %4661 = vperm.xlu0 %13825, %v11499_v11   ;;  %4604 = vperm.xlu1 %13826, %v11491_v12   ;;  %v13902_v11 = vld [vmem:[%s18414_s26 + $0x118] sm:$0xff]   ;;  %v13903_v12 = vld [vmem:[%s18414_s26 + $0x140] sm:$0xff]  }
0x1aef   : > { %6183 = vperm.xlu0 %13825, %v11664_v18   ;;  %6178 = vperm.xlu1 %13826, %v11663_v21   ;;  %v13905_v18 = vld [vmem:[%s18414_s26 + $0x150] sm:$0xff]   ;;  %v5620_v21 = vsel %vm2352_vm3, %v5586_v10, 0 }
0x1af3   : > { %6193 = vperm.xlu0 %13825, %v11666_v30   ;;  %6188 = vperm.xlu1 %13826, %v11665_v49   ;;  %v5704_v30 = vpack.c.bf16 %v16137_v24, %v16137_v24  ;;  %v13906_v49 = vld [vmem:[%s18414_s26 + $0x158] sm:$0xff]   ;;  %v13908_v24 = vld [vmem:[%s18414_s26 + $0x168] sm:$0xff]  }
0x1af7   : > { %6248 = vperm.xlu0 %13825, %v11672_v61   ;;  %6243 = vperm.xlu1 %13826, %v11671_v32   ;;  %v13907_v61 = vld [vmem:[%s18414_s26 + $0x160] sm:$0xff]   ;;  %v13909_v32 = vld [vmem:[%s18414_s26 + $0x170] sm:$0xff]  }
0x1afb   : > { %6305 = vperm.xlu0 %13825, %v11680_v62   ;;  %6300 = vperm.xlu1 %13826, %v11679_v40   ;;  %v5738_v62 = vsel %vm2352_vm3, %v5704_v30, 0  ;;  %v5822_v40 = vpack.c.bf16 %v16172_v15, %v16172_v15  ;;  %v13912_v15 = vld [vmem:[%s18414_s26 + $0x188] sm:$0xff]  }
0x1aff   : > { %6203 = vperm.xlu0 %13825, %v11668_v45   ;;  %6198 = vperm.xlu1 %13826, %v11667_v2   ;;  %v13910_v45 = vld [vmem:[%s18414_s26 + $0x178] sm:$0xff]   ;;  %v13911_v2 = vld [vmem:[%s18414_s26 + $0x180] sm:$0xff]  }
0x1b03   : > { %6258 = vperm.xlu0 %13825, %v11674_v52   ;;  %6253 = vperm.xlu1 %13826, %v11673_v51   ;;  %v13913_v52 = vld [vmem:[%s18414_s26 + $0x190] sm:$0xff]   ;;  %v5856_v51 = vsel %vm2352_vm3, %v5822_v40, 0 }
0x1b07   : > { %6315 = vperm.xlu0 %13825, %v11682_v16   ;;  %6310 = vperm.xlu1 %13826, %v11681_v13   ;;  %v13914_v16 = vld [vmem:[%s18414_s26 + $0x198] sm:$0xff]   ;;  %v13915_v13 = vld [vmem:[%s18414_s26 + $0x1a0] sm:$0xff]  }
0x1b0b   : > { %6213 = vperm.xlu0 %13825, %v11670_v17   ;;  %6208 = vperm.xlu1 %13826, %v11669_v28   ;;  %v13916_v17 = vld [vmem:[%s18414_s26 + $0x1a8] sm:$0xff]   ;;  %v13917_v28 = vld [vmem:[%s18414_s26 + $0x1b0] sm:$0xff]  }
0x1b0f   : > { %6268 = vperm.xlu0 %13825, %v11676_v53   ;;  %6263 = vperm.xlu1 %13826, %v11675_v26   ;;  %v13918_v53 = vld [vmem:[%s18414_s26 + $0x1b8] sm:$0xff]   ;;  %v13919_v26 = vld [vmem:[%s18414_s26 + $0x1c0] sm:$0xff]  }
0x1b13   : > { %6325 = vperm.xlu0 %13825, %v11684_v60   ;;  %6320 = vperm.xlu1 %13826, %v11683_v0  }
0x1b17   : > { %6278 = vperm.xlu0 %13825, %v11678_v27   ;;  %6273 = vperm.xlu1 %13826, %v11677_v5  }
0x1b1b   : > { %6335 = vperm.xlu0 %13825, %v11686_v6   ;;  %6330 = vperm.xlu1 %13826, %v11685_v50  }
0x1b51   : > { %v5163_v36 = vpop.permute.xlu0 %5162  ;;  %v5161_v37 = vpop.permute.xlu1 %5160 }
0x1b52   : > { %v5164_v48 = vpack.c.bf16 %v16175_v23, %v5161_v37  ;;  %v5165_v8 = vpack.c.bf16 %v5163_v36, %v5163_v36  ;;  %v13898_v23 = vld [vmem:[%s18414_s26 + $0x138] sm:$0xff]  }
0x1b54   : > { %12863 = vmatpush3.bf16.msra.mxu0 %v5164_v48  ;;  %v5179_v54 = vsel %vm2352_vm3, %v5165_v8, 0 }
0x1b55   : > { %12864 = vmatprep.subr.bf16.mxu0 %v14313_v58 }
0x1b58   : > { %12865 = vmatpush3.bf16.msra.mxu0 %v5179_v54 }
0x1b59   : > { %13586 = vmatprep.subr.msk.bf16.mxu0 %vm2352_vm3, %v5258_v7 }
0x1b5b   : > { %12867 = vmatmul.mubr.msk.bf16.vlgmr.msra.gmra.mrb[88].mxu0 %vm2348_vm4, %v11530_v20 }
0x1b5c   : > { %12871 = vmatpush3.bf16.msra.mxu0 %v5292_v55  ;;  %12872 = vmatprep.mubr.msk.bf16.mxu0 %vm2933_vm5, %v13895_v63 }
0x1b5d   : > { %13587 = vmatprep.subr.msk.bf16.mxu0 %vm2352_vm3, %v5248_v38 }
0x1b62   : > { %v5227_v60 = vpop.permute.xlu0 %5226  ;;  %v5173_v0 = vpop.permute.xlu1 %5172 }
0x1b63   : > { %12873 = vmatmul.mubr.msk.bf16.vlgmr.msra.gmra.mrb[92].mxu0 %vm2933_vm5, %v13896_v42 }
0x1b64   : > { %12881 = vmatpush3.bf16.msra.mxu0 %v5392_v3  ;;  %12876 = vmatprep.mubr.msk.bf16.mxu0 %vm2933_vm5, %v13897_v29 }
0x1b65   : > { %13588 = vmatprep.subr.msk.bf16.mxu0 %vm2352_vm3, %v5468_v43 }
0x1b66   : > { %v4451_v27 = vpop.permute.xlu0 %4450  ;;  %v5235_v5 = vpop.permute.xlu1 %5234 }
0x1b67   : > { %v4547_v6 = vadd.f32 %v15982_v31, %v4451_v27 }
0x1b69   : > { %v4557_v50 = vmax.f32 %v4547_v6, 0.0 }
0x1b6a   : > { %v4605_v36 = vpop.permute.xlu1 %4604  ;;  %v4662_v55 = vpop.permute.xlu0 %4661 }
0x1b6b   : > { %12877 = vmatmul.mubr.msk.bf16.gmra.mrb[96].mxu0 %vm2933_vm5, %v13898_v23  ;;  %v4614_v48 = vmul.f32 %v4605_v36, %v4557_v50 }
0x1b6c   : > { %12882 = vmatprep.mubr.msk.bf16.mxu0 %vm2933_vm5, %v13899_v46 }
0x1b6d   : > { %v4671_v38 = vadd.f32 %v4662_v55, %v4614_v48 }
0x1b6f   : > { %v4679_v3 = vmul.f32 %v14651_v59, %v4671_v38 }
0x1b71   : > { %v6058_v46 = vpack.c.bf16 %v4679_v3, %v4679_v3 }
0x1b73   : > { %12883 = vmatmul.mubr.msk.bf16.vlgmr.msra.gmra.mrb[92].mxu0 %vm2933_vm5, %v13900_v33  ;;  %v13920_v33 = vld [vmem:[%s18414_s26 + $0x1c8] sm:$0xff]  }
0x1b74   : > { %12891 = vmatpush3.bf16.msra.mxu0 %v5502_v14  ;;  %12886 = vmatprep.mubr.msk.bf16.mxu0 %vm2933_vm5, %v13901_v9  ;;  %v13921_v9 = vld [vmem:[%s18414_s26 + $0x1d0] sm:$0xff]   ;;  %v6092_v14 = vsel %vm2352_vm3, %v6058_v46, 0 }
0x1b75   : > { %13589 = vmatprep.subr.msk.bf16.mxu0 %vm2352_vm3, %v5586_v10  ;;  %v13922_v10 = vld [vmem:[%s18414_s26 + $0x1d8] sm:$0xff]  }
0x1b7b   : > { %12887 = vmatmul.mubr.msk.bf16.gmra.mrb[96].mxu0 %vm2933_vm5, %v13902_v11  ;;  %v13923_v11 = vld [vmem:[%s18414_s26 + $0x1e0] sm:$0xff]  }
0x1b7c   : > { %12892 = vmatprep.mubr.msk.bf16.mxu0 %vm2933_vm5, %v13903_v12  ;;  %v13924_v12 = vld [vmem:[%s18414_s26 + $0x1e8] sm:$0xff]  }
0x1b83   : > { %12893 = vmatmul.mubr.msk.bf16.vlgmr.msra.gmra.mrb[92].mxu0 %vm2933_vm5, %v13904_v22  ;;  %v13925_v22 = vld [vmem:[%s18414_s26 + $0x1f0] sm:$0xff]  }
0x1b84   : > { %12901 = vmatpush3.bf16.msra.mxu0 %v5620_v21  ;;  %12896 = vmatprep.mubr.msk.bf16.mxu0 %vm2933_vm5, %v13905_v18  ;;  %v13926_v18 = vld [vmem:[%s18414_s26 + $0x1f8] sm:$0xff]   ;;  %v6179_v21 = vpop.permute.xlu1 %6178 }
0x1b85   : > { %13590 = vmatprep.subr.msk.bf16.mxu0 %vm2352_vm3, %v5704_v30  ;;  %v6184_v30 = vpop.permute.xlu0 %6183 }
0x1b8b   : > { %12897 = vmatmul.mubr.msk.bf16.gmra.mrb[96].mxu0 %vm2933_vm5, %v13906_v49  ;;  %v6189_v49 = vpop.permute.xlu1 %6188 }
0x1b8c   : > { %12902 = vmatprep.mubr.msk.bf16.mxu0 %vm2933_vm5, %v13907_v61  ;;  %v6194_v61 = vpop.permute.xlu0 %6193 }
0x1b93   : > { %12903 = vmatmul.mubr.msk.bf16.vlgmr.msra.gmra.mrb[92].mxu0 %vm2933_vm5, %v13908_v24  ;;  %v6244_v24 = vpop.permute.xlu1 %6243 }
0x1b94   : > { %12911 = vmatpush3.bf16.msra.mxu0 %v5738_v62  ;;  %12906 = vmatprep.mubr.msk.bf16.mxu0 %vm2933_vm5, %v13909_v32  ;;  %v6249_v32 = vpop.permute.xlu0 %6248 }
0x1b95   : > { %13591 = vmatprep.subr.msk.bf16.mxu0 %vm2352_vm3, %v5822_v40 }
0x1b97   : > { %v6301_v62 = vpop.permute.xlu1 %6300 }
0x1b98   : > { %v6306_v40 = vpop.permute.xlu0 %6305 }
0x1b9b   : > { %12907 = vmatmul.mubr.msk.bf16.gmra.mrb[96].mxu0 %vm2933_vm5, %v13910_v45  ;;  %v6199_v45 = vpop.permute.xlu1 %6198 }
0x1b9c   : > { %12912 = vmatprep.mubr.msk.bf16.mxu0 %vm2933_vm5, %v13911_v2  ;;  %v6204_v2 = vpop.permute.xlu0 %6203 }
0x1ba3   : > { %12913 = vmatmul.mubr.msk.bf16.vlgmr.msra.gmra.mrb[92].mxu0 %vm2933_vm5, %v13912_v15  ;;  %v6254_v15 = vpop.permute.xlu1 %6253 }
0x1ba4   : > { %12921 = vmatpush3.bf16.msra.mxu0 %v5856_v51  ;;  %12916 = vmatprep.mubr.msk.bf16.mxu0 %vm2933_vm5, %v13913_v52  ;;  %v6259_v52 = vpop.permute.xlu0 %6258 }
0x1ba7   : > { %v6311_v51 = vpop.permute.xlu1 %6310 }
0x1bab   : > { %12917 = vmatmul.mubr.msk.bf16.gmra.mrb[96].mxu0 %vm2933_vm5, %v13914_v16  ;;  %v6316_v16 = vpop.permute.xlu0 %6315 }
0x1bac   : > { %12922 = vmatprep.mubr.msk.bf16.mxu0 %vm2933_vm5, %v13915_v13  ;;  %v6209_v13 = vpop.permute.xlu1 %6208 }
0x1bb3   : > { %12923 = vmatmul.mubr.msk.bf16.vlgmr.msra.gmra.mrb[92].mxu0 %vm2933_vm5, %v13916_v17  ;;  %v6214_v17 = vpop.permute.xlu0 %6213 }
0x1bb4   : > { %12926 = vmatprep.mubr.msk.bf16.mxu0 %vm2933_vm5, %v13917_v28  ;;  %v6264_v28 = vpop.permute.xlu1 %6263 }
0x1bbb   : > { %12927 = vmatmul.mubr.msk.bf16.gmra.mrb[96].mxu0 %vm2933_vm5, %v13918_v53 }
0x1bbc   : > { %12932 = vmatprep.mubr.msk.bf16.mxu0 %vm2933_vm5, %v13919_v26 }
0x1c2e   : > { %v5215_v37 = vpop.f32.mrb[88].mxu0 }
0x1c2f   : > { %v5216_v8 = vadd.f32 %v5215_v37, %v5173_v0  ;;  %v12868_v54 = vpop.f32.mrb[89].mxu0  ;;  %v6269_v0 = vpop.permute.xlu0 %6268 }
0x1c30   : > { %v5218_v7 = vpop.f32.mrb[90].mxu0 }
0x1c31   : > { %v5221_v20 = vmax.f32 %v5216_v8, 0.0  ;;  %v12869_v63 = vpop.f32.mrb[91].mxu0  ;;  %v6321_v8 = vpop.permute.xlu1 %6320 }
0x1c33   : > { %v5229_v42 = vmul.f32 %v5227_v60, %v5221_v20  ;;  %v6326_v38 = vpop.permute.xlu0 %6325 }
0x1c35   : > { %v5237_v29 = vadd.f32 %v5235_v5, %v5229_v42 }
0x1c37   : > { %v5238_v43 = vmul.f32 %v14651_v59, %v5237_v29 }
0x1c39   : > { %v5940_v23 = vpack.c.bf16 %v5238_v43, %v5238_v43 }
0x1c3b   : > { %13592 = vmatprep.subr.msk.bf16.mxu0 %vm2352_vm3, %v5940_v23  ;;  %v5974_v31 = vsel %vm2352_vm3, %v5940_v23, 0 }
0x1c3c   : > { %12931 = vmatpush3.bf16.msra.mxu0 %v5974_v31 }
0x1c3d   : > { %13593 = vmatprep.subr.msk.bf16.mxu0 %vm2352_vm3, %v6058_v46 }
0x1c3f   : > { %12933 = vmatmul.mubr.msk.bf16.vlgmr.msra.gmra.mrb[92].mxu0 %vm2933_vm5, %v13920_v33 }
0x1c40   : > { %12941 = vmatpush3.bf16.msra.mxu0 %v6092_v14  ;;  %12936 = vmatprep.mubr.msk.bf16.mxu0 %vm2933_vm5, %v13921_v9 }
0x1c47   : > { %12937 = vmatmul.mubr.msk.bf16.gmra.mrb[96].mxu0 %vm2933_vm5, %v13922_v10 }
0x1c48   : > { %12942 = vmatprep.mubr.msk.bf16.mxu0 %vm2933_vm5, %v13923_v11  ;;  %v6274_v11 = vpop.permute.xlu1 %6273 }
0x1c4f   : > { %12943 = vmatmul.mubr.msk.bf16.vlgmr.msra.gmra.mrb[92].mxu0 %vm2933_vm5, %v13924_v12 }
0x1c50   : > { %12946 = vmatprep.mubr.msk.bf16.mxu0 %vm2933_vm5, %v13925_v22 }
0x1c57   : > { %12947 = vmatmul.mubr.msk.bf16.gmra.mrb[96].mxu0 %vm2933_vm5, %v13926_v18 }
0x1d22   : > { %v12944_v53 = vpop.f32.mrb[92].mxu0 }
0x1d23   : > { %v6218_v26 = vadd.f32 %v12944_v53, %v6189_v49  ;;  %v6128_v60 = vpop.f32.mrb[93].mxu0 }
0x1d24   : > { %v6216_v27 = vadd.f32 %v6179_v21, %v6128_v60  ;;  %v12945_v5 = vpop.f32.mrb[94].mxu0 }
0x1d25   : > { %v6226_v6 = vmax.f32 %v6218_v26, 0.0  ;;  %v6219_v50 = vadd.f32 %v12945_v5, %v6194_v61  ;;  %v6131_v36 = vpop.f32.mrb[95].mxu0  ;;  %v11687_v5 = vld [vmem:[%s18325_s10 + $0x20] sm:$0xff] }
0x1d26   : > { %v6224_v37 = vmax.f32 %v6216_v27, 0.0  ;;  %v6217_v48 = vadd.f32 %v6184_v30, %v6131_v36  ;;  %12966 = vmatprep.mubr.msk.f32.mxu1 %vm2127_vm1, %v11687_v5 }
0x1d27   : > { %v6283_v54 = vmul.f32 %v6254_v15, %v6226_v6  ;;  %v6227_v7 = vmax.f32 %v6219_v50, 0.0 }
0x1d28   : > { %v6281_v20 = vmul.f32 %v6244_v24, %v6224_v37  ;;  %v6225_v63 = vmax.f32 %v6217_v48, 0.0 }
0x1d29   : > { %v6340_v55 = vadd.f32 %v6311_v51, %v6283_v54  ;;  %v6284_v43 = vmul.f32 %v6259_v52, %v6227_v7  ;;  %v6331_v51 = vpop.permute.xlu1 %6330 }
0x1d2a   : > { %v6338_v42 = vadd.f32 %v6301_v62, %v6281_v20  ;;  %v6282_v29 = vmul.f32 %v6249_v32, %v6225_v63  ;;  %v12948_v3 = vpop.f32.mrb[96].mxu0  ;;  %v6279_v32 = vpop.permute.xlu0 %6278 }
0x1d2b   : > { %v6222_v23 = vadd.f32 %v12948_v3, %v6209_v13  ;;  %v6144_v46 = vpop.f32.mrb[97].mxu0  ;;  %v16438_v31 = vmul.f32 %v14651_v59, %v6340_v55  ;;  %v6341_v61 = vadd.f32 %v6316_v16, %v6284_v43 }
0x1d2c   : > { %v6339_v33 = vadd.f32 %v6306_v40, %v6282_v29  ;;  %v6220_v9 = vadd.f32 %v6199_v45, %v6144_v46  ;;  %v12949_v14 = vpop.f32.mrb[98].mxu0  ;;  %v16441_v10 = vmul.f32 %v14651_v59, %v6338_v42 }
0x1d2d   : > { %v6230_v12 = vmax.f32 %v6222_v23, 0.0  ;;  %v6223_v22 = vadd.f32 %v12949_v14, %v6214_v17  ;;  %v6147_v18 = vpop.f32.mrb[99].mxu0  ;;  %6358 = vadd.xlane.f32.xlu0 %v16438_v31  ;;  %v16450_v17 = vmul.f32 %v14651_v59, %v6341_v61  ;;  %v11688_v14 = vld [vmem:[%s18325_s10 + $0x28] sm:$0xff] }
0x1d2e   : > { %v6228_v21 = vmax.f32 %v6220_v9, 0.0  ;;  %v6221_v30 = vadd.f32 %v6204_v2, %v6147_v18  ;;  %6354 = vadd.xlane.f32.xlu1 %v16441_v10  ;;  %v16446_v49 = vmul.f32 %v14651_v59, %v6339_v33  ;;  %v6336_v16 = vpop.permute.xlu0 %6335  ;;  %v11692_v18 = vld [vmem:[%s18326_s11 + $0x28] sm:$0xff] }
0x1d2f   : > { %v6231_v24 = vmax.f32 %v6223_v22, 0.0  ;;  %v6287_v62 = vmul.f32 %v6274_v11, %v6230_v12  ;;  %v11689_v11 = vld [vmem:[%s18325_s10 + $0x30] sm:$0xff]  ;;  %v11690_v12 = vld [vmem:[%s18325_s10 + $0x38] sm:$0xff]  ;;  %v11699_v22 = vld [vmem:[%s18327_s12 + $0x40] sm:$0xff] }
0x1d30   : > { %v6285_v40 = vmul.f32 %v6264_v28, %v6228_v21  ;;  %v6229_v45 = vmax.f32 %v6221_v30, 0.0  ;;  %v11691_v21 = vld [vmem:[%s18326_s11 + $0x20] sm:$0xff] }
0x1d31   : > { %6356 = vadd.xlane.f32.xlu0 %v16446_v49  ;;  %v6288_v13 = vmul.f32 %v6279_v32, %v6231_v24  ;;  %v6344_v2 = vadd.f32 %v6331_v51, %v6287_v62  ;;  %v11694_v62 = vld [vmem:[%s18326_s11 + $0x38] sm:$0xff] }
0x1d32   : > { %v6342_v15 = vadd.f32 %v6321_v8, %v6285_v40  ;;  %v6286_v52 = vmul.f32 %v6269_v0, %v6229_v45  ;;  %v11693_v45 = vld [vmem:[%s18326_s11 + $0x30] sm:$0xff] }
0x1d33   : > { %v6345_v60 = vadd.f32 %v6336_v16, %v6288_v13  ;;  %v16461_v0 = vmul.f32 %v14651_v59, %v6344_v2 }
0x1d34   : > { %v6343_v53 = vadd.f32 %v6326_v38, %v6286_v52  ;;  %v16453_v26 = vmul.f32 %v14651_v59, %v6342_v15 }
0x1d35   : > { %6360 = vadd.xlane.f32.xlu0 %v16450_v17  ;;  %v16466_v27 = vmul.f32 %v14651_v59, %v6345_v60 }
0x1d36   : > { %6362 = vadd.xlane.f32.xlu1 %v16453_v26  ;;  %v16458_v28 = vmul.f32 %v14651_v59, %v6343_v53 }
0x1d39   : > { %6364 = vadd.xlane.f32.xlu0 %v16458_v28 }
0x1d3a   : > { %6366 = vadd.xlane.f32.xlu1 %v16461_v0 }
0x1d3d   : > { %6368 = vadd.xlane.f32.xlu0 %v16466_v27 }
0x1dba   : > { %v6359_v6 = vpop.xlane.xlu0 %6358 }
0x1dbb   : > { %v6355_v50 = vpop.xlane.xlu1 %6354  ;;  %v6372_v7 = vmul.f32 0.0625, %v6359_v6  ;;  %v11700_v6 = vld [vmem:[%s18327_s12 + $0x48] sm:$0xff] }
0x1dbc   : > { %v6370_v37 = vmul.f32 0.0625, %v6355_v50  ;;  %v11701_v50 = vld [vmem:[%s18327_s12 + $0x50] sm:$0xff] }
0x1dbe   : > { %v6357_v36 = vpop.xlane.xlu0 %6356 }
0x1dbf   : > { %v6371_v48 = vmul.f32 0.0625, %v6357_v36  ;;  %v11702_v36 = vld [vmem:[%s18327_s12 + $0x58] sm:$0xff] }
0x1dc1   : > { %v13322_v8 = vpack.c.bf16 %v6371_v48, %v6370_v37  ;;  %v11703_v37 = vld [vmem:[%s18327_s12 + $0x60] sm:$0xff]  ;;  %v11704_v48 = vld [vmem:[%s18327_s12 + $0x68] sm:$0xff] }
0x1dc2   : > { %v6361_v54 = vpop.xlane.xlu0 %6360 }
0x1dc3   : > { %v6373_v20 = vmul.f32 0.0625, %v6361_v54  ;;  %13323 = vmatprep.subr.bf16.mxu1 %v13322_v8  ;;  %v6363_v63 = vpop.xlane.xlu1 %6362  ;;  %v11706_v54 = vld [vmem:[%s18327_s12 + $0x78] sm:$0xff] }
0x1dc4   : > { %13325 = vmatpush3.bf16.msra.mxu1 %v13322_v8  ;;  %v6374_v42 = vmul.f32 0.0625, %v6363_v63  ;;  %v11705_v8 = vld [vmem:[%s18327_s12 + $0x70] sm:$0xff] }
0x1dc5   : > { %v13326_v55 = vpack.c.bf16 %v6373_v20, %v6372_v7  ;;  %v11708_v7 = vld [vmem:[%s18328_s13 + $0x48] sm:$0xff]  ;;  %v11707_v20 = vld [vmem:[%s18328_s13 + $0x40] sm:$0xff] }
0x1dc6   : > { %v6365_v38 = vpop.xlane.xlu0 %6364 }
0x1dc7   : > { %v6375_v29 = vmul.f32 0.0625, %v6365_v38  ;;  %13327 = vmatprep.subr.bf16.mxu1 %v13326_v55  ;;  %v6367_v3 = vpop.xlane.xlu1 %6366 }
0x1dc8   : > { %13329 = vmatpush3.bf16.msra.mxu1 %v13326_v55  ;;  %v6376_v46 = vmul.f32 0.0625, %v6367_v3 }
0x1dc9   : > { %v13330_v43 = vpack.c.bf16 %v6375_v29, %v6374_v42  ;;  %v11710_v29 = vld [vmem:[%s18328_s13 + $0x58] sm:$0xff] }
0x1dca   : > { %v6369_v23 = vpop.xlane.xlu0 %6368 }
0x1dcb   : > { %v6377_v33 = vmul.f32 0.0625, %v6369_v23  ;;  %13331 = vmatprep.subr.bf16.mxu1 %v13330_v43 }
0x1dcc   : > { %13333 = vmatpush3.bf16.msra.mxu1 %v13330_v43  ;;  %v11709_v43 = vld [vmem:[%s18328_s13 + $0x50] sm:$0xff] }
0x1dcd   : > { %v13334_v9 = vpack.c.bf16 %v6377_v33, %v6376_v46 }
0x1dcf   : > { %13335 = vmatprep.subr.bf16.mxu1 %v13334_v9 }
0x1dd0   : > { %13337 = vmatpush3.bf16.msra.mxu1 %v13334_v9 }
0x1dd3   : > { %12967 = vmatmul.mubr.msk.f32.vlgmr.msra.gmra.mrb[40].mxu1 %vm2127_vm1, %v11688_v14 }
0x1dd4   : > { %12969 = vmatprep.mubr.msk.f32.mxu1 %vm2127_vm1, %v11689_v11  ;;  %v11712_v11 = vld [vmem:[%s18328_s13 + $0x68] sm:$0xff] }
0x1dd7   : > { %12970 = vmatmul.mubr.msk.f32.gmra.mrb[42].mxu1 %vm2127_vm1, %v11690_v12 }
0x1dd8   : > { %12980 = vmatprep.mubr.msk.f32.mxu1 %vm4157_vm6, %v11699_v22  ;;  %v11711_v22 = vld [vmem:[%s18328_s13 + $0x60] sm:$0xff] }
0x1ea6   : > { %v12968_v30 = vpop.f32.mrb[40].mxu1 }
0x1ea7   : > { %v6472_v61 = vadd.f32 %v12968_v30, %v11692_v18  ;;  %v6466_v24 = vpop.f32.mrb[41].mxu1 }
0x1ea8   : > { %v6467_v32 = vadd.f32 %v11691_v21, %v6466_v24 }
0x1ea9   : > { %v6486_v40 = vmax.f32 %v6472_v61, 0.0 }
0x1eaa   : > { %v6485_v15 = vmax.f32 %v6467_v32, 0.0  ;;  %v12971_v52 = vpop.f32.mrb[42].mxu1  ;;  %v11714_v32 = vld [vmem:[%s18328_s13 + $0x78] sm:$0xff] }
0x1eab   : > { %v6482_v51 = vadd.f32 %v12971_v52, %v11694_v62  ;;  %v6476_v13 = vpop.f32.mrb[43].mxu1 }
0x1eac   : > { %v13338_v2 = vpack.c.bf16 %v6486_v40, %v6485_v15  ;;  %v6477_v53 = vadd.f32 %v11693_v45, %v6476_v13  ;;  %v11713_v40 = vld [vmem:[%s18328_s13 + $0x70] sm:$0xff] }
0x1ead   : > { %v6488_v16 = vmax.f32 %v6482_v51, 0.0 }
0x1eae   : > { %v6487_v60 = vmax.f32 %v6477_v53, 0.0  ;;  %13339 = vmatprep.subr.bf16.mxu1 %v13338_v2 }
0x1eaf   : > { %13341 = vmatpush3.bf16.msra.mxu1 %v13338_v2 }
0x1eb0   : > { %v13342_v5 = vpack.c.bf16 %v6488_v16, %v6487_v60 }
0x1eb2   : > { %13343 = vmatprep.subr.bf16.mxu1 %v13342_v5 }
0x1eb3   : > { %13345 = vmatpush3.bf16.msra.mxu1 %v13342_v5 }
0x1eb6   : > { %12981 = vmatmul.mubr.msk.f32.vlgmr.msra.gmra.mrb[44].mxu1 %vm4157_vm6, %v11700_v6 }
0x1eb7   : > { %12983 = vmatprep.mubr.msk.f32.mxu1 %vm4157_vm6, %v11701_v50 }
0x1eba   : > { %12984 = vmatmul.mubr.msk.f32.gmra.mrb[46].mxu1 %vm4157_vm6, %v11702_v36 }
0x1ebb   : > { %12986 = vmatprep.mubr.msk.f32.mxu1 %vm4157_vm6, %v11703_v37 }
0x1ebe   : > { %12987 = vmatmul.mubr.msk.f32.gmra.mrb[48].mxu1 %vm4157_vm6, %v11704_v48 }
0x1ebf   : > { %12989 = vmatprep.mubr.msk.f32.mxu1 %vm4157_vm6, %v11705_v8 }
0x1ec2   : > { %12990 = vmatmul.mubr.msk.f32.gmra.mrb[50].mxu1 %vm4157_vm6, %v11706_v54 }
0x1f89   : > { %v12982_v63 = vpop.f32.mrb[44].mxu1 }
0x1f8a   : > { %v6603_v55 = vadd.f32 %v12982_v63, %v11708_v7  ;;  %v6597_v38 = vpop.f32.mrb[45].mxu1 }
0x1f8b   : > { %v6598_v42 = vadd.f32 %v11707_v20, %v6597_v38 }
0x1f8c   : > { %v11724_v3 = vmul.f32 -1.442695, %v6603_v55 }
0x1f8d   : > { %v11723_v23 = vmul.f32 -1.442695, %v6598_v42  ;;  %v12985_v46 = vpop.f32.mrb[46].mxu1 }
0x1f8e   : > { %14061 = vpow2.f32 %v11724_v3  ;;  %v6613_v33 = vadd.f32 %v12985_v46, %v11710_v29  ;;  %v6607_v9 = vpop.f32.mrb[47].mxu1 }
0x1f8f   : > { %14063 = vpow2.f32 %v11723_v23  ;;  %v6608_v14 = vadd.f32 %v11709_v43, %v6607_v9 }
0x1f90   : > { %v11726_v12 = vmul.f32 -1.442695, %v6613_v33 }
0x1f91   : > { %v11725_v18 = vmul.f32 -1.442695, %v6608_v14  ;;  %v12988_v21 = vpop.f32.mrb[48].mxu1  ;;  %v11755_v14 = vld [vmem:[%s18408_s5 + $0x1c0] sm:$0xff] }
0x1f92   : > { %14065 = vpow2.f32 %v11726_v12  ;;  %v6623_v30 = vadd.f32 %v12988_v21, %v11712_v11  ;;  %v6617_v61 = vpop.f32.mrb[49].mxu1  ;;  %v11739_v12 = vld [vmem:[%s18408_s5 + $0x180] sm:$0xff] }
0x1f93   : > { %14067 = vpow2.f32 %v11725_v18  ;;  %v6618_v24 = vadd.f32 %v11711_v22, %v6617_v61  ;;  %v11763_v22 = vld [vmem:[%s18408_s5 + $0x200] sm:$0xff] }
0x1f94   : > { %v11728_v62 = vmul.f32 -1.442695, %v6623_v30  ;;  %v13927_v18 = vld [vmem:[%s18409_s0 + $0x40] sm:$0xff]  }
0x1f95   : > { %v11727_v45 = vmul.f32 -1.442695, %v6618_v24  ;;  %v12991_v15 = vpop.f32.mrb[50].mxu1  ;;  %13000 = vmatprep.mubr.msk.bf16.mxu1 %vm2127_vm1, %v13927_v18 }
0x1f96   : > { %14069 = vpow2.f32 %v11728_v62  ;;  %v6633_v52 = vadd.f32 %v12991_v15, %v11714_v32  ;;  %v6627_v51 = vpop.f32.mrb[51].mxu1 }
0x1f97   : > { %14071 = vpow2.f32 %v11727_v45  ;;  %v6628_v13 = vadd.f32 %v11713_v40, %v6627_v51 }
0x1f98   : > { %v14062_v2 = vpop.eup %14061  ;;  %v11730_v53 = vmul.f32 -1.442695, %v6633_v52 }
0x1f99   : > { %v14064_v16 = vpop.eup %14063  ;;  %v6661_v60 = vadd.f32 1.0, %v14062_v2  ;;  %v11729_v5 = vmul.f32 -1.442695, %v6628_v13 }
0x1f9a   : > { %v6660_v6 = vadd.f32 1.0, %v14064_v16  ;;  %14073 = vpow2.f32 %v11730_v53 }
0x1f9b   : > { %14075 = vrcp.f32 %v6661_v60 }
0x1f9c   : > { %v14066_v50 = vpop.eup %14065  ;;  %14077 = vrcp.f32 %v6660_v6 }
0x1f9d   : > { %v14068_v36 = vpop.eup %14067  ;;  %v6663_v37 = vadd.f32 1.0, %v14066_v50  ;;  %14079 = vpow2.f32 %v11729_v5 }
0x1f9e   : > { %v6662_v8 = vadd.f32 1.0, %v14068_v36 }
0x1f9f   : > { %14081 = vrcp.f32 %v6663_v37 }
0x1fa0   : > { %v14070_v48 = vpop.eup %14069 }
0x1fa1   : > { %v14072_v54 = vpop.eup %14071  ;;  %v6665_v7 = vadd.f32 1.0, %v14070_v48 }
0x1fa2   : > { %v6664_v20 = vadd.f32 1.0, %v14072_v54 }
0x1fa3   : > { %14083 = vrcp.f32 %v6665_v7 }
0x1fa4   : > { %v14074_v63 = vpop.eup %14073  ;;  %14085 = vrcp.f32 %v6662_v8 }
0x1fa5   : > { %v14076_v55 = vpop.eup %14075  ;;  %v6667_v38 = vadd.f32 1.0, %v14074_v63  ;;  %14087 = vrcp.f32 %v6664_v20 }
0x1fa6   : > { %v14078_v42 = vpop.eup %14077  ;;  %6691 = vperm.xlu0 %13825, %v14076_v55   ;;  %v11772_v55 = vld [vmem:[%s18412_s9 + $0x150] sm:$0xff] }
0x1fa7   : > { %v14080_v29 = vpop.eup %14079  ;;  %14089 = vrcp.f32 %v6667_v38  ;;  %6686 = vperm.xlu1 %13826, %v14078_v42   ;;  %v11740_v38 = vld [vmem:[%s18408_s5 + $0x188] sm:$0xff]  ;;  %v11774_v42 = vld [vmem:[%s18412_s9 + $0x158] sm:$0xff] }
0x1fa8   : > { %v6666_v3 = vadd.f32 1.0, %v14080_v29  ;;  %v11756_v29 = vld [vmem:[%s18408_s5 + $0x1c8] sm:$0xff] }
0x1fa9   : > { %v14082_v43 = vpop.eup %14081 }
0x1faa   : > { %14091 = vrcp.f32 %v6666_v3  ;;  %v11775_v3 = vld [vmem:[%s18412_s9 + $0x160] sm:$0xff] }
0x1fab   : > { %6701 = vperm.xlu1 %13826, %v14082_v43   ;;  %v11764_v43 = vld [vmem:[%s18408_s5 + $0x208] sm:$0xff] }
0x1fad   : > { %v14084_v23 = vpop.eup %14083 }
0x1fae   : > { %v14086_v46 = vpop.eup %14085  ;;  %6711 = vperm.xlu0 %13825, %v14084_v23  }
0x1faf   : > { %6696 = vperm.xlu1 %13826, %v14086_v46   ;;  %v14088_v33 = vpop.eup %14087 }
0x1fb1   : > { %v14090_v9 = vpop.eup %14089 }
0x1fb2   : > { %6721 = vperm.xlu0 %13825, %v14090_v9  }
0x1fb3   : > { %6706 = vperm.xlu1 %13826, %v14088_v33  }
0x1fb4   : > { %v14092_v11 = vpop.eup %14091 }
0x1fb6   : > { %6918 = vperm.xlu0 %13825, %v11755_v14  }
0x1fb7   : > { %6716 = vperm.xlu1 %13826, %v14092_v11  }
0x1fbb   : > { %6764 = vperm.xlu1 %13826, %v11739_v12  }
0x1fbf   : > { %6975 = vperm.xlu1 %13826, %v11763_v22  }
0x2025   : > { %v6692_v21 = vpop.permute.xlu0 %6691 }
0x2026   : > { %v6725_v30 = vmul.f32 %v6692_v21, %v16446_v49  ;;  %v6687_v61 = vpop.permute.xlu1 %6686  ;;  %v11771_v21 = vld [vmem:[%s18413_s28 + $0x38] sm:$0xf] }
0x2027   : > { %v6724_v24 = vmul.f32 %v6687_v61, %v16441_v10 }
0x2028   : > { %v16569_v32 = vadd.f32 %v6725_v30, %v15885_v19 }
0x2029   : > { %v16572_v62 = vadd.f32 %v6724_v24, %v15888_v39 }
0x202a   : > { %v6702_v40 = vpop.permute.xlu1 %6701 }
0x202b   : > { %v16576_v45 = vpack.c.bf16 %v16569_v32, %v16572_v62  ;;  %v6727_v15 = vmul.f32 %v6702_v40, %v16450_v17 }
0x202d   : > { %v6712_v52 = vpop.permute.xlu0 %6711  ;;  %12992 = vmatprep.subr.bf16.mxu1 %v16576_v45  ;;  %v16583_v19 = vadd.f32 %v6727_v15, %v15899_v35 }
0x202e   : > { %12993 = vmatpush3.bf16.msra.mxu1 %v16576_v45  ;;  %v6697_v49 = vpop.permute.xlu1 %6696  ;;  %v6729_v39 = vmul.f32 %v6712_v52, %v16458_v28 }
0x202f   : > { %v6726_v10 = vmul.f32 %v6697_v49, %v16438_v31 }
0x2030   : > { %v16595_v16 = vadd.f32 %v6729_v39, %v15914_v44 }
0x2031   : > { %v16587_v51 = vadd.f32 %v6726_v10, %v15902_v34  ;;  %v6722_v13 = vpop.permute.xlu0 %6721 }
0x2032   : > { %v6707_v2 = vpop.permute.xlu1 %6706  ;;  %v6731_v31 = vmul.f32 %v6722_v13, %v16466_v27 }
0x2033   : > { %v16591_v17 = vpack.c.bf16 %v16583_v19, %v16587_v51  ;;  %v6728_v53 = vmul.f32 %v6707_v2, %v16453_v26 }
0x2034   : > { %v16609_v26 = vadd.f32 %v6731_v31, %v15928_v56  ;;  %v13930_v56 = vld [vmem:[%s18409_s0 + $0x58] sm:$0xff]  }
0x2035   : > { %v16599_v35 = vadd.f32 %v6728_v53, %v15911_v41  ;;  %12994 = vmatprep.subr.bf16.mxu1 %v16591_v17  ;;  %v6919_v8 = vpop.permute.xlu0 %6918 }
0x2036   : > { %12995 = vmatpush3.bf16.msra.mxu1 %v16591_v17  ;;  %v6717_v34 = vpop.permute.xlu1 %6716 }
0x2037   : > { %v16605_v28 = vpack.c.bf16 %v16595_v16, %v16599_v35  ;;  %v6730_v60 = vmul.f32 %v6717_v34, %v16461_v0  ;;  %v13928_v0 = vld [vmem:[%s18409_s0 + $0x48] sm:$0xff]  }
0x2039   : > { %v16612_v44 = vadd.f32 %v6730_v60, %v15925_v4  ;;  %12996 = vmatprep.subr.bf16.mxu1 %v16605_v28  ;;  %v13929_v4 = vld [vmem:[%s18409_s0 + $0x50] sm:$0xff]   ;;  %s18424_s0 = sld [smem:[#allocation31_spill]] }
0x203a   : > { %12997 = vmatpush3.bf16.msra.mxu1 %v16605_v28  ;;  %v6765_v5 = vpop.permute.xlu1 %6764 }
0x203b   : > { %v16618_v41 = vpack.c.bf16 %v16609_v26, %v16612_v44 }
0x203d   : > { %12998 = vmatprep.subr.bf16.mxu1 %v16618_v41 }
0x203e   : > { %12999 = vmatpush3.bf16.msra.mxu1 %v16618_v41  ;;  %v6976_v7 = vpop.permute.xlu1 %6975 }
0x203f   : > { %13008 = vmatprep.subr.bf16.mxu1 %v14313_v58 }
0x2041   : > { %13001 = vmatmul.mubr.msk.bf16.vlgmr.msra.gmra.mrb[52].mxu1 %vm2127_vm1, %v13928_v0 }
0x2042   : > { %13004 = vmatprep.mubr.msk.bf16.mxu1 %vm2127_vm1, %v13929_v4 }
0x2049   : > { %13005 = vmatmul.mubr.msk.bf16.gmra.mrb[56].mxu1 %vm2127_vm1, %v13930_v56 }
0x204a   : > { %13012 = vmatprep.mubr.msk.bf16.mxu1 %vm14319_vm2, %v14313_v58 }
0x2114   : > { %v16637_v27 = vpop.f32.mrb[52].mxu1 }
0x2115   : > { %v6868_v6 = vpop.f32.mrb[53].mxu1 }
0x2116   : > { %v6869_v50 = vadd.f32 %v6868_v6, %v6765_v5  ;;  %v16639_v36 = vpop.f32.mrb[54].mxu1 }
0x2117   : > { %v6871_v37 = vpop.f32.mrb[55].mxu1 }
0x2118   : > { %v6899_v48 = vmax.f32 %v6869_v50, 0.0 }
0x211a   : > { %v6956_v54 = vmul.f32 %v6919_v8, %v6899_v48  ;;  %v11741_v48 = vld [vmem:[%s18408_s5 + $0x190] sm:$0xff] }
0x211b   : > { %v11779_v8 = vld [vmem:[%s18412_s9 + $0x170] sm:$0xff] }
0x211c   : > { %v7013_v20 = vadd.f32 %v6976_v7, %v6956_v54  ;;  %v16662_v23 = vpop.f32.mrb[56].mxu1  ;;  %v11757_v54 = vld [vmem:[%s18408_s5 + $0x1d0] sm:$0xff]  ;;  %v11780_v7 = vld [vmem:[%s18412_s9 + $0x178] sm:$0xff] }
0x211d   : > { %v16664_v46 = vpop.f32.mrb[57].mxu1 }
0x211e   : > { %v7021_v63 = vmul.f32 %v14651_v59, %v7013_v20  ;;  %v16666_v33 = vpop.f32.mrb[58].mxu1  ;;  %v11765_v20 = vld [vmem:[%s18408_s5 + $0x210] sm:$0xff] }
0x211f   : > { %v16668_v9 = vpop.f32.mrb[59].mxu1 }
0x2120   : > { %7031 = vrot.lane.b32.xlu1 %v7021_v63, %s14322_s30  ;;  %7029 = vrot.lane.b32.xlu0 %v7021_v63, %s14323_s2 }
0x2124   : > { %7041 = vperm.xlu1 %13826, %v11772_v55   ;;  %6769 = vperm.xlu0 %13825, %v11740_v38  }
0x2128   : > { %7095 = vperm.xlu1 %13826, %v11774_v42   ;;  %6923 = vperm.xlu0 %13825, %v11756_v29  }
0x212c   : > { %7103 = vperm.xlu1 %13826, %v11775_v3   ;;  %6980 = vperm.xlu0 %13825, %v11764_v43   ;;  %v11776_v3 = vld [vmem:[%s18413_s28 + $0x3c] sm:$0xf] }
0x2192   : > { %v7032_v14 = vpop.permute.xlu1 %7031  ;;  %v7030_v11 = vpop.permute.xlu0 %7029 }
0x2193   : > { %v7033_v12 = vpack.c.bf16 %v7021_v63, %v7030_v11  ;;  %v7034_v22 = vpack.c.bf16 %v7032_v14, %v7032_v14 }
0x2195   : > { %13009 = vmatpush3.bf16.msra.mxu1 %v7033_v12  ;;  %v7048_v18 = vsel %vm2352_vm3, %v7034_v22, 0 }
0x2196   : > { %13010 = vmatprep.subr.bf16.mxu1 %v14313_v58 }
0x2199   : > { %13011 = vmatpush3.bf16.msra.mxu1 %v7048_v18 }
0x219a   : > { %13016 = vmatprep.subr.bf16.mxu1 %v14313_v58 }
0x219c   : > { %13013 = vmatmul.mubr.msk.bf16.vlgmr.msra.gmra.mrb[60].mxu1 %vm2348_vm4, %v11771_v21 }
0x219d   : > { %13020 = vmatprep.mubr.msk.bf16.mxu1 %vm14319_vm2, %v14313_v58 }
0x21a3   : > { %v6770_v30 = vpop.permute.xlu0 %6769  ;;  %v7042_v61 = vpop.permute.xlu1 %7041 }
0x21a4   : > { %v6872_v24 = vadd.f32 %v6871_v37, %v6770_v30  ;;  %v11777_v37 = vld [vmem:[%s18412_s9 + $0x168] sm:$0xff] }
0x21a6   : > { %v6900_v15 = vmax.f32 %v6872_v24, 0.0 }
0x21a7   : > { %v6924_v40 = vpop.permute.xlu0 %6923  ;;  %v7096_v52 = vpop.permute.xlu1 %7095 }
0x21a8   : > { %v6957_v53 = vmul.f32 %v6924_v40, %v6900_v15 }
0x21ab   : > { %v6981_v13 = vpop.permute.xlu0 %6980  ;;  %v7104_v4 = vpop.permute.xlu1 %7103 }
0x21ac   : > { %v7014_v60 = vadd.f32 %v6981_v13, %v6957_v53 }
0x21ae   : > { %v7022_v5 = vmul.f32 %v14651_v59, %v7014_v60  ;;  %v11742_v60 = vld [vmem:[%s18408_s5 + $0x198] sm:$0xff] }
0x226f   : > { %v7084_v49 = vpop.f32.mrb[60].mxu1 }
0x2270   : > { %v7085_v10 = vadd.f32 %v7084_v49, %v7042_v61  ;;  %v13014_v39 = vpop.f32.mrb[61].mxu1 }
0x2271   : > { %v7087_v2 = vpop.f32.mrb[62].mxu1 }
0x2272   : > { %v7090_v31 = vmax.f32 %v7085_v10, 0.0  ;;  %v13015_v34 = vpop.f32.mrb[63].mxu1 }
0x2273   : > { %v11782_v34 = vld [vmem:[%s18412_s9 + $0x180] sm:$0xff] }
0x2274   : > { %v7098_v0 = vmul.f32 %v7096_v52, %v7090_v31 }
0x2276   : > { %v7106_v56 = vadd.f32 %v7104_v4, %v7098_v0  ;;  %v11784_v0 = vld [vmem:[%s18412_s9 + $0x188] sm:$0xff]  ;;  %v11758_v4 = vld [vmem:[%s18408_s5 + $0x1d8] sm:$0xff] }
0x2278   : > { %v16681_v6 = vmul.f32 %v14651_v59, %v7106_v56  ;;  %v11785_v56 = vld [vmem:[%s18412_s9 + $0x190] sm:$0xff] }
0x227a   : > { %v7108_v50 = vadd.f32 %v16681_v6, %v7022_v5  ;;  %v11766_v5 = vld [vmem:[%s18408_s5 + $0x218] sm:$0xff] }
0x227c   : > { %7111 = vrot.lane.b32.xlu1 %v7108_v50, %s14322_s30  ;;  %7109 = vrot.lane.b32.xlu0 %v7108_v50, %s14323_s2 }
0x2280   : > { %7121 = vperm.xlu1 %13826, %v11777_v37   ;;  %6774 = vperm.xlu0 %13825, %v11741_v48  }
0x2284   : > { %7175 = vperm.xlu1 %13826, %v11779_v8   ;;  %6928 = vperm.xlu0 %13825, %v11757_v54  }
0x2288   : > { %7183 = vperm.xlu1 %13826, %v11780_v7   ;;  %6985 = vperm.xlu0 %13825, %v11765_v20   ;;  %v11781_v7 = vld [vmem:[%s18413_s28 + $0x40] sm:$0xf] }
0x22ee   : > { %v7112_v63 = vpop.permute.xlu1 %7111  ;;  %v7110_v55 = vpop.permute.xlu0 %7109 }
0x22ef   : > { %v7113_v38 = vpack.c.bf16 %v7108_v50, %v7110_v55  ;;  %v7114_v42 = vpack.c.bf16 %v7112_v63, %v7112_v63 }
0x22f1   : > { %13017 = vmatpush3.bf16.msra.mxu1 %v7113_v38  ;;  %v7128_v29 = vsel %vm2352_vm3, %v7114_v42, 0 }
0x22f2   : > { %13018 = vmatprep.subr.bf16.mxu1 %v14313_v58 }
0x22f5   : > { %13019 = vmatpush3.bf16.msra.mxu1 %v7128_v29 }
0x22f6   : > { %13024 = vmatprep.subr.bf16.mxu1 %v14313_v58 }
0x22f8   : > { %13021 = vmatmul.mubr.msk.bf16.vlgmr.msra.gmra.mrb[64].mxu1 %vm2348_vm4, %v11776_v3 }
0x22f9   : > { %13028 = vmatprep.mubr.msk.bf16.mxu1 %vm14319_vm2, %v14313_v58 }
0x22ff   : > { %v6775_v43 = vpop.permute.xlu0 %6774  ;;  %v7122_v14 = vpop.permute.xlu1 %7121 }
0x2300   : > { %v6877_v11 = vadd.f32 %v16637_v27, %v6775_v43 }
0x2302   : > { %v6901_v22 = vmax.f32 %v6877_v11, 0.0 }
0x2303   : > { %v6929_v12 = vpop.permute.xlu0 %6928  ;;  %v7176_v18 = vpop.permute.xlu1 %7175 }
0x2304   : > { %v6958_v15 = vmul.f32 %v6929_v12, %v6901_v22 }
0x2307   : > { %v6986_v24 = vpop.permute.xlu0 %6985  ;;  %v7184_v13 = vpop.permute.xlu1 %7183 }
0x2308   : > { %v7015_v10 = vadd.f32 %v6986_v24, %v6958_v15 }
0x230a   : > { %v7023_v53 = vmul.f32 %v14651_v59, %v7015_v10  ;;  %v11743_v10 = vld [vmem:[%s18408_s5 + $0x1a0] sm:$0xff] }
0x23cb   : > { %v7164_v21 = vpop.f32.mrb[64].mxu1 }
0x23cc   : > { %v7165_v30 = vadd.f32 %v7164_v21, %v7122_v14  ;;  %v13022_v61 = vpop.f32.mrb[65].mxu1 }
0x23cd   : > { %v7167_v40 = vpop.f32.mrb[66].mxu1 }
0x23ce   : > { %v7170_v52 = vmax.f32 %v7165_v30, 0.0  ;;  %v13023_v49 = vpop.f32.mrb[67].mxu1 }
0x23cf   : > { %v11787_v49 = vld [vmem:[%s18412_s9 + $0x198] sm:$0xff] }
0x23d0   : > { %v7178_v39 = vmul.f32 %v7176_v18, %v7170_v52 }
0x23d2   : > { %v7186_v2 = vadd.f32 %v7184_v13, %v7178_v39  ;;  %v11789_v39 = vld [vmem:[%s18412_s9 + $0x1a0] sm:$0xff] }
0x23d3   : > { %v11759_v13 = vld [vmem:[%s18408_s5 + $0x1e0] sm:$0xff] }
0x23d4   : > { %v16716_v31 = vmul.f32 %v14651_v59, %v7186_v2  ;;  %v11790_v2 = vld [vmem:[%s18412_s9 + $0x1a8] sm:$0xff] }
0x23d6   : > { %v7188_v27 = vadd.f32 %v16716_v31, %v7023_v53  ;;  %v11767_v53 = vld [vmem:[%s18408_s5 + $0x220] sm:$0xff] }
0x23d8   : > { %7191 = vrot.lane.b32.xlu1 %v7188_v27, %s14322_s30  ;;  %7189 = vrot.lane.b32.xlu0 %v7188_v27, %s14323_s2 }
0x23dc   : > { %7201 = vperm.xlu1 %13826, %v11782_v34   ;;  %6779 = vperm.xlu0 %13825, %v11742_v60  }
0x23e0   : > { %7255 = vperm.xlu1 %13826, %v11784_v0   ;;  %6933 = vperm.xlu0 %13825, %v11758_v4  }
0x23e4   : > { %7263 = vperm.xlu1 %13826, %v11785_v56   ;;  %6990 = vperm.xlu0 %13825, %v11766_v5   ;;  %v11786_v56 = vld [vmem:[%s18413_s28 + $0x44] sm:$0xf] }
0x244a   : > { %v7192_v50 = vpop.permute.xlu1 %7191  ;;  %v7190_v37 = vpop.permute.xlu0 %7189 }
0x244b   : > { %v7193_v48 = vpack.c.bf16 %v7188_v27, %v7190_v37  ;;  %v7194_v8 = vpack.c.bf16 %v7192_v50, %v7192_v50 }
0x244d   : > { %13025 = vmatpush3.bf16.msra.mxu1 %v7193_v48  ;;  %v7208_v54 = vsel %vm2352_vm3, %v7194_v8, 0 }
0x244e   : > { %13026 = vmatprep.subr.bf16.mxu1 %v14313_v58 }
0x2451   : > { %13027 = vmatpush3.bf16.msra.mxu1 %v7208_v54 }
0x2452   : > { %13032 = vmatprep.subr.bf16.mxu1 %v14313_v58 }
0x2454   : > { %13029 = vmatmul.mubr.msk.bf16.vlgmr.msra.gmra.mrb[68].mxu1 %vm2348_vm4, %v11781_v7 }
0x2455   : > { %13036 = vmatprep.mubr.msk.bf16.mxu1 %vm14319_vm2, %v14313_v58 }
0x245b   : > { %v6780_v20 = vpop.permute.xlu0 %6779  ;;  %v7202_v63 = vpop.permute.xlu1 %7201 }
0x245c   : > { %v6880_v55 = vadd.f32 %v16639_v36, %v6780_v20 }
0x245e   : > { %v6902_v42 = vmax.f32 %v6880_v55, 0.0 }
0x245f   : > { %v6934_v38 = vpop.permute.xlu0 %6933  ;;  %v7256_v29 = vpop.permute.xlu1 %7255 }
0x2460   : > { %v6959_v22 = vmul.f32 %v6934_v38, %v6902_v42 }
0x2463   : > { %v6991_v11 = vpop.permute.xlu0 %6990  ;;  %v7264_v24 = vpop.permute.xlu1 %7263 }
0x2464   : > { %v7016_v30 = vadd.f32 %v6991_v11, %v6959_v22 }
0x2466   : > { %v7024_v15 = vmul.f32 %v14651_v59, %v7016_v30  ;;  %v11744_v30 = vld [vmem:[%s18408_s5 + $0x1a8] sm:$0xff] }
0x2527   : > { %v7244_v3 = vpop.f32.mrb[68].mxu1 }
0x2528   : > { %v7245_v43 = vadd.f32 %v7244_v3, %v7202_v63  ;;  %v13030_v14 = vpop.f32.mrb[69].mxu1 }
0x2529   : > { %v7247_v12 = vpop.f32.mrb[70].mxu1 }
0x252a   : > { %v7250_v18 = vmax.f32 %v7245_v43, 0.0  ;;  %v13031_v21 = vpop.f32.mrb[71].mxu1 }
0x252b   : > { %v11792_v21 = vld [vmem:[%s18412_s9 + $0x1b0] sm:$0xff] }
0x252c   : > { %v7258_v61 = vmul.f32 %v7256_v29, %v7250_v18 }
0x252e   : > { %v7266_v40 = vadd.f32 %v7264_v24, %v7258_v61  ;;  %v11794_v61 = vld [vmem:[%s18412_s9 + $0x1b8] sm:$0xff]  ;;  %v11760_v24 = vld [vmem:[%s18408_s5 + $0x1e8] sm:$0xff] }
0x2530   : > { %v16751_v52 = vmul.f32 %v14651_v59, %v7266_v40  ;;  %v11795_v40 = vld [vmem:[%s18412_s9 + $0x1c0] sm:$0xff] }
0x2532   : > { %v7268_v36 = vadd.f32 %v16751_v52, %v7024_v15  ;;  %v11768_v15 = vld [vmem:[%s18408_s5 + $0x228] sm:$0xff] }
0x2534   : > { %7271 = vrot.lane.b32.xlu1 %v7268_v36, %s14322_s30  ;;  %7269 = vrot.lane.b32.xlu0 %v7268_v36, %s14323_s2 }
0x2538   : > { %7281 = vperm.xlu1 %13826, %v11787_v49   ;;  %6784 = vperm.xlu0 %13825, %v11743_v10  }
0x253c   : > { %7335 = vperm.xlu1 %13826, %v11789_v39   ;;  %6938 = vperm.xlu0 %13825, %v11759_v13  }
0x2540   : > { %7343 = vperm.xlu1 %13826, %v11790_v2   ;;  %6995 = vperm.xlu0 %13825, %v11767_v53   ;;  %v11791_v2 = vld [vmem:[%s18413_s28 + $0x48] sm:$0xf] }
0x25a6   : > { %v7272_v27 = vpop.permute.xlu1 %7271  ;;  %v7270_v34 = vpop.permute.xlu0 %7269 }
0x25a7   : > { %v7273_v60 = vpack.c.bf16 %v7268_v36, %v7270_v34  ;;  %v7274_v0 = vpack.c.bf16 %v7272_v27, %v7272_v27 }
0x25a9   : > { %13033 = vmatpush3.bf16.msra.mxu1 %v7273_v60  ;;  %v7288_v4 = vsel %vm2352_vm3, %v7274_v0, 0 }
0x25aa   : > { %13034 = vmatprep.subr.bf16.mxu1 %v14313_v58 }
0x25ad   : > { %13035 = vmatpush3.bf16.msra.mxu1 %v7288_v4 }
0x25ae   : > { %13040 = vmatprep.subr.bf16.mxu1 %v14313_v58 }
0x25b0   : > { %13037 = vmatmul.mubr.msk.bf16.vlgmr.msra.gmra.mrb[72].mxu1 %vm2348_vm4, %v11786_v56 }
0x25b1   : > { %13044 = vmatprep.mubr.msk.bf16.mxu1 %vm14319_vm2, %v14313_v58 }
0x25b7   : > { %v6785_v5 = vpop.permute.xlu0 %6784  ;;  %v7282_v50 = vpop.permute.xlu1 %7281 }
0x25b8   : > { %v6885_v37 = vadd.f32 %v16664_v46, %v6785_v5 }
0x25ba   : > { %v6903_v8 = vmax.f32 %v6885_v37, 0.0 }
0x25bb   : > { %v6939_v48 = vpop.permute.xlu0 %6938  ;;  %v7336_v54 = vpop.permute.xlu1 %7335 }
0x25bc   : > { %v6960_v42 = vmul.f32 %v6939_v48, %v6903_v8 }
0x25bf   : > { %v6996_v55 = vpop.permute.xlu0 %6995  ;;  %v7344_v11 = vpop.permute.xlu1 %7343 }
0x25c0   : > { %v7017_v43 = vadd.f32 %v6996_v55, %v6960_v42 }
0x25c2   : > { %v7025_v22 = vmul.f32 %v14651_v59, %v7017_v43  ;;  %v11745_v43 = vld [vmem:[%s18408_s5 + $0x1b0] sm:$0xff] }
0x2683   : > { %v7324_v7 = vpop.f32.mrb[72].mxu1 }
0x2684   : > { %v7325_v20 = vadd.f32 %v7324_v7, %v7282_v50  ;;  %v13038_v63 = vpop.f32.mrb[73].mxu1 }
0x2685   : > { %v7327_v38 = vpop.f32.mrb[74].mxu1 }
0x2686   : > { %v7330_v29 = vmax.f32 %v7325_v20, 0.0  ;;  %v13039_v3 = vpop.f32.mrb[75].mxu1 }
0x2687   : > { %v11797_v3 = vld [vmem:[%s18412_s9 + $0x1c8] sm:$0xff] }
0x2688   : > { %v7338_v14 = vmul.f32 %v7336_v54, %v7330_v29 }
0x268a   : > { %v7346_v12 = vadd.f32 %v7344_v11, %v7338_v14  ;;  %v11799_v14 = vld [vmem:[%s18412_s9 + $0x1d0] sm:$0xff] }
0x268b   : > { %v11761_v11 = vld [vmem:[%s18408_s5 + $0x1f0] sm:$0xff] }
0x268c   : > { %v16786_v18 = vmul.f32 %v14651_v59, %v7346_v12  ;;  %v11800_v12 = vld [vmem:[%s18412_s9 + $0x1d8] sm:$0xff] }
0x268e   : > { %v7348_v46 = vadd.f32 %v16786_v18, %v7025_v22  ;;  %v11769_v22 = vld [vmem:[%s18408_s5 + $0x230] sm:$0xff] }
0x2690   : > { %7351 = vrot.lane.b32.xlu1 %v7348_v46, %s14322_s30  ;;  %7349 = vrot.lane.b32.xlu0 %v7348_v46, %s14323_s2 }
0x2694   : > { %7361 = vperm.xlu1 %13826, %v11792_v21   ;;  %6789 = vperm.xlu0 %13825, %v11744_v30  }
0x2698   : > { %7415 = vperm.xlu1 %13826, %v11794_v61   ;;  %6943 = vperm.xlu0 %13825, %v11760_v24  }
0x269c   : > { %7423 = vperm.xlu1 %13826, %v11795_v40   ;;  %7000 = vperm.xlu0 %13825, %v11768_v15   ;;  %v11796_v40 = vld [vmem:[%s18413_s28 + $0x4c] sm:$0xf] }
0x2702   : > { %v7352_v36 = vpop.permute.xlu1 %7351  ;;  %v7350_v49 = vpop.permute.xlu0 %7349 }
0x2703   : > { %v7353_v10 = vpack.c.bf16 %v7348_v46, %v7350_v49  ;;  %v7354_v39 = vpack.c.bf16 %v7352_v36, %v7352_v36 }
0x2705   : > { %13041 = vmatpush3.bf16.msra.mxu1 %v7353_v10  ;;  %v7368_v13 = vsel %vm2352_vm3, %v7354_v39, 0 }
0x2706   : > { %13042 = vmatprep.subr.bf16.mxu1 %v14313_v58 }
0x2709   : > { %13043 = vmatpush3.bf16.msra.mxu1 %v7368_v13 }
0x270a   : > { %13048 = vmatprep.subr.bf16.mxu1 %v14313_v58 }
0x270c   : > { %13045 = vmatmul.mubr.msk.bf16.vlgmr.msra.gmra.mrb[76].mxu1 %vm2348_vm4, %v11791_v2 }
0x270d   : > { %13052 = vmatprep.mubr.msk.bf16.mxu1 %vm14319_vm2, %v14313_v58 }
0x2713   : > { %v6790_v53 = vpop.permute.xlu0 %6789  ;;  %v7362_v27 = vpop.permute.xlu1 %7361 }
0x2714   : > { %v6888_v34 = vadd.f32 %v16668_v9, %v6790_v53 }
0x2716   : > { %v6904_v0 = vmax.f32 %v6888_v34, 0.0 }
0x2717   : > { %v6944_v60 = vpop.permute.xlu0 %6943  ;;  %v7416_v4 = vpop.permute.xlu1 %7415 }
0x2718   : > { %v6961_v8 = vmul.f32 %v6944_v60, %v6904_v0 }
0x271b   : > { %v7001_v37 = vpop.permute.xlu0 %7000  ;;  %v7424_v55 = vpop.permute.xlu1 %7423 }
0x271c   : > { %v7018_v20 = vadd.f32 %v7001_v37, %v6961_v8 }
0x271e   : > { %v7026_v42 = vmul.f32 %v14651_v59, %v7018_v20  ;;  %v11802_v20 = vld [vmem:[%s18412_s9 + $0x1e0] sm:$0xff] }
0x27df   : > { %v7404_v56 = vpop.f32.mrb[76].mxu1 }
0x27e0   : > { %v7405_v5 = vadd.f32 %v7404_v56, %v7362_v27  ;;  %v13046_v50 = vpop.f32.mrb[77].mxu1 }
0x27e1   : > { %v7407_v48 = vpop.f32.mrb[78].mxu1 }
0x27e2   : > { %v7410_v54 = vmax.f32 %v7405_v5, 0.0  ;;  %v13047_v7 = vpop.f32.mrb[79].mxu1 }
0x27e3   : > { %v11804_v7 = vld [vmem:[%s18412_s9 + $0x1e8] sm:$0xff] }
0x27e4   : > { %v7418_v63 = vmul.f32 %v7416_v4, %v7410_v54 }
0x27e6   : > { %v7426_v38 = vadd.f32 %v7424_v55, %v7418_v63  ;;  %v11746_v63 = vld [vmem:[%s18408_s5 + $0x1b8] sm:$0xff]  ;;  %v11805_v55 = vld [vmem:[%s18412_s9 + $0x1f0] sm:$0xff] }
0x27e8   : > { %v16821_v29 = vmul.f32 %v14651_v59, %v7426_v38  ;;  %v11770_v38 = vld [vmem:[%s18408_s5 + $0x238] sm:$0xff] }
0x27ea   : > { %v7428_v9 = vadd.f32 %v16821_v29, %v7026_v42  ;;  %v11762_v42 = vld [vmem:[%s18408_s5 + $0x1f8] sm:$0xff] }
0x27ec   : > { %7431 = vrot.lane.b32.xlu1 %v7428_v9, %s14322_s30  ;;  %7429 = vrot.lane.b32.xlu0 %v7428_v9, %s14323_s2 }
0x27f0   : > { %7441 = vperm.xlu1 %13826, %v11797_v3   ;;  %6794 = vperm.xlu0 %13825, %v11745_v43   ;;  %v11934_v3 = vld [vmem:[%s18416_s23 + $0x180] sm:$0xff]  ;;  %v11937_v43 = vld [vmem:[%s18416_s23 + $0x198] sm:$0xff] }
0x27f4   : > { %7495 = vperm.xlu1 %13826, %v11799_v14   ;;  %6948 = vperm.xlu0 %13825, %v11761_v11   ;;  %v11936_v14 = vld [vmem:[%s18416_s23 + $0x190] sm:$0xff]  ;;  %v11943_v11 = vld [vmem:[%s18416_s23 + $0x1c8] sm:$0xff] }
0x27f8   : > { %7503 = vperm.xlu1 %13826, %v11800_v12   ;;  %7005 = vperm.xlu0 %13825, %v11769_v22   ;;  %v11942_v12 = vld [vmem:[%s18416_s23 + $0x1c0] sm:$0xff]  ;;  %v11951_v22 = vld [vmem:[%s18416_s23 + $0x208] sm:$0xff] }
0x285e   : > { %v7432_v46 = vpop.permute.xlu1 %7431  ;;  %v7430_v21 = vpop.permute.xlu0 %7429 }
0x285f   : > { %v7433_v30 = vpack.c.bf16 %v7428_v9, %v7430_v21  ;;  %v7434_v61 = vpack.c.bf16 %v7432_v46, %v7432_v46  ;;  %v11935_v9 = vld [vmem:[%s18416_s23 + $0x188] sm:$0xff]  ;;  %v11950_v46 = vld [vmem:[%s18416_s23 + $0x200] sm:$0xff] }
0x2860   : > { %v11939_v21 = vld [vmem:[%s18416_s23 + $0x1a8] sm:$0xff] }
0x2861   : > { %13049 = vmatpush3.bf16.msra.mxu1 %v7433_v30  ;;  %v7448_v24 = vsel %vm2352_vm3, %v7434_v61, 0  ;;  %v11938_v30 = vld [vmem:[%s18416_s23 + $0x1a0] sm:$0xff]  ;;  %v11945_v61 = vld [vmem:[%s18416_s23 + $0x1d8] sm:$0xff] }
0x2862   : > { %13050 = vmatprep.subr.bf16.mxu1 %v14313_v58 }
0x2865   : > { %13051 = vmatpush3.bf16.msra.mxu1 %v7448_v24  ;;  %v11944_v24 = vld [vmem:[%s18416_s23 + $0x1d0] sm:$0xff] }
0x2866   : > { %13056 = vmatprep.subr.bf16.mxu1 %v14313_v58 }
0x2868   : > { %13053 = vmatmul.mubr.msk.bf16.vlgmr.msra.gmra.mrb[80].mxu1 %vm2348_vm4, %v11796_v40  ;;  %v11953_v40 = vld [vmem:[%s18416_s23 + $0x218] sm:$0xff] }
0x2869   : > { %13060 = vmatprep.mubr.msk.bf16.mxu1 %vm14319_vm2, %v14313_v58 }
0x286f   : > { %v6795_v15 = vpop.permute.xlu0 %6794  ;;  %v7442_v36 = vpop.permute.xlu1 %7441 }
0x2870   : > { %v6893_v49 = vadd.f32 %v16662_v23, %v6795_v15  ;;  %v11952_v15 = vld [vmem:[%s18416_s23 + $0x210] sm:$0xff] }
0x2872   : > { %v6905_v39 = vmax.f32 %v6893_v49, 0.0  ;;  %v11940_v49 = vld [vmem:[%s18416_s23 + $0x1b0] sm:$0xff] }
0x2873   : > { %v6949_v10 = vpop.permute.xlu0 %6948  ;;  %v7496_v13 = vpop.permute.xlu1 %7495 }
0x2874   : > { %v6962_v0 = vmul.f32 %v6949_v10, %v6905_v39  ;;  %v11947_v10 = vld [vmem:[%s18416_s23 + $0x1e8] sm:$0xff]  ;;  %v11946_v39 = vld [vmem:[%s18416_s23 + $0x1e0] sm:$0xff] }
0x2877   : > { %v7006_v34 = vpop.permute.xlu0 %7005  ;;  %v7504_v37 = vpop.permute.xlu1 %7503 }
0x2878   : > { %v7019_v5 = vadd.f32 %v7006_v34, %v6962_v0  ;;  %v11957_v34 = vld [vmem:[%s18416_s23 + $0x238] sm:$0xff] }
0x287a   : > { %v7027_v8 = vmul.f32 %v14651_v59, %v7019_v5 }
0x293b   : > { %v7484_v2 = vpop.f32.mrb[80].mxu1 }
0x293c   : > { %v7485_v53 = vadd.f32 %v7484_v2, %v7442_v36  ;;  %v13054_v27 = vpop.f32.mrb[81].mxu1  ;;  %v11941_v36 = vld [vmem:[%s18416_s23 + $0x1b8] sm:$0xff]  ;;  %v11954_v2 = vld [vmem:[%s18416_s23 + $0x220] sm:$0xff] }
0x293d   : > { %v7487_v60 = vpop.f32.mrb[82].mxu1  ;;  %v11948_v27 = vld [vmem:[%s18416_s23 + $0x1f0] sm:$0xff] }
0x293e   : > { %v7490_v4 = vmax.f32 %v7485_v53, 0.0  ;;  %v13055_v56 = vpop.f32.mrb[83].mxu1  ;;  %v11949_v53 = vld [vmem:[%s18416_s23 + $0x1f8] sm:$0xff]  ;;  %v11956_v60 = vld [vmem:[%s18416_s23 + $0x230] sm:$0xff] }
0x2940   : > { %v7498_v50 = vmul.f32 %v7496_v13, %v7490_v4  ;;  %v11955_v13 = vld [vmem:[%s18416_s23 + $0x228] sm:$0xff] }
0x2942   : > { %v7506_v48 = vadd.f32 %v7504_v37, %v7498_v50  ;;  %v7607_v37 = vpack.c.bf16 %v16716_v31, %v16716_v31  ;;  %v13932_v31 = vld [vmem:[%s18414_s26 + $0x228] sm:$0xff]  }
0x2944   : > { %v16856_v54 = vmul.f32 %v14651_v59, %v7506_v48  ;;  %v11801_v48 = vld [vmem:[%s18413_s28 + $0x50] sm:$0xf] }
0x2946   : > { %v16859_v23 = vadd.f32 %v16856_v54, %v7027_v8  ;;  %v13931_v8 = vld [vmem:[%s18414_s26 + $0x220] sm:$0xff]  }
0x2948   : > { %7511 = vrot.lane.b32.xlu1 %v16859_v23, %s14322_s30  ;;  %7509 = vrot.lane.b32.xlu0 %v16859_v23, %s14323_s2  ;;  %s1008_s30 = scalar_select %p1007_p5, %s14476_s7, 1 }
0x2949   : > { %s14324_s7 = smov [#allocation6]  }
0x294a   : > { %s12152_s2 = sshll.u32 %s1008_s30, 7  ;;  %s18421_s30 = sld [smem:[#allocation17_spill]] }
0x294b   : > { %s17481_s3 = scalar_lea.vmem %s18339_s24, %s12152_s2  ;;  %s18422_s2 = sld [smem:[#allocation15_spill]] }
0x294c   : > { %7575 = vperm.xlu1 %13826, %v11804_v7   ;;  %7521 = vperm.xlu0 %13825, %v11802_v20   ;;  %v13933_v7 = vld [vmem:[%s18414_s26 + $0x230] sm:$0xff]   ;;  %s14248_s1 = sshll.u32 %s14324_s7, 4  ;;  %s14249_s1 = int_to_ptr.vmem [resolvable:$false] %s14248_s1 }
0x2950   : > { %6799 = vperm.xlu1 %13826, %v11746_v63   ;;  %7583 = vperm.xlu0 %13825, %v11805_v55   ;;  %v13934_v63 = vld [vmem:[%s18414_s26 + $0x238] sm:$0xff]   ;;  %v13935_v55 = vld [vmem:[%s18414_s26 + $0x200] sm:$0xff]   ;;  %s1006_s29 = scalar_lea.vmem [#allocation6], %s18421_s30  ;;  %s11053_s5 = scalar_lea.sflag [#allocation3], %s18421_s30 }
0x2951   : > { %s11068_s4 = sshll.u32 %s1006_s29, 4  ;;  %p18425_p11 = scmp.ne.s32.totalorder %s18422_s2, 0  ;;  %s18273_s4 = int_to_ptr.vmem [resolvable:$true] %s11068_s4 }
0x2952   : > { %s14244_s27 = scalar_lea.vmem %s18273_s4, 16  ;;  %p14251_p0 = scmp.lt.s32.totalorder %s18273_s4, %s14249_s1 }
0x2953   : > { %p14245_p10 = scmp.ne.s32.totalorder %s18273_s4, %s14244_s27 }
0x2954   : > { %7010 = vperm.xlu1 %13826, %v11770_v38   ;;  %6953 = vperm.xlu0 %13825, %v11762_v42   ;;  %v13937_v38 = vld [vmem:[%s18414_s26 + $0x210] sm:$0xff]  }
0x2955   : > { %p14246_p12 = pnand %p14245_p10, %p18425_p11 }
0x2957   : > { %p14247_p13 = pneg %p14246_p12 }
0x2958   : > { %8532 = vperm.xlu1 %13826, %v11935_v9   ;;  %8527 = vperm.xlu0 %13825, %v11934_v3   ;;  %v7935_v9 = vpack.c.bf16 %v16786_v18, %v16786_v18  ;;  %v13938_v3 = vld [vmem:[%s18414_s26 + $0x218] sm:$0xff]   ;;  %v13940_v18 = vld [vmem:[%s18414_s26 + $0x248] sm:$0xff]  }
0x295c   : > { %8542 = vperm.xlu1 %13826, %v11937_v43   ;;  %8537 = vperm.xlu0 %13825, %v11936_v14   ;;  %v13939_v43 = vld [vmem:[%s18414_s26 + $0x240] sm:$0xff]   ;;  %v13941_v14 = vld [vmem:[%s18414_s26 + $0x250] sm:$0xff]  }
0x2960   : > { %8597 = vperm.xlu1 %13826, %v11943_v11   ;;  %8592 = vperm.xlu0 %13825, %v11942_v12   ;;  %v7969_v11 = vsel %vm2352_vm3, %v7935_v9, 0  ;;  %v8053_v12 = vpack.c.bf16 %v16821_v29, %v16821_v29  ;;  %v13944_v29 = vld [vmem:[%s18414_s26 + $0x268] sm:$0xff]  }
0x2964   : > { %8654 = vperm.xlu1 %13826, %v11951_v22   ;;  %8649 = vperm.xlu0 %13825, %v11950_v46   ;;  %v13942_v22 = vld [vmem:[%s18414_s26 + $0x258] sm:$0xff]   ;;  %v13943_v46 = vld [vmem:[%s18414_s26 + $0x260] sm:$0xff]  }
0x2968   : > { %8552 = vperm.xlu1 %13826, %v11939_v21   ;;  %8547 = vperm.xlu0 %13825, %v11938_v30   ;;  %v13945_v21 = vld [vmem:[%s18414_s26 + $0x270] sm:$0xff]   ;;  %v8087_v30 = vsel %vm2352_vm3, %v8053_v12, 0 }
0x296c   : > { %8607 = vperm.xlu1 %13826, %v11945_v61   ;;  %8602 = vperm.xlu0 %13825, %v11944_v24   ;;  %v8171_v61 = vpack.c.bf16 %v16856_v54, %v16856_v54  ;;  %v13946_v24 = vld [vmem:[%s18414_s26 + $0x278] sm:$0xff]   ;;  %v13948_v54 = vld [vmem:[%s18414_s26 + $0x288] sm:$0xff]  }
0x2970   : > { %8664 = vperm.xlu1 %13826, %v11953_v40   ;;  %8659 = vperm.xlu0 %13825, %v11952_v15   ;;  %v13947_v40 = vld [vmem:[%s18414_s26 + $0x280] sm:$0xff]   ;;  %v13949_v15 = vld [vmem:[%s18414_s26 + $0x290] sm:$0xff]  }
0x2974   : > { %8562 = vperm.xlu1 %13826, %v11941_v36   ;;  %8557 = vperm.xlu0 %13825, %v11940_v49   ;;  %v8205_v36 = vsel %vm2352_vm3, %v8171_v61, 0  ;;  %v13950_v49 = vld [vmem:[%s18414_s26 + $0x298] sm:$0xff]  }
0x2978   : > { %8617 = vperm.xlu1 %13826, %v11947_v10   ;;  %8612 = vperm.xlu0 %13825, %v11946_v39   ;;  %v13951_v10 = vld [vmem:[%s18414_s26 + $0x2a0] sm:$0xff]   ;;  %v13952_v39 = vld [vmem:[%s18414_s26 + $0x2a8] sm:$0xff]  }
0x297c   : > { %8674 = vperm.xlu1 %13826, %v11955_v13   ;;  %8669 = vperm.xlu0 %13825, %v11954_v2   ;;  %v13953_v13 = vld [vmem:[%s18414_s26 + $0x2b0] sm:$0xff]   ;;  %v13954_v2 = vld [vmem:[%s18414_s26 + $0x2b8] sm:$0xff]  }
0x2980   : > { %8627 = vperm.xlu1 %13826, %v11949_v53   ;;  %8622 = vperm.xlu0 %13825, %v11948_v27   ;;  %v13955_v53 = vld [vmem:[%s18414_s26 + $0x2c0] sm:$0xff]  }
0x2984   : > { %8684 = vperm.xlu1 %13826, %v11957_v34   ;;  %8679 = vperm.xlu0 %13825, %v11956_v60  }
0x29ba   : > { %v7512_v0 = vpop.permute.xlu1 %7511  ;;  %v7510_v4 = vpop.permute.xlu0 %7509 }
0x29bb   : > { %v7513_v56 = vpack.c.bf16 %v16859_v23, %v7510_v4  ;;  %v7514_v5 = vpack.c.bf16 %v7512_v0, %v7512_v0  ;;  %v7597_v23 = vpack.c.bf16 %v16681_v6, %v16681_v6  ;;  %v7817_v6 = vpack.c.bf16 %v16751_v52, %v16751_v52  ;;  %v13936_v52 = vld [vmem:[%s18414_s26 + $0x208] sm:$0xff]  }
0x29bd   : > { %13057 = vmatpush3.bf16.msra.mxu1 %v7513_v56  ;;  %v7528_v50 = vsel %vm2352_vm3, %v7514_v5, 0  ;;  %v7741_v20 = vsel %vm2352_vm3, %v7597_v23, 0  ;;  %v7851_v42 = vsel %vm2352_vm3, %v7817_v6, 0 }
0x29be   : > { %13058 = vmatprep.subr.bf16.mxu1 %v14313_v58  ;;  %v7641_v58 = vsel %vm2352_vm3, %v7607_v37, 0 }
0x29c1   : > { %13059 = vmatpush3.bf16.msra.mxu1 %v7528_v50 }
0x29c2   : > { %13594 = vmatprep.subr.msk.bf16.mxu1 %vm2352_vm3, %v7607_v37 }
0x29c4   : > { %13061 = vmatmul.mubr.msk.bf16.vlgmr.msra.gmra.mrb[84].mxu1 %vm2348_vm4, %v11801_v48 }
0x29c5   : > { %13065 = vmatpush3.bf16.msra.mxu1 %v7641_v58  ;;  %13066 = vmatprep.mubr.msk.bf16.mxu1 %vm2933_vm5, %v13931_v8 }
0x29c6   : > { %13595 = vmatprep.subr.msk.bf16.mxu1 %vm2352_vm3, %v7597_v23 }
0x29cb   : > { %v7576_v27 = vpop.permute.xlu1 %7575  ;;  %v7522_v34 = vpop.permute.xlu0 %7521 }
0x29cc   : > { %13067 = vmatmul.mubr.msk.bf16.vlgmr.msra.gmra.mrb[88].mxu1 %vm2933_vm5, %v13932_v31 }
0x29cd   : > { %13075 = vmatpush3.bf16.msra.mxu1 %v7741_v20  ;;  %13070 = vmatprep.mubr.msk.bf16.mxu1 %vm2933_vm5, %v13933_v7 }
0x29ce   : > { %13596 = vmatprep.subr.msk.bf16.mxu1 %vm2352_vm3, %v7817_v6 }
0x29cf   : > { %v6800_v60 = vpop.permute.xlu1 %6799  ;;  %v7584_v0 = vpop.permute.xlu0 %7583 }
0x29d0   : > { %v6896_v4 = vadd.f32 %v16666_v33, %v6800_v60 }
0x29d2   : > { %v6906_v56 = vmax.f32 %v6896_v4, 0.0 }
0x29d3   : > { %v6954_v5 = vpop.permute.xlu0 %6953  ;;  %v7011_v7 = vpop.permute.xlu1 %7010 }
0x29d4   : > { %13071 = vmatmul.mubr.msk.bf16.gmra.mrb[92].mxu1 %vm2933_vm5, %v13934_v63  ;;  %v6963_v37 = vmul.f32 %v6954_v5, %v6906_v56 }
0x29d5   : > { %13076 = vmatprep.mubr.msk.bf16.mxu1 %vm2933_vm5, %v13935_v55 }
0x29d6   : > { %v7020_v20 = vadd.f32 %v7011_v7, %v6963_v37 }
0x29d8   : > { %v7028_v55 = vmul.f32 %v14651_v59, %v7020_v20 }
0x29dc   : > { %13077 = vmatmul.mubr.msk.bf16.vlgmr.msra.gmra.mrb[88].mxu1 %vm2933_vm5, %v13936_v52 }
0x29dd   : > { %13085 = vmatpush3.bf16.msra.mxu1 %v7851_v42  ;;  %13080 = vmatprep.mubr.msk.bf16.mxu1 %vm2933_vm5, %v13937_v38  ;;  %v8407_v42 = vpack.c.bf16 %v7028_v55, %v7028_v55 }
0x29de   : > { %13597 = vmatprep.subr.msk.bf16.mxu1 %vm2352_vm3, %v7935_v9  ;;  %v13956_v9 = vld [vmem:[%s18414_s26 + $0x2c8] sm:$0xff]  }
0x29e4   : > { %13081 = vmatmul.mubr.msk.bf16.gmra.mrb[92].mxu1 %vm2933_vm5, %v13938_v3  ;;  %v13957_v3 = vld [vmem:[%s18414_s26 + $0x2d0] sm:$0xff]  }
0x29e5   : > { %13086 = vmatprep.mubr.msk.bf16.mxu1 %vm2933_vm5, %v13939_v43  ;;  %v8441_v43 = vsel %vm2352_vm3, %v8407_v42, 0 }
0x29ec   : > { %13087 = vmatmul.mubr.msk.bf16.vlgmr.msra.gmra.mrb[88].mxu1 %vm2933_vm5, %v13940_v18  ;;  %v13958_v18 = vld [vmem:[%s18414_s26 + $0x2d8] sm:$0xff]  }
0x29ed   : > { %13095 = vmatpush3.bf16.msra.mxu1 %v7969_v11  ;;  %13090 = vmatprep.mubr.msk.bf16.mxu1 %vm2933_vm5, %v13941_v14  ;;  %v13959_v14 = vld [vmem:[%s18414_s26 + $0x2e0] sm:$0xff]   ;;  %v13960_v11 = vld [vmem:[%s18414_s26 + $0x2e8] sm:$0xff]  }
0x29ee   : > { %13598 = vmatprep.subr.msk.bf16.mxu1 %vm2352_vm3, %v8053_v12  ;;  %v13961_v12 = vld [vmem:[%s18414_s26 + $0x2f0] sm:$0xff]  }
0x29f4   : > { %13091 = vmatmul.mubr.msk.bf16.gmra.mrb[92].mxu1 %vm2933_vm5, %v13942_v22  ;;  %v13962_v22 = vld [vmem:[%s18414_s26 + $0x2f8] sm:$0xff]  }
0x29f5   : > { %13096 = vmatprep.mubr.msk.bf16.mxu1 %vm2933_vm5, %v13943_v46  ;;  %v8533_v46 = vpop.permute.xlu1 %8532 }
0x29fc   : > { %13097 = vmatmul.mubr.msk.bf16.vlgmr.msra.gmra.mrb[88].mxu1 %vm2933_vm5, %v13944_v29  ;;  %v8528_v29 = vpop.permute.xlu0 %8527 }
0x29fd   : > { %13105 = vmatpush3.bf16.msra.mxu1 %v8087_v30  ;;  %13100 = vmatprep.mubr.msk.bf16.mxu1 %vm2933_vm5, %v13945_v21  ;;  %v8543_v21 = vpop.permute.xlu1 %8542 }
0x29fe   : > { %13599 = vmatprep.subr.msk.bf16.mxu1 %vm2352_vm3, %v8171_v61 }
0x2a00   : > { %v8538_v30 = vpop.permute.xlu0 %8537 }
0x2a01   : > { %v8598_v61 = vpop.permute.xlu1 %8597 }
0x2a04   : > { %13101 = vmatmul.mubr.msk.bf16.gmra.mrb[92].mxu1 %vm2933_vm5, %v13946_v24  ;;  %v8593_v24 = vpop.permute.xlu0 %8592 }
0x2a05   : > { %13106 = vmatprep.mubr.msk.bf16.mxu1 %vm2933_vm5, %v13947_v40  ;;  %v8655_v40 = vpop.permute.xlu1 %8654 }
0x2a0c   : > { %13107 = vmatmul.mubr.msk.bf16.vlgmr.msra.gmra.mrb[88].mxu1 %vm2933_vm5, %v13948_v54  ;;  %v8650_v54 = vpop.permute.xlu0 %8649 }
0x2a0d   : > { %13115 = vmatpush3.bf16.msra.mxu1 %v8205_v36  ;;  %13110 = vmatprep.mubr.msk.bf16.mxu1 %vm2933_vm5, %v13949_v15  ;;  %v8553_v15 = vpop.permute.xlu1 %8552 }
0x2a10   : > { %v8548_v36 = vpop.permute.xlu0 %8547 }
0x2a14   : > { %13111 = vmatmul.mubr.msk.bf16.gmra.mrb[92].mxu1 %vm2933_vm5, %v13950_v49  ;;  %v8608_v49 = vpop.permute.xlu1 %8607 }
0x2a15   : > { %13116 = vmatprep.mubr.msk.bf16.mxu1 %vm2933_vm5, %v13951_v10  ;;  %v8603_v10 = vpop.permute.xlu0 %8602 }
0x2a1c   : > { %13117 = vmatmul.mubr.msk.bf16.vlgmr.msra.gmra.mrb[88].mxu1 %vm2933_vm5, %v13952_v39  ;;  %v8665_v39 = vpop.permute.xlu1 %8664 }
0x2a1d   : > { %13120 = vmatprep.mubr.msk.bf16.mxu1 %vm2933_vm5, %v13953_v13  ;;  %v8660_v13 = vpop.permute.xlu0 %8659 }
0x2a24   : > { %13121 = vmatmul.mubr.msk.bf16.gmra.mrb[92].mxu1 %vm2933_vm5, %v13954_v2  ;;  %v8563_v2 = vpop.permute.xlu1 %8562 }
0x2a25   : > { %13126 = vmatprep.mubr.msk.bf16.mxu1 %vm2933_vm5, %v13955_v53  ;;  %v8558_v53 = vpop.permute.xlu0 %8557 }
0x2a29   : > { %v8613_v5 = vpop.permute.xlu0 %8612 }
0x2a97   : > { %v7564_v50 = vpop.f32.mrb[84].mxu1 }
0x2a98   : > { %v7565_v48 = vadd.f32 %v7564_v50, %v7522_v34  ;;  %v13062_v8 = vpop.f32.mrb[85].mxu1  ;;  %v8618_v34 = vpop.permute.xlu1 %8617 }
0x2a99   : > { %v7567_v58 = vpop.f32.mrb[86].mxu1 }
0x2a9a   : > { %v7570_v23 = vmax.f32 %v7565_v48, 0.0  ;;  %v13063_v31 = vpop.f32.mrb[87].mxu1 }
0x2a9c   : > { %v7578_v6 = vmul.f32 %v7576_v27, %v7570_v23 }
0x2a9e   : > { %v7586_v63 = vadd.f32 %v7584_v0, %v7578_v6  ;;  %v8675_v6 = vpop.permute.xlu1 %8674 }
0x2aa0   : > { %v7587_v52 = vmul.f32 %v14651_v59, %v7586_v63 }
0x2aa2   : > { %v8289_v38 = vpack.c.bf16 %v7587_v52, %v7587_v52 }
0x2aa4   : > { %13600 = vmatprep.subr.msk.bf16.mxu1 %vm2352_vm3, %v8289_v38  ;;  %v8323_v33 = vsel %vm2352_vm3, %v8289_v38, 0  ;;  %v8670_v38 = vpop.permute.xlu0 %8669 }
0x2aa5   : > { %13125 = vmatpush3.bf16.msra.mxu1 %v8323_v33 }
0x2aa6   : > { %13601 = vmatprep.subr.msk.bf16.mxu1 %vm2352_vm3, %v8407_v42 }
0x2aa8   : > { %13127 = vmatmul.mubr.msk.bf16.vlgmr.msra.gmra.mrb[88].mxu1 %vm2933_vm5, %v13956_v9 }
0x2aa9   : > { %13135 = vmatpush3.bf16.msra.mxu1 %v8441_v43  ;;  %13130 = vmatprep.mubr.msk.bf16.mxu1 %vm2933_vm5, %v13957_v3 }
0x2ab0   : > { %13131 = vmatmul.mubr.msk.bf16.gmra.mrb[92].mxu1 %vm2933_vm5, %v13958_v18 }
0x2ab1   : > { %13136 = vmatprep.mubr.msk.bf16.mxu1 %vm2933_vm5, %v13959_v14 }
0x2ab8   : > { %13137 = vmatmul.mubr.msk.bf16.vlgmr.msra.gmra.mrb[88].mxu1 %vm2933_vm5, %v13960_v11 }
0x2ab9   : > { %13140 = vmatprep.mubr.msk.bf16.mxu1 %vm2933_vm5, %v13961_v12 }
0x2ac0   : > { %13141 = vmatmul.mubr.msk.bf16.gmra.mrb[92].mxu1 %vm2933_vm5, %v13962_v22 }
0x2b8b   : > { %v13138_v27 = vpop.f32.mrb[88].mxu1 }
0x2b8c   : > { %v8567_v60 = vadd.f32 %v13138_v27, %v8538_v30  ;;  %v8477_v0 = vpop.f32.mrb[89].mxu1  ;;  %v8628_v30 = vpop.permute.xlu1 %8627 }
0x2b8d   : > { %v8565_v4 = vadd.f32 %v8528_v29, %v8477_v0  ;;  %v13139_v56 = vpop.f32.mrb[90].mxu1 }
0x2b8e   : > { %v8575_v50 = vmax.f32 %v8567_v60, 0.0  ;;  %v8568_v37 = vadd.f32 %v13139_v56, %v8543_v21  ;;  %v8480_v48 = vpop.f32.mrb[91].mxu1 }
0x2b8f   : > { %v8573_v8 = vmax.f32 %v8565_v4, 0.0  ;;  %v8566_v58 = vadd.f32 %v8533_v46, %v8480_v48  ;;  %v11958_v48 = vld [vmem:[%s18325_s10 + $0x40] sm:$0xff] }
0x2b90   : > { %v8632_v23 = vmul.f32 %v8603_v10, %v8575_v50  ;;  %v8576_v31 = vmax.f32 %v8568_v37, 0.0  ;;  %v8623_v10 = vpop.permute.xlu0 %8622  ;;  %13160 = vmatprep.mubr.msk.f32.mxu0 %vm2127_vm1, %v11958_v48 }
0x2b91   : > { %v8630_v7 = vmul.f32 %v8593_v24, %v8573_v8  ;;  %v8574_v20 = vmax.f32 %v8566_v58, 0.0 }
0x2b92   : > { %v8689_v42 = vadd.f32 %v8660_v13, %v8632_v23  ;;  %v8633_v33 = vmul.f32 %v8608_v49, %v8576_v31 }
0x2b93   : > { %v8687_v63 = vadd.f32 %v8650_v54, %v8630_v7  ;;  %v8631_v55 = vmul.f32 %v8598_v61, %v8574_v20  ;;  %v13142_v52 = vpop.f32.mrb[92].mxu1 }
0x2b94   : > { %v8493_v9 = vpop.f32.mrb[93].mxu1  ;;  %v8571_v43 = vadd.f32 %v13142_v52, %v8558_v53  ;;  %v8690_v61 = vadd.f32 %v8665_v39, %v8633_v33  ;;  %v8685_v39 = vpop.permute.xlu1 %8684 }
0x2b95   : > { %v8688_v3 = vadd.f32 %v8655_v40, %v8631_v55  ;;  %v8569_v18 = vadd.f32 %v8548_v36, %v8493_v9  ;;  %v13143_v14 = vpop.f32.mrb[94].mxu1  ;;  %v17122_v11 = vmul.f32 %v14651_v59, %v8687_v63  ;;  %v17130_v36 = vmul.f32 %v14651_v59, %v8689_v42  ;;  %v8680_v56 = vpop.permute.xlu0 %8679 }
0x2b96   : > { %v8572_v12 = vadd.f32 %v13143_v14, %v8563_v2  ;;  %v8496_v22 = vpop.f32.mrb[95].mxu1  ;;  %v8579_v54 = vmax.f32 %v8571_v43, 0.0  ;;  %v17134_v60 = vmul.f32 %v14651_v59, %v8690_v61  ;;  %v11970_v61 = vld [vmem:[%s18327_s12 + $0x80] sm:$0xff] }
0x2b97   : > { %v8577_v46 = vmax.f32 %v8569_v18, 0.0  ;;  %v8570_v29 = vadd.f32 %v8553_v15, %v8496_v22  ;;  %8703 = vadd.xlane.f32.xlu0 %v17122_v11  ;;  %v17126_v21 = vmul.f32 %v14651_v59, %v8688_v3 }
0x2b98   : > { %v8580_v24 = vmax.f32 %v8572_v12, 0.0  ;;  %v8636_v15 = vmul.f32 %v8623_v10, %v8579_v54  ;;  %v11962_v54 = vld [vmem:[%s18326_s11 + $0x40] sm:$0xff] }
0x2b99   : > { %v8634_v40 = vmul.f32 %v8613_v5, %v8577_v46  ;;  %v8578_v49 = vmax.f32 %v8570_v29, 0.0  ;;  %8705 = vadd.xlane.f32.xlu1 %v17126_v21  ;;  %v11959_v46 = vld [vmem:[%s18325_s10 + $0x48] sm:$0xff]  ;;  %v11960_v29 = vld [vmem:[%s18325_s10 + $0x50] sm:$0xff] }
0x2b9a   : > { %v8637_v13 = vmul.f32 %v8628_v30, %v8580_v24  ;;  %v8693_v5 = vadd.f32 %v8680_v56, %v8636_v15  ;;  %v11961_v30 = vld [vmem:[%s18325_s10 + $0x58] sm:$0xff]  ;;  %v11963_v24 = vld [vmem:[%s18326_s11 + $0x48] sm:$0xff] }
0x2b9b   : > { %v8635_v2 = vmul.f32 %v8618_v34, %v8578_v49  ;;  %8707 = vadd.xlane.f32.xlu0 %v17130_v36  ;;  %v8691_v53 = vadd.f32 %v8670_v38, %v8634_v40 }
0x2b9c   : > { %v8694_v0 = vadd.f32 %v8685_v39, %v8637_v13  ;;  %v17150_v37 = vmul.f32 %v14651_v59, %v8693_v5 }
0x2b9d   : > { %v8692_v27 = vadd.f32 %v8675_v6, %v8635_v2  ;;  %v17142_v34 = vmul.f32 %v14651_v59, %v8691_v53  ;;  %v11965_v2 = vld [vmem:[%s18326_s11 + $0x58] sm:$0xff]  ;;  %v11964_v53 = vld [vmem:[%s18326_s11 + $0x50] sm:$0xff] }
0x2b9e   : > { %v17146_v50 = vmul.f32 %v14651_v59, %v8694_v0 }
0x2b9f   : > { %8709 = vadd.xlane.f32.xlu0 %v17134_v60  ;;  %v17138_v4 = vmul.f32 %v14651_v59, %v8692_v27 }
0x2ba1   : > { %8713 = vadd.xlane.f32.xlu1 %v17138_v4 }
0x2ba3   : > { %8711 = vadd.xlane.f32.xlu0 %v17142_v34 }
0x2ba5   : > { %8717 = vadd.xlane.f32.xlu1 %v17146_v50 }
0x2ba7   : > { %8715 = vadd.xlane.f32.xlu0 %v17150_v37 }
0x2c24   : > { %v8704_v8 = vpop.xlane.xlu0 %8703 }
0x2c25   : > { %v8719_v23 = vmul.f32 0.0625, %v8704_v8 }
0x2c26   : > { %v8706_v58 = vpop.xlane.xlu1 %8705 }
0x2c27   : > { %v8720_v31 = vmul.f32 0.0625, %v8706_v58 }
0x2c28   : > { %v8708_v7 = vpop.xlane.xlu0 %8707 }
0x2c29   : > { %v13346_v20 = vpack.c.bf16 %v8720_v31, %v8719_v23  ;;  %v8721_v63 = vmul.f32 0.0625, %v8708_v7  ;;  %v11971_v31 = vld [vmem:[%s18327_s12 + $0x88] sm:$0xff]  ;;  %v11972_v7 = vld [vmem:[%s18327_s12 + $0x90] sm:$0xff] }
0x2c2b   : > { %13347 = vmatprep.subr.bf16.mxu0 %v13346_v20 }
0x2c2c   : > { %13349 = vmatpush3.bf16.msra.mxu0 %v13346_v20  ;;  %v8710_v6 = vpop.xlane.xlu0 %8709  ;;  %v11973_v20 = vld [vmem:[%s18327_s12 + $0x98] sm:$0xff] }
0x2c2d   : > { %v8722_v55 = vmul.f32 0.0625, %v8710_v6  ;;  %v11974_v6 = vld [vmem:[%s18327_s12 + $0xa0] sm:$0xff] }
0x2c2e   : > { %v8714_v52 = vpop.xlane.xlu1 %8713 }
0x2c2f   : > { %v13350_v38 = vpack.c.bf16 %v8722_v55, %v8721_v63  ;;  %v8724_v33 = vmul.f32 0.0625, %v8714_v52  ;;  %v11976_v63 = vld [vmem:[%s18327_s12 + $0xb0] sm:$0xff]  ;;  %v13963_v55 = vld [vmem:[%s18329_s14 + $0x40] sm:$0xff]   ;;  %v13964_v52 = vld [vmem:[%s18329_s14 + $0x48] sm:$0xff]  }
0x2c30   : > { %v8712_v42 = vpop.xlane.xlu0 %8711 }
0x2c31   : > { %v8723_v9 = vmul.f32 0.0625, %v8712_v42  ;;  %13351 = vmatprep.subr.bf16.mxu0 %v13350_v38 }
0x2c32   : > { %v8718_v3 = vpop.xlane.xlu1 %8717  ;;  %13353 = vmatpush3.bf16.msra.mxu0 %v13350_v38  ;;  %v11978_v38 = vld [vmem:[%s18328_s13 + $0x80] sm:$0xff] }
0x2c33   : > { %v13354_v43 = vpack.c.bf16 %v8724_v33, %v8723_v9  ;;  %v8726_v14 = vmul.f32 0.0625, %v8718_v3 }
0x2c34   : > { %v8716_v18 = vpop.xlane.xlu0 %8715 }
0x2c35   : > { %v8725_v12 = vmul.f32 0.0625, %v8716_v18  ;;  %13355 = vmatprep.subr.bf16.mxu0 %v13354_v43 }
0x2c36   : > { %13357 = vmatpush3.bf16.msra.mxu0 %v13354_v43  ;;  %v11981_v43 = vld [vmem:[%s18328_s13 + $0x98] sm:$0xff] }
0x2c37   : > { %v13358_v22 = vpack.c.bf16 %v8726_v14, %v8725_v12  ;;  %v11980_v14 = vld [vmem:[%s18328_s13 + $0x90] sm:$0xff] }
0x2c39   : > { %13359 = vmatprep.subr.bf16.mxu0 %v13358_v22 }
0x2c3a   : > { %13361 = vmatpush3.bf16.msra.mxu0 %v13358_v22 }
0x2c3d   : > { %13161 = vmatmul.mubr.msk.f32.vlgmr.msra.gmra.mrb[100].mxu0 %vm2127_vm1, %v11959_v46  ;;  %v13970_v46 = vld [vmem:[%s18329_s14 + $0x78] sm:$0xff]  }
0x2c3e   : > { %13163 = vmatprep.mubr.msk.f32.mxu0 %vm2127_vm1, %v11960_v29 }
0x2c41   : > { %13164 = vmatmul.mubr.msk.f32.gmra.mrb[102].mxu0 %vm2127_vm1, %v11961_v30 }
0x2c42   : > { %13174 = vmatprep.mubr.msk.f32.mxu0 %vm4157_vm6, %v11970_v61  ;;  %v13971_v61 = vld [vmem:[%s18329_s14] sm:$0xff]  }
0x2d10   : > { %v13162_v40 = vpop.f32.mrb[100].mxu0 }
0x2d11   : > { %v8821_v49 = vadd.f32 %v13162_v40, %v11963_v24  ;;  %v8815_v10 = vpop.f32.mrb[101].mxu0 }
0x2d12   : > { %v8816_v13 = vadd.f32 %v11962_v54, %v8815_v10  ;;  %v11983_v54 = vld [vmem:[%s18328_s13 + $0xa8] sm:$0xff] }
0x2d13   : > { %v8835_v15 = vmax.f32 %v8821_v49, 0.0  ;;  %v11982_v49 = vld [vmem:[%s18328_s13 + $0xa0] sm:$0xff] }
0x2d14   : > { %v8834_v27 = vmax.f32 %v8816_v13, 0.0  ;;  %v13165_v39 = vpop.f32.mrb[102].mxu0 }
0x2d15   : > { %v8831_v0 = vadd.f32 %v13165_v39, %v11965_v2  ;;  %v8825_v56 = vpop.f32.mrb[103].mxu0 }
0x2d16   : > { %v13362_v5 = vpack.c.bf16 %v8835_v15, %v8834_v27  ;;  %v8826_v48 = vadd.f32 %v11964_v53, %v8825_v56  ;;  %v11985_v27 = vld [vmem:[%s18328_s13 + $0xb8] sm:$0xff] }
0x2d17   : > { %v8837_v8 = vmax.f32 %v8831_v0, 0.0  ;;  %v11984_v0 = vld [vmem:[%s18328_s13 + $0xb0] sm:$0xff] }
0x2d18   : > { %v8836_v58 = vmax.f32 %v8826_v48, 0.0  ;;  %13363 = vmatprep.subr.bf16.mxu0 %v13362_v5  ;;  %v13972_v48 = vld [vmem:[%s18329_s14 + $0x8] sm:$0xff]  }
0x2d19   : > { %13365 = vmatpush3.bf16.msra.mxu0 %v13362_v5 }
0x2d1a   : > { %v13366_v23 = vpack.c.bf16 %v8837_v8, %v8836_v58 }
0x2d1c   : > { %13367 = vmatprep.subr.bf16.mxu0 %v13366_v23 }
0x2d1d   : > { %13369 = vmatpush3.bf16.msra.mxu0 %v13366_v23 }
0x2d1e   : > { %13186 = vmatprep.subr.bf16.mxu0 %v16576_v45 }
0x2d20   : > { %13175 = vmatmul.mubr.msk.f32.vlgmr.msra.gmra.mrb[104].mxu0 %vm4157_vm6, %v11971_v31 }
0x2d21   : > { %13187 = vmatpush3.bf16.msra.mxu0 %v16576_v45  ;;  %13177 = vmatprep.mubr.msk.f32.mxu0 %vm4157_vm6, %v11972_v7  ;;  %v11975_v45 = vld [vmem:[%s18327_s12 + $0xa8] sm:$0xff] }
0x2d22   : > { %13188 = vmatprep.subr.bf16.mxu0 %v16591_v17 }
0x2d24   : > { %13178 = vmatmul.mubr.msk.f32.gmra.mrb[106].mxu0 %vm4157_vm6, %v11973_v20 }
0x2d25   : > { %13189 = vmatpush3.bf16.msra.mxu0 %v16591_v17  ;;  %13180 = vmatprep.mubr.msk.f32.mxu0 %vm4157_vm6, %v11974_v6  ;;  %v11977_v17 = vld [vmem:[%s18327_s12 + $0xb8] sm:$0xff] }
0x2d26   : > { %13190 = vmatprep.subr.bf16.mxu0 %v16605_v28 }
0x2d28   : > { %13181 = vmatmul.mubr.msk.f32.gmra.mrb[108].mxu0 %vm4157_vm6, %v11975_v45 }
0x2d29   : > { %13191 = vmatpush3.bf16.msra.mxu0 %v16605_v28  ;;  %13183 = vmatprep.mubr.msk.f32.mxu0 %vm4157_vm6, %v11976_v63  ;;  %v13965_v28 = vld [vmem:[%s18329_s14 + $0x50] sm:$0xff]  }
0x2d2a   : > { %13192 = vmatprep.subr.bf16.mxu0 %v16618_v41 }
0x2d2c   : > { %13184 = vmatmul.mubr.msk.f32.gmra.mrb[110].mxu0 %vm4157_vm6, %v11977_v17 }
0x2d2d   : > { %13193 = vmatpush3.bf16.msra.mxu0 %v16618_v41  ;;  %13194 = vmatprep.mubr.msk.bf16.mxu0 %vm2127_vm1, %v13963_v55  ;;  %v11979_v41 = vld [vmem:[%s18328_s13 + $0x88] sm:$0xff] }
0x2d2e   : > { %13210 = vmatprep.subr.bf16.mxu0 %v15892_v47 }
0x2d30   : > { %13195 = vmatmul.mubr.msk.bf16.vlgmr.msra.gmra.mrb[112].mxu0 %vm2127_vm1, %v13964_v52 }
0x2d31   : > { %13211 = vmatpush3.bf16.msra.mxu0 %v15892_v47  ;;  %v13966_v47 = vld [vmem:[%s18329_s14 + $0x58] sm:$0xff]   ;;  %13198 = vmatprep.mubr.msk.bf16.mxu0 %vm2127_vm1, %v13965_v28 }
0x2d32   : > { %13212 = vmatprep.subr.bf16.mxu0 %v15907_v1 }
0x2d35   : > { %13213 = vmatpush3.bf16.msra.mxu0 %v15907_v1  ;;  %v13967_v1 = vld [vmem:[%s18329_s14 + $0x60] sm:$0xff]  }
0x2d36   : > { %13214 = vmatprep.subr.bf16.mxu0 %v15921_v25 }
0x2d38   : > { %13199 = vmatmul.mubr.msk.bf16.gmra.mrb[116].mxu0 %vm2127_vm1, %v13966_v47 }
0x2d39   : > { %13215 = vmatpush3.bf16.msra.mxu0 %v15921_v25  ;;  %13202 = vmatprep.mubr.msk.bf16.mxu0 %vm2127_vm1, %v13967_v1  ;;  %v13968_v25 = vld [vmem:[%s18329_s14 + $0x68] sm:$0xff]  }
0x2d3a   : > { %13216 = vmatprep.subr.bf16.mxu0 %v15934_v57 }
0x2d3d   : > { %13217 = vmatpush3.bf16.msra.mxu0 %v15934_v57  ;;  %v13969_v57 = vld [vmem:[%s18329_s14 + $0x70] sm:$0xff]  }
0x2d40   : > { %13203 = vmatmul.mubr.msk.bf16.gmra.mrb[120].mxu0 %vm2127_vm1, %v13968_v25 }
0x2d41   : > { %13206 = vmatprep.mubr.msk.bf16.mxu0 %vm2127_vm1, %v13969_v57 }
0x2d48   : > { %13207 = vmatmul.mubr.msk.bf16.gmra.mrb[124].mxu0 %vm2127_vm1, %v13970_v46 }
0x2d49   : > { %13218 = vmatprep.mubr.msk.bf16.mxu0 %vm2127_vm1, %v13971_v61 }
0x2d50   : > { %13219 = vmatmul.mubr.msk.bf16.vlgmr.msra.gmra.mrb[112].mxu0 %vm2127_vm1, %v13972_v48  ;;  %v9652_v48 = vld [vmem:[%s18330_s15 + $0x50] sm:$0xff] }
0x2df3   : > { %v13176_v42 = vpop.f32.mrb[104].mxu0 }
0x2df4   : > { %v8952_v33 = vadd.f32 %v13176_v42, %v11979_v41  ;;  %v8946_v9 = vpop.f32.mrb[105].mxu0 }
0x2df5   : > { %v8947_v3 = vadd.f32 %v11978_v38, %v8946_v9 }
0x2df6   : > { %v11995_v18 = vmul.f32 -1.442695, %v8952_v33 }
0x2df7   : > { %v11994_v12 = vmul.f32 -1.442695, %v8947_v3  ;;  %v13179_v22 = vpop.f32.mrb[106].mxu0  ;;  %v13973_v3 = vld [vmem:[%s18329_s14 + $0x10] sm:$0xff]  }
0x2df8   : > { %14093 = vpow2.f32 %v11995_v18  ;;  %v8962_v29 = vadd.f32 %v13179_v22, %v11981_v43  ;;  %v8956_v30 = vpop.f32.mrb[107].mxu0  ;;  %v13974_v18 = vld [vmem:[%s18329_s14 + $0x18] sm:$0xff]   ;;  %13222 = vmatprep.mubr.msk.bf16.mxu0 %vm2127_vm1, %v13973_v3  ;;  %v9935_v3 = vld [vmem:[%s18334_s19 + $0x68] sm:$0xff] }
0x2df9   : > { %14095 = vpow2.f32 %v11994_v12  ;;  %v8957_v24 = vadd.f32 %v11980_v14, %v8956_v30  ;;  %13223 = vmatmul.mubr.msk.bf16.gmra.mrb[116].mxu0 %vm2127_vm1, %v13974_v18  ;;  %v13976_v30 = vld [vmem:[%s18329_s14 + $0x28] sm:$0xff]   ;;  %v9937_v18 = vld [vmem:[%s18334_s19 + $0x78] sm:$0xff] }
0x2dfa   : > { %v11997_v40 = vmul.f32 -1.442695, %v8962_v29  ;;  %v13975_v29 = vld [vmem:[%s18329_s14 + $0x20] sm:$0xff]  }
0x2dfb   : > { %v11996_v10 = vmul.f32 -1.442695, %v8957_v24  ;;  %v13182_v13 = vpop.f32.mrb[108].mxu0  ;;  %13226 = vmatprep.mubr.msk.bf16.mxu0 %vm2127_vm1, %v13975_v29 }
0x2dfc   : > { %14097 = vpow2.f32 %v11997_v40  ;;  %v8972_v2 = vadd.f32 %v13182_v13, %v11983_v54  ;;  %v8966_v15 = vpop.f32.mrb[109].mxu0  ;;  %v9642_v54 = vld [vmem:[%s18330_s15] sm:$0xff]  ;;  %v9643_v40 = vld [vmem:[%s18330_s15 + $0x8] sm:$0xff]  ;;  %v9644_v13 = vld [vmem:[%s18330_s15 + $0x10] sm:$0xff] }
0x2dfd   : > { %14099 = vpow2.f32 %v11996_v10  ;;  %v8967_v53 = vadd.f32 %v11982_v49, %v8966_v15  ;;  %v13977_v49 = vld [vmem:[%s18329_s14 + $0x30] sm:$0xff]   ;;  %v13978_v10 = vld [vmem:[%s18329_s14 + $0x38] sm:$0xff]   ;;  %v9646_v15 = vld [vmem:[%s18330_s15 + $0x20] sm:$0xff] }
0x2dfe   : > { %v11999_v39 = vmul.f32 -1.442695, %v8972_v2  ;;  %v9645_v2 = vld [vmem:[%s18330_s15 + $0x18] sm:$0xff] }
0x2dff   : > { %v11998_v56 = vmul.f32 -1.442695, %v8967_v53  ;;  %v13185_v5 = vpop.f32.mrb[110].mxu0  ;;  %v9647_v53 = vld [vmem:[%s18330_s15 + $0x28] sm:$0xff] }
0x2e00   : > { %14101 = vpow2.f32 %v11999_v39  ;;  %v8982_v8 = vadd.f32 %v13185_v5, %v11985_v27  ;;  %v8976_v58 = vpop.f32.mrb[111].mxu0  ;;  %v13979_v27 = vld [vmem:[%s18329_s14 + $0x80] sm:$0xff]   ;;  %v9648_v39 = vld [vmem:[%s18330_s15 + $0x30] sm:$0xff]  ;;  %v9651_v5 = vld [vmem:[%s18330_s15 + $0x48] sm:$0xff] }
0x2e01   : > { %14103 = vpow2.f32 %v11998_v56  ;;  %v8977_v23 = vadd.f32 %v11984_v0, %v8976_v58  ;;  %13227 = vmatmul.mubr.msk.bf16.gmra.mrb[120].mxu0 %vm2127_vm1, %v13976_v30  ;;  %v9649_v0 = vld [vmem:[%s18330_s15 + $0x38] sm:$0xff]  ;;  %v9650_v56 = vld [vmem:[%s18330_s15 + $0x40] sm:$0xff] }
0x2e02   : > { %v14094_v31 = vpop.eup %14093  ;;  %v12001_v7 = vmul.f32 -1.442695, %v8982_v8  ;;  %13230 = vmatprep.mubr.msk.bf16.mxu0 %vm2127_vm1, %v13977_v49  ;;  %v9653_v8 = vld [vmem:[%s18330_s15 + $0x58] sm:$0xff]  ;;  %v9654_v58 = vld [vmem:[%s18330_s15 + $0x60] sm:$0xff] }
0x2e03   : > { %v14096_v20 = vpop.eup %14095  ;;  %v9010_v6 = vadd.f32 1.0, %v14094_v31  ;;  %v12000_v45 = vmul.f32 -1.442695, %v8977_v23  ;;  %v9655_v23 = vld [vmem:[%s18330_s15 + $0x68] sm:$0xff]  ;;  %v9656_v31 = vld [vmem:[%s18330_s15 + $0x70] sm:$0xff] }
0x2e04   : > { %v9009_v63 = vadd.f32 1.0, %v14096_v20  ;;  %14105 = vpow2.f32 %v12001_v7  ;;  %v9657_v7 = vld [vmem:[%s18330_s15 + $0x78] sm:$0xff]  ;;  %v9815_v20 = vld [vmem:[%s18332_s17] sm:$0xff] }
0x2e05   : > { %14107 = vrcp.f32 %v9010_v6  ;;  %v9816_v6 = vld [vmem:[%s18332_s17 + $0x8] sm:$0xff] }
0x2e06   : > { %v14098_v17 = vpop.eup %14097  ;;  %14109 = vrcp.f32 %v9009_v63  ;;  %v9818_v63 = vld [vmem:[%s18332_s17 + $0x18] sm:$0xff] }
0x2e07   : > { %v14100_v55 = vpop.eup %14099  ;;  %v9012_v52 = vadd.f32 1.0, %v14098_v17  ;;  %14111 = vpow2.f32 %v12000_v45  ;;  %v9817_v45 = vld [vmem:[%s18332_s17 + $0x10] sm:$0xff]  ;;  %v9922_v17 = vld [vmem:[%s18334_s19] sm:$0xff] }
0x2e08   : > { %v9011_v28 = vadd.f32 1.0, %v14100_v55  ;;  %v9923_v55 = vld [vmem:[%s18334_s19 + $0x8] sm:$0xff] }
0x2e09   : > { %14113 = vrcp.f32 %v9012_v52  ;;  %13231 = vmatmul.mubr.msk.bf16.gmra.mrb[124].mxu0 %vm2127_vm1, %v13978_v10  ;;  %v9924_v52 = vld [vmem:[%s18334_s19 + $0x10] sm:$0xff] }
0x2e0a   : > { %v14102_v47 = vpop.eup %14101  ;;  %14115 = vrcp.f32 %v9011_v28  ;;  %13242 = vmatprep.mubr.msk.bf16.mxu0 %vm2127_vm1, %v13979_v27  ;;  %v9925_v28 = vld [vmem:[%s18334_s19 + $0x18] sm:$0xff] }
0x2e0b   : > { %v14104_v1 = vpop.eup %14103  ;;  %v9014_v25 = vadd.f32 1.0, %v14102_v47  ;;  %v9926_v47 = vld [vmem:[%s18334_s19 + $0x20] sm:$0xff] }
0x2e0c   : > { %v9013_v57 = vadd.f32 1.0, %v14104_v1  ;;  %v9927_v1 = vld [vmem:[%s18334_s19 + $0x28] sm:$0xff] }
0x2e0e   : > { %v14106_v41 = vpop.eup %14105  ;;  %14117 = vrcp.f32 %v9013_v57  ;;  %v9929_v57 = vld [vmem:[%s18334_s19 + $0x38] sm:$0xff] }
0x2e0f   : > { %v14108_v38 = vpop.eup %14107  ;;  %14119 = vrcp.f32 %v9014_v25  ;;  %v9016_v42 = vadd.f32 1.0, %v14106_v41  ;;  %v9928_v25 = vld [vmem:[%s18334_s19 + $0x30] sm:$0xff]  ;;  %v9930_v41 = vld [vmem:[%s18334_s19 + $0x40] sm:$0xff] }
0x2e10   : > { %v14110_v33 = vpop.eup %14109  ;;  %9040 = vperm.xlu1 %13826, %v14108_v38   ;;  %v9931_v38 = vld [vmem:[%s18334_s19 + $0x48] sm:$0xff] }
0x2e11   : > { %v14112_v9 = vpop.eup %14111  ;;  %9035 = vperm.xlu0 %13825, %v14110_v33   ;;  %14121 = vrcp.f32 %v9016_v42  ;;  %v9932_v42 = vld [vmem:[%s18334_s19 + $0x50] sm:$0xff]  ;;  %v9933_v33 = vld [vmem:[%s18334_s19 + $0x58] sm:$0xff] }
0x2e12   : > { %v9015_v43 = vadd.f32 1.0, %v14112_v9  ;;  %v9934_v9 = vld [vmem:[%s18334_s19 + $0x60] sm:$0xff] }
0x2e13   : > { %v14114_v14 = vpop.eup %14113 }
0x2e14   : > { %14123 = vrcp.f32 %v9015_v43  ;;  %9050 = vperm.xlu1 %13826, %v14114_v14   ;;  %v14116_v12 = vpop.eup %14115  ;;  %v9936_v43 = vld [vmem:[%s18334_s19 + $0x70] sm:$0xff] }
0x2e18   : > { %v14118_v22 = vpop.eup %14117  ;;  %9045 = vperm.xlu1 %13826, %v14116_v12  }
0x2e19   : > { %v14120_v46 = vpop.eup %14119  ;;  %9055 = vperm.xlu0 %13825, %v14118_v22  }
0x2e1b   : > { %v14122_v61 = vpop.eup %14121 }
0x2e1c   : > { %9060 = vperm.xlu1 %13826, %v14120_v46  }
0x2e1e   : > { %v14124_v24 = vpop.eup %14123 }
0x2e1f   : > { %9065 = vperm.xlu0 %13825, %v14124_v24  }
0x2e20   : > { %9070 = vperm.xlu1 %13826, %v14122_v61  }
0x2e23   : > { %9660 = vperm.xlu0 %13825, %v9642_v54  }
0x2e24   : > { %9665 = vperm.xlu1 %13826, %v9643_v40  }
0x2e27   : > { %9670 = vperm.xlu0 %13825, %v9644_v13  }
0x2e28   : > { %9675 = vperm.xlu1 %13826, %v9645_v2  }
0x2e2b   : > { %9680 = vperm.xlu0 %13825, %v9646_v15  }
0x2e2c   : > { %9685 = vperm.xlu1 %13826, %v9647_v53  }
0x2e2f   : > { %9690 = vperm.xlu0 %13825, %v9648_v39  }
0x2e30   : > { %9695 = vperm.xlu1 %13826, %v9649_v0   ;;  %v13986_v0 = vld [vmem:[%s18329_s14 + $0xb8] sm:$0xff]  }
0x2e33   : > { %9700 = vperm.xlu0 %13825, %v9650_v56   ;;  %v13987_v56 = vld [vmem:[%s18331_s16] sm:$0xff]  }
0x2e34   : > { %9705 = vperm.xlu1 %13826, %v9651_v5  }
0x2e37   : > { %9710 = vperm.xlu0 %13825, %v9652_v48  }
0x2e38   : > { %9715 = vperm.xlu1 %13826, %v9653_v8  }
0x2e3b   : > { %9720 = vperm.xlu0 %13825, %v9654_v58  }
0x2e3c   : > { %9725 = vperm.xlu1 %13826, %v9655_v23  }
0x2e3f   : > { %9730 = vperm.xlu0 %13825, %v9656_v31  }
0x2e40   : > { %9735 = vperm.xlu1 %13826, %v9657_v7  }
0x2e43   : > { %9821 = vperm.xlu0 %13825, %v9815_v20  }
0x2e44   : > { %9826 = vperm.xlu1 %13826, %v9816_v6  }
0x2e47   : > { %9831 = vperm.xlu0 %13825, %v9817_v45  }
0x2e48   : > { %9836 = vperm.xlu1 %13826, %v9818_v63  }
0x2e4b   : > { %9940 = vperm.xlu0 %13825, %v9922_v17  }
0x2e4c   : > { %9945 = vperm.xlu1 %13826, %v9923_v55  }
0x2e4f   : > { %9950 = vperm.xlu0 %13825, %v9924_v52  }
0x2e50   : > { %9955 = vperm.xlu1 %13826, %v9925_v28  }
0x2e53   : > { %9960 = vperm.xlu0 %13825, %v9926_v47  }
0x2e54   : > { %9965 = vperm.xlu1 %13826, %v9927_v1  }
0x2e57   : > { %9970 = vperm.xlu0 %13825, %v9928_v25  }
0x2e58   : > { %9975 = vperm.xlu1 %13826, %v9929_v57  }
0x2e5b   : > { %9980 = vperm.xlu0 %13825, %v9930_v41  }
0x2e5c   : > { %9985 = vperm.xlu1 %13826, %v9931_v38  }
0x2e5f   : > { %9990 = vperm.xlu0 %13825, %v9932_v42  }
0x2e60   : > { %9995 = vperm.xlu1 %13826, %v9933_v33  }
0x2e63   : > { %10000 = vperm.xlu0 %13825, %v9934_v9  }
0x2e64   : > { %10005 = vperm.xlu1 %13826, %v9935_v3  }
0x2e67   : > { %10010 = vperm.xlu0 %13825, %v9936_v43  }
0x2e68   : > { %10015 = vperm.xlu1 %13826, %v9937_v18  }
0x2e8f   : > { %v9041_v14 = vpop.permute.xlu1 %9040 }
0x2e90   : > { %v9074_v12 = vmul.f32 %v9041_v14, %v17126_v21  ;;  %v9036_v22 = vpop.permute.xlu0 %9035 }
0x2e91   : > { %v9073_v46 = vmul.f32 %v9036_v22, %v17122_v11 }
0x2e92   : > { %v9082_v29 = vadd.f32 %v9074_v12, %v16569_v32 }
0x2e93   : > { %v9081_v30 = vadd.f32 %v9073_v46, %v16572_v62  ;;  %v9051_v61 = vpop.permute.xlu1 %9050 }
0x2e94   : > { %v9076_v54 = vmul.f32 %v9051_v61, %v17134_v60 }
0x2e95   : > { %v9461_v24 = vpack.c.bf16 %v9082_v29, %v9081_v30 }
0x2e96   : > { %v9084_v13 = vadd.f32 %v9076_v54, %v16583_v19 }
0x2e97   : > { %v9046_v40 = vpop.permute.xlu1 %9045  ;;  %13234 = vmatprep.subr.bf16.mxu0 %v9461_v24 }
0x2e98   : > { %v9075_v49 = vmul.f32 %v9046_v40, %v17130_v36  ;;  %13235 = vmatpush3.bf16.msra.mxu0 %v9461_v24  ;;  %v9056_v10 = vpop.permute.xlu0 %9055 }
0x2e99   : > { %v9077_v11 = vmul.f32 %v9056_v10, %v17142_v34 }
0x2e9a   : > { %v9083_v21 = vadd.f32 %v9075_v49, %v16587_v51 }
0x2e9b   : > { %v9061_v2 = vpop.permute.xlu1 %9060  ;;  %v9085_v15 = vadd.f32 %v9077_v11, %v16599_v35  ;;  %v13981_v35 = vld [vmem:[%s18329_s14 + $0x90] sm:$0xff]  }
0x2e9c   : > { %v9078_v32 = vmul.f32 %v9061_v2, %v17138_v4  ;;  %v9462_v62 = vpack.c.bf16 %v9084_v13, %v9083_v21 }
0x2e9e   : > { %v9086_v60 = vadd.f32 %v9078_v32, %v16595_v16  ;;  %v9066_v53 = vpop.permute.xlu0 %9065  ;;  %13236 = vmatprep.subr.bf16.mxu0 %v9462_v62  ;;  %v13980_v16 = vld [vmem:[%s18329_s14 + $0x88] sm:$0xff]  }
0x2e9f   : > { %v9079_v36 = vmul.f32 %v9066_v53, %v17150_v37  ;;  %v9071_v27 = vpop.permute.xlu1 %9070  ;;  %13237 = vmatpush3.bf16.msra.mxu0 %v9462_v62  ;;  %v13985_v37 = vld [vmem:[%s18329_s14 + $0xb0] sm:$0xff]  }
0x2ea0   : > { %v9080_v19 = vmul.f32 %v9071_v27, %v17146_v50  ;;  %v9463_v39 = vpack.c.bf16 %v9086_v60, %v9085_v15  ;;  %v13984_v50 = vld [vmem:[%s18329_s14 + $0xa8] sm:$0xff]  }
0x2ea1   : > { %v9087_v51 = vadd.f32 %v9079_v36, %v16612_v44  ;;  %v13983_v44 = vld [vmem:[%s18329_s14 + $0xa0] sm:$0xff]  }
0x2ea2   : > { %v9088_v34 = vadd.f32 %v9080_v19, %v16609_v26  ;;  %13238 = vmatprep.subr.bf16.mxu0 %v9463_v39  ;;  %v13982_v26 = vld [vmem:[%s18329_s14 + $0x98] sm:$0xff]   ;;  %v9661_v5 = vpop.permute.xlu0 %9660 }
0x2ea3   : > { %13239 = vmatpush3.bf16.msra.mxu0 %v9463_v39  ;;  %v9666_v48 = vpop.permute.xlu1 %9665 }
0x2ea4   : > { %v9464_v4 = vpack.c.bf16 %v9088_v34, %v9087_v51 }
0x2ea6   : > { %13240 = vmatprep.subr.bf16.mxu0 %v9464_v4  ;;  %v9671_v8 = vpop.permute.xlu0 %9670 }
0x2ea7   : > { %13241 = vmatpush3.bf16.msra.mxu0 %v9464_v4  ;;  %v9676_v58 = vpop.permute.xlu1 %9675 }
0x2eaa   : > { %13243 = vmatmul.mubr.msk.bf16.vlgmr.msra.gmra.mrb[112].mxu0 %vm2127_vm1, %v13980_v16  ;;  %v9681_v23 = vpop.permute.xlu0 %9680 }
0x2eab   : > { %13246 = vmatprep.mubr.msk.bf16.mxu0 %vm2127_vm1, %v13981_v35  ;;  %v9686_v31 = vpop.permute.xlu1 %9685 }
0x2eae   : > { %v9691_v7 = vpop.permute.xlu0 %9690 }
0x2eaf   : > { %v9696_v63 = vpop.permute.xlu1 %9695 }
0x2eb2   : > { %13247 = vmatmul.mubr.msk.bf16.gmra.mrb[116].mxu0 %vm2127_vm1, %v13982_v26  ;;  %v9701_v57 = vpop.permute.xlu0 %9700 }
0x2eb3   : > { %13250 = vmatprep.mubr.msk.bf16.mxu0 %vm2127_vm1, %v13983_v44  ;;  %v9706_v42 = vpop.permute.xlu1 %9705 }
0x2eb6   : > { %v9711_v24 = vpop.permute.xlu0 %9710 }
0x2eb7   : > { %v9716_v13 = vpop.permute.xlu1 %9715 }
0x2eba   : > { %13251 = vmatmul.mubr.msk.bf16.gmra.mrb[120].mxu0 %vm2127_vm1, %v13984_v50  ;;  %v9721_v36 = vpop.permute.xlu0 %9720 }
0x2ebb   : > { %13254 = vmatprep.mubr.msk.bf16.mxu0 %vm2127_vm1, %v13985_v37  ;;  %v9726_v16 = vpop.permute.xlu1 %9725 }
0x2ec2   : > { %13255 = vmatmul.mubr.msk.bf16.gmra.mrb[124].mxu0 %vm2127_vm1, %v13986_v0 }
0x2ec3   : > { %13274 = vmatprep.mubr.bf16.mxu0 %v13987_v56  ;;  %v9731_v56 = vpop.permute.xlu0 %9730 }
0x2f7d   : > { %v13244_v20 = vpop.f32.mrb[112].mxu0 }
0x2f7e   : > { %v9740_v6 = vadd.f32 %v13244_v20, %v9671_v8  ;;  %v9563_v45 = vpop.f32.mrb[113].mxu0 }
0x2f7f   : > { %v9738_v17 = vadd.f32 %v9661_v5, %v9563_v45  ;;  %v13245_v55 = vpop.f32.mrb[114].mxu0 }
0x2f80   : > { %9757 = vst.msk [vmem:[%s17481_s3 + $0x10] sm:$0xff] %vm9754_vm7, %v9740_v6  ;;  %v9741_v52 = vadd.f32 %v13245_v55, %v9676_v58  ;;  %v9566_v28 = vpop.f32.mrb[115].mxu0  ;;  %v9773_v41 = vmax.f32 %v9740_v6, 0.0 }
0x2f81   : > { %9755 = vst.msk [vmem:[%s17481_s3] sm:$0xff] %vm9754_vm7, %v9738_v17  ;;  %v9771_v47 = vmax.f32 %v9738_v17, 0.0  ;;  %v9739_v1 = vadd.f32 %v9666_v48, %v9566_v28 }
0x2f82   : > { %9758 = vst.msk [vmem:[%s17481_s3 + $0x18] sm:$0xff] %vm9754_vm7, %v9741_v52  ;;  %v9774_v25 = vmax.f32 %v9741_v52, 0.0  ;;  %v17501_v12 = vmul.f32 %v14651_v59, %v9773_v41 }
0x2f83   : > { %9756 = vst.msk [vmem:[%s17481_s3 + $0x8] sm:$0xff] %vm9754_vm7, %v9739_v1  ;;  %v9772_v38 = vmax.f32 %v9739_v1, 0.0  ;;  %v17492_v33 = vmul.f32 %v14651_v59, %v9771_v47 }
0x2f84   : > { %v17495_v9 = vmul.f32 %v14651_v59, %v9774_v25 }
0x2f85   : > { %v17498_v3 = vmul.f32 %v14651_v59, %v9772_v38  ;;  %v13248_v43 = vpop.f32.mrb[116].mxu0 }
0x2f86   : > { %v9744_v18 = vadd.f32 %v13248_v43, %v9691_v7  ;;  %v9579_v14 = vpop.f32.mrb[117].mxu0  ;;  %v9808_v49 = vpack.c.bf16 %v17495_v9, %v17501_v12  ;;  %v9736_v7 = vpop.permute.xlu1 %9735 }
0x2f87   : > { %v9742_v22 = vadd.f32 %v9681_v23, %v9579_v14  ;;  %v13249_v46 = vpop.f32.mrb[118].mxu0  ;;  %v9807_v29 = vpack.c.bf16 %v17498_v3, %v17492_v33 }
0x2f88   : > { %9761 = vst.msk [vmem:[%s17481_s3 + $0x30] sm:$0xff] %vm9754_vm7, %v9744_v18  ;;  %v9745_v30 = vadd.f32 %v13249_v46, %v9696_v63  ;;  %v9582_v61 = vpop.f32.mrb[119].mxu0  ;;  %v9777_v21 = vmax.f32 %v9744_v18, 0.0  ;;  %v13989_v46 = vld [vmem:[%s18333_s18] sm:$0xff]  }
0x2f89   : > { %9759 = vst.msk [vmem:[%s17481_s3 + $0x20] sm:$0xff] %vm9754_vm7, %v9742_v22  ;;  %v9775_v54 = vmax.f32 %v9742_v22, 0.0  ;;  %v9743_v40 = vadd.f32 %v9686_v31, %v9582_v61  ;;  %13258 = vmatprep.subr.bf16.mxu0 %v9807_v29  ;;  %v13988_v22 = vld [vmem:[%s18331_s16 + $0x8] sm:$0xff]   ;;  %13282 = vmatprep.mubr.msk.bf16.mxu1 %vm4157_vm6, %v13989_v46 }
0x2f8a   : > { %9762 = vst.msk [vmem:[%s17481_s3 + $0x38] sm:$0xff] %vm9754_vm7, %v9745_v30  ;;  %v9778_v10 = vmax.f32 %v9745_v30, 0.0  ;;  %13259 = vmatpush3.bf16.msra.mxu0 %v9807_v29  ;;  %v17525_v27 = vmul.f32 %v14651_v59, %v9777_v21  ;;  %v9822_v29 = vpop.permute.xlu0 %9821  ;;  %v9827_v30 = vpop.permute.xlu1 %9826 }
0x2f8b   : > { %9760 = vst.msk [vmem:[%s17481_s3 + $0x28] sm:$0xff] %vm9754_vm7, %v9743_v40  ;;  %v9776_v11 = vmax.f32 %v9743_v40, 0.0  ;;  %13260 = vmatprep.subr.bf16.mxu0 %v9808_v49  ;;  %v17516_v2 = vmul.f32 %v14651_v59, %v9775_v54 }
0x2f8c   : > { %v17519_v32 = vmul.f32 %v14651_v59, %v9778_v10 }
0x2f8d   : > { %v17522_v62 = vmul.f32 %v14651_v59, %v9776_v11  ;;  %v13252_v15 = vpop.f32.mrb[120].mxu0 }
0x2f8e   : > { %v9748_v60 = vadd.f32 %v13252_v15, %v9711_v24  ;;  %v9595_v53 = vpop.f32.mrb[121].mxu0  ;;  %13261 = vmatpush3.bf16.msra.mxu0 %v9808_v49  ;;  %v9810_v44 = vpack.c.bf16 %v17519_v32, %v17525_v27  ;;  %v9832_v61 = vpop.permute.xlu0 %9831 }
0x2f8f   : > { %v9746_v19 = vadd.f32 %v9701_v57, %v9595_v53  ;;  %v13253_v39 = vpop.f32.mrb[122].mxu0  ;;  %v9809_v51 = vpack.c.bf16 %v17522_v62, %v17516_v2  ;;  %v9837_v49 = vpop.permute.xlu1 %9836 }
0x2f90   : > { %9765 = vst.msk [vmem:[%s17481_s3 + $0x50] sm:$0xff] %vm9754_vm7, %v9748_v60  ;;  %v9749_v34 = vadd.f32 %v13253_v39, %v9716_v13  ;;  %v9598_v4 = vpop.f32.mrb[123].mxu0  ;;  %v9781_v37 = vmax.f32 %v9748_v60, 0.0 }
0x2f91   : > { %9763 = vst.msk [vmem:[%s17481_s3 + $0x40] sm:$0xff] %vm9754_vm7, %v9746_v19  ;;  %v9779_v35 = vmax.f32 %v9746_v19, 0.0  ;;  %v9747_v26 = vadd.f32 %v9706_v42, %v9598_v4  ;;  %13262 = vmatprep.subr.bf16.mxu0 %v9809_v51  ;;  %v13991_v4 = vld [vmem:[%s18333_s18 + $0x10] sm:$0xff]  }
0x2f92   : > { %9766 = vst.msk [vmem:[%s17481_s3 + $0x58] sm:$0xff] %vm9754_vm7, %v9749_v34  ;;  %v9782_v50 = vmax.f32 %v9749_v34, 0.0  ;;  %13263 = vmatpush3.bf16.msra.mxu0 %v9809_v51  ;;  %v17549_v20 = vmul.f32 %v14651_v59, %v9781_v37  ;;  %v13990_v34 = vld [vmem:[%s18333_s18 + $0x8] sm:$0xff]  }
0x2f93   : > { %9764 = vst.msk [vmem:[%s17481_s3 + $0x48] sm:$0xff] %vm9754_vm7, %v9747_v26  ;;  %v9780_v0 = vmax.f32 %v9747_v26, 0.0  ;;  %13264 = vmatprep.subr.bf16.mxu0 %v9810_v44  ;;  %v17540_v5 = vmul.f32 %v14651_v59, %v9779_v35  ;;  %v13993_v35 = vld [vmem:[%s18333_s18 + $0x20] sm:$0xff]   ;;  %v13994_v26 = vld [vmem:[%s18333_s18 + $0x28] sm:$0xff]   ;;  %v9946_v37 = vpop.permute.xlu1 %9945 }
0x2f94   : > { %v17543_v48 = vmul.f32 %v14651_v59, %v9782_v50  ;;  %v13996_v50 = vld [vmem:[%s18333_s18 + $0x38] sm:$0xff]  }
0x2f95   : > { %v17546_v8 = vmul.f32 %v14651_v59, %v9780_v0  ;;  %v13256_v58 = vpop.f32.mrb[124].mxu0  ;;  %v9941_v0 = vpop.permute.xlu0 %9940 }
0x2f96   : > { %v9752_v23 = vadd.f32 %v13256_v58, %v9731_v56  ;;  %v9611_v31 = vpop.f32.mrb[125].mxu0  ;;  %13265 = vmatpush3.bf16.msra.mxu0 %v9810_v44  ;;  %v9812_v47 = vpack.c.bf16 %v17543_v48, %v17549_v20  ;;  %v13995_v44 = vld [vmem:[%s18333_s18 + $0x30] sm:$0xff]  }
0x2f97   : > { %v9750_v6 = vadd.f32 %v9721_v36, %v9611_v31  ;;  %v13257_v45 = vpop.f32.mrb[126].mxu0  ;;  %v9811_v63 = vpack.c.bf16 %v17546_v8, %v17540_v5  ;;  %v9956_v56 = vpop.permute.xlu1 %9955  ;;  %v10195_v31 = vsub.f32 1.0, %v14651_v59 }
0x2f98   : > { %9769 = vst.msk [vmem:[%s17481_s3 + $0x70] sm:$0xff] %vm9754_vm7, %v9752_v23  ;;  %v9753_v17 = vadd.f32 %v13257_v45, %v9736_v7  ;;  %v9614_v55 = vpop.f32.mrb[127].mxu0  ;;  %v9785_v25 = vmax.f32 %v9752_v23, 0.0 }
0x2f99   : > { %9767 = vst.msk [vmem:[%s17481_s3 + $0x60] sm:$0xff] %vm9754_vm7, %v9750_v6  ;;  %v9783_v52 = vmax.f32 %v9750_v6, 0.0  ;;  %v9751_v28 = vadd.f32 %v9726_v16, %v9614_v55  ;;  %13266 = vmatprep.subr.bf16.mxu0 %v9811_v63  ;;  %v13992_v16 = vld [vmem:[%s18333_s18 + $0x18] sm:$0xff]   ;;  %v9951_v58 = vpop.permute.xlu0 %9950 }
0x2f9a   : > { %9770 = vst.msk [vmem:[%s17481_s3 + $0x78] sm:$0xff] %vm9754_vm7, %v9753_v17  ;;  %v9786_v1 = vmax.f32 %v9753_v17, 0.0  ;;  %13267 = vmatpush3.bf16.msra.mxu0 %v9811_v63  ;;  %v17573_v43 = vmul.f32 %v14651_v59, %v9785_v25 }
0x2f9b   : > { %9768 = vst.msk [vmem:[%s17481_s3 + $0x68] sm:$0xff] %vm9754_vm7, %v9751_v28  ;;  %v9784_v57 = vmax.f32 %v9751_v28, 0.0  ;;  %13268 = vmatprep.subr.bf16.mxu0 %v9812_v47  ;;  %v17564_v41 = vmul.f32 %v14651_v59, %v9783_v52  ;;  %v9966_v23 = vpop.permute.xlu1 %9965  ;;  %v17615_v52 = vmul.f32 1e+30, %v10195_v31  ;;  %s18420_s3 = sld [smem:[#allocation29_spill]] }
0x2f9c   : > { %v17567_v38 = vmul.f32 %v14651_v59, %v9786_v1 }
0x2f9d   : > { %v17570_v42 = vmul.f32 %v14651_v59, %v9784_v57  ;;  %v9961_v7 = vpop.permute.xlu0 %9960 }
0x2f9e   : > { %13269 = vmatpush3.bf16.msra.mxu0 %v9812_v47  ;;  %v9814_v14 = vpack.c.bf16 %v17567_v38, %v17573_v43 }
0x2f9f   : > { %v9813_v18 = vpack.c.bf16 %v17570_v42, %v17564_v41  ;;  %v9976_v28 = vpop.permute.xlu1 %9975 }
0x2fa1   : > { %13270 = vmatprep.subr.bf16.mxu0 %v9813_v18  ;;  %v9971_v57 = vpop.permute.xlu0 %9970 }
0x2fa2   : > { %13271 = vmatpush3.bf16.msra.mxu0 %v9813_v18 }
0x2fa3   : > { %13272 = vmatprep.subr.bf16.mxu0 %v9814_v14 }
0x2fa6   : > { %13273 = vmatpush3.bf16.msra.mxu0 %v9814_v14 }
0x2fa9   : > { %13275 = vmatmul.mubr.bf16.vlgmr.msra.gmra.mrb[128].mxu0 %v13988_v22 }
0x307c   : > { %v13276_v24 = vpop.f32.mrb[128].mxu0 }
0x307d   : > { %v9894_v54 = vadd.f32 %v13276_v24, %v9832_v61  ;;  %v9885_v40 = vpop.f32.mrb[129].mxu0  ;;  %v9986_v61 = vpop.permute.xlu1 %9985 }
0x307e   : > { %v9886_v10 = vadd.f32 %v9885_v40, %v9822_v29  ;;  %v13277_v13 = vpop.f32.mrb[130].mxu0 }
0x307f   : > { %14125 = vtanh.f32 %v9894_v54  ;;  %v9897_v21 = vadd.f32 %v13277_v13, %v9837_v49  ;;  %v9888_v11 = vpop.f32.mrb[131].mxu0  ;;  %v9981_v13 = vpop.permute.xlu0 %9980 }
0x3080   : > { %14127 = vtanh.f32 %v9886_v10  ;;  %v9889_v15 = vadd.f32 %v9888_v11, %v9827_v30 }
0x3081   : > { %14129 = vtanh.f32 %v9897_v21 }
0x3082   : > { %14131 = vtanh.f32 %v9889_v15 }
0x3089   : > { %v14126_v60 = vpop.eup %14125 }
0x308a   : > { %v14128_v53 = vpop.eup %14127 }
0x308b   : > { %v14130_v36 = vpop.eup %14129 }
0x308c   : > { %v14132_v19 = vpop.eup %14131  ;;  %v9921_v39 = vpack.c.bf16 %v14130_v36, %v14126_v60 }
0x308d   : > { %v9920_v51 = vpack.c.bf16 %v14132_v19, %v14128_v53 }
0x308f   : > { %13278 = vmatprep.subr.bf16.mxu1 %v9920_v51 }
0x3090   : > { %13279 = vmatpush3.bf16.msra.mxu1 %v9920_v51 }
0x3091   : > { %13280 = vmatprep.subr.bf16.mxu1 %v9921_v39 }
0x3094   : > { %13281 = vmatpush3.bf16.msra.mxu1 %v9921_v39  ;;  %v9996_v39 = vpop.permute.xlu1 %9995 }
0x3097   : > { %13283 = vmatmul.mubr.msk.bf16.vlgmr.msra.gmra.mrb[96].mxu1 %vm4157_vm6, %v13990_v34 }
0x3098   : > { %13286 = vmatprep.mubr.msk.bf16.mxu1 %vm4157_vm6, %v13991_v4  ;;  %v10006_v31 = vpop.permute.xlu1 %10005 }
0x309f   : > { %13287 = vmatmul.mubr.msk.bf16.gmra.mrb[100].mxu1 %vm4157_vm6, %v13992_v16  ;;  %v9991_v16 = vpop.permute.xlu0 %9990 }
0x30a0   : > { %13290 = vmatprep.mubr.msk.bf16.mxu1 %vm4157_vm6, %v13993_v35 }
0x30a7   : > { %13291 = vmatmul.mubr.msk.bf16.gmra.mrb[104].mxu1 %vm4157_vm6, %v13994_v26 }
0x30a8   : > { %13294 = vmatprep.mubr.msk.bf16.mxu1 %vm4157_vm6, %v13995_v44 }
0x30af   : > { %13295 = vmatmul.mubr.msk.bf16.gmra.mrb[108].mxu1 %vm4157_vm6, %v13996_v50 }
0x316a   : > { %v13284_v6 = vpop.f32.mrb[96].mxu1 }
0x316b   : > { %v10116_v45 = vpop.f32.mrb[97].mxu1  ;;  %v10125_v63 = vadd.f32 %v13284_v6, %v9951_v58 }
0x316c   : > { %v10117_v17 = vadd.f32 %v10116_v45, %v9941_v0  ;;  %v13285_v55 = vpop.f32.mrb[98].mxu1 }
0x316d   : > { %v10119_v47 = vpop.f32.mrb[99].mxu1  ;;  %v10181_v18 = vmul.f32 %v14651_v59, %v10125_v63  ;;  %v10128_v14 = vadd.f32 %v13285_v55, %v9956_v56 }
0x316e   : > { %v10179_v1 = vmul.f32 %v14651_v59, %v10117_v17  ;;  %v10120_v25 = vadd.f32 %v10119_v47, %v9946_v37  ;;  %v10001_v17 = vpop.permute.xlu0 %10000 }
0x316f   : > { %v10182_v54 = vmul.f32 %v14651_v59, %v10128_v14  ;;  %v17630_v10 = vsub.f32 %v10181_v18, %v17615_v52 }
0x3170   : > { %v10180_v22 = vmul.f32 %v14651_v59, %v10120_v25  ;;  %v17621_v46 = vsub.f32 %v10179_v1, %v17615_v52 }
0x3171   : > { %v17636_v19 = vsub.f32 %v10182_v54, %v17615_v52 }
0x3172   : > { %v13288_v29 = vpop.f32.mrb[100].mxu1  ;;  %10213 = vmax.xlane.f32.xlu0 %v17621_v46  ;;  %v17625_v30 = vsub.f32 %v10180_v22, %v17615_v52  ;;  %v10016_v22 = vpop.permute.xlu1 %10015 }
0x3173   : > { %v10132_v24 = vpop.f32.mrb[101].mxu1  ;;  %v10141_v60 = vadd.f32 %v13288_v29, %v9971_v57 }
0x3174   : > { %v10133_v40 = vadd.f32 %v10132_v24, %v9961_v7  ;;  %v13289_v49 = vpop.f32.mrb[102].mxu1  ;;  %10215 = vmax.xlane.f32.xlu1 %v17625_v30 }
0x3175   : > { %v10135_v21 = vpop.f32.mrb[103].mxu1  ;;  %v10144_v11 = vadd.f32 %v13289_v49, %v9976_v28  ;;  %v10185_v26 = vmul.f32 %v14651_v59, %v10141_v60 }
0x3176   : > { %v10136_v15 = vadd.f32 %v10135_v21, %v9966_v23  ;;  %10217 = vmax.xlane.f32.xlu0 %v17630_v10  ;;  %v10183_v53 = vmul.f32 %v14651_v59, %v10133_v40  ;;  %v10011_v40 = vpop.permute.xlu0 %10010 }
0x3177   : > { %v10186_v51 = vmul.f32 %v14651_v59, %v10144_v11  ;;  %v17656_v63 = vsub.f32 %v10185_v26, %v17615_v52 }
0x3178   : > { %v10184_v36 = vmul.f32 %v14651_v59, %v10136_v15  ;;  %v17646_v37 = vsub.f32 %v10183_v53, %v17615_v52 }
0x3179   : > { %v17650_v23 = vsub.f32 %v10186_v51, %v17615_v52 }
0x317a   : > { %v13292_v34 = vpop.f32.mrb[104].mxu1  ;;  %10219 = vmax.xlane.f32.xlu0 %v17636_v19  ;;  %v17641_v4 = vsub.f32 %v10184_v36, %v17615_v52 }
0x317b   : > { %v10148_v35 = vpop.f32.mrb[105].mxu1  ;;  %v10157_v7 = vadd.f32 %v13292_v34, %v9991_v16 }
0x317c   : > { %v10149_v44 = vadd.f32 %v10148_v35, %v9981_v13  ;;  %v13293_v50 = vpop.f32.mrb[106].mxu1  ;;  %10223 = vmax.xlane.f32.xlu1 %v17641_v4 }
0x317d   : > { %v10151_v0 = vpop.f32.mrb[107].mxu1  ;;  %v10160_v56 = vadd.f32 %v13293_v50, %v9996_v39  ;;  %v10189_v25 = vmul.f32 %v14651_v59, %v10157_v7 }
0x317e   : > { %v10152_v58 = vadd.f32 %v10151_v0, %v9986_v61  ;;  %10221 = vmax.xlane.f32.xlu0 %v17646_v37  ;;  %v10187_v6 = vmul.f32 %v14651_v59, %v10149_v44 }
0x317f   : > { %v10190_v55 = vmul.f32 %v14651_v59, %v10160_v56  ;;  %v17676_v11 = vsub.f32 %v10189_v25, %v17615_v52 }
0x3180   : > { %v10188_v45 = vmul.f32 %v14651_v59, %v10152_v58  ;;  %10227 = vmax.xlane.f32.xlu1 %v17650_v23  ;;  %v17666_v14 = vsub.f32 %v10187_v6, %v17615_v52 }
0x3181   : > { %v17670_v54 = vsub.f32 %v10190_v55, %v17615_v52 }
0x3182   : > { %v13296_v28 = vpop.f32.mrb[108].mxu1  ;;  %10225 = vmax.xlane.f32.xlu0 %v17656_v63  ;;  %v17661_v47 = vsub.f32 %v10188_v45, %v17615_v52 }
0x3183   : > { %v10164_v1 = vpop.f32.mrb[109].mxu1  ;;  %v10173_v49 = vadd.f32 %v13296_v28, %v10011_v40 }
0x3184   : > { %v10165_v57 = vadd.f32 %v10164_v1, %v10001_v17  ;;  %v13297_v18 = vpop.f32.mrb[110].mxu1  ;;  %10231 = vmax.xlane.f32.xlu1 %v17661_v47 }
0x3185   : > { %v10167_v29 = vpop.f32.mrb[111].mxu1  ;;  %v10176_v61 = vadd.f32 %v13297_v18, %v10016_v22  ;;  %v10193_v53 = vmul.f32 %v14651_v59, %v10173_v49 }
0x3186   : > { %v10168_v24 = vadd.f32 %v10167_v29, %v10006_v31  ;;  %10229 = vmax.xlane.f32.xlu0 %v17666_v14  ;;  %v10191_v13 = vmul.f32 %v14651_v59, %v10165_v57 }
0x3187   : > { %v10194_v15 = vmul.f32 %v14651_v59, %v10176_v61  ;;  %v17694_v51 = vsub.f32 %v10193_v53, %v17615_v52 }
0x3188   : > { %v10192_v21 = vmul.f32 %v14651_v59, %v10168_v24  ;;  %10235 = vmax.xlane.f32.xlu1 %v17670_v54  ;;  %v17686_v36 = vsub.f32 %v10191_v13, %v17615_v52 }
0x3189   : > { %v17690_v39 = vsub.f32 %v10194_v15, %v17615_v52 }
0x318a   : > { %10233 = vmax.xlane.f32.xlu0 %v17676_v11  ;;  %v17681_v60 = vsub.f32 %v10192_v21, %v17615_v52 }
0x318c   : > { %10239 = vmax.xlane.f32.xlu1 %v17681_v60 }
0x318e   : > { %10237 = vmax.xlane.f32.xlu0 %v17686_v36 }
0x3190   : > { %10243 = vmax.xlane.f32.xlu1 %v17690_v39 }
0x3192   : > { %10241 = vmax.xlane.f32.xlu0 %v17694_v51 }
0x31ff   : > { %v10214_v34 = vpop.xlane.xlu0 %10213 }
0x3200   : > { %v10245_v59 = vsub.f32 %v17621_v46, %v10214_v34 }
0x3201   : > { %v10216_v16 = vpop.xlane.xlu1 %10215 }
0x3202   : > { %v10261_v35 = vmul.f32 1.442695, %v10245_v59  ;;  %v10246_v26 = vsub.f32 %v17625_v30, %v10216_v16 }
0x3203   : > { %v10218_v44 = vpop.xlane.xlu0 %10217 }
0x3204   : > { %14133 = vpow2.f32 %v10261_v35  ;;  %v10263_v50 = vmul.f32 1.442695, %v10246_v26  ;;  %v10247_v0 = vsub.f32 %v17630_v10, %v10218_v44 }
0x3206   : > { %14135 = vpow2.f32 %v10263_v50  ;;  %v10265_v56 = vmul.f32 1.442695, %v10247_v0 }
0x3207   : > { %v10220_v58 = vpop.xlane.xlu0 %10219 }
0x3208   : > { %14137 = vpow2.f32 %v10265_v56  ;;  %v10248_v52 = vsub.f32 %v17636_v19, %v10220_v58 }
0x3209   : > { %v10224_v31 = vpop.xlane.xlu1 %10223 }
0x320a   : > { %v10267_v7 = vmul.f32 1.442695, %v10248_v52  ;;  %v10250_v6 = vsub.f32 %v17641_v4, %v10224_v31 }
0x320b   : > { %v10222_v46 = vpop.xlane.xlu0 %10221 }
0x320c   : > { %14139 = vpow2.f32 %v10267_v7  ;;  %v10271_v45 = vmul.f32 1.442695, %v10250_v6  ;;  %v10249_v30 = vsub.f32 %v17646_v37, %v10222_v46 }
0x320d   : > { %v10228_v17 = vpop.xlane.xlu1 %10227 }
0x320e   : > { %v17703_v55 = vpop.eup %14133  ;;  %v10269_v28 = vmul.f32 1.442695, %v10249_v30  ;;  %v10252_v10 = vsub.f32 %v17650_v23, %v10228_v17  ;;  %14141 = vpow2.f32 %v10271_v45 }
0x320f   : > { %10293 = vadd.xlane.f32.xlu0 %v17703_v55  ;;  %v10226_v1 = vpop.xlane.xlu0 %10225 }
0x3210   : > { %v17707_v19 = vpop.eup %14135  ;;  %14143 = vpow2.f32 %v10269_v28  ;;  %v10275_v25 = vmul.f32 1.442695, %v10252_v10  ;;  %v10251_v4 = vsub.f32 %v17656_v63, %v10226_v1 }
0x3211   : > { %10295 = vadd.xlane.f32.xlu1 %v17707_v19  ;;  %v10232_v57 = vpop.xlane.xlu1 %10231 }
0x3212   : > { %v17711_v37 = vpop.eup %14137  ;;  %v10273_v18 = vmul.f32 1.442695, %v10251_v4  ;;  %v10254_v22 = vsub.f32 %v17661_v47, %v10232_v57  ;;  %14145 = vpow2.f32 %v10275_v25 }
0x3213   : > { %10297 = vadd.xlane.f32.xlu0 %v17711_v37  ;;  %v10230_v23 = vpop.xlane.xlu0 %10229 }
0x3214   : > { %14147 = vpow2.f32 %v10273_v18  ;;  %v10279_v29 = vmul.f32 1.442695, %v10254_v22  ;;  %v10253_v61 = vsub.f32 %v17666_v14, %v10230_v23 }
0x3215   : > { %v10236_v24 = vpop.xlane.xlu1 %10235 }
0x3216   : > { %v17716_v40 = vpop.eup %14139  ;;  %v10277_v63 = vmul.f32 1.442695, %v10253_v61  ;;  %v10256_v49 = vsub.f32 %v17670_v54, %v10236_v24  ;;  %14149 = vpow2.f32 %v10279_v29 }
0x3217   : > { %10299 = vadd.xlane.f32.xlu1 %v17716_v40  ;;  %v10234_v13 = vpop.xlane.xlu0 %10233 }
0x3218   : > { %14151 = vpow2.f32 %v10277_v63  ;;  %v10283_v47 = vmul.f32 1.442695, %v10256_v49  ;;  %v10255_v21 = vsub.f32 %v17676_v11, %v10234_v13  ;;  %v17721_v15 = vpop.eup %14141 }
0x3219   : > { %v10240_v53 = vpop.xlane.xlu1 %10239 }
0x321a   : > { %v17723_v34 = vpop.eup %14143  ;;  %v10281_v14 = vmul.f32 1.442695, %v10255_v21  ;;  %v10258_v59 = vsub.f32 %v17681_v60, %v10240_v53  ;;  %14153 = vpow2.f32 %v10283_v47 }
0x321b   : > { %10303 = vadd.xlane.f32.xlu1 %v17721_v15  ;;  %10301 = vadd.xlane.f32.xlu0 %v17723_v34  ;;  %v10238_v54 = vpop.xlane.xlu0 %10237 }
0x321c   : > { %14155 = vpow2.f32 %v10281_v14  ;;  %v10287_v16 = vmul.f32 1.442695, %v10258_v59  ;;  %v10257_v35 = vsub.f32 %v17686_v36, %v10238_v54  ;;  %v17729_v26 = vpop.eup %14145 }
0x321d   : > { %v10244_v11 = vpop.xlane.xlu1 %10243 }
0x321e   : > { %v17731_v44 = vpop.eup %14147  ;;  %v10285_v50 = vmul.f32 1.442695, %v10257_v35  ;;  %v10260_v0 = vsub.f32 %v17690_v39, %v10244_v11  ;;  %14157 = vpow2.f32 %v10287_v16 }
0x321f   : > { %10307 = vadd.xlane.f32.xlu1 %v17729_v26  ;;  %10305 = vadd.xlane.f32.xlu0 %v17731_v44  ;;  %v10242_v60 = vpop.xlane.xlu0 %10241 }
0x3220   : > { %14159 = vpow2.f32 %v10285_v50  ;;  %v10291_v56 = vmul.f32 1.442695, %v10260_v0  ;;  %v10259_v58 = vsub.f32 %v17694_v51, %v10242_v60  ;;  %v17737_v52 = vpop.eup %14149 }
0x3222   : > { %v17739_v36 = vpop.eup %14151  ;;  %v10289_v31 = vmul.f32 1.442695, %v10259_v58  ;;  %14161 = vpow2.f32 %v10291_v56 }
0x3223   : > { %10311 = vadd.xlane.f32.xlu1 %v17737_v52  ;;  %10309 = vadd.xlane.f32.xlu0 %v17739_v36 }
0x3224   : > { %14163 = vpow2.f32 %v10289_v31  ;;  %v17743_v39 = vpop.eup %14153 }
0x3226   : > { %v17745_v7 = vpop.eup %14155 }
0x3227   : > { %10315 = vadd.xlane.f32.xlu1 %v17743_v39  ;;  %10313 = vadd.xlane.f32.xlu0 %v17745_v7 }
0x3228   : > { %v17749_v51 = vpop.eup %14157 }
0x322a   : > { %v17751_v6 = vpop.eup %14159 }
0x322b   : > { %10319 = vadd.xlane.f32.xlu1 %v17749_v51  ;;  %10317 = vadd.xlane.f32.xlu0 %v17751_v6 }
0x322c   : > { %v17755_v46 = vpop.eup %14161 }
0x322e   : > { %v17757_v45 = vpop.eup %14163 }
0x322f   : > { %10323 = vadd.xlane.f32.xlu1 %v17755_v46  ;;  %10321 = vadd.xlane.f32.xlu0 %v17757_v45 }
0x329c   : > { %v10294_v30 = vpop.xlane.xlu0 %10293 }
0x329d   : > { %14165 = vrcp.f32 %v10294_v30 }
0x329e   : > { %v10296_v17 = vpop.xlane.xlu1 %10295 }
0x32a0   : > { %v10298_v28 = vpop.xlane.xlu0 %10297 }
0x32a1   : > { %14167 = vrcp.f32 %v10298_v28 }
0x32a2   : > { %14169 = vrcp.f32 %v10296_v17 }
0x32a4   : > { %v10300_v10 = vpop.xlane.xlu1 %10299 }
0x32a5   : > { %14171 = vrcp.f32 %v10300_v10 }
0x32a7   : > { %v14166_v25 = vpop.eup %14165 }
0x32a8   : > { %v10302_v1 = vpop.xlane.xlu0 %10301  ;;  %v10304_v57 = vpop.xlane.xlu1 %10303  ;;  %v10326_v61 = vmul.f32 %v14166_v25, %v17703_v55 }
0x32aa   : > { %v10357_v47 = vmul.f32 %v10326_v61, %v17492_v33 }
0x32ab   : > { %v14168_v4 = vpop.eup %14167 }
0x32ac   : > { %v10306_v18 = vpop.xlane.xlu0 %10305  ;;  %v10330_v22 = vmul.f32 %v14168_v4, %v17711_v37  ;;  %v14170_v23 = vpop.eup %14169  ;;  %v10405_v59 = vmul.f32 %v10357_v47, %v17492_v33 }
0x32ad   : > { %14173 = vrcp.f32 %v10306_v18  ;;  %v10308_v49 = vpop.xlane.xlu1 %10307  ;;  %v10328_v21 = vmul.f32 %v14170_v23, %v17707_v19 }
0x32ae   : > { %v10359_v29 = vmul.f32 %v10330_v22, %v17501_v12  ;;  %14175 = vrcp.f32 %v10302_v1 }
0x32af   : > { %v14172_v24 = vpop.eup %14171  ;;  %14177 = vrcp.f32 %v10308_v49  ;;  %v10358_v37 = vmul.f32 %v10328_v21, %v17498_v3 }
0x32b0   : > { %10377 = vadd.xlane.f32.xlu0 %v10359_v29  ;;  %v10332_v63 = vmul.f32 %v14172_v24, %v17716_v40  ;;  %v10310_v53 = vpop.xlane.xlu0 %10309  ;;  %v10407_v55 = vmul.f32 %v10359_v29, %v17501_v12  ;;  %14179 = vrcp.f32 %v10304_v57 }
0x32b1   : > { %v10312_v35 = vpop.xlane.xlu1 %10311  ;;  %v10406_v11 = vmul.f32 %v10358_v37, %v17498_v3 }
0x32b2   : > { %v10360_v13 = vmul.f32 %v10332_v63, %v17495_v9 }
0x32b4   : > { %10379 = vadd.xlane.f32.xlu1 %v10360_v13  ;;  %10373 = vadd.xlane.f32.xlu0 %v10357_v47  ;;  %v10314_v40 = vpop.xlane.xlu0 %10313  ;;  %v10408_v54 = vmul.f32 %v10360_v13, %v17495_v9 }
0x32b5   : > { %14181 = vrcp.f32 %v10314_v40  ;;  %v10316_v33 = vpop.xlane.xlu1 %10315  ;;  %v12103_v40 = vld [vmem:[%s18335_s20 + $0x98] sm:$0xff] }
0x32b6   : > { %14183 = vrcp.f32 %v10310_v53 }
0x32b7   : > { %v14174_v14 = vpop.eup %14173  ;;  %14185 = vrcp.f32 %v10316_v33  ;;  %v12101_v33 = vld [vmem:[%s18335_s20 + $0x88] sm:$0xff] }
0x32b8   : > { %10375 = vadd.xlane.f32.xlu1 %v10358_v37  ;;  %10425 = vadd.xlane.f32.xlu0 %v10407_v55  ;;  %v10338_v16 = vmul.f32 %v14174_v14, %v17731_v44  ;;  %v14176_v19 = vpop.eup %14175  ;;  %v10318_v58 = vpop.xlane.xlu0 %10317  ;;  %14187 = vrcp.f32 %v10312_v35  ;;  %v10616_v14 = vld [vmem:[%s18335_s20 + $0x18] sm:$0xff] }
0x32b9   : > { %v10334_v50 = vmul.f32 %v14176_v19, %v17723_v34  ;;  %v14178_v0 = vpop.eup %14177  ;;  %v10320_v1 = vpop.xlane.xlu1 %10319  ;;  %14189 = vrcp.f32 %v10318_v58 }
0x32ba   : > { %v10363_v12 = vmul.f32 %v10338_v16, %v17525_v27  ;;  %v10340_v60 = vmul.f32 %v14178_v0, %v17729_v26  ;;  %v14180_v56 = vpop.eup %14179 }
0x32bb   : > { %v10361_v9 = vmul.f32 %v10334_v50, %v17516_v2  ;;  %v10336_v31 = vmul.f32 %v14180_v56, %v17721_v15 }
0x32bc   : > { %10421 = vadd.xlane.f32.xlu1 %v10405_v59  ;;  %10427 = vadd.xlane.f32.xlu0 %v10408_v54  ;;  %v10411_v44 = vmul.f32 %v10363_v12, %v17525_v27  ;;  %v10364_v3 = vmul.f32 %v10340_v60, %v17519_v32  ;;  %v10322_v17 = vpop.xlane.xlu0 %10321  ;;  %v12100_v54 = vld [vmem:[%s18335_s20 + $0x80] sm:$0xff] }
0x32bd   : > { %v10409_v34 = vmul.f32 %v10361_v9, %v17516_v2  ;;  %v10362_v27 = vmul.f32 %v10336_v31, %v17522_v62  ;;  %14191 = vrcp.f32 %v10322_v17  ;;  %v10324_v57 = vpop.xlane.xlu1 %10323 }
0x32be   : > { %v10412_v26 = vmul.f32 %v10364_v3, %v17519_v32  ;;  %14193 = vrcp.f32 %v10320_v1 }
0x32bf   : > { %v14182_v30 = vpop.eup %14181  ;;  %v10410_v2 = vmul.f32 %v10362_v27, %v17522_v62  ;;  %14195 = vrcp.f32 %v10324_v57 }
0x32c0   : > { %10423 = vadd.xlane.f32.xlu0 %v10406_v11  ;;  %10385 = vadd.xlane.f32.xlu1 %v10363_v12  ;;  %v10346_v28 = vmul.f32 %v14182_v30, %v17745_v7  ;;  %v14184_v10 = vpop.eup %14183  ;;  %v10614_v11 = vld [vmem:[%s18335_s20 + $0x8] sm:$0xff] }
0x32c1   : > { %v10342_v25 = vmul.f32 %v14184_v10, %v17739_v36  ;;  %v14186_v4 = vpop.eup %14185 }
0x32c2   : > { %v10367_v15 = vmul.f32 %v10346_v28, %v17549_v20  ;;  %v10348_v18 = vmul.f32 %v14186_v4, %v17743_v39  ;;  %v14188_v22 = vpop.eup %14187  ;;  %v10619_v28 = vld [vmem:[%s18335_s20 + $0x30] sm:$0xff] }
0x32c3   : > { %v10365_v32 = vmul.f32 %v10342_v25, %v17540_v5  ;;  %v14190_v62 = vpop.eup %14189  ;;  %v10344_v29 = vmul.f32 %v14188_v22, %v17737_v52 }
0x32c4   : > { %10381 = vadd.xlane.f32.xlu1 %v10361_v9  ;;  %10433 = vadd.xlane.f32.xlu0 %v10411_v44  ;;  %v10415_v7 = vmul.f32 %v10367_v15, %v17549_v20  ;;  %v10368_v23 = vmul.f32 %v10348_v18, %v17543_v48  ;;  %v10350_v63 = vmul.f32 %v14190_v62, %v17751_v6 }
0x32c5   : > { %v10413_v36 = vmul.f32 %v10365_v32, %v17540_v5  ;;  %v10366_v24 = vmul.f32 %v10344_v29, %v17546_v8 }
0x32c6   : > { %v10416_v20 = vmul.f32 %v10368_v23, %v17543_v48  ;;  %v10369_v52 = vmul.f32 %v10350_v63, %v17564_v41 }
0x32c7   : > { %v14192_v61 = vpop.eup %14191  ;;  %v10414_v13 = vmul.f32 %v10366_v24, %v17546_v8 }
0x32c8   : > { %10387 = vadd.xlane.f32.xlu1 %v10364_v3  ;;  %10429 = vadd.xlane.f32.xlu0 %v10409_v34  ;;  %v10354_v39 = vmul.f32 %v14192_v61, %v17757_v45  ;;  %v14194_v49 = vpop.eup %14193  ;;  %v10417_v48 = vmul.f32 %v10369_v52, %v17564_v41  ;;  %v10615_v41 = vld [vmem:[%s18335_s20 + $0x10] sm:$0xff] }
0x32c9   : > { %v10352_v47 = vmul.f32 %v14194_v49, %v17749_v51  ;;  %v14196_v21 = vpop.eup %14195 }
0x32ca   : > { %v10371_v5 = vmul.f32 %v10354_v39, %v17573_v43  ;;  %v10356_v6 = vmul.f32 %v14196_v21, %v17755_v46  ;;  %v12102_v46 = vld [vmem:[%s18335_s20 + $0x90] sm:$0xff] }
0x32cb   : > { %v10370_v45 = vmul.f32 %v10352_v47, %v17570_v42 }
0x32cc   : > { %10383 = vadd.xlane.f32.xlu1 %v10362_v27  ;;  %10435 = vadd.xlane.f32.xlu0 %v10412_v26  ;;  %v10372_v8 = vmul.f32 %v10356_v6, %v17567_v38  ;;  %v10419_v37 = vmul.f32 %v10371_v5, %v17573_v43  ;;  %v10613_v43 = vld [vmem:[%s18335_s20] sm:$0xff] }
0x32cd   : > { %v10418_v53 = vmul.f32 %v10370_v45, %v17570_v42 }
0x32ce   : > { %v10420_v51 = vmul.f32 %v10372_v8, %v17567_v38 }
0x32d0   : > { %10431 = vadd.xlane.f32.xlu0 %v10410_v2  ;;  %10393 = vadd.xlane.f32.xlu1 %v10367_v15  ;;  %v12106_v15 = vld [vmem:[%s18335_s20 + $0xb0] sm:$0xff] }
0x32d4   : > { %10389 = vadd.xlane.f32.xlu1 %v10365_v32  ;;  %10441 = vadd.xlane.f32.xlu0 %v10415_v7  ;;  %v10617_v7 = vld [vmem:[%s18335_s20 + $0x20] sm:$0xff] }
0x32d8   : > { %10395 = vadd.xlane.f32.xlu1 %v10368_v23  ;;  %10437 = vadd.xlane.f32.xlu0 %v10413_v36  ;;  %v12104_v23 = vld [vmem:[%s18335_s20 + $0xa0] sm:$0xff] }
0x32dc   : > { %10391 = vadd.xlane.f32.xlu1 %v10366_v24  ;;  %10443 = vadd.xlane.f32.xlu0 %v10416_v20  ;;  %v10620_v20 = vld [vmem:[%s18335_s20 + $0x38] sm:$0xff] }
0x32e0   : > { %10439 = vadd.xlane.f32.xlu0 %v10414_v13  ;;  %10401 = vadd.xlane.f32.xlu1 %v10371_v5  ;;  %v12107_v5 = vld [vmem:[%s18335_s20 + $0xb8] sm:$0xff] }
0x32e4   : > { %10445 = vadd.xlane.f32.xlu0 %v10417_v48  ;;  %10397 = vadd.xlane.f32.xlu1 %v10369_v52 }
0x32e8   : > { %10447 = vadd.xlane.f32.xlu0 %v10418_v53  ;;  %10403 = vadd.xlane.f32.xlu1 %v10372_v8 }
0x32ec   : > { %10399 = vadd.xlane.f32.xlu1 %v10370_v45  ;;  %10449 = vadd.xlane.f32.xlu0 %v10419_v37  ;;  %v10618_v45 = vld [vmem:[%s18335_s20 + $0x28] sm:$0xff] }
0x32f0   : > { %10451 = vadd.xlane.f32.xlu1 %v10420_v51 }
0x333d   : > { %v10378_v42 = vpop.xlane.xlu0 %10377 }
0x333e   : > { %v10631_v55 = vmul.f32 %v10615_v41, %v10378_v42  ;;  %v10455_v12 = vmul.f32 %v10378_v42, %v10378_v42 }
0x3340   : > { %v10664_v38 = vadd.f32 %v12102_v46, %v10631_v55  ;;  %v12105_v46 = vld [vmem:[%s18335_s20 + $0xa8] sm:$0xff] }
0x3341   : > { %v10380_v59 = vpop.xlane.xlu1 %10379  ;;  %v10374_v16 = vpop.xlane.xlu0 %10373 }
0x3342   : > { %v10632_v19 = vmul.f32 %v10616_v14, %v10380_v59  ;;  %v10629_v35 = vmul.f32 %v10613_v43, %v10374_v16  ;;  %10772 = vperm.xlu1 %13826, %v10664_v38   ;;  %v10456_v58 = vmul.f32 %v10380_v59, %v10380_v59  ;;  %v10453_v3 = vmul.f32 %v10374_v16, %v10374_v16 }
0x3344   : > { %v10665_v50 = vadd.f32 %v12103_v40, %v10632_v19  ;;  %v10662_v0 = vadd.f32 %v12100_v54, %v10629_v35 }
0x3345   : > { %v10376_v9 = vpop.xlane.xlu1 %10375  ;;  %v10426_v44 = vpop.xlane.xlu0 %10425 }
0x3346   : > { %v10630_v60 = vmul.f32 %v10614_v11, %v10376_v9  ;;  %v10471_v56 = vsub.f32 %v10426_v44, %v10455_v12  ;;  %10777 = vperm.xlu1 %13826, %v10665_v50   ;;  %10762 = vperm.xlu0 %13825, %v10662_v0   ;;  %v10454_v10 = vmul.f32 %v10376_v9, %v10376_v9  ;;  %v12119_v9 = vld [vmem:[%s18335_s20 + $0x118] sm:$0xff] }
0x3348   : > { %v10663_v34 = vadd.f32 %v12101_v33, %v10630_v60  ;;  %v17833_v31 = vmax.f32 %v10471_v56, 1e-09 }
0x3349   : > { %v10422_v30 = vpop.xlane.xlu1 %10421  ;;  %v10428_v17 = vpop.xlane.xlu0 %10427 }
0x334a   : > { %14197 = vrsqrt.f32 %v17833_v31  ;;  %v10469_v27 = vsub.f32 %v10422_v30, %v10453_v3  ;;  %v10472_v26 = vsub.f32 %v10428_v17, %v10456_v58  ;;  %10767 = vperm.xlu1 %13826, %v10663_v34   ;;  %vm10517_vm8 = vcmp.eq.f32.partialorder %v17833_v31, inf  ;;  %v12117_v3 = vld [vmem:[%s18335_s20 + $0x108] sm:$0xff]  ;;  %v10621_v34 = vld [vmem:[%s18335_s20 + $0x40] sm:$0xff]  ;;  %v12135_v17 = vld [vmem:[%s18335_s20 + $0x198] sm:$0xff] }
0x334b   : > { %vm10519_vm11 = vcmp.eq.f32.partialorder %v17833_v31, 0.0  ;;  %v10520_v14 = vand.u32 2147483648, %v17833_v31 }
0x334c   : > { %v17839_v1 = vmax.f32 %v10469_v27, 1e-09  ;;  %v17841_v2 = vmax.f32 %v10472_v26, 1e-09 }
0x334d   : > { %v10386_v25 = vpop.xlane.xlu1 %10385  ;;  %v10424_v4 = vpop.xlane.xlu0 %10423 }
0x334e   : > { %14199 = vrsqrt.f32 %v17839_v1  ;;  %v10635_v57 = vmul.f32 %v10619_v28, %v10386_v25  ;;  %v10470_v32 = vsub.f32 %v10424_v4, %v10454_v10  ;;  %v10459_v18 = vmul.f32 %v10386_v25, %v10386_v25  ;;  %v12118_v28 = vld [vmem:[%s18335_s20 + $0x110] sm:$0xff] }
0x334f   : > { %14201 = vrsqrt.f32 %v17841_v2  ;;  %vm10524_vm9 = vcmp.eq.f32.partialorder %v17841_v2, inf  ;;  %vm10526_vm10 = vcmp.eq.f32.partialorder %v17841_v2, 0.0  ;;  %v10527_v40 = vand.u32 2147483648, %v17841_v2 }
0x3350   : > { %v10668_v22 = vadd.f32 %v12106_v15, %v10635_v57  ;;  %v17851_v62 = vmax.f32 %v10470_v32, 1e-09  ;;  %vm10503_vm12 = vcmp.eq.f32.partialorder %v17839_v1, inf  ;;  %vm10505_vm13 = vcmp.eq.f32.partialorder %v17839_v1, 0.0 }
0x3351   : > { %v10382_v36 = vpop.xlane.xlu1 %10381  ;;  %v10434_v29 = vpop.xlane.xlu0 %10433  ;;  %v10506_v60 = vand.u32 2147483648, %v17839_v1 }
0x3352   : > { %14203 = vrsqrt.f32 %v17851_v62  ;;  %v10633_v61 = vmul.f32 %v10617_v7, %v10382_v36  ;;  %v10475_v24 = vsub.f32 %v10434_v29, %v10459_v18  ;;  %10792 = vperm.xlu0 %13825, %v10668_v22   ;;  %v10457_v63 = vmul.f32 %v10382_v36, %v10382_v36  ;;  %v12133_v22 = vld [vmem:[%s18335_s20 + $0x188] sm:$0xff] }
0x3353   : > { %vm10510_vm14 = vcmp.eq.f32.partialorder %v17851_v62, inf  ;;  %vm10512_vm15 = vcmp.eq.f32.partialorder %v17851_v62, 0.0  ;;  %v10513_v58 = vand.u32 2147483648, %v17851_v62 }
0x3354   : > { %v14198_v39 = vpop.eup %14197  ;;  %v10666_v49 = vadd.f32 %v12104_v23, %v10633_v61  ;;  %v17860_v13 = vmax.f32 %v10475_v24, 1e-09  ;;  %v12122_v61 = vld [vmem:[%s18335_s20 + $0x130] sm:$0xff] }
0x3355   : > { %v10388_v52 = vpop.xlane.xlu1 %10387  ;;  %v10430_v47 = vpop.xlane.xlu0 %10429  ;;  %v10516_v6 = vmul.f32 %v14198_v39, %v17833_v31 }
0x3356   : > { %14205 = vrsqrt.f32 %v17860_v13  ;;  %v10636_v21 = vmul.f32 %v10620_v20, %v10388_v52  ;;  %v10473_v48 = vsub.f32 %v10430_v47, %v10457_v63  ;;  %10782 = vperm.xlu0 %13825, %v10666_v49   ;;  %v10460_v8 = vmul.f32 %v10388_v52, %v10388_v52  ;;  %v12134_v63 = vld [vmem:[%s18335_s20 + $0x190] sm:$0xff] }
0x3357   : > { %v10518_v54 = vsel %vm10517_vm8, %v17833_v31, %v10516_v6  ;;  %vm10545_vm0 = vcmp.eq.f32.partialorder %v17860_v13, inf  ;;  %v12108_v31 = vld [vmem:[%s18335_s20 + $0xc0] sm:$0xff]  ;;  %v10548_v23 = vand.u32 2147483648, %v17860_v13  ;;  %vm10547_vm1 = vcmp.eq.f32.partialorder %v17860_v13, 0.0 }
0x3358   : > { %v14200_v53 = vpop.eup %14199  ;;  %v10669_v37 = vadd.f32 %v12107_v5, %v10636_v21  ;;  %v17870_v51 = vmax.f32 %v10473_v48, 1e-09  ;;  %v10521_v26 = vsel %vm10519_vm11, %v10520_v14, %v10518_v54 }
0x3359   : > { %v14202_v41 = vpop.eup %14201  ;;  %v10384_v42 = vpop.xlane.xlu1 %10383  ;;  %v10502_v12 = vmul.f32 %v14200_v53, %v17839_v1  ;;  %v10697_v24 = vmul.f32 %v12118_v28, %v10521_v26 }
0x335a   : > { %v10436_v55 = vpop.xlane.xlu0 %10435  ;;  %14207 = vrsqrt.f32 %v17870_v51  ;;  %v10634_v43 = vmul.f32 %v10618_v45, %v10384_v42  ;;  %10797 = vperm.xlu0 %13825, %v10669_v37   ;;  %v10523_v59 = vmul.f32 %v14202_v41, %v17841_v2  ;;  %v10458_v19 = vmul.f32 %v10384_v42, %v10384_v42  ;;  %v12116_v45 = vld [vmem:[%s18335_s20 + $0x100] sm:$0xff] }
0x335b   : > { %v10476_v38 = vsub.f32 %v10436_v55, %v10460_v8  ;;  %v10504_v4 = vsel %vm10503_vm12, %v17839_v1, %v10502_v12  ;;  %v12138_v1 = vld [vmem:[%s18335_s20 + $0x1b0] sm:$0xff]  ;;  %vm10531_vm2 = vcmp.eq.f32.partialorder %v17870_v51, inf  ;;  %v10534_v42 = vand.u32 2147483648, %v17870_v51  ;;  %v12120_v55 = vld [vmem:[%s18335_s20 + $0x120] sm:$0xff] }
0x335c   : > { %v14204_v16 = vpop.eup %14203  ;;  %v10667_v35 = vadd.f32 %v12105_v46, %v10634_v43  ;;  %v10525_v33 = vsel %vm10524_vm9, %v17841_v2, %v10523_v59  ;;  %v10507_v49 = vsel %vm10505_vm13, %v10506_v60, %v10504_v4  ;;  %v10730_v46 = vadd.f32 %v12134_v63, %v10697_v24 }
0x335d   : > { %v17886_v11 = vmax.f32 %v10476_v38, 1e-09  ;;  %v17889_v50 = vpop.xlane.xlu1 %10393  ;;  %v10509_v44 = vmul.f32 %v14204_v16, %v17851_v62  ;;  %v10528_v30 = vsel %vm10526_vm10, %v10527_v40, %v10525_v33  ;;  %vm10533_vm3 = vcmp.eq.f32.partialorder %v17870_v51, 0.0  ;;  %v12136_v33 = vld [vmem:[%s18335_s20 + $0x1a0] sm:$0xff] }
0x335e   : > { %v10432_v0 = vpop.xlane.xlu0 %10431  ;;  %10787 = vperm.xlu0 %13825, %v10667_v35   ;;  %v10698_v2 = vmul.f32 %v12119_v9, %v10528_v30  ;;  %v10463_v57 = vmul.f32 %v17889_v50, %v17889_v50  ;;  %v10695_v43 = vmul.f32 %v12116_v45, %v10507_v49  ;;  %v10622_v35 = vld [vmem:[%s18335_s20 + $0x48] sm:$0xff]  ;;  %v12126_v45 = vld [vmem:[%s18335_s20 + $0x150] sm:$0xff] }
0x335f   : > { %14209 = vrsqrt.f32 %v17886_v11  ;;  %v10474_v56 = vsub.f32 %v10432_v0, %v10458_v19  ;;  %v10511_v27 = vsel %vm10510_vm14, %v17851_v62, %v10509_v44  ;;  %v12132_v19 = vld [vmem:[%s18335_s20 + $0x180] sm:$0xff]  ;;  %vm10552_vm4 = vcmp.eq.f32.partialorder %v17886_v11, inf }
0x3360   : > { %v14206_v10 = vpop.eup %14205  ;;  %v10514_v25 = vsel %vm10512_vm15, %v10513_v58, %v10511_v27  ;;  %v10731_v29 = vadd.f32 %v12135_v17, %v10698_v2  ;;  %v10555_v60 = vand.u32 2147483648, %v17886_v11  ;;  %vm10554_vm5 = vcmp.eq.f32.partialorder %v17886_v11, 0.0  ;;  %v10623_v17 = vld [vmem:[%s18335_s20 + $0x50] sm:$0xff]  ;;  %v12109_v2 = vld [vmem:[%s18335_s20 + $0xc8] sm:$0xff] }
0x3361   : > { %v17921_v15 = vmax.f32 %v10474_v56, 1e-09  ;;  %v10390_v32 = vpop.xlane.xlu1 %10389  ;;  %v10696_v18 = vmul.f32 %v12117_v3, %v10514_v25  ;;  %v10544_v62 = vmul.f32 %v14206_v10, %v17860_v13  ;;  %v12123_v56 = vld [vmem:[%s18335_s20 + $0x138] sm:$0xff]  ;;  %v10728_v3 = vadd.f32 %v12132_v19, %v10695_v43 }
0x3362   : > { %v10442_v7 = vpop.xlane.xlu0 %10441  ;;  %v10637_v36 = vmul.f32 %v10621_v34, %v10390_v32  ;;  %v10461_v52 = vmul.f32 %v10390_v32, %v10390_v32  ;;  %10926 = vperm.xlu1 %13826, %v10731_v29  }
0x3363   : > { %14211 = vrsqrt.f32 %v17921_v15  ;;  %v10479_v20 = vsub.f32 %v10442_v7, %v10463_v57  ;;  %v10546_v39 = vsel %vm10545_vm0, %v17860_v13, %v10544_v62  ;;  %v10729_v21 = vadd.f32 %v12133_v22, %v10696_v18  ;;  %v12121_v18 = vld [vmem:[%s18335_s20 + $0x128] sm:$0xff] }
0x3364   : > { %v14208_v5 = vpop.eup %14207  ;;  %v10670_v47 = vadd.f32 %v12108_v31, %v10637_v36  ;;  %v10549_v48 = vsel %vm10547_vm1, %v10548_v23, %v10546_v39  ;;  %vm10538_vm7 = vcmp.eq.f32.partialorder %v17921_v15, inf  ;;  %v10541_v7 = vand.u32 2147483648, %v17921_v15  ;;  %v12110_v23 = vld [vmem:[%s18335_s20 + $0xd0] sm:$0xff]  ;;  %v10624_v36 = vld [vmem:[%s18335_s20 + $0x58] sm:$0xff] }
0x3365   : > { %v17952_v6 = vmax.f32 %v10479_v20, 1e-09  ;;  %v17954_v13 = vpop.xlane.xlu1 %10395  ;;  %v10701_v8 = vmul.f32 %v12122_v61, %v10549_v48  ;;  %v10530_v37 = vmul.f32 %v14208_v5, %v17870_v51  ;;  %v10639_v22 = vmul.f32 %v10623_v17, %v17889_v50 }
0x3366   : > { %v10438_v53 = vpop.xlane.xlu0 %10437  ;;  %10802 = vperm.xlu0 %13825, %v10670_v47   ;;  %v10464_v40 = vmul.f32 %v17954_v13, %v17954_v13  ;;  %10916 = vperm.xlu1 %13826, %v10729_v21   ;;  %vm10540_vm8 = vcmp.eq.f32.partialorder %v17921_v15, 0.0  ;;  %v10640_v21 = vmul.f32 %v10624_v36, %v17954_v13 }
0x3367   : > { %v10477_v41 = vsub.f32 %v10438_v53, %v10461_v52  ;;  %14213 = vrsqrt.f32 %v17952_v6  ;;  %v10532_v14 = vsel %vm10531_vm2, %v17870_v51, %v10530_v37  ;;  %v10734_v54 = vadd.f32 %v12138_v1, %v10701_v8  ;;  %v12111_v8 = vld [vmem:[%s18335_s20 + $0xd8] sm:$0xff]  ;;  %v10627_v1 = vld [vmem:[%s18335_s20 + $0x70] sm:$0xff] }
0x3368   : > { %v10535_v16 = vsel %vm10533_vm3, %v10534_v42, %v10532_v14  ;;  %v10672_v47 = vadd.f32 %v12110_v23, %v10639_v22  ;;  %vm10573_vm9 = vcmp.eq.f32.partialorder %v17952_v6, inf  ;;  %v10576_v48 = vand.u32 2147483648, %v17952_v6  ;;  %v12142_v14 = vld [vmem:[%s18335_s20 + $0x1d0] sm:$0xff] }
0x3369   : > { %v14210_v38 = vpop.eup %14209  ;;  %v17970_v59 = vmax.f32 %v10477_v41, 1e-09  ;;  %v10392_v12 = vpop.xlane.xlu1 %10391  ;;  %v10699_v0 = vmul.f32 %v12120_v55, %v10535_v16  ;;  %vm10575_vm10 = vcmp.eq.f32.partialorder %v17952_v6, 0.0  ;;  %v10673_v16 = vadd.f32 %v12111_v8, %v10640_v21 }
0x336a   : > { %v10444_v51 = vpop.xlane.xlu0 %10443  ;;  %v10551_v9 = vmul.f32 %v14210_v38, %v17886_v11  ;;  %10921 = vperm.xlu0 %13825, %v10730_v46   ;;  %v10462_v58 = vmul.f32 %v10392_v12, %v10392_v12  ;;  %v10638_v27 = vmul.f32 %v10622_v35, %v10392_v12  ;;  %10941 = vperm.xlu1 %13826, %v10734_v54  }
0x336b   : > { %14215 = vrsqrt.f32 %v17970_v59  ;;  %v10480_v44 = vsub.f32 %v10444_v51, %v10464_v40  ;;  %v10732_v28 = vadd.f32 %v12136_v33, %v10699_v0  ;;  %vm10559_vm11 = vcmp.eq.f32.partialorder %v17970_v59, inf  ;;  %v12114_v51 = vld [vmem:[%s18335_s20 + $0xf0] sm:$0xff]  ;;  %v10625_v33 = vld [vmem:[%s18335_s20 + $0x60] sm:$0xff] }
0x336c   : > { %v10553_v34 = vsel %vm10552_vm4, %v17886_v11, %v10551_v9  ;;  %v12139_v11 = vld [vmem:[%s18335_s20 + $0x1b8] sm:$0xff]  ;;  %v10671_v29 = vadd.f32 %v12109_v2, %v10638_v27  ;;  %v10562_v54 = vand.u32 2147483648, %v17970_v59  ;;  %vm10561_vm12 = vcmp.eq.f32.partialorder %v17970_v59, 0.0 }
0x336d   : > { %v14212_v30 = vpop.eup %14211  ;;  %v17993_v26 = vmax.f32 %v10480_v44, 1e-09  ;;  %v10556_v10 = vsel %vm10554_vm5, %v10555_v60, %v10553_v34  ;;  %v10402_v25 = vpop.xlane.xlu1 %10401  ;;  %v12127_v27 = vld [vmem:[%s18335_s20 + $0x158] sm:$0xff] }
0x336e   : > { %v10440_v4 = vpop.xlane.xlu0 %10439  ;;  %v10702_v57 = vmul.f32 %v12123_v56, %v10556_v10  ;;  %v10537_v31 = vmul.f32 %v14212_v30, %v17921_v15  ;;  %10911 = vperm.xlu0 %13825, %v10728_v3   ;;  %10931 = vperm.xlu1 %13826, %v10732_v28   ;;  %v10643_v19 = vmul.f32 %v10627_v1, %v10402_v25  ;;  %v12115_v1 = vld [vmem:[%s18335_s20 + $0xf8] sm:$0xff] }
0x336f   : > { %14217 = vrsqrt.f32 %v17993_v26  ;;  %v10478_v32 = vsub.f32 %v10440_v4, %v10462_v58  ;;  %v10467_v0 = vmul.f32 %v10402_v25, %v10402_v25  ;;  %vm10580_vm13 = vcmp.eq.f32.partialorder %v17993_v26, inf }
0x3370   : > { %v10539_v62 = vsel %vm10538_vm7, %v17921_v15, %v10537_v31  ;;  %v10735_v24 = vadd.f32 %v12139_v11, %v10702_v57  ;;  %v12137_v15 = vld [vmem:[%s18335_s20 + $0x1a8] sm:$0xff]  ;;  %vm10582_vm14 = vcmp.eq.f32.partialorder %v17993_v26, 0.0  ;;  %v10583_v17 = vand.u32 2147483648, %v17993_v26  ;;  %v12112_v57 = vld [vmem:[%s18335_s20 + $0xe0] sm:$0xff] }
0x3371   : > { %v18017_v61 = vmax.f32 %v10478_v32, 1e-09  ;;  %v10542_v20 = vsel %vm10540_vm8, %v10541_v7, %v10539_v62  ;;  %v14214_v39 = vpop.eup %14213  ;;  %v10398_v50 = vpop.xlane.xlu1 %10397  ;;  %v10676_v28 = vadd.f32 %v12114_v51, %v10643_v19  ;;  %v10626_v11 = vld [vmem:[%s18335_s20 + $0x68] sm:$0xff]  ;;  %v12128_v51 = vld [vmem:[%s18335_s20 + $0x160] sm:$0xff] }
0x3372   : > { %v10446_v63 = vpop.xlane.xlu0 %10445  ;;  %v10700_v49 = vmul.f32 %v12121_v18, %v10542_v20  ;;  %v10465_v5 = vmul.f32 %v10398_v50, %v10398_v50  ;;  %10807 = vperm.xlu0 %13825, %v10671_v29   ;;  %v10572_v52 = vmul.f32 %v14214_v39, %v17952_v6  ;;  %10946 = vperm.xlu1 %13826, %v10735_v24   ;;  %v12125_v20 = vld [vmem:[%s18335_s20 + $0x148] sm:$0xff] }
0x3373   : > { %14219 = vrsqrt.f32 %v18017_v61  ;;  %v10641_v10 = vmul.f32 %v10625_v33, %v10398_v50  ;;  %vm10566_vm15 = vcmp.eq.f32.partialorder %v18017_v61, inf  ;;  %v10569_v24 = vand.u32 2147483648, %v18017_v61 }
0x3374   : > { %v10481_v37 = vsub.f32 %v10446_v63, %v10465_v5  ;;  %v10733_v13 = vadd.f32 %v12137_v15, %v10700_v49  ;;  %v10574_v41 = vsel %vm10573_vm9, %v17952_v6, %v10572_v52  ;;  %v12124_v6 = vld [vmem:[%s18335_s20 + $0x140] sm:$0xff]  ;;  %vm10568_vm0 = vcmp.eq.f32.partialorder %v18017_v61, 0.0  ;;  %v10628_v52 = vld [vmem:[%s18335_s20 + $0x78] sm:$0xff] }
0x3375   : > { %v14216_v53 = vpop.eup %14215  ;;  %v18038_v46 = vpop.xlane.xlu1 %10403  ;;  %v10577_v55 = vsel %vm10575_vm10, %v10576_v48, %v10574_v41  ;;  %v10674_v39 = vadd.f32 %v12112_v57, %v10641_v10  ;;  %v12141_v48 = vld [vmem:[%s18335_s20 + $0x1c8] sm:$0xff]  ;;  %v12131_v10 = vld [vmem:[%s18335_s20 + $0x178] sm:$0xff] }
0x3376   : > { %v10448_v42 = vpop.xlane.xlu0 %10447  ;;  %v10558_v43 = vmul.f32 %v14216_v53, %v17970_v59  ;;  %v18044_v38 = vmax.f32 %v10481_v37, 1e-09  ;;  %10812 = vperm.xlu0 %13825, %v10672_v47   ;;  %v10705_v40 = vmul.f32 %v12126_v45, %v10577_v55  ;;  %10936 = vperm.xlu1 %13826, %v10733_v13   ;;  %v10468_v2 = vmul.f32 %v18038_v46, %v18038_v46  ;;  %v12113_v47 = vld [vmem:[%s18335_s20 + $0xe8] sm:$0xff] }
0x3378   : > { %v10560_v35 = vsel %vm10559_vm11, %v17970_v59, %v10558_v43  ;;  %14221 = vrsqrt.f32 %v18044_v38  ;;  %v10738_v9 = vadd.f32 %v12142_v14, %v10705_v40  ;;  %v12140_v59 = vld [vmem:[%s18335_s20 + $0x1c0] sm:$0xff]  ;;  %vm10587_vm1 = vcmp.eq.f32.partialorder %v18044_v38, inf  ;;  %v12130_v43 = vld [vmem:[%s18335_s20 + $0x170] sm:$0xff] }
0x3379   : > { %v14218_v12 = vpop.eup %14217  ;;  %v10563_v44 = vsel %vm10561_vm12, %v10562_v54, %v10560_v35  ;;  %v10400_v60 = vpop.xlane.xlu1 %10399  ;;  %v10590_v40 = vand.u32 2147483648, %v18044_v38  ;;  %vm10589_vm4 = vcmp.eq.f32.partialorder %v18044_v38, 0.0  ;;  %v12146_v35 = vld [vmem:[%s18335_s20 + $0x1f0] sm:$0xff] }
0x337a   : > { %v10450_v56 = vpop.xlane.xlu0 %10449  ;;  %v10703_v58 = vmul.f32 %v12124_v6, %v10563_v44  ;;  %v10579_v3 = vmul.f32 %v14218_v12, %v17993_v26  ;;  %v10466_v34 = vmul.f32 %v10400_v60, %v10400_v60  ;;  %10817 = vperm.xlu0 %13825, %v10673_v16   ;;  %10961 = vperm.xlu1 %13826, %v10738_v9  }
0x337b   : > { %v10483_v30 = vsub.f32 %v10450_v56, %v10467_v0  ;;  %v10642_v50 = vmul.f32 %v10626_v11, %v10400_v60 }
0x337c   : > { %v10581_v25 = vsel %vm10580_vm13, %v17993_v26, %v10579_v3  ;;  %v10482_v31 = vsub.f32 %v10448_v42, %v10466_v34  ;;  %v10736_v7 = vadd.f32 %v12140_v59, %v10703_v58  ;;  %v12143_v26 = vld [vmem:[%s18335_s20 + $0x1d8] sm:$0xff]  ;;  %v12129_v59 = vld [vmem:[%s18335_s20 + $0x168] sm:$0xff] }
0x337d   : > { %v14220_v4 = vpop.eup %14219  ;;  %v10499_v32 = vmax.f32 %v10483_v30, 1e-09  ;;  %v10584_v18 = vsel %vm10582_vm14, %v10583_v17, %v10581_v25  ;;  %v10452_v22 = vpop.xlane.xlu1 %10451  ;;  %v10675_v53 = vadd.f32 %v12113_v47, %v10642_v50 }
0x337e   : > { %v10706_v62 = vmul.f32 %v12127_v27, %v10584_v18  ;;  %v10565_v23 = vmul.f32 %v14220_v4, %v18017_v61  ;;  %v10498_v36 = vmax.f32 %v10482_v31, 1e-09  ;;  %v10484_v29 = vsub.f32 %v10452_v22, %v10468_v2  ;;  %10832 = vperm.xlu0 %13825, %v10676_v28   ;;  %10951 = vperm.xlu1 %13826, %v10736_v7   ;;  %v12145_v27 = vld [vmem:[%s18335_s20 + $0x1e8] sm:$0xff]  ;;  %v12147_v4 = vld [vmem:[%s18335_s20 + $0x1f8] sm:$0xff] }
0x337f   : > { %14223 = vrsqrt.f32 %v10499_v32  ;;  %vm10601_vm2 = vcmp.eq.f32.partialorder %v10499_v32, inf  ;;  %vm10603_vm3 = vcmp.eq.f32.partialorder %v10499_v32, 0.0 }
0x3380   : > { %v10567_v63 = vsel %vm10566_vm15, %v18017_v61, %v10565_v23  ;;  %14225 = vrsqrt.f32 %v10498_v36  ;;  %v10500_v49 = vmax.f32 %v10484_v29, 1e-09  ;;  %v10739_v15 = vadd.f32 %v12143_v26, %v10706_v62  ;;  %v10745_v23 = vld [vmem:[%s18419_s25 + $0x8] sm:$0xff]  ;;  %v10744_v29 = vld [vmem:[%s18419_s25] sm:$0xff] }
0x3381   : > { %v10570_v5 = vsel %vm10568_vm0, %v10569_v24, %v10567_v63  ;;  %v10644_v61 = vmul.f32 %v10628_v52, %v18038_v46  ;;  %v10604_v46 = vand.u32 2147483648, %v10499_v32  ;;  %vm10594_vm5 = vcmp.eq.f32.partialorder %v10498_v36, inf  ;;  %v10746_v63 = vld [vmem:[%s18419_s25 + $0x10] sm:$0xff] }
0x3382   : > { %v10704_v21 = vmul.f32 %v12125_v20, %v10570_v5  ;;  %v14222_v45 = vpop.eup %14221  ;;  %14227 = vrsqrt.f32 %v10500_v49  ;;  %10822 = vperm.xlu0 %13825, %v10674_v39   ;;  %10966 = vperm.xlu1 %13826, %v10739_v15   ;;  %v10597_v44 = vand.u32 2147483648, %v10498_v36  ;;  %vm10596_vm7 = vcmp.eq.f32.partialorder %v10498_v36, 0.0  ;;  %v10894_v5 = vld [vmem:[%s18420_s3 + $0x8] sm:$0xff] }
0x3383   : > { %v10586_v37 = vmul.f32 %v14222_v45, %v18044_v38  ;;  %v10677_v41 = vadd.f32 %v12115_v1, %v10644_v61  ;;  %vm10608_vm8 = vcmp.eq.f32.partialorder %v10500_v49, inf  ;;  %v10611_v34 = vand.u32 2147483648, %v10500_v49  ;;  %v10747_v45 = vld [vmem:[%s18419_s25 + $0x18] sm:$0xff] }
0x3384   : > { %v10737_v8 = vadd.f32 %v12141_v48, %v10704_v21  ;;  %vm10610_vm9 = vcmp.eq.f32.partialorder %v10500_v49, 0.0  ;;  %v10893_v48 = vld [vmem:[%s18420_s3] sm:$0xff] }
0x3385   : > { %v10588_v55 = vsel %vm10587_vm1, %v18044_v38, %v10586_v37  ;;  %v12144_v38 = vld [vmem:[%s18335_s20 + $0x1e0] sm:$0xff]  ;;  %v10749_v37 = vld [vmem:[%s18419_s25 + $0x28] sm:$0xff] }
0x3386   : > { %10827 = vperm.xlu0 %13825, %v10675_v53   ;;  %10956 = vperm.xlu1 %13826, %v10737_v8   ;;  %v10591_v12 = vsel %vm10589_vm4, %v10590_v40, %v10588_v55  ;;  %v10748_v53 = vld [vmem:[%s18419_s25 + $0x20] sm:$0xff] }
0x3387   : > { %v10707_v56 = vmul.f32 %v12128_v51, %v10591_v12 }
0x3389   : > { %v14224_v13 = vpop.eup %14223  ;;  %v10740_v30 = vadd.f32 %v12144_v38, %v10707_v56 }
0x338a   : > { %v10600_v42 = vmul.f32 %v14224_v13, %v10499_v32  ;;  %v14226_v14 = vpop.eup %14225  ;;  %10837 = vperm.xlu0 %13825, %v10677_v41   ;;  %v10895_v13 = vld [vmem:[%s18420_s3 + $0x10] sm:$0xff] }
0x338b   : > { %v10593_v6 = vmul.f32 %v14226_v14, %v10498_v36 }
0x338c   : > { %v10602_v54 = vsel %vm10601_vm2, %v10499_v32, %v10600_v42  ;;  %v14228_v16 = vpop.eup %14227 }
0x338d   : > { %v10605_v19 = vsel %vm10603_vm3, %v10604_v46, %v10602_v54  ;;  %v10595_v33 = vsel %vm10594_vm5, %v10498_v36, %v10593_v6  ;;  %v10607_v9 = vmul.f32 %v14228_v16, %v10500_v49 }
0x338e   : > { %v10709_v0 = vmul.f32 %v12130_v43, %v10605_v19  ;;  %v10598_v58 = vsel %vm10596_vm7, %v10597_v44, %v10595_v33 }
0x338f   : > { %v10609_v3 = vsel %vm10608_vm8, %v10500_v49, %v10607_v9  ;;  %v10708_v17 = vmul.f32 %v12129_v59, %v10598_v58  ;;  %v10750_v9 = vld [vmem:[%s18419_s25 + $0x30] sm:$0xff] }
0x3390   : > { %v10742_v60 = vadd.f32 %v12146_v35, %v10709_v0  ;;  %v10612_v28 = vsel %vm10610_vm9, %v10611_v34, %v10609_v3  ;;  %v10896_v35 = vld [vmem:[%s18420_s3 + $0x18] sm:$0xff]  ;;  %v10897_v3 = vld [vmem:[%s18420_s3 + $0x20] sm:$0xff] }
0x3391   : > { %v10741_v2 = vadd.f32 %v12145_v27, %v10708_v17  ;;  %v10710_v25 = vmul.f32 %v12131_v10, %v10612_v28  ;;  %v10751_v27 = vld [vmem:[%s18419_s25 + $0x38] sm:$0xff]  ;;  %v10752_v10 = vld [vmem:[%s18419_s25 + $0x40] sm:$0xff] }
0x3392   : > { %10981 = vperm.xlu1 %13826, %v10742_v60  }
0x3393   : > { %v10743_v57 = vadd.f32 %v12147_v4, %v10710_v25 }
0x3396   : > { %10971 = vperm.xlu1 %13826, %v10740_v30  }
0x339a   : > { %10976 = vperm.xlu1 %13826, %v10741_v2   ;;  %v10898_v2 = vld [vmem:[%s18420_s3 + $0x28] sm:$0xff] }
0x339e   : > { %10986 = vperm.xlu1 %13826, %v10743_v57  }
0x33c1   : > { %v10773_v32 = vpop.permute.xlu1 %10772 }
0x33c2   : > { %v10842_v52 = vmul.f32 %v10773_v32, %v10746_v63 }
0x33c4   : > { %v10859_v42 = vsel %vm4157_vm6, %v10842_v52, 0.0 }
0x33c5   : > { %v10763_v11 = vpop.permute.xlu0 %10762  ;;  %v10778_v18 = vpop.permute.xlu1 %10777 }
0x33c6   : > { %v10840_v39 = vmul.f32 %v10763_v11, %v10744_v29  ;;  %v10843_v55 = vmul.f32 %v10778_v18, %v10747_v45  ;;  %v10753_v11 = vld [vmem:[%s18419_s25 + $0x48] sm:$0xff] }
0x33c8   : > { %v10856_v47 = vsel %vm4157_vm6, %v10840_v39, 0.0  ;;  %v10861_v51 = vsel %vm4157_vm6, %v10843_v55, 0.0 }
0x33c9   : > { %v10768_v62 = vpop.permute.xlu1 %10767 }
0x33ca   : > { %v10841_v24 = vmul.f32 %v10768_v62, %v10745_v23 }
0x33cc   : > { %v10857_v49 = vsel %vm4157_vm6, %v10841_v24, 0.0 }
0x33cd   : > { %v10858_v61 = vadd.f32 %v10857_v49, %v10856_v47 }
0x33cf   : > { %v10860_v43 = vadd.f32 %v10859_v42, %v10858_v61 }
0x33d1   : > { %v10793_v31 = vpop.permute.xlu0 %10792  ;;  %v10862_v44 = vadd.f32 %v10861_v51, %v10860_v43 }
0x33d2   : > { %v10846_v30 = vmul.f32 %v10793_v31, %v10750_v9 }
0x33d4   : > { %v10867_v32 = vsel %vm4157_vm6, %v10846_v30, 0.0 }
0x33d5   : > { %v10783_v7 = vpop.permute.xlu0 %10782 }
0x33d6   : > { %v10844_v14 = vmul.f32 %v10783_v7, %v10748_v53 }
0x33d8   : > { %v10863_v0 = vsel %vm4157_vm6, %v10844_v14, 0.0  ;;  %v10757_v14 = vld [vmem:[%s18419_s25 + $0x68] sm:$0xff] }
0x33d9   : > { %v10798_v22 = vpop.permute.xlu0 %10797  ;;  %v10864_v59 = vadd.f32 %v10863_v0, %v10862_v44 }
0x33da   : > { %v10847_v7 = vmul.f32 %v10798_v22, %v10751_v27  ;;  %v10755_v22 = vld [vmem:[%s18419_s25 + $0x58] sm:$0xff]  ;;  %v10903_v27 = vld [vmem:[%s18420_s3 + $0x50] sm:$0xff] }
0x33dd   : > { %v10788_v26 = vpop.permute.xlu0 %10787 }
0x33de   : > { %v10845_v54 = vmul.f32 %v10788_v26, %v10749_v37  ;;  %v10900_v37 = vld [vmem:[%s18420_s3 + $0x38] sm:$0xff] }
0x33e0   : > { %v10865_v60 = vsel %vm4157_vm6, %v10845_v54, 0.0 }
0x33e1   : > { %v10927_v36 = vpop.permute.xlu1 %10926  ;;  %v10866_v28 = vadd.f32 %v10865_v60, %v10864_v59  ;;  %v10758_v60 = vld [vmem:[%s18419_s25 + $0x70] sm:$0xff] }
0x33e2   : > { %v10992_v56 = vmul.f32 %v10927_v36, %v10896_v35  ;;  %v10754_v36 = vld [vmem:[%s18419_s25 + $0x50] sm:$0xff]  ;;  %v10902_v35 = vld [vmem:[%s18420_s3 + $0x48] sm:$0xff] }
0x33e3   : > { %v10868_v23 = vadd.f32 %v10867_v32, %v10866_v28 }
0x33e4   : > { %v11010_v25 = vsel %vm4157_vm6, %v10992_v56, 0.0 }
0x33e5   : > { %v10803_v20 = vpop.permute.xlu0 %10802  ;;  %v10917_v50 = vpop.permute.xlu1 %10916 }
0x33e6   : > { %v10990_v8 = vmul.f32 %v10917_v50, %v10894_v5  ;;  %v10848_v18 = vmul.f32 %v10803_v20, %v10752_v10  ;;  %v10899_v50 = vld [vmem:[%s18420_s3 + $0x30] sm:$0xff]  ;;  %v10869_v20 = vsel %vm4157_vm6, %v10847_v7, 0.0 }
0x33e7   : > { %v10870_v47 = vadd.f32 %v10869_v20, %v10868_v23 }
0x33e8   : > { %v11006_v6 = vsel %vm4157_vm6, %v10990_v8, 0.0  ;;  %v10871_v49 = vsel %vm4157_vm6, %v10848_v18, 0.0 }
0x33e9   : > { %v10922_v15 = vpop.permute.xlu0 %10921  ;;  %v18146_v21 = vpop.permute.xlu1 %10941 }
0x33ea   : > { %v10991_v16 = vmul.f32 %v10922_v15, %v10895_v13  ;;  %v10995_v45 = vmul.f32 %v18146_v21, %v10899_v50  ;;  %v10901_v21 = vld [vmem:[%s18420_s3 + $0x40] sm:$0xff]  ;;  %v10907_v50 = vld [vmem:[%s18420_s3 + $0x70] sm:$0xff] }
0x33ec   : > { %v11008_v38 = vsel %vm4157_vm6, %v10991_v16, 0.0  ;;  %v11016_v43 = vsel %vm4157_vm6, %v10995_v45, 0.0  ;;  %v10908_v45 = vld [vmem:[%s18420_s3 + $0x78] sm:$0xff] }
0x33ed   : > { %v10912_v1 = vpop.permute.xlu0 %10911  ;;  %v10932_v46 = vpop.permute.xlu1 %10931 }
0x33ee   : > { %v10989_v41 = vmul.f32 %v10912_v1, %v10893_v48  ;;  %v10993_v4 = vmul.f32 %v10932_v46, %v10897_v3  ;;  %v10756_v48 = vld [vmem:[%s18419_s25 + $0x60] sm:$0xff]  ;;  %v10872_v1 = vadd.f32 %v10871_v49, %v10870_v47  ;;  %v10759_v3 = vld [vmem:[%s18419_s25 + $0x78] sm:$0xff] }
0x33f0   : > { %v11005_v40 = vsel %vm4157_vm6, %v10989_v41, 0.0  ;;  %v11012_v29 = vsel %vm4157_vm6, %v10993_v4, 0.0 }
0x33f1   : > { %v10808_v19 = vpop.permute.xlu0 %10807  ;;  %v11007_v12 = vadd.f32 %v11006_v6, %v11005_v40  ;;  %v10947_v33 = vpop.permute.xlu1 %10946 }
0x33f2   : > { %v10849_v24 = vmul.f32 %v10808_v19, %v10753_v11  ;;  %v10996_v40 = vmul.f32 %v10947_v33, %v10900_v37  ;;  %v10904_v11 = vld [vmem:[%s18420_s3 + $0x58] sm:$0xff] }
0x33f3   : > { %v11009_v34 = vadd.f32 %v11008_v38, %v11007_v12 }
0x33f4   : > { %v10873_v61 = vsel %vm4157_vm6, %v10849_v24, 0.0  ;;  %v11018_v33 = vsel %vm4157_vm6, %v10996_v40, 0.0 }
0x33f5   : > { %v10813_v58 = vpop.permute.xlu0 %10812  ;;  %v10937_v17 = vpop.permute.xlu1 %10936  ;;  %v11011_v31 = vadd.f32 %v11010_v25, %v11009_v34  ;;  %v10874_v46 = vadd.f32 %v10873_v61, %v10872_v1 }
0x33f6   : > { %v10994_v62 = vmul.f32 %v10937_v17, %v10898_v2  ;;  %v10850_v5 = vmul.f32 %v10813_v58, %v10754_v36 }
0x33f7   : > { %v11013_v63 = vadd.f32 %v11012_v29, %v11011_v31 }
0x33f8   : > { %v11014_v15 = vsel %vm4157_vm6, %v10994_v62, 0.0  ;;  %v10875_v41 = vsel %vm4157_vm6, %v10850_v5, 0.0  ;;  %v10905_v62 = vld [vmem:[%s18420_s3 + $0x60] sm:$0xff] }
0x33f9   : > { %v10818_v57 = vpop.permute.xlu0 %10817  ;;  %v10962_v26 = vpop.permute.xlu1 %10961  ;;  %v11015_v13 = vadd.f32 %v11014_v15, %v11013_v63  ;;  %v10876_v19 = vadd.f32 %v10875_v41, %v10874_v46  ;;  %v10906_v63 = vld [vmem:[%s18420_s3 + $0x68] sm:$0xff]  ;;  %s18271_s3 = scalar_lea.hbm %s18424_s0, %s12148_s6 }
0x33fa   : > { %v10851_v53 = vmul.f32 %v10818_v57, %v10755_v22  ;;  %v10999_v4 = vmul.f32 %v10962_v26, %v10903_v27 }
0x33fb   : > { %v11017_v16 = vadd.f32 %v11016_v43, %v11015_v13 }
0x33fc   : > { %v10877_v54 = vsel %vm4157_vm6, %v10851_v53, 0.0  ;;  %v11024_v23 = vsel %vm4157_vm6, %v10999_v4, 0.0 }
0x33fd   : > { %v10833_v39 = vpop.permute.xlu0 %10832  ;;  %v10952_v52 = vpop.permute.xlu1 %10951  ;;  %v10878_v44 = vadd.f32 %v10877_v54, %v10876_v19  ;;  %v11019_v58 = vadd.f32 %v11018_v33, %v11017_v16 }
0x33fe   : > { %v10997_v51 = vmul.f32 %v10952_v52, %v10901_v21  ;;  %v10854_v17 = vmul.f32 %v10833_v39, %v10758_v60 }
0x3400   : > { %v11020_v30 = vsel %vm4157_vm6, %v10997_v51, 0.0  ;;  %v10883_v57 = vsel %vm4157_vm6, %v10854_v17, 0.0 }
0x3401   : > { %v10823_v8 = vpop.permute.xlu0 %10822  ;;  %v10967_v42 = vpop.permute.xlu1 %10966  ;;  %v11021_v25 = vadd.f32 %v11020_v30, %v11019_v58 }
0x3402   : > { %v10852_v55 = vmul.f32 %v10823_v8, %v10756_v48  ;;  %v11000_v36 = vmul.f32 %v10967_v42, %v10904_v11 }
0x3404   : > { %v10879_v0 = vsel %vm4157_vm6, %v10852_v55, 0.0  ;;  %v11026_v22 = vsel %vm4157_vm6, %v11000_v36, 0.0 }
0x3405   : > { %v10828_v6 = vpop.permute.xlu0 %10827  ;;  %v10957_v9 = vpop.permute.xlu1 %10956  ;;  %v10880_v59 = vadd.f32 %v10879_v0, %v10878_v44 }
0x3406   : > { %v10853_v12 = vmul.f32 %v10828_v6, %v10757_v14  ;;  %v10998_v56 = vmul.f32 %v10957_v9, %v10902_v35 }
0x3408   : > { %v10881_v38 = vsel %vm4157_vm6, %v10853_v12, 0.0  ;;  %v11022_v10 = vsel %vm4157_vm6, %v10998_v56, 0.0  ;;  %v11043_v12 = vld [vmem:[%s18423_s8] sm:$0x1]  ;;  %s14250_s8 = scalar_lea.vmem %s14249_s1, 32 }
0x3409   : > { %v10838_v34 = vpop.permute.xlu0 %10837  ;;  %v10882_v28 = vadd.f32 %v10881_v38, %v10880_v59  ;;  %v11023_v31 = vadd.f32 %v11022_v10, %v11021_v25  ;;  %p14252_p1 = scmp.lt.s32.totalorder %s14250_s8, %s14244_s27 }
0x340a   : > { %v10855_v2 = vmul.f32 %v10838_v34, %v10759_v3 }
0x340b   : > { %v10884_v32 = vadd.f32 %v10883_v57, %v10882_v28  ;;  %v11025_v29 = vadd.f32 %v11024_v23, %v11023_v31  ;;  %p14253_p2 = por %p14252_p1, %p14251_p0 }
0x340c   : > { %v10885_v18 = vsel %vm4157_vm6, %v10855_v2, 0.0 }
0x340d   : > { %v10886_v26 = vadd.f32 %v10885_v18, %v10884_v32  ;;  %v11027_v15 = vadd.f32 %v11026_v22, %v11025_v29  ;;  %p14254_p3 = pnand %p14253_p2, %p14247_p13 }
0x340f   : > { %v10887_v49 = vrot.slane %v10886_v26, 4 }
0x3411   : > { %v10982_v7 = vpop.permute.xlu1 %10981  ;;  %v10888_v53 = vadd.f32 %v10887_v49, %v10886_v26 }
0x3412   : > { %v11003_v52 = vmul.f32 %v10982_v7, %v10907_v50 }
0x3413   : > { %v10889_v55 = vrot.slane %v10888_v53, 2 }
0x3414   : > { %v11032_v37 = vsel %vm4157_vm6, %v11003_v52, 0.0 }
0x3415   : > { %v10972_v24 = vpop.permute.xlu1 %10971  ;;  %v10890_v21 = vadd.f32 %v10889_v55, %v10888_v53 }
0x3416   : > { %v11001_v39 = vmul.f32 %v10972_v24, %v10905_v62 }
0x3417   : > { %v10891_v54 = vrot.slane %v10890_v21, 1 }
0x3418   : > { %v11028_v20 = vsel %vm4157_vm6, %v11001_v39, 0.0 }
0x3419   : > { %v10977_v5 = vpop.permute.xlu1 %10976  ;;  %v11029_v48 = vadd.f32 %v11028_v20, %v11027_v15  ;;  %v10892_v19 = vadd.f32 %v10891_v54, %v10890_v21 }
0x341a   : > { %v11002_v47 = vmul.f32 %v10977_v5, %v10906_v63 }
0x341c   : > { %v11030_v61 = vsel %vm4157_vm6, %v11002_v47, 0.0 }
0x341d   : > { %v11031_v8 = vadd.f32 %v11030_v61, %v11029_v48  ;;  %v10987_v1 = vpop.permute.xlu1 %10986 }
0x341e   : > { %v11004_v13 = vmul.f32 %v10987_v1, %v10908_v45 }
0x341f   : > { %v11033_v41 = vadd.f32 %v11032_v37, %v11031_v8 }
0x3420   : > { %v11034_v42 = vsel %vm4157_vm6, %v11004_v13, 0.0  ;;  %vm11045_vm6 = vcmask 253952  }
0x3421   : > { %v11035_v14 = vadd.f32 %v11034_v42, %v11033_v41 }
0x3423   : > { %v11036_v46 = vrot.slane %v11035_v14, 4 }
0x3425   : > { %v11037_v43 = vadd.f32 %v11036_v46, %v11035_v14 }
0x3427   : > { %v11038_v40 = vrot.slane %v11037_v43, 2 }
0x3429   : > { %v11039_v6 = vadd.f32 %v11038_v40, %v11037_v43 }
0x342b   : > { %v11040_v16 = vrot.slane %v11039_v6, 1 }
0x342d   : > { %v11041_v35 = vadd.f32 %v11040_v16, %v11039_v6 }
0x342f   : > { %v11042_v51 = vadd.f32 %v11041_v35, %v10892_v19 }
0x3431   : > { %v11044_v0 = vadd.f32 %v11043_v12, %v11042_v51 }
0x3433   : > { %11046 = vst.msk [vmem:[%s1006_s29] sm:$0x1] %vm11045_vm6, %v11044_v0 }
0x3434   : > { %14257 = shalt.err (!%p14254_p3)
}
0x3435   : > { %s14258_s30 = scalar_lea.hbm %s18271_s3, 16  ;;  %s14262_s21 = scalar_lea.hbm %s18424_s0, 32 }
0x3436   : > { %p14259_p4 = scmp.ne.s32.totalorder %s18271_s3, %s14258_s30  ;;  %p14263_p9 = scmp.lt.u32.totalorder %s18271_s3, %s18424_s0 }
0x3437   : > { %p14264_p5 = scmp.lt.u32.totalorder %s14262_s21, %s14258_s30  ;;  %p14266_p12 = scmp.lt.u32.totalorder %s14258_s30, %s18271_s3 }
0x3438   : > { %p14260_p7 = pnand %p14259_p4, %p18425_p11 }
0x3439   : > { %p14265_p10 = por %p14264_p5, %p14263_p9 }
0x343a   : > { %p14261_p8 = pneg %p14260_p7 }
0x343b   : > { %p14267_p13 = por %p14266_p12, %p14265_p10 }
0x343d   : > { %p14268_p0 = pnand %p14267_p13, %p14261_p8 }
0x343f   : > { %14271 = shalt.err (!%p14268_p0)
}
0x3440   : > { %13608 = dma.vmem_to_hbm [thread:$0]  (%p18425_p11), %s18273_s4, 16, %s18271_s3, %s11053_s5  }
0x3441 PF: > { %s18426_s27 = sld [smem:[#allocation9_spill]]  ;;  %s18427_s1 = sld [smem:[#allocation16_spill]] }
0x3447   : > { %s11088_s6 = sand.u32 1, %s18426_s27   ;;  %p18429_p1 = scmp.ne.s32.totalorder %s18427_s1, 0 }
0x3448   : > { %s11089_s29 = scalar_lea.sflag [#allocation3], %s11088_s6 }
0x3449   : > { %p13615_p2 = pnand %p11169_p6, %p18429_p1 }
0x344b   : > { %14293 = dma.done.wait (!%p13615_p2), %s11089_s29, 16  }
0x344c   : > { %14295 = vsyncadd (!%p13615_p2), %s11089_s29, 4294967280  ;;  %s18430_s30 = sld [smem:[#allocation13_spill]]  ;;  %s18431_s29 = sld [smem:[#allocation10_spill]] }
0x344d   : > { %s18432_s2 = sld [smem:[#allocation11_spill]]  ;;  %s18433_s6 = sld [smem:[#allocation14_spill]] }
0x3452   : > { %p37_p3 = scmp.ge.s32.totalorder %s18430_s30, 4  }
0x3454   :  { %39 = sbr.rel (!%p37_p3) target bundleno = 19 (0x13), region = 351 }
0x345b   :  { %11093 = vsyncpa [#allocation3], 1 }
0x345c   :  { %11095 = vsyncpa [#allocation3 + $0x1], 1 }
0x345d   :  { %11096 = vsyncpa [#allocation4], 1 }
0x345e   :  { %11098 = vsyncpa [#allocation4 + $0x1], 1 }

</bundles_post_ra>
